<compile_context>
chip_gen: v5e
topology: v5e:2x2
jax: 0.10.0
libtpu: 0.0.40
codegen_flags: <defaults>
</compile_context>

<pallas_src>
import jax
import jax.numpy as jnp
from jax.experimental import pallas as pl
from jax.experimental.pallas import tpu as pltpu


# Layer configuration matching Autoencoder.__init__ / forward (logical dims).
_LAYER_DIMS = [
    (784, 1000), (1000, 500), (500, 250), (250, 2),      # encoder
    (2, 250), (250, 500), (500, 1000), (1000, 784),      # decoder
]
_ACTS = ["tanh", "tanh", "tanh", "none",                  # encode()
         "tanh", "tanh", "tanh", "sigmoid"]               # decode()

_N_LAYERS = len(_LAYER_DIMS)
_IN_DIM = _LAYER_DIMS[0][0]     # 784
_OUT_DIM = _LAYER_DIMS[-1][1]   # 784


def _pad128(n):
    """Round an internal feature dim up to a multiple of 128 (lane-dense)."""
    return max(128, ((n + 127) // 128) * 128)


def _round_up(n, m):
    return ((n + m - 1) // m) * m


def _default_tile_m():
    """Preferred batch tile: MXU-native row count (256 on v6e/v7x, 128 on v5e)."""
    try:
        kind = jax.devices()[0].device_kind.lower()
    except Exception:
        kind = ""
    return 128 if "v5" in kind else 256


def _fused_ae_kernel(x_ref, *refs):
    """All 8 layers fused: h_i = act_i(h_{i-1} @ W_i + b_i), kept in vregs."""
    o_ref = refs[-1]
    p_refs = refs[:-1]                      # w1, b1, ..., w8, b8 (VMEM-resident)
    h = x_ref[...].astype(jnp.bfloat16)     # (TM, 784) bf16
    for i, act in enumerate(_ACTS):
        w = p_refs[2 * i][...]              # (d_in_p, d_out_p) bf16
        b = p_refs[2 * i + 1][...]          # (1, d_out_p) f32
        y = jnp.dot(h, w, preferred_element_type=jnp.float32) + b   # MXU, f32 acc
        if act == "tanh":
            h = jnp.tanh(y).astype(jnp.bfloat16)                    # EUP, bf16 carry
        elif act == "sigmoid":
            # sigmoid = 1 / (1 + exp(-y)); exp + approx reciprocal on the EUP.
            h = pl.reciprocal(1.0 + jnp.exp(-y), approx=True)        # f32 (last layer)
        else:                                                        # bottleneck: identity
            h = y.astype(jnp.bfloat16)
    o_ref[...] = h.astype(o_ref.dtype)


def init_params(key):
    """PyTorch-style init U(-1/sqrt(fan_in), 1/sqrt(fan_in)), then bf16 + pad.

    Weights are pre-transposed to (in, out) so the kernel computes x @ W + b.
    Internal dims are zero-padded to multiples of 128 (padding rows/cols are
    exactly zero so the math is unchanged); the 784 input/output dims are kept
    exact so no wrapper-side pad/slice is needed.
    """
    params = []
    for li, (d_in, d_out) in enumerate(_LAYER_DIMS):
        key, kw, kb = jax.random.split(key, 3)
        bound = float(1.0 / (d_in ** 0.5))
        w = jax.random.uniform(kw, (d_in, d_out), jnp.float32, -bound, bound)
        b = jax.random.uniform(kb, (d_out,), jnp.float32, -bound, bound)
        d_in_p = d_in if li == 0 else _pad128(d_in)
        d_out_p = d_out if li == _N_LAYERS - 1 else _pad128(d_out)
        w_p = jnp.zeros((d_in_p, d_out_p), jnp.bfloat16)
        w_p = w_p.at[:d_in, :d_out].set(w.astype(jnp.bfloat16))
        b_p = jnp.zeros((1, d_out_p), jnp.float32).at[0, :d_out].set(b)
        params.append((w_p, b_p))
    return params, key


def autoencoder_forward(params, x, *, tile_m=None):
    """Fused forward pass, one pallas_call with a batch grid.  x: (B, 784) f32."""
    B, D = x.shape
    assert D == _IN_DIM
    if tile_m is None:
        tile_m = _default_tile_m()
    tm = max(8, min(_round_up(tile_m, 8), _round_up(B, 8)))
    Bp = _round_up(B, tm)
    if Bp != B:  # rare: batch not tile-aligned — zero-pad extra rows only.
        x = jnp.pad(x, ((0, Bp - B), (0, 0)))

    flat = []
    in_specs = [pl.BlockSpec((tm, _IN_DIM), lambda i: (i, 0))]
    for w, b in params:
        flat += [w, b]
        in_specs.append(pl.BlockSpec(w.shape, lambda i: (0, 0)))  # VMEM-resident
        in_specs.append(pl.BlockSpec(b.shape, lambda i: (0, 0)))
    out_spec = pl.BlockSpec((tm, _OUT_DIM), lambda i: (i, 0))

    # VMEM budget: (possibly double-buffered) weights + double-buffered IO tiles
    # + headroom for in-kernel intermediates.  ~20-24 MiB at TM=256.
    param_bytes = sum(int(t.size) * t.dtype.itemsize for t in flat)
    io_bytes = 2 * 2 * tm * _IN_DIM * 4
    vmem_limit = int(min(48 << 20, 2 * param_bytes + io_bytes + (8 << 20)))

    out = pl.pallas_call(
        _fused_ae_kernel,
        out_shape=jax.ShapeDtypeStruct((Bp, _OUT_DIM), jnp.float32),
        grid=(pl.cdiv(Bp, tm),),
        in_specs=in_specs,
        out_specs=out_spec,
        compiler_params=pltpu.CompilerParams(
            dimension_semantics=("parallel",),
            vmem_limit_bytes=vmem_limit),
    )(x, *flat)
    return out[:B] if Bp != B else out


def autoencoder_forward_ref(params, x):
    """Pure-JAX reference using the same padded bf16 weights / bf16 carry."""
    h = x.astype(jnp.bfloat16)
    for (w, b), act in zip(params, _ACTS):
        y = jnp.dot(h, w, preferred_element_type=jnp.float32) + b
        if act == "tanh":
            h = jnp.tanh(y).astype(jnp.bfloat16)
        elif act == "sigmoid":
            h = jax.nn.sigmoid(y)
        else:
            h = y.astype(jnp.bfloat16)
    return h


if __name__ == "__main__":
    key = jax.random.PRNGKey(0)
    params, key = init_params(key)
    key, kx = jax.random.split(key)
    B = 32
    x = jax.random.uniform(kx, (B, _IN_DIM), jnp.float32)  # batch of "MNIST" rows

    # Small tile (tm=8) so the batch grid (4 steps) is exercised at demo scale;
    # the default picks the MXU-native 256/128 tile on real workloads.
    fwd = jax.jit(lambda p, xx: autoencoder_forward(p, xx, tile_m=8))
    out = fwd(params, x)
    jax.block_until_ready(out)

    ref = autoencoder_forward_ref(params, x)
    assert out.shape == (B, _OUT_DIM)
    # bf16 matmuls + approx reciprocal in the final sigmoid -> loose tolerance.
    assert jnp.allclose(out, ref, atol=2e-2, rtol=2e-2), "mismatch vs reference"

    print("KERNEL_OK")
</pallas_src>

<mosaic_0001>
module attributes {stable_mosaic.version = 11 : i64} {
  func.func @_fused_ae_kernel(%arg0: i32, %arg1: memref<8x784xf32, #tpu.memory_space<vmem>>, %arg2: memref<784x1024xbf16, #tpu.memory_space<vmem>>, %arg3: memref<1x1024xf32, #tpu.memory_space<vmem>>, %arg4: memref<1024x512xbf16, #tpu.memory_space<vmem>>, %arg5: memref<1x512xf32, #tpu.memory_space<vmem>>, %arg6: memref<512x256xbf16, #tpu.memory_space<vmem>>, %arg7: memref<1x256xf32, #tpu.memory_space<vmem>>, %arg8: memref<256x128xbf16, #tpu.memory_space<vmem>>, %arg9: memref<1x128xf32, #tpu.memory_space<vmem>>, %arg10: memref<128x256xbf16, #tpu.memory_space<vmem>>, %arg11: memref<1x256xf32, #tpu.memory_space<vmem>>, %arg12: memref<256x512xbf16, #tpu.memory_space<vmem>>, %arg13: memref<1x512xf32, #tpu.memory_space<vmem>>, %arg14: memref<512x1024xbf16, #tpu.memory_space<vmem>>, %arg15: memref<1x1024xf32, #tpu.memory_space<vmem>>, %arg16: memref<1024x784xbf16, #tpu.memory_space<vmem>>, %arg17: memref<1x784xf32, #tpu.memory_space<vmem>>, %arg18: memref<8x784xf32, #tpu.memory_space<vmem>>) attributes {dimension_semantics = [#tpu.dimension_semantics<parallel>], iteration_bounds = array<i64: 4>, scalar_prefetch = 0 : i64, scratch_operands = 0 : i64, tpu.core_type = #tpu.core_type<tc>, window_params = [{transform_indices = @transform_0, window_bounds = array<i64: 8, 784>}, {pipeline_mode = #tpu.pipeline_mode<synchronous>, transform_indices = @transform_1, window_bounds = array<i64: 784, 1024>}, {pipeline_mode = #tpu.pipeline_mode<synchronous>, transform_indices = @transform_2, window_bounds = array<i64: 1, 1024>}, {pipeline_mode = #tpu.pipeline_mode<synchronous>, transform_indices = @transform_3, window_bounds = array<i64: 1024, 512>}, {pipeline_mode = #tpu.pipeline_mode<synchronous>, transform_indices = @transform_4, window_bounds = array<i64: 1, 512>}, {pipeline_mode = #tpu.pipeline_mode<synchronous>, transform_indices = @transform_5, window_bounds = array<i64: 512, 256>}, {pipeline_mode = #tpu.pipeline_mode<synchronous>, transform_indices = @transform_6, window_bounds = array<i64: 1, 256>}, {pipeline_mode = #tpu.pipeline_mode<synchronous>, transform_indices = @transform_7, window_bounds = array<i64: 256, 128>}, {pipeline_mode = #tpu.pipeline_mode<synchronous>, transform_indices = @transform_8, window_bounds = array<i64: 1, 128>}, {pipeline_mode = #tpu.pipeline_mode<synchronous>, transform_indices = @transform_9, window_bounds = array<i64: 128, 256>}, {pipeline_mode = #tpu.pipeline_mode<synchronous>, transform_indices = @transform_10, window_bounds = array<i64: 1, 256>}, {pipeline_mode = #tpu.pipeline_mode<synchronous>, transform_indices = @transform_11, window_bounds = array<i64: 256, 512>}, {pipeline_mode = #tpu.pipeline_mode<synchronous>, transform_indices = @transform_12, window_bounds = array<i64: 1, 512>}, {pipeline_mode = #tpu.pipeline_mode<synchronous>, transform_indices = @transform_13, window_bounds = array<i64: 512, 1024>}, {pipeline_mode = #tpu.pipeline_mode<synchronous>, transform_indices = @transform_14, window_bounds = array<i64: 1, 1024>}, {pipeline_mode = #tpu.pipeline_mode<synchronous>, transform_indices = @transform_15, window_bounds = array<i64: 1024, 784>}, {pipeline_mode = #tpu.pipeline_mode<synchronous>, transform_indices = @transform_16, window_bounds = array<i64: 1, 784>}, {transform_indices = @transform_17, window_bounds = array<i64: 8, 784>}]} {
    %c0 = arith.constant 0 : index
    %c0_0 = arith.constant 0 : index
    %0 = vector.load %arg1[%c0, %c0_0] : memref<8x784xf32, #tpu.memory_space<vmem>>, vector<8x784xf32>
    %1 = arith.truncf %0 : vector<8x784xf32> to vector<8x784xbf16>
    %c0_1 = arith.constant 0 : index
    %c0_2 = arith.constant 0 : index
    %2 = vector.load %arg2[%c0_1, %c0_2] : memref<784x1024xbf16, #tpu.memory_space<vmem>>, vector<784x1024xbf16>
    %c0_3 = arith.constant 0 : index
    %c0_4 = arith.constant 0 : index
    %3 = vector.load %arg3[%c0_3, %c0_4] : memref<1x1024xf32, #tpu.memory_space<vmem>>, vector<1x1024xf32>
    %cst = arith.constant dense<0.000000e+00> : vector<8x1024xf32>
    %4 = tpu.matmul %1, %2, %cst {dimension_numbers = #tpu.dot_dimension_numbers<[1], [0], [0], [1], [0, 0, 1, 1], [], []>} : vector<8x784xbf16>, vector<784x1024xbf16>, vector<8x1024xf32> -> vector<8x1024xf32>
    %5 = vector.broadcast %3 : vector<1x1024xf32> to vector<8x1024xf32>
    %6 = arith.addf %4, %5 : vector<8x1024xf32>
    %7 = math.tanh %6 : vector<8x1024xf32>
    %8 = arith.truncf %7 : vector<8x1024xf32> to vector<8x1024xbf16>
    %c0_5 = arith.constant 0 : index
    %c0_6 = arith.constant 0 : index
    %9 = vector.load %arg4[%c0_5, %c0_6] : memref<1024x512xbf16, #tpu.memory_space<vmem>>, vector<1024x512xbf16>
    %c0_7 = arith.constant 0 : index
    %c0_8 = arith.constant 0 : index
    %10 = vector.load %arg5[%c0_7, %c0_8] : memref<1x512xf32, #tpu.memory_space<vmem>>, vector<1x512xf32>
    %cst_9 = arith.constant dense<0.000000e+00> : vector<8x512xf32>
    %11 = tpu.matmul %8, %9, %cst_9 {dimension_numbers = #tpu.dot_dimension_numbers<[1], [0], [0], [1], [0, 0, 1, 1], [], []>} : vector<8x1024xbf16>, vector<1024x512xbf16>, vector<8x512xf32> -> vector<8x512xf32>
    %12 = vector.broadcast %10 : vector<1x512xf32> to vector<8x512xf32>
    %13 = arith.addf %11, %12 : vector<8x512xf32>
    %14 = math.tanh %13 : vector<8x512xf32>
    %15 = arith.truncf %14 : vector<8x512xf32> to vector<8x512xbf16>
    %c0_10 = arith.constant 0 : index
    %c0_11 = arith.constant 0 : index
    %16 = vector.load %arg6[%c0_10, %c0_11] : memref<512x256xbf16, #tpu.memory_space<vmem>>, vector<512x256xbf16>
    %c0_12 = arith.constant 0 : index
    %c0_13 = arith.constant 0 : index
    %17 = vector.load %arg7[%c0_12, %c0_13] : memref<1x256xf32, #tpu.memory_space<vmem>>, vector<1x256xf32>
    %cst_14 = arith.constant dense<0.000000e+00> : vector<8x256xf32>
    %18 = tpu.matmul %15, %16, %cst_14 {dimension_numbers = #tpu.dot_dimension_numbers<[1], [0], [0], [1], [0, 0, 1, 1], [], []>} : vector<8x512xbf16>, vector<512x256xbf16>, vector<8x256xf32> -> vector<8x256xf32>
    %19 = vector.broadcast %17 : vector<1x256xf32> to vector<8x256xf32>
    %20 = arith.addf %18, %19 : vector<8x256xf32>
    %21 = math.tanh %20 : vector<8x256xf32>
    %22 = arith.truncf %21 : vector<8x256xf32> to vector<8x256xbf16>
    %c0_15 = arith.constant 0 : index
    %c0_16 = arith.constant 0 : index
    %23 = vector.load %arg8[%c0_15, %c0_16] : memref<256x128xbf16, #tpu.memory_space<vmem>>, vector<256x128xbf16>
    %c0_17 = arith.constant 0 : index
    %c0_18 = arith.constant 0 : index
    %24 = vector.load %arg9[%c0_17, %c0_18] : memref<1x128xf32, #tpu.memory_space<vmem>>, vector<1x128xf32>
    %cst_19 = arith.constant dense<0.000000e+00> : vector<8x128xf32>
    %25 = tpu.matmul %22, %23, %cst_19 {dimension_numbers = #tpu.dot_dimension_numbers<[1], [0], [0], [1], [0, 0, 1, 1], [], []>} : vector<8x256xbf16>, vector<256x128xbf16>, vector<8x128xf32> -> vector<8x128xf32>
    %26 = vector.broadcast %24 : vector<1x128xf32> to vector<8x128xf32>
    %27 = arith.addf %25, %26 : vector<8x128xf32>
    %28 = arith.truncf %27 : vector<8x128xf32> to vector<8x128xbf16>
    %c0_20 = arith.constant 0 : index
    %c0_21 = arith.constant 0 : index
    %29 = vector.load %arg10[%c0_20, %c0_21] : memref<128x256xbf16, #tpu.memory_space<vmem>>, vector<128x256xbf16>
    %c0_22 = arith.constant 0 : index
    %c0_23 = arith.constant 0 : index
    %30 = vector.load %arg11[%c0_22, %c0_23] : memref<1x256xf32, #tpu.memory_space<vmem>>, vector<1x256xf32>
    %cst_24 = arith.constant dense<0.000000e+00> : vector<8x256xf32>
    %31 = tpu.matmul %28, %29, %cst_24 {dimension_numbers = #tpu.dot_dimension_numbers<[1], [0], [0], [1], [0, 0, 1, 1], [], []>} : vector<8x128xbf16>, vector<128x256xbf16>, vector<8x256xf32> -> vector<8x256xf32>
    %32 = vector.broadcast %30 : vector<1x256xf32> to vector<8x256xf32>
    %33 = arith.addf %31, %32 : vector<8x256xf32>
    %34 = math.tanh %33 : vector<8x256xf32>
    %35 = arith.truncf %34 : vector<8x256xf32> to vector<8x256xbf16>
    %c0_25 = arith.constant 0 : index
    %c0_26 = arith.constant 0 : index
    %36 = vector.load %arg12[%c0_25, %c0_26] : memref<256x512xbf16, #tpu.memory_space<vmem>>, vector<256x512xbf16>
    %c0_27 = arith.constant 0 : index
    %c0_28 = arith.constant 0 : index
    %37 = vector.load %arg13[%c0_27, %c0_28] : memref<1x512xf32, #tpu.memory_space<vmem>>, vector<1x512xf32>
    %cst_29 = arith.constant dense<0.000000e+00> : vector<8x512xf32>
    %38 = tpu.matmul %35, %36, %cst_29 {dimension_numbers = #tpu.dot_dimension_numbers<[1], [0], [0], [1], [0, 0, 1, 1], [], []>} : vector<8x256xbf16>, vector<256x512xbf16>, vector<8x512xf32> -> vector<8x512xf32>
    %39 = vector.broadcast %37 : vector<1x512xf32> to vector<8x512xf32>
    %40 = arith.addf %38, %39 : vector<8x512xf32>
    %41 = math.tanh %40 : vector<8x512xf32>
    %42 = arith.truncf %41 : vector<8x512xf32> to vector<8x512xbf16>
    %c0_30 = arith.constant 0 : index
    %c0_31 = arith.constant 0 : index
    %43 = vector.load %arg14[%c0_30, %c0_31] : memref<512x1024xbf16, #tpu.memory_space<vmem>>, vector<512x1024xbf16>
    %c0_32 = arith.constant 0 : index
    %c0_33 = arith.constant 0 : index
    %44 = vector.load %arg15[%c0_32, %c0_33] : memref<1x1024xf32, #tpu.memory_space<vmem>>, vector<1x1024xf32>
    %cst_34 = arith.constant dense<0.000000e+00> : vector<8x1024xf32>
    %45 = tpu.matmul %42, %43, %cst_34 {dimension_numbers = #tpu.dot_dimension_numbers<[1], [0], [0], [1], [0, 0, 1, 1], [], []>} : vector<8x512xbf16>, vector<512x1024xbf16>, vector<8x1024xf32> -> vector<8x1024xf32>
    %46 = vector.broadcast %44 : vector<1x1024xf32> to vector<8x1024xf32>
    %47 = arith.addf %45, %46 : vector<8x1024xf32>
    %48 = math.tanh %47 : vector<8x1024xf32>
    %49 = arith.truncf %48 : vector<8x1024xf32> to vector<8x1024xbf16>
    %c0_35 = arith.constant 0 : index
    %c0_36 = arith.constant 0 : index
    %50 = vector.load %arg16[%c0_35, %c0_36] : memref<1024x784xbf16, #tpu.memory_space<vmem>>, vector<1024x784xbf16>
    %c0_37 = arith.constant 0 : index
    %c0_38 = arith.constant 0 : index
    %51 = vector.load %arg17[%c0_37, %c0_38] : memref<1x784xf32, #tpu.memory_space<vmem>>, vector<1x784xf32>
    %cst_39 = arith.constant dense<0.000000e+00> : vector<8x784xf32>
    %52 = tpu.matmul %49, %50, %cst_39 {dimension_numbers = #tpu.dot_dimension_numbers<[1], [0], [0], [1], [0, 0, 1, 1], [], []>} : vector<8x1024xbf16>, vector<1024x784xbf16>, vector<8x784xf32> -> vector<8x784xf32>
    %53 = vector.broadcast %51 : vector<1x784xf32> to vector<8x784xf32>
    %54 = arith.addf %52, %53 : vector<8x784xf32>
    %cst_40 = arith.constant 0.000000e+00 : f32
    %55 = vector.broadcast %cst_40 : f32 to vector<8x784xf32>
    %56 = arith.subf %55, %54 : vector<8x784xf32>
    %57 = math.exp %56 : vector<8x784xf32>
    %cst_41 = arith.constant 1.000000e+00 : f32
    %58 = vector.broadcast %cst_41 : f32 to vector<8x784xf32>
    %59 = arith.addf %58, %57 : vector<8x784xf32>
    %60 = tpu.reciprocal %59 {approx = true} : vector<8x784xf32> -> vector<8x784xf32>
    %c0_42 = arith.constant 0 : index
    %c0_43 = arith.constant 0 : index
    %61 = vector.load %arg18[%c0_42, %c0_43] : memref<8x784xf32, #tpu.memory_space<vmem>>, vector<8x784xf32>
    tpu.vector_store %arg18[%c0_42, %c0_43], %60 {strides = array<i32>} : memref<8x784xf32, #tpu.memory_space<vmem>>, vector<8x784xf32>,
    return
  }
  func.func @transform_0(%arg0: i32) -> (i32, i32) {
    %c0_i32 = arith.constant 0 : i32
    %c0_i32_0 = arith.constant 0 : i32
    return %arg0, %c0_i32 : i32, i32
  }
  func.func @transform_1(%arg0: i32) -> (i32, i32) {
    %c0_i32 = arith.constant 0 : i32
    %c0_i32_0 = arith.constant 0 : i32
    %c0_i32_1 = arith.constant 0 : i32
    return %c0_i32, %c0_i32_0 : i32, i32
  }
  func.func @transform_2(%arg0: i32) -> (i32, i32) {
    %c0_i32 = arith.constant 0 : i32
    %c0_i32_0 = arith.constant 0 : i32
    %c0_i32_1 = arith.constant 0 : i32
    return %c0_i32, %c0_i32_0 : i32, i32
  }
  func.func @transform_3(%arg0: i32) -> (i32, i32) {
    %c0_i32 = arith.constant 0 : i32
    %c0_i32_0 = arith.constant 0 : i32
    %c0_i32_1 = arith.constant 0 : i32
    return %c0_i32, %c0_i32_0 : i32, i32
  }
  func.func @transform_4(%arg0: i32) -> (i32, i32) {
    %c0_i32 = arith.constant 0 : i32
    %c0_i32_0 = arith.constant 0 : i32
    %c0_i32_1 = arith.constant 0 : i32
    return %c0_i32, %c0_i32_0 : i32, i32
  }
  func.func @transform_5(%arg0: i32) -> (i32, i32) {
    %c0_i32 = arith.constant 0 : i32
    %c0_i32_0 = arith.constant 0 : i32
    %c0_i32_1 = arith.constant 0 : i32
    return %c0_i32, %c0_i32_0 : i32, i32
  }
  func.func @transform_6(%arg0: i32) -> (i32, i32) {
    %c0_i32 = arith.constant 0 : i32
    %c0_i32_0 = arith.constant 0 : i32
    %c0_i32_1 = arith.constant 0 : i32
    return %c0_i32, %c0_i32_0 : i32, i32
  }
  func.func @transform_7(%arg0: i32) -> (i32, i32) {
    %c0_i32 = arith.constant 0 : i32
    %c0_i32_0 = arith.constant 0 : i32
    %c0_i32_1 = arith.constant 0 : i32
    return %c0_i32, %c0_i32_0 : i32, i32
  }
  func.func @transform_8(%arg0: i32) -> (i32, i32) {
    %c0_i32 = arith.constant 0 : i32
    %c0_i32_0 = arith.constant 0 : i32
    %c0_i32_1 = arith.constant 0 : i32
    return %c0_i32, %c0_i32_0 : i32, i32
  }
  func.func @transform_9(%arg0: i32) -> (i32, i32) {
    %c0_i32 = arith.constant 0 : i32
    %c0_i32_0 = arith.constant 0 : i32
    %c0_i32_1 = arith.constant 0 : i32
    return %c0_i32, %c0_i32_0 : i32, i32
  }
  func.func @transform_10(%arg0: i32) -> (i32, i32) {
    %c0_i32 = arith.constant 0 : i32
    %c0_i32_0 = arith.constant 0 : i32
    %c0_i32_1 = arith.constant 0 : i32
    return %c0_i32, %c0_i32_0 : i32, i32
  }
  func.func @transform_11(%arg0: i32) -> (i32, i32) {
    %c0_i32 = arith.constant 0 : i32
    %c0_i32_0 = arith.constant 0 : i32
    %c0_i32_1 = arith.constant 0 : i32
    return %c0_i32, %c0_i32_0 : i32, i32
  }
  func.func @transform_12(%arg0: i32) -> (i32, i32) {
    %c0_i32 = arith.constant 0 : i32
    %c0_i32_0 = arith.constant 0 : i32
    %c0_i32_1 = arith.constant 0 : i32
    return %c0_i32, %c0_i32_0 : i32, i32
  }
  func.func @transform_13(%arg0: i32) -> (i32, i32) {
    %c0_i32 = arith.constant 0 : i32
    %c0_i32_0 = arith.constant 0 : i32
    %c0_i32_1 = arith.constant 0 : i32
    return %c0_i32, %c0_i32_0 : i32, i32
  }
  func.func @transform_14(%arg0: i32) -> (i32, i32) {
    %c0_i32 = arith.constant 0 : i32
    %c0_i32_0 = arith.constant 0 : i32
    %c0_i32_1 = arith.constant 0 : i32
    return %c0_i32, %c0_i32_0 : i32, i32
  }
  func.func @transform_15(%arg0: i32) -> (i32, i32) {
    %c0_i32 = arith.constant 0 : i32
    %c0_i32_0 = arith.constant 0 : i32
    %c0_i32_1 = arith.constant 0 : i32
    return %c0_i32, %c0_i32_0 : i32, i32
  }
  func.func @transform_16(%arg0: i32) -> (i32, i32) {
    %c0_i32 = arith.constant 0 : i32
    %c0_i32_0 = arith.constant 0 : i32
    %c0_i32_1 = arith.constant 0 : i32
    return %c0_i32, %c0_i32_0 : i32, i32
  }
  func.func @transform_17(%arg0: i32) -> (i32, i32) {
    %c0_i32 = arith.constant 0 : i32
    %c0_i32_0 = arith.constant 0 : i32
    return %arg0, %c0_i32 : i32, i32
  }
}

</mosaic_0001>

<bundles_post_ra>
// kernel: _lambda_.1
= control target key start
LH: loop header
LB: loop body
LE: loop exit
PB: predicated region body
PF: predicated region fallthrough
CT: control target
= control target key end

     0   :  { %s28916_s0 = inlined_call_operand.vmem [shape: f32[32,784], index: 0, kind: input, shape index: {}]   ;;  %s28917_s1 = inlined_call_operand.vmem [shape: bf16[784,1024], index: 1, kind: input, shape index: {}]   ;;  %s28918_s2 = inlined_call_operand.vmem [shape: f32[1,1024], index: 2, kind: input, shape index: {}]   ;;  %s28919_s3 = inlined_call_operand.vmem [shape: bf16[1024,512], index: 3, kind: input, shape index: {}]   ;;  %s28920_s4 = inlined_call_operand.vmem [shape: f32[1,512], index: 4, kind: input, shape index: {}]   ;;  %s28921_s5 = inlined_call_operand.vmem [shape: bf16[512,256], index: 5, kind: input, shape index: {}]   ;;  %s28922_s6 = inlined_call_operand.hbm [shape: f32[1,256], index: 6, kind: input, shape index: {}]   ;;  %s28923_s7 = inlined_call_operand.vmem [shape: bf16[256,128], index: 7, kind: input, shape index: {}]   ;;  %s28924_s8 = inlined_call_operand.vmem [shape: f32[1,128], index: 8, kind: input, shape index: {}]   ;;  %s28925_s9 = inlined_call_operand.vmem [shape: bf16[128,256], index: 9, kind: input, shape index: {}]   ;;  %s28926_s10 = inlined_call_operand.hbm [shape: f32[1,256], index: 10, kind: input, shape index: {}]   ;;  %s28927_s11 = inlined_call_operand.vmem [shape: bf16[256,512], index: 11, kind: input, shape index: {}]   ;;  %s28928_s12 = inlined_call_operand.vmem [shape: f32[1,512], index: 12, kind: input, shape index: {}]   ;;  %s28929_s13 = inlined_call_operand.hbm [shape: bf16[512,1024], index: 13, kind: input, shape index: {}]   ;;  %s28930_s14 = inlined_call_operand.vmem [shape: f32[1,1024], index: 14, kind: input, shape index: {}]   ;;  %s28931_s15 = inlined_call_operand.vmem [shape: bf16[1024,784], index: 15, kind: input, shape index: {}]   ;;  %s28932_s16 = inlined_call_operand.vmem [shape: f32[1,784], index: 16, kind: input, shape index: {}]   ;;  %s28933_s17 = inlined_call_operand.hbm [shape: f32[32,784], index: 17, kind: output, shape index: {}]  }
   0x1   :  { %28942 = sst [smem:[#allocation18_spill]] %s28916_s0 }
   0x2   :  { %28943 = sst [smem:[#allocation19_spill]] %s28917_s1 }
   0x3   :  { %28944 = sst [smem:[#allocation20_spill]] %s28922_s6 }
   0x4   :  { %28945 = sst [smem:[#allocation21_spill]] %s28926_s10 }
   0x5   :  { %22 = vsyncpa [#allocation3], 0 }
   0x6   :  { %23 = vsyncpa [#allocation6], 0 }
   0x7   :  { %24 = vsyncpa [#allocation4], 0 }
   0x8   :  { %26 = vsyncpa [#allocation4 + $0x1], 0  ;;  %s20691_s24 = smov 0   ;;  %s20693_s25 = smov 0  }
   0x9   :  { %s20695_s26 = smov 0   ;;  %s20697_s27 = smov 0  }
   0xa LB: > { %28946 = sst [smem:[#allocation12_spill]] %s20582_s24  ;;  %s20712_s28 = sadd.s32 4294967295, %s20594_s27   ;;  %s20594_s27 = sphi %s20697_s27, %s28964_s27   ;;  %s20590_s26 = sphi %s20695_s26, %s28966_s26   ;;  %s20586_s25 = sphi %s20693_s25, %s28968_s25   ;;  %s20582_s24 = sphi %s20691_s24, %s28967_s24  }
   0xb   : > { %28947 = sst [smem:[#allocation13_spill]] %s20590_s26  ;;  %s12686_s29 = sadd.s32 4294967294, %s20594_s27  }
   0xc   : > { %28948 = sst [smem:[#allocation14_spill]] %s20594_s27  ;;  %s20716_s0 = sadd.s32 1, %s20594_s27  }
   0xd   : > { %28949 = sst [smem:[#allocation15_spill]] %s20716_s0  ;;  %s401_s30 = sadd.s32 1, %s20590_s26 }
   0xe   : > { %s398_s18 = ssub.s32 %s20594_s27, %s20716_s0  ;;  %p411_p0 = scmp.ne.s32.totalorder %s20590_s26, %s20586_s25 }
   0xf   : > { %p399_p1 = scmp.eq.s32.totalorder %s398_s18, 0  ;;  %p412_p2 = scmp.eq.s32.totalorder %s20712_s28, 3 }
  0x10   : > { %p417_p3 = scmp.ne.s32.totalorder %s20586_s25, %s20582_s24  ;;  %p418_p4 = scmp.eq.s32.totalorder %s12686_s29, 3 }
  0x11   : > { %s20727_s19 = scalar_select %p399_p1, %s20590_s26, %s401_s30  }
  0x12   : > { %p20729_p5 = por %p412_p2, %p411_p0  ;;  %p20733_p6 = por %p418_p4, %p417_p3 }
  0x13   : > { %28950 = sst [smem:[#allocation16_spill]] %s20727_s19  ;;  %p12687_p7 = scmp.ge.s32.totalorder %s20594_s27, 1 }
  0x14   : > { %s28952_s20 = scalar_select %p20733_p6, 1, 0 }
  0x15   : > { %p425_p8 = scmp.lt.s32.totalorder %s20594_s27, 5  ;;  %p20299_p9 = scmp.eq.s32.totalorder %s20712_s28, 0 }
  0x16   : > { %28953 = sst [smem:[#allocation17_spill]] %s28952_s20  ;;  %s20596_s30 = smov [#allocation5]  }
  0x17   : > { %p20740_p10 = pnand %p12687_p7, %p425_p8  ;;  %s28955_s10 = sld [smem:[#allocation21_spill]] }
  0x18   : > { %s475_s18 = sshll.u32 %s20596_s30, 4  ;;  %s28956_s6 = sld [smem:[#allocation20_spill]]  ;;  %s476_s18 = int_to_ptr.vmem [resolvable:$true] %s475_s18 }
  0x19   : > { %p20285_p11 = pneg %p20740_p10  ;;  %s20597_s24 = smov [#allocation2]  }
  0x1a   : > { %s454_s30 = sshll.u32 %s20597_s24, 4  ;;  %s20598_s26 = smov [#allocation7]   ;;  %s455_s30 = int_to_ptr.vmem [resolvable:$true] %s454_s30 }
  0x1b   : > { %p20754_p12 = pnand %p20299_p9, %p20285_p11  ;;  %s492_s19 = sshll.u32 %s20598_s26, 4  ;;  %s493_s19 = int_to_ptr.vmem [resolvable:$true] %s492_s19 }
  0x1c   : > { %s20600_s27 = smov 32  }
  0x1d   : > { %s473_s29 = sshll.u32 %s28955_s10, 4  ;;  %s490_s10 = sshll.u32 %s28929_s13, 4  ;;  %s474_s29 = int_to_ptr.hbm [resolvable:$true] %s473_s29  ;;  %s491_s10 = int_to_ptr.hbm [resolvable:$true] %s490_s10 }
  0x1e   : > { %s452_s0 = sshll.u32 %s28956_s6, 4  ;;  %s20599_s6 = smov 512   ;;  %s453_s0 = int_to_ptr.hbm [resolvable:$true] %s452_s0 }
  0x1f   : > { %20291 = dma.hbm_to_vmem [thread:$0]  (!%p20754_p12), %s474_s29, 32, %s476_s18, [#allocation6]  }
  0x20   : > { %20288 = dma.hbm_to_vmem [thread:$0]  (!%p20754_p12), %s453_s0, 32, %s455_s30, [#allocation3]  }
  0x21   : > { %20294 = dma.hbm_to_vmem [thread:$0]  (!%p20754_p12), %s491_s10, 32768, %s493_s19, [#allocation6], %s20599_s6, %s20599_s6, %s20600_s27  }
  0x22   : > { %525 = sbr.rel (%p20740_p10) target bundleno = 2410 (0x96a), region = 88 }
  0x27   : > { %20569 = dma.done.wait (%p20299_p9), [#allocation3], 32  }
  0x28   : > { %20571 = vsyncadd (%p20299_p9), [#allocation3], 4294967264 }
  0x29   : > { %20573 = dma.done.wait (%p20299_p9), [#allocation6], 32800  }
  0x2a   : > { %20575 = vsyncadd (%p20299_p9), [#allocation6], 4294934496  ;;  %s28958_s29 = sld [smem:[#allocation19_spill]]  ;;  %p588_p13 = scmp.lt.s32.totalorder %s20712_s28, 3  ;;  %vm2978_vm0 = vcmask 130048  }
  0x2b   : > { %s28959_s0 = sld [smem:[#allocation18_spill]]  ;;  %s28941_s23 = sand.u32 1, %s20586_s25  }
  0x2c   : > { %s20901_s6 = scalar_select %p588_p13, %s20712_s28, 3 }
  0x2d   : > { %s27884_s24 = smul.u32 56, %s28941_s23  ;;  %s20544_s22 = scalar_lea.hbm %s28933_s17, 224 }
  0x2e   : > { %s20269_s18 = smul.u32 56, %s20901_s6 }
  0x2f   : > { %s27952_s23 = scalar_lea.vmem [#allocation8], %s27884_s24  ;;  %s20270_s30 = smul.u32 56, %s20712_s28 }
  0x30   : > { %v12923_v0 = vld [vmem:[%s28958_s29 + $0x1c0] sm:$0xf]  ;;  %s12593_s19 = sshll.u32 %s27952_s23, 4  ;;  %s12594_s19 = int_to_ptr.vmem [resolvable:$true] %s12593_s19 }
  0x31   : > { %v18816_v1 = vld [vmem:[%s28958_s29 + $0x1dc] sm:$0xf0]  ;;  %s20973_s6 = scalar_lea.vmem %s28959_s0, %s20269_s18  ;;  %s12591_s18 = scalar_lea.hbm %s28933_s17, %s20270_s30 }
  0x32   : > { %v13179_v2 = vld [vmem:[%s28958_s29 + $0x3c0] sm:$0xf]  ;;  %v12924_v3 = vor.u32 %v18816_v1, %v12923_v0  ;;  %s12595_s0 = sshll.u32 %s12591_s18, 4  ;;  %s12596_s0 = int_to_ptr.hbm [resolvable:$true] %s12595_s0 }
  0x33   : > { %v18880_v4 = vld [vmem:[%s28958_s29 + $0x3dc] sm:$0xf0]  ;;  %s20538_s27 = sshra.s32 %s12596_s0, 4  ;;  %s20539_s27 = int_to_ptr.hbm [resolvable:$true] %s20538_s27 }
  0x34   : > { %v13435_v5 = vld [vmem:[%s28958_s29 + $0x5c0] sm:$0xf]  ;;  %v13180_v7 = vor.u32 %v18880_v4, %v13179_v2  ;;  %2982 = vmatpush.bf16.msra.mxu0 %v12924_v3  ;;  %s20540_s28 = scalar_lea.hbm %s20539_s27, 56  ;;  %p20545_p3 = scmp.lt.s32.totalorder %s20539_s27, %s28933_s17 }
  0x35   : > { %v18944_v6 = vld [vmem:[%s28958_s29 + $0x5dc] sm:$0xf0]  ;;  %p20541_p0 = scmp.ne.s32.totalorder %s20539_s27, %s20540_s28  ;;  %p20546_p4 = scmp.lt.s32.totalorder %s20544_s22, %s20540_s28 }
  0x36   : > { %v13436_v8 = vor.u32 %v18944_v6, %v13435_v5  ;;  %v13691_v9 = vld [vmem:[%s28958_s29 + $0x7c0] sm:$0xf]  ;;  %2995 = vmatpush.bf16.msra.mxu1 %v13180_v7 }
  0x37   : > { %v19008_v10 = vld [vmem:[%s28958_s29 + $0x7dc] sm:$0xf0]  ;;  %p20542_p1 = pnand %p20541_p0, %p20729_p5  ;;  %p20547_p7 = por %p20546_p4, %p20545_p3 }
  0x38   : > { %v12891_v11 = vld [vmem:[%s28958_s29 + $0x180] sm:$0xf]  ;;  %v13692_v12 = vor.u32 %v19008_v10, %v13691_v9  ;;  %3008 = vmatpush.bf16.msra.mxu2 %v13436_v8 }
  0x39   : > { %v18808_v13 = vld [vmem:[%s28958_s29 + $0x19c] sm:$0xf0]  ;;  %p20543_p2 = pneg %p20542_p1 }
  0x3a   : > { %v13147_v14 = vld [vmem:[%s28958_s29 + $0x380] sm:$0xf]  ;;  %v12892_v16 = vor.u32 %v18808_v13, %v12891_v11  ;;  %3021 = vmatpush.bf16.msra.mxu3 %v13692_v12 }
  0x3b   : > { %v18872_v15 = vld [vmem:[%s28958_s29 + $0x39c] sm:$0xf0]  ;;  %p20548_p8 = pnand %p20547_p7, %p20543_p2 }
  0x3c   : > { %v13148_v17 = vor.u32 %v18872_v15, %v13147_v14  ;;  %v13403_v18 = vld [vmem:[%s28958_s29 + $0x580] sm:$0xf]  ;;  %2983 = vmatpush.bf16.msra.mxu0 %v12892_v16 }
  0x3d   : > { %v18936_v19 = vld [vmem:[%s28958_s29 + $0x59c] sm:$0xf0] }
  0x3e   : > { %v13659_v20 = vld [vmem:[%s28958_s29 + $0x780] sm:$0xf]  ;;  %v13404_v21 = vor.u32 %v18936_v19, %v13403_v18  ;;  %2996 = vmatpush.bf16.msra.mxu1 %v13148_v17 }
  0x3f   : > { %v19000_v22 = vld [vmem:[%s28958_s29 + $0x79c] sm:$0xf0] }
  0x40   : > { %v12859_v23 = vld [vmem:[%s28958_s29 + $0x140] sm:$0xf]  ;;  %v13660_v25 = vor.u32 %v19000_v22, %v13659_v20  ;;  %3009 = vmatpush.bf16.msra.mxu2 %v13404_v21 }
  0x41   : > { %v18800_v24 = vld [vmem:[%s28958_s29 + $0x15c] sm:$0xf0] }
  0x42   : > { %v13115_v26 = vld [vmem:[%s28958_s29 + $0x340] sm:$0xf]  ;;  %v12860_v29 = vor.u32 %v18800_v24, %v12859_v23  ;;  %3022 = vmatpush.bf16.msra.mxu3 %v13660_v25 }
  0x43   : > { %v18864_v27 = vld [vmem:[%s28958_s29 + $0x35c] sm:$0xf0] }
  0x44   : > { %v13371_v28 = vld [vmem:[%s28958_s29 + $0x540] sm:$0xf]  ;;  %v13116_v33 = vor.u32 %v18864_v27, %v13115_v26  ;;  %2984 = vmatpush.bf16.msra.mxu0 %v12860_v29 }
  0x45   : > { %v18928_v30 = vld [vmem:[%s28958_s29 + $0x55c] sm:$0xf0] }
  0x46   : > { %v13627_v31 = vld [vmem:[%s28958_s29 + $0x740] sm:$0xf]  ;;  %v13372_v34 = vor.u32 %v18928_v30, %v13371_v28  ;;  %2997 = vmatpush.bf16.msra.mxu1 %v13116_v33  ;;  %v18812_v33 = vld [vmem:[%s28958_s29 + $0x1c4] sm:$0xf] }
  0x47   : > { %v18992_v32 = vld [vmem:[%s28958_s29 + $0x75c] sm:$0xf0] }
  0x48   : > { %v12827_v35 = vld [vmem:[%s28958_s29 + $0x100] sm:$0xf]  ;;  %v13628_v38 = vor.u32 %v18992_v32, %v13627_v31  ;;  %3010 = vmatpush.bf16.msra.mxu2 %v13372_v34  ;;  %v12925_v34 = vld [vmem:[%s28958_s29 + $0x1e0] sm:$0xf0] }
  0x49   : > { %v18792_v36 = vld [vmem:[%s28958_s29 + $0x11c] sm:$0xf0] }
  0x4a   : > { %v13083_v37 = vld [vmem:[%s28958_s29 + $0x300] sm:$0xf]  ;;  %v12828_v44 = vor.u32 %v18792_v36, %v12827_v35  ;;  %3023 = vmatpush.bf16.msra.mxu3 %v13628_v38  ;;  %v596_v35 = vld [vmem:[%s20973_s6 + $0x10] sm:$0xff] }
  0x4b   : > { %v18856_v39 = vld [vmem:[%s28958_s29 + $0x31c] sm:$0xf0] }
  0x4c   : > { %v13339_v40 = vld [vmem:[%s28958_s29 + $0x500] sm:$0xf]  ;;  %v13084_v45 = vor.u32 %v18856_v39, %v13083_v37  ;;  %2985 = vmatpush.bf16.msra.mxu0 %v12828_v44  ;;  %v13181_v44 = vld [vmem:[%s28958_s29 + $0x3e0] sm:$0xf0] }
  0x4d   : > { %v18920_v41 = vld [vmem:[%s28958_s29 + $0x51c] sm:$0xf0] }
  0x4e   : > { %v13595_v42 = vld [vmem:[%s28958_s29 + $0x700] sm:$0xf]  ;;  %v13340_v46 = vor.u32 %v18920_v41, %v13339_v40  ;;  %2998 = vmatpush.bf16.msra.mxu1 %v13084_v45  ;;  %v597_v45 = vld [vmem:[%s20973_s6 + $0x18] sm:$0xff] }
  0x4f   : > { %v18984_v43 = vld [vmem:[%s28958_s29 + $0x71c] sm:$0xf0] }
  0x50   : > { %v12795_v47 = vld [vmem:[%s28958_s29 + $0xc0] sm:$0xf]  ;;  %v13596_v50 = vor.u32 %v18984_v43, %v13595_v42  ;;  %3011 = vmatpush.bf16.msra.mxu2 %v13340_v46  ;;  %v18876_v43 = vld [vmem:[%s28958_s29 + $0x3c4] sm:$0xf] }
  0x51   : > { %v18784_v48 = vld [vmem:[%s28958_s29 + $0xdc] sm:$0xf0] }
  0x52   : > { %v13051_v49 = vld [vmem:[%s28958_s29 + $0x2c0] sm:$0xf]  ;;  %v12796_v56 = vor.u32 %v18784_v48, %v12795_v47  ;;  %3024 = vmatpush.bf16.msra.mxu3 %v13596_v50  ;;  %v12928_v47 = vor.u32 %v18812_v33, %v12925_v34 }
  0x53   : > { %v18848_v51 = vld [vmem:[%s28958_s29 + $0x2dc] sm:$0xf0] }
  0x54   : > { %v13307_v52 = vld [vmem:[%s28958_s29 + $0x4c0] sm:$0xf]  ;;  %v13052_v57 = vor.u32 %v18848_v51, %v13051_v49  ;;  %2986 = vmatpush.bf16.msra.mxu0 %v12796_v56  ;;  %v21023_v51 = vpack.c.bf16 %v596_v35, %v596_v35  ;;  %v18844_v35 = vld [vmem:[%s28958_s29 + $0x2c4] sm:$0xf] }
  0x55   : > { %v18912_v53 = vld [vmem:[%s28958_s29 + $0x4dc] sm:$0xf0] }
  0x56   : > { %v13563_v54 = vld [vmem:[%s28958_s29 + $0x6c0] sm:$0xf]  ;;  %v13308_v58 = vor.u32 %v18912_v53, %v13307_v52  ;;  %2999 = vmatpush.bf16.msra.mxu1 %v13052_v57  ;;  %v18804_v53 = vld [vmem:[%s28958_s29 + $0x184] sm:$0xf]  ;;  %v21036_v57 = vpack.c.bf16 %v597_v45, %v597_v45 }
  0x57   : > { %v18976_v55 = vld [vmem:[%s28958_s29 + $0x6dc] sm:$0xf0] }
  0x58   : > { %v12763_v59 = vld [vmem:[%s28958_s29 + $0x80] sm:$0xf]  ;;  %v13564_v62 = vor.u32 %v18976_v55, %v13563_v54  ;;  %3012 = vmatpush.bf16.msra.mxu2 %v13308_v58  ;;  %v12893_v54 = vld [vmem:[%s28958_s29 + $0x1a0] sm:$0xf0]  ;;  %v595_v58 = vld [vmem:[%s20973_s6 + $0x8] sm:$0xff] }
  0x59   : > { %v18776_v60 = vld [vmem:[%s28958_s29 + $0x9c] sm:$0xf0] }
  0x5a   : > { %v13019_v61 = vld [vmem:[%s28958_s29 + $0x280] sm:$0xf]  ;;  %v12764_v4 = vor.u32 %v18776_v60, %v12763_v59  ;;  %3025 = vmatpush.bf16.msra.mxu3 %v13564_v62  ;;  %v13184_v59 = vor.u32 %v18876_v43, %v13181_v44  ;;  %v13149_v62 = vld [vmem:[%s28958_s29 + $0x3a0] sm:$0xf0] }
  0x5b   : > { %v18840_v63 = vld [vmem:[%s28958_s29 + $0x29c] sm:$0xf0]  ;;  %v18772_v43 = vld [vmem:[%s28958_s29 + $0x84] sm:$0xf] }
  0x5c   : > { %v13275_v0 = vld [vmem:[%s28958_s29 + $0x480] sm:$0xf]  ;;  %v13020_v5 = vor.u32 %v18840_v63, %v13019_v61  ;;  %2987 = vmatpush.bf16.msra.mxu0 %v12764_v4  ;;  %v18868_v61 = vld [vmem:[%s28958_s29 + $0x384] sm:$0xf] }
  0x5d   : > { %v18904_v1 = vld [vmem:[%s28958_s29 + $0x49c] sm:$0xf0]  ;;  %v12765_v44 = vld [vmem:[%s28958_s29 + $0xa0] sm:$0xf0] }
  0x5e   : > { %v13531_v2 = vld [vmem:[%s28958_s29 + $0x680] sm:$0xf]  ;;  %v13276_v6 = vor.u32 %v18904_v1, %v13275_v0  ;;  %3000 = vmatpush.bf16.msra.mxu1 %v13020_v5  ;;  %v12896_v0 = vor.u32 %v18804_v53, %v12893_v54  ;;  %v18796_v5 = vld [vmem:[%s28958_s29 + $0x144] sm:$0xf] }
  0x5f   : > { %v18968_v3 = vld [vmem:[%s28958_s29 + $0x69c] sm:$0xf0] }
  0x60   : > { %v12731_v7 = vld [vmem:[%s28958_s29 + $0x40] sm:$0xf]  ;;  %v13532_v10 = vor.u32 %v18968_v3, %v13531_v2  ;;  %3013 = vmatpush.bf16.msra.mxu2 %v13276_v6  ;;  %v12861_v6 = vld [vmem:[%s28958_s29 + $0x160] sm:$0xf0] }
  0x61   : > { %v18768_v8 = vld [vmem:[%s28958_s29 + $0x5c] sm:$0xf0] }
  0x62   : > { %v12987_v9 = vld [vmem:[%s28958_s29 + $0x240] sm:$0xf]  ;;  %v12732_v16 = vor.u32 %v18768_v8, %v12731_v7  ;;  %3026 = vmatpush.bf16.msra.mxu3 %v13532_v10  ;;  %v21065_v7 = vpack.c.bf16 %v595_v58, %v595_v58  ;;  %v13152_v8 = vor.u32 %v18868_v61, %v13149_v62  ;;  %v18860_v10 = vld [vmem:[%s28958_s29 + $0x344] sm:$0xf] }
  0x63   : > { %v18832_v11 = vld [vmem:[%s28958_s29 + $0x25c] sm:$0xf0] }
  0x64   : > { %v13243_v12 = vld [vmem:[%s28958_s29 + $0x440] sm:$0xf]  ;;  %v12988_v20 = vor.u32 %v18832_v11, %v12987_v9  ;;  %2988 = vmatpush.bf16.msra.mxu0 %v12732_v16  ;;  %v13117_v11 = vld [vmem:[%s28958_s29 + $0x360] sm:$0xf0] }
  0x65   : > { %v18896_v13 = vld [vmem:[%s28958_s29 + $0x45c] sm:$0xf0] }
  0x66   : > { %v13499_v14 = vld [vmem:[%s28958_s29 + $0x640] sm:$0xf]  ;;  %v13244_v21 = vor.u32 %v18896_v13, %v13243_v12  ;;  %3001 = vmatpush.bf16.msra.mxu1 %v12988_v20  ;;  %v12864_v13 = vor.u32 %v18796_v5, %v12861_v6  ;;  %v13120_v20 = vor.u32 %v18860_v10, %v13117_v11  ;;  %v18940_v10 = vld [vmem:[%s28958_s29 + $0x5c4] sm:$0xf] }
  0x67   : > { %v18960_v15 = vld [vmem:[%s28958_s29 + $0x65c] sm:$0xf0]  ;;  %v13437_v11 = vld [vmem:[%s28958_s29 + $0x5e0] sm:$0xf0] }
  0x68   : > { %v12699_v17 = vld [vmem:[%s28958_s29] sm:$0xf]  ;;  %v13500_v25 = vor.u32 %v18960_v15, %v13499_v14  ;;  %3014 = vmatpush.bf16.msra.mxu2 %v13244_v21 }
  0x69   : > { %v18760_v18 = vld [vmem:[%s28958_s29 + $0x1c] sm:$0xf0] }
  0x6a   : > { %v12955_v19 = vld [vmem:[%s28958_s29 + $0x200] sm:$0xf]  ;;  %v12700_v32 = vor.u32 %v18760_v18, %v12699_v17  ;;  %3027 = vmatpush.bf16.msra.mxu3 %v13500_v25  ;;  %v18788_v18 = vld [vmem:[%s28958_s29 + $0x104] sm:$0xf] }
  0x6b   : > { %v18824_v22 = vld [vmem:[%s28958_s29 + $0x21c] sm:$0xf0] }
  0x6c   : > { %v13211_v23 = vld [vmem:[%s28958_s29 + $0x400] sm:$0xf]  ;;  %v12956_v36 = vor.u32 %v18824_v22, %v12955_v19  ;;  %2989 = vmatpush.bf16.msra.mxu0 %v12700_v32  ;;  %v12829_v19 = vld [vmem:[%s28958_s29 + $0x120] sm:$0xf0]  ;;  %v600_v32 = vld [vmem:[%s20973_s6 + $0x30] sm:$0xff] }
  0x6d   : > { %v18888_v24 = vld [vmem:[%s28958_s29 + $0x41c] sm:$0xf0]  ;;  %v18852_v22 = vld [vmem:[%s28958_s29 + $0x304] sm:$0xf]  ;;  %v12832_v25 = vor.u32 %v18788_v18, %v12829_v19  ;;  %v21142_v45 = vpack.c.bf16 %v600_v32, %v600_v32 }
  0x6e   : > { %v13467_v26 = vld [vmem:[%s28958_s29 + $0x600] sm:$0xf]  ;;  %v13212_v37 = vor.u32 %v18888_v24, %v13211_v23  ;;  %3002 = vmatpush.bf16.msra.mxu1 %v12956_v36  ;;  %v13085_v23 = vld [vmem:[%s28958_s29 + $0x320] sm:$0xf0] }
  0x6f   : > { %v18952_v27 = vld [vmem:[%s28958_s29 + $0x61c] sm:$0xf0]  ;;  %v13088_v33 = vor.u32 %v18852_v22, %v13085_v23  ;;  %v13053_v36 = vld [vmem:[%s28958_s29 + $0x2e0] sm:$0xf0]  ;;  %v599_v23 = vld [vmem:[%s20973_s6 + $0x28] sm:$0xff] }
  0x70   : > { %v13947_v28 = vld [vmem:[%s28958_s29 + $0x9c0] sm:$0xf]  ;;  %v13468_v41 = vor.u32 %v18952_v27, %v13467_v26  ;;  %3015 = vmatpush.bf16.msra.mxu2 %v13212_v37  ;;  %v12957_v22 = vld [vmem:[%s28958_s29 + $0x220] sm:$0xf0] }
  0x71   : > { %v19072_v29 = vld [vmem:[%s28958_s29 + $0x9dc] sm:$0xf0]  ;;  %3003 = vmatmul.bf16.vlgmr.msra.gmra.mxu1 %v21065_v7  ;;  %v18996_v32 = vld [vmem:[%s28958_s29 + $0x784] sm:$0xf] }
  0x72   : > { %v14203_v30 = vld [vmem:[%s28958_s29 + $0xbc0] sm:$0xf]  ;;  %v13948_v42 = vor.u32 %v19072_v29, %v13947_v28  ;;  %3028 = vmatpush.bf16.msra.mxu3 %v13468_v41 }
  0x73   : > { %v19136_v31 = vld [vmem:[%s28958_s29 + $0xbdc] sm:$0xf0]  ;;  %3016 = vmatmul.bf16.vlgmr.msra.gmra.mxu2 %v21023_v51 }
  0x74   : > { %v14235_v38 = vld [vmem:[%s28958_s29 + $0xc00] sm:$0xf]  ;;  %v14204_v46 = vor.u32 %v19136_v31, %v14203_v30  ;;  %3034 = vmatpush.bf16.msrb.mxu0 %v13948_v42  ;;  %v18780_v30 = vld [vmem:[%s28958_s29 + $0xc4] sm:$0xf] }
  0x75   : > { %v19144_v39 = vld [vmem:[%s28958_s29 + $0xc1c] sm:$0xf0]  ;;  %3029 = vmatmul.bf16.vlgmr.msra.gmra.mxu3 %v21036_v57  ;;  %v12797_v31 = vld [vmem:[%s28958_s29 + $0xe0] sm:$0xf0] }
  0x76   : > { %v594_v40 = vld [vmem:[%s20973_s6] sm:$0xff]  ;;  %v14236_v56 = vor.u32 %v19144_v39, %v14235_v38  ;;  %3047 = vmatpush.bf16.msrb.mxu1 %v14204_v46  ;;  %3073 = vmatpush.bf16.msrb.mxu3 %v12928_v47  ;;  %v12800_v38 = vor.u32 %v18780_v30, %v12797_v31  ;;  %v13056_v46 = vor.u32 %v18844_v35, %v13053_v36 }
  0x77   : > { %v13915_v48 = vld [vmem:[%s28958_s29 + $0x980] sm:$0xf]  ;;  %v21034_v55 = vpack.c.bf16 %v594_v40, %v594_v40  ;;  %v13405_v31 = vld [vmem:[%s28958_s29 + $0x5a0] sm:$0xf0]  ;;  %v21240_v35 = vpack.c.bf16 %v599_v23, %v599_v23 }
  0x78   : > { %v19064_v49 = vld [vmem:[%s28958_s29 + $0x99c] sm:$0xf0]  ;;  %3067 = vmatpush.bf16.msrb.mxu2 %v14236_v56  ;;  %v19060_v36 = vld [vmem:[%s28958_s29 + $0x984] sm:$0xf] }
  0x79   : > { %v14171_v50 = vld [vmem:[%s28958_s29 + $0xb80] sm:$0xf]  ;;  %v13916_v60 = vor.u32 %v19064_v49, %v13915_v48  ;;  %2990 = vmatmul.bf16.vlgmr.msra.gmra.mxu0 %v21034_v55  ;;  %v18836_v48 = vld [vmem:[%s28958_s29 + $0x284] sm:$0xf] }
  0x7a   : > { %v19128_v52 = vld [vmem:[%s28958_s29 + $0xb9c] sm:$0xf0]  ;;  %3074 = vmatpush.bf16.msrb.mxu3 %v12896_v0  ;;  %v13021_v49 = vld [vmem:[%s28958_s29 + $0x2a0] sm:$0xf0] }
  0x7b   : > { %v14172_v63 = vor.u32 %v19128_v52, %v14171_v50  ;;  %v13883_v1 = vld [vmem:[%s28958_s29 + $0x940] sm:$0xf]  ;;  %3035 = vmatpush.bf16.msrb.mxu0 %v13916_v60  ;;  %v12768_v52 = vor.u32 %v18772_v43, %v12765_v44  ;;  %v12733_v60 = vld [vmem:[%s28958_s29 + $0x60] sm:$0xf0]  ;;  %v13024_v61 = vor.u32 %v18836_v48, %v13021_v49 }
  0x7c   : > { %v19056_v2 = vld [vmem:[%s28958_s29 + $0x95c] sm:$0xf0]  ;;  %3086 = vmatpush.bf16.msra.mxu2 %v13184_v59  ;;  %v18764_v59 = vld [vmem:[%s28958_s29 + $0x44] sm:$0xf] }
  0x7d   : > { %v14139_v3 = vld [vmem:[%s28958_s29 + $0xb40] sm:$0xf]  ;;  %v13884_v9 = vor.u32 %v19056_v2, %v13883_v1  ;;  %3048 = vmatpush.bf16.msrb.mxu1 %v14172_v63  ;;  %v18828_v63 = vld [vmem:[%s28958_s29 + $0x244] sm:$0xf] }
  0x7e   : > { %v19120_v4 = vld [vmem:[%s28958_s29 + $0xb5c] sm:$0xf0]  ;;  %3075 = vmatpush.bf16.msrb.mxu3 %v12864_v13  ;;  %v12989_v0 = vld [vmem:[%s28958_s29 + $0x260] sm:$0xf0] }
  0x7f   : > { %v14140_v12 = vor.u32 %v19120_v4, %v14139_v3  ;;  %v13851_v14 = vld [vmem:[%s28958_s29 + $0x900] sm:$0xf]  ;;  %3036 = vmatpush.bf16.msrb.mxu0 %v13884_v9  ;;  %v12736_v3 = vor.u32 %v18764_v59, %v12733_v60  ;;  %v12701_v9 = vld [vmem:[%s28958_s29 + $0x20] sm:$0xf0] }
  0x80   : > { %v19048_v15 = vld [vmem:[%s28958_s29 + $0x91c] sm:$0xf0]  ;;  %3087 = vmatpush.bf16.msra.mxu2 %v13152_v8  ;;  %v18756_v8 = vld [vmem:[%s28958_s29 + $0x4] sm:$0xf] }
  0x81   : > { %v14107_v16 = vld [vmem:[%s28958_s29 + $0xb00] sm:$0xf]  ;;  %v13852_v21 = vor.u32 %v19048_v15, %v13851_v14  ;;  %3049 = vmatpush.bf16.msrb.mxu1 %v14140_v12  ;;  %v19004_v12 = vld [vmem:[%s28958_s29 + $0x7c4] sm:$0xf]  ;;  %v12992_v14 = vor.u32 %v18828_v63, %v12989_v0 }
  0x82   : > { %v19112_v17 = vld [vmem:[%s28958_s29 + $0xb1c] sm:$0xf0]  ;;  %3076 = vmatpush.bf16.msrb.mxu3 %v12832_v25  ;;  %v13693_v13 = vld [vmem:[%s28958_s29 + $0x7e0] sm:$0xf0] }
  0x83   : > { %v14108_v24 = vor.u32 %v19112_v17, %v14107_v16  ;;  %v13819_v26 = vld [vmem:[%s28958_s29 + $0x8c0] sm:$0xf]  ;;  %3037 = vmatpush.bf16.msrb.mxu0 %v13852_v21  ;;  %14265 = vmatmul.msk.bf16.vlgmr.msrb.gmra.mxu2 %vm2978_vm0, %v21142_v45  ;;  %v19068_v16 = vld [vmem:[%s28958_s29 + $0x9c4] sm:$0xf]  ;;  %v13696_v25 = vor.u32 %v19004_v12, %v13693_v13 }
  0x84   : > { %v19040_v27 = vld [vmem:[%s28958_s29 + $0x8dc] sm:$0xf0]  ;;  %3088 = vmatpush.bf16.msra.mxu2 %v13120_v20  ;;  %v13949_v17 = vld [vmem:[%s28958_s29 + $0x9e0] sm:$0xf0]  ;;  %v12704_v20 = vor.u32 %v18756_v8, %v12701_v9 }
  0x85   : > { %v14075_v28 = vld [vmem:[%s28958_s29 + $0xac0] sm:$0xf]  ;;  %v13820_v34 = vor.u32 %v19040_v27, %v13819_v26  ;;  %3050 = vmatpush.bf16.msrb.mxu1 %v14108_v24  ;;  %v18820_v21 = vld [vmem:[%s28958_s29 + $0x204] sm:$0xf]  ;;  %v13440_v24 = vor.u32 %v18940_v10, %v13437_v11 }
  0x86   : > { %v19104_v29 = vld [vmem:[%s28958_s29 + $0xadc] sm:$0xf0]  ;;  %3077 = vmatpush.bf16.msrb.mxu3 %v12800_v38  ;;  %v19132_v26 = vld [vmem:[%s28958_s29 + $0xbc4] sm:$0xf] }
  0x87   : > { %v14076_v37 = vor.u32 %v19104_v29, %v14075_v28  ;;  %v13787_v39 = vld [vmem:[%s28958_s29 + $0x880] sm:$0xf]  ;;  %3038 = vmatpush.bf16.msrb.mxu0 %v13820_v34  ;;  %v14205_v27 = vld [vmem:[%s28958_s29 + $0xbe0] sm:$0xf0]  ;;  %v13952_v29 = vor.u32 %v19068_v16, %v13949_v17  ;;  %v12960_v34 = vor.u32 %v18820_v21, %v12957_v22 }
  0x88   : > { %v19032_v40 = vld [vmem:[%s28958_s29 + $0x89c] sm:$0xf0]  ;;  %3089 = vmatpush.bf16.msra.mxu2 %v13088_v33  ;;  %v18932_v28 = vld [vmem:[%s28958_s29 + $0x584] sm:$0xf]  ;;  %v14208_v38 = vor.u32 %v19132_v26, %v14205_v27 }
  0x89   : > { %v14043_v41 = vld [vmem:[%s28958_s29 + $0xa80] sm:$0xf]  ;;  %v13788_v47 = vor.u32 %v19032_v40, %v13787_v39  ;;  %3051 = vmatpush.bf16.msrb.mxu1 %v14076_v37  ;;  %v13661_v33 = vld [vmem:[%s28958_s29 + $0x7a0] sm:$0xf0]  ;;  %v13408_v39 = vor.u32 %v18932_v28, %v13405_v31 }
  0x8a   : > { %v19096_v42 = vld [vmem:[%s28958_s29 + $0xa9c] sm:$0xf0]  ;;  %3078 = vmatpush.bf16.msrb.mxu3 %v12768_v52  ;;  %v13917_v37 = vld [vmem:[%s28958_s29 + $0x9a0] sm:$0xf0]  ;;  %v13664_v40 = vor.u32 %v18996_v32, %v13661_v33 }
  0x8b   : > { %v14044_v50 = vor.u32 %v19096_v42, %v14043_v41  ;;  %v13755_v53 = vld [vmem:[%s28958_s29 + $0x840] sm:$0xf]  ;;  %3039 = vmatpush.bf16.msrb.mxu0 %v13788_v47  ;;  %v19124_v41 = vld [vmem:[%s28958_s29 + $0xb84] sm:$0xf]  ;;  %v13920_v44 = vor.u32 %v19060_v36, %v13917_v37 }
  0x8c   : > { %v19024_v54 = vld [vmem:[%s28958_s29 + $0x85c] sm:$0xf0]  ;;  %3090 = vmatpush.bf16.msra.mxu2 %v13056_v46  ;;  %v14173_v42 = vld [vmem:[%s28958_s29 + $0xba0] sm:$0xf0] }
  0x8d   : > { %v14011_v56 = vld [vmem:[%s28958_s29 + $0xa40] sm:$0xf]  ;;  %v13756_v62 = vor.u32 %v19024_v54, %v13755_v53  ;;  %3052 = vmatpush.bf16.msrb.mxu1 %v14044_v50  ;;  %v18924_v43 = vld [vmem:[%s28958_s29 + $0x544] sm:$0xf]  ;;  %v14176_v52 = vor.u32 %v19124_v41, %v14173_v42 }
  0x8e   : > { %v19088_v58 = vld [vmem:[%s28958_s29 + $0xa5c] sm:$0xf0]  ;;  %3079 = vmatpush.bf16.msrb.mxu3 %v12736_v3  ;;  %v13373_v46 = vld [vmem:[%s28958_s29 + $0x560] sm:$0xf0] }
  0x8f   : > { %v13723_v1 = vld [vmem:[%s28958_s29 + $0x800] sm:$0xf]  ;;  %v14012_v2 = vor.u32 %v19088_v58, %v14011_v56  ;;  %3040 = vmatpush.bf16.msrb.mxu0 %v13756_v62  ;;  %v18988_v47 = vld [vmem:[%s28958_s29 + $0x744] sm:$0xf]  ;;  %v13376_v53 = vor.u32 %v18924_v43, %v13373_v46 }
  0x90   : > { %v19016_v4 = vld [vmem:[%s28958_s29 + $0x81c] sm:$0xf0]  ;;  %3091 = vmatpush.bf16.msra.mxu2 %v13024_v61  ;;  %v13629_v48 = vld [vmem:[%s28958_s29 + $0x760] sm:$0xf0] }
  0x91   : > { %v13979_v5 = vld [vmem:[%s28958_s29 + $0xa00] sm:$0xf]  ;;  %v13724_v15 = vor.u32 %v19016_v4, %v13723_v1  ;;  %3053 = vmatpush.bf16.msrb.mxu1 %v14012_v2  ;;  %v19052_v49 = vld [vmem:[%s28958_s29 + $0x944] sm:$0xf]  ;;  %v13632_v54 = vor.u32 %v18988_v47, %v13629_v48 }
  0x92   : > { %v19080_v6 = vld [vmem:[%s28958_s29 + $0xa1c] sm:$0xf0]  ;;  %3080 = vmatpush.bf16.msrb.mxu3 %v12704_v20  ;;  %v13885_v50 = vld [vmem:[%s28958_s29 + $0x960] sm:$0xf0] }
  0x93   : > { %v598_v18 = vld [vmem:[%s20973_s6 + $0x20] sm:$0xff]  ;;  %v13980_v19 = vor.u32 %v19080_v6, %v13979_v5  ;;  %3041 = vmatpush.bf16.msrb.mxu0 %v13724_v15  ;;  %v13888_v60 = vor.u32 %v19052_v49, %v13885_v50  ;;  %s28960_s6 = sand.u32 1, %s20586_s25  }
  0x94   : > { %v21229_v30 = vpack.c.bf16 %v598_v18, %v598_v18  ;;  %3092 = vmatpush.bf16.msra.mxu2 %v12992_v14  ;;  %v19116_v56 = vld [vmem:[%s28958_s29 + $0xb44] sm:$0xf]  ;;  %s12580_s10 = scalar_lea.sflag [#allocation4], %s28960_s6 }
  0x95   : > { %3054 = vmatpush.bf16.msrb.mxu1 %v13980_v19  ;;  %3081 = vmatmul.bf16.vlgmr.msrb.gmra.mxu3 %v21034_v55  ;;  %v14141_v58 = vld [vmem:[%s28958_s29 + $0xb60] sm:$0xf0] }
  0x96   : > { %3125 = vmatpush.bf16.msra.mxu3 %v13952_v29  ;;  %3042 = vmatmul.bf16.vlgmr.msrb.gmra.mxu0 %v21229_v30  ;;  %v18916_v59 = vld [vmem:[%s28958_s29 + $0x504] sm:$0xf]  ;;  %v14144_v2 = vor.u32 %v19116_v56, %v14141_v58  ;;  %v12931_v56 = vld [vmem:[%s28958_s29 + $0x1c8] sm:$0xf] }
  0x97   : > { %3099 = vmatpush.bf16.msra.mxu0 %v13440_v24  ;;  %v13341_v61 = vld [vmem:[%s28958_s29 + $0x520] sm:$0xf0]  ;;  %v18817_v58 = vld [vmem:[%s28958_s29 + $0x1e4] sm:$0xf0] }
  0x98   : > { %3093 = vmatpush.bf16.msra.mxu2 %v12960_v34  ;;  %3055 = vmatmul.bf16.vlgmr.msrb.gmra.mxu1 %v21240_v35  ;;  %v18980_v62 = vld [vmem:[%s28958_s29 + $0x704] sm:$0xf]  ;;  %v13344_v3 = vor.u32 %v18916_v59, %v13341_v61  ;;  %v13443_v59 = vld [vmem:[%s28958_s29 + $0x5c8] sm:$0xf] }
  0x99   : > { %3112 = vmatpush.bf16.msra.mxu1 %v13696_v25  ;;  %v13597_v63 = vld [vmem:[%s28958_s29 + $0x720] sm:$0xf0]  ;;  %v18945_v61 = vld [vmem:[%s28958_s29 + $0x5e4] sm:$0xf0] }
  0x9a   : > { %3126 = vmatpush.bf16.msra.mxu3 %v13920_v44  ;;  %v19044_v0 = vld [vmem:[%s28958_s29 + $0x904] sm:$0xf]  ;;  %v13600_v4 = vor.u32 %v18980_v62, %v13597_v63 }
  0x9b   : > { %3100 = vmatpush.bf16.msra.mxu0 %v13408_v39  ;;  %3094 = vmatmul.bf16.vlgmr.msra.gmra.mxu2 %v21065_v7  ;;  %v13853_v1 = vld [vmem:[%s28958_s29 + $0x920] sm:$0xf0] }
  0x9c   : > { %3138 = vmatpush.bf16.msrb.mxu2 %v14208_v38  ;;  %v19108_v5 = vld [vmem:[%s28958_s29 + $0xb04] sm:$0xf]  ;;  %v13856_v9 = vor.u32 %v19044_v0, %v13853_v1 }
  0x9d   : > { %3113 = vmatpush.bf16.msra.mxu1 %v13664_v40  ;;  %v14109_v6 = vld [vmem:[%s28958_s29 + $0xb20] sm:$0xf0] }
  0x9e   : > { %v18908_v8 = vld [vmem:[%s28958_s29 + $0x4c4] sm:$0xf]  ;;  %3127 = vmatpush.bf16.msra.mxu3 %v13888_v60  ;;  %v14112_v15 = vor.u32 %v19108_v5, %v14109_v6  ;;  %v12932_v5 = vor.u32 %v18817_v58, %v12931_v56  ;;  %v13699_v6 = vld [vmem:[%s28958_s29 + $0x7c8] sm:$0xf] }
  0x9f   : > { %3101 = vmatpush.bf16.msra.mxu0 %v13376_v53  ;;  %v13309_v10 = vld [vmem:[%s28958_s29 + $0x4e0] sm:$0xf0]  ;;  %v18785_v56 = vld [vmem:[%s28958_s29 + $0xe4] sm:$0xf0] }
  0xa0   : > { %3139 = vmatpush.bf16.msrb.mxu2 %v14176_v52  ;;  %v18972_v11 = vld [vmem:[%s28958_s29 + $0x6c4] sm:$0xf]  ;;  %v13312_v16 = vor.u32 %v18908_v8, %v13309_v10  ;;  %v19009_v8 = vld [vmem:[%s28958_s29 + $0x7e4] sm:$0xf0] }
  0xa1   : > { %3114 = vmatpush.bf16.msra.mxu1 %v13632_v54  ;;  %v13565_v12 = vld [vmem:[%s28958_s29 + $0x6e0] sm:$0xf0]  ;;  %v13315_v58 = vld [vmem:[%s28958_s29 + $0x4c8] sm:$0xf] }
  0xa2   : > { %v19036_v13 = vld [vmem:[%s28958_s29 + $0x8c4] sm:$0xf]  ;;  %v13568_v17 = vor.u32 %v18972_v11, %v13565_v12  ;;  %3128 = vmatpush.bf16.msra.mxu3 %v13856_v9  ;;  %v13444_v9 = vor.u32 %v18945_v61, %v13443_v59  ;;  %v13187_v11 = vld [vmem:[%s28958_s29 + $0x3c8] sm:$0xf] }
  0xa3   : > { %v13821_v14 = vld [vmem:[%s28958_s29 + $0x8e0] sm:$0xf0]  ;;  %3102 = vmatpush.bf16.msra.mxu0 %v13344_v3  ;;  %v18881_v12 = vld [vmem:[%s28958_s29 + $0x3e4] sm:$0xf0] }
  0xa4   : > { %3140 = vmatpush.bf16.msrb.mxu2 %v14144_v2  ;;  %v19100_v18 = vld [vmem:[%s28958_s29 + $0xac4] sm:$0xf]  ;;  %v13824_v21 = vor.u32 %v19036_v13, %v13821_v14  ;;  %v12899_v13 = vld [vmem:[%s28958_s29 + $0x188] sm:$0xf] }
  0xa5   : > { %3115 = vmatpush.bf16.msra.mxu1 %v13600_v4  ;;  %v14077_v19 = vld [vmem:[%s28958_s29 + $0xae0] sm:$0xf0]  ;;  %v18913_v59 = vld [vmem:[%s28958_s29 + $0x4e4] sm:$0xf0] }
  0xa6   : > { %v18900_v20 = vld [vmem:[%s28958_s29 + $0x484] sm:$0xf]  ;;  %v14080_v27 = vor.u32 %v19100_v18, %v14077_v19  ;;  %3129 = vmatpush.bf16.msra.mxu3 %v13824_v21  ;;  %v13700_v18 = vor.u32 %v19009_v8, %v13699_v6  ;;  %v13188_v19 = vor.u32 %v18881_v12, %v13187_v11  ;;  %v19001_v21 = vld [vmem:[%s28958_s29 + $0x7a4] sm:$0xf0] }
  0xa7   : > { %v13277_v22 = vld [vmem:[%s28958_s29 + $0x4a0] sm:$0xf0]  ;;  %3103 = vmatpush.bf16.msra.mxu0 %v13312_v16  ;;  %v13411_v16 = vld [vmem:[%s28958_s29 + $0x588] sm:$0xf] }
  0xa8   : > { %v18964_v23 = vld [vmem:[%s28958_s29 + $0x684] sm:$0xf]  ;;  %3141 = vmatpush.bf16.msrb.mxu2 %v14112_v15  ;;  %v13280_v28 = vor.u32 %v18900_v20, %v13277_v22  ;;  %v18809_v15 = vld [vmem:[%s28958_s29 + $0x1a4] sm:$0xf0] }
  0xa9   : > { %v13533_v24 = vld [vmem:[%s28958_s29 + $0x6a0] sm:$0xf0]  ;;  %3116 = vmatpush.bf16.msra.mxu1 %v13568_v17  ;;  %v18937_v17 = vld [vmem:[%s28958_s29 + $0x5a4] sm:$0xf0]  ;;  %v12900_v22 = vor.u32 %v18809_v15, %v12899_v13 }
  0xaa   : > { %v19028_v25 = vld [vmem:[%s28958_s29 + $0x884] sm:$0xf]  ;;  %v13536_v29 = vor.u32 %v18964_v23, %v13533_v24  ;;  %v13667_v20 = vld [vmem:[%s28958_s29 + $0x788] sm:$0xf]  ;;  %v13412_v23 = vor.u32 %v18937_v17, %v13411_v16 }
  0xab   : > { %v13789_v26 = vld [vmem:[%s28958_s29 + $0x8a0] sm:$0xf0]  ;;  %3104 = vmatpush.bf16.msra.mxu0 %v13280_v28  ;;  %v13155_v24 = vld [vmem:[%s28958_s29 + $0x388] sm:$0xf] }
  0xac   : > { %v19092_v31 = vld [vmem:[%s28958_s29 + $0xa84] sm:$0xf]  ;;  %v13792_v34 = vor.u32 %v19028_v25, %v13789_v26  ;;  %3142 = vmatpush.bf16.msrb.mxu2 %v14080_v27  ;;  %v18873_v25 = vld [vmem:[%s28958_s29 + $0x3a4] sm:$0xf0] }
  0xad   : > { %v14045_v32 = vld [vmem:[%s28958_s29 + $0xaa0] sm:$0xf0]  ;;  %3117 = vmatpush.bf16.msra.mxu1 %v13536_v29  ;;  %v12867_v26 = vld [vmem:[%s28958_s29 + $0x148] sm:$0xf] }
  0xae   : > { %v18892_v33 = vld [vmem:[%s28958_s29 + $0x444] sm:$0xf]  ;;  %v14048_v41 = vor.u32 %v19092_v31, %v14045_v32  ;;  %3130 = vmatpush.bf16.msra.mxu3 %v13792_v34  ;;  %v18801_v27 = vld [vmem:[%s28958_s29 + $0x164] sm:$0xf0]  ;;  %v13668_v31 = vor.u32 %v19001_v21, %v13667_v20  ;;  %v13156_v32 = vor.u32 %v18873_v25, %v13155_v24 }
  0xaf   : > { %v13245_v36 = vld [vmem:[%s28958_s29 + $0x460] sm:$0xf0]  ;;  %v13379_v28 = vld [vmem:[%s28958_s29 + $0x548] sm:$0xf] }
  0xb0   : > { %v18956_v37 = vld [vmem:[%s28958_s29 + $0x644] sm:$0xf]  ;;  %v13248_v44 = vor.u32 %v18892_v33, %v13245_v36  ;;  %3143 = vmatpush.bf16.msrb.mxu2 %v14048_v41  ;;  %v18929_v29 = vld [vmem:[%s28958_s29 + $0x564] sm:$0xf0]  ;;  %v12868_v36 = vor.u32 %v18801_v27, %v12867_v26 }
  0xb1   : > { %v13501_v38 = vld [vmem:[%s28958_s29 + $0x660] sm:$0xf0]  ;;  %v13635_v33 = vld [vmem:[%s28958_s29 + $0x748] sm:$0xf] }
  0xb2   : > { %v19020_v39 = vld [vmem:[%s28958_s29 + $0x844] sm:$0xf]  ;;  %v13504_v46 = vor.u32 %v18956_v37, %v13501_v38  ;;  %3105 = vmatpush.bf16.msra.mxu0 %v13248_v44  ;;  %v18993_v34 = vld [vmem:[%s28958_s29 + $0x764] sm:$0xf0]  ;;  %v13380_v37 = vor.u32 %v18929_v29, %v13379_v28 }
  0xb3   : > { %v13757_v40 = vld [vmem:[%s28958_s29 + $0x860] sm:$0xf0]  ;;  %v13123_v38 = vld [vmem:[%s28958_s29 + $0x348] sm:$0xf]  ;;  %v13636_v44 = vor.u32 %v18993_v34, %v13635_v33 }
  0xb4   : > { %v19084_v42 = vld [vmem:[%s28958_s29 + $0xa44] sm:$0xf]  ;;  %v13760_v50 = vor.u32 %v19020_v39, %v13757_v40  ;;  %3118 = vmatpush.bf16.msra.mxu1 %v13504_v46  ;;  %v18865_v39 = vld [vmem:[%s28958_s29 + $0x364] sm:$0xf0] }
  0xb5   : > { %v14013_v43 = vld [vmem:[%s28958_s29 + $0xa60] sm:$0xf0]  ;;  %v12835_v40 = vld [vmem:[%s28958_s29 + $0x108] sm:$0xf]  ;;  %v13124_v46 = vor.u32 %v18865_v39, %v13123_v38 }
  0xb6   : > { %v18884_v47 = vld [vmem:[%s28958_s29 + $0x404] sm:$0xf]  ;;  %v14016_v60 = vor.u32 %v19084_v42, %v14013_v43  ;;  %3131 = vmatpush.bf16.msra.mxu3 %v13760_v50  ;;  %v18793_v41 = vld [vmem:[%s28958_s29 + $0x124] sm:$0xf0] }
  0xb7   : > { %v13213_v48 = vld [vmem:[%s28958_s29 + $0x420] sm:$0xf0]  ;;  %v13347_v42 = vld [vmem:[%s28958_s29 + $0x508] sm:$0xf] }
  0xb8   : > { %v18948_v49 = vld [vmem:[%s28958_s29 + $0x604] sm:$0xf]  ;;  %v13216_v0 = vor.u32 %v18884_v47, %v13213_v48  ;;  %3144 = vmatpush.bf16.msrb.mxu2 %v14016_v60  ;;  %v18921_v43 = vld [vmem:[%s28958_s29 + $0x524] sm:$0xf0] }
  0xb9   : > { %v13469_v52 = vld [vmem:[%s28958_s29 + $0x620] sm:$0xf0]  ;;  %v13603_v47 = vld [vmem:[%s28958_s29 + $0x708] sm:$0xf]  ;;  %v13348_v50 = vor.u32 %v18921_v43, %v13347_v42 }
  0xba   : > { %v19012_v53 = vld [vmem:[%s28958_s29 + $0x804] sm:$0xf]  ;;  %v13472_v1 = vor.u32 %v18948_v49, %v13469_v52  ;;  %3106 = vmatpush.bf16.msra.mxu0 %v13216_v0  ;;  %v18985_v48 = vld [vmem:[%s28958_s29 + $0x724] sm:$0xf0]  ;;  %v12836_v49 = vor.u32 %v18793_v41, %v12835_v40 }
  0xbb   : > { %v13725_v54 = vld [vmem:[%s28958_s29 + $0x820] sm:$0xf0]  ;;  %v13091_v52 = vld [vmem:[%s28958_s29 + $0x308] sm:$0xf]  ;;  %v13604_v60 = vor.u32 %v18985_v48, %v13603_v47 }
  0xbc   : > { %v19140_v62 = vld [vmem:[%s28958_s29 + $0xc04] sm:$0xf]  ;;  %v13728_v4 = vor.u32 %v19012_v53, %v13725_v54  ;;  %3119 = vmatpush.bf16.msra.mxu1 %v13472_v1  ;;  %v18857_v53 = vld [vmem:[%s28958_s29 + $0x324] sm:$0xf0]  ;;  %v13316_v1 = vor.u32 %v18913_v59, %v13315_v58  ;;  %v13189_v59 = vld [vmem:[%s28958_s29 + $0x3e8] sm:$0xf0] }
  0xbd   : > { %v14237_v63 = vld [vmem:[%s28958_s29 + $0xc20] sm:$0xf0]  ;;  %3107 = vmatmul.bf16.vlgmr.msra.gmra.mxu0 %v21023_v51  ;;  %v12803_v54 = vld [vmem:[%s28958_s29 + $0xc8] sm:$0xf]  ;;  %v13092_v61 = vor.u32 %v18857_v53, %v13091_v52  ;;  %v18813_v53 = vld [vmem:[%s28958_s29 + $0x1cc] sm:$0xf] }
  0xbe   : > { %v19076_v2 = vld [vmem:[%s28958_s29 + $0xa04] sm:$0xf]  ;;  %v14240_v10 = vor.u32 %v19140_v62, %v14237_v63  ;;  %3132 = vmatpush.bf16.msra.mxu3 %v13728_v4  ;;  %3190 = vmatpush.bf16.msrb.mxu0 %v13444_v9  ;;  %v13571_v62 = vld [vmem:[%s28958_s29 + $0x6c8] sm:$0xf]  ;;  %v12804_v0 = vor.u32 %v18785_v56, %v12803_v54  ;;  %v12933_v54 = vld [vmem:[%s28958_s29 + $0x1e8] sm:$0xf0] }
  0xbf   : > { %v13981_v3 = vld [vmem:[%s28958_s29 + $0xa20] sm:$0xf0]  ;;  %3120 = vmatmul.bf16.vlgmr.msra.gmra.mxu1 %v21036_v57  ;;  %v18977_v63 = vld [vmem:[%s28958_s29 + $0x6e4] sm:$0xf0]  ;;  %v18877_v56 = vld [vmem:[%s28958_s29 + $0x3cc] sm:$0xf] }
  0xc0   : > { %v13984_v14 = vor.u32 %v19076_v2, %v13981_v3  ;;  %3164 = vmatpush.bf16.msrb.mxu1 %v12932_v5  ;;  %v13059_v2 = vld [vmem:[%s28958_s29 + $0x2c8] sm:$0xf]  ;;  %v13572_v9 = vor.u32 %v18977_v63, %v13571_v62 }
  0xc1   : > { %3133 = vmatmul.bf16.vlgmr.msra.gmra.mxu3 %v21229_v30  ;;  %v18849_v3 = vld [vmem:[%s28958_s29 + $0x2e4] sm:$0xf0] }
  0xc2   : > { %3158 = vmatpush.bf16.msrb.mxu3 %v14240_v10  ;;  %3145 = vmatpush.bf16.msrb.mxu2 %v13984_v14  ;;  %v12771_v4 = vld [vmem:[%s28958_s29 + $0x88] sm:$0xf]  ;;  %v13060_v10 = vor.u32 %v18849_v3, %v13059_v2  ;;  %v13192_v3 = vor.u32 %v18877_v56, %v13189_v59 }
  0xc3   : > { %3191 = vmatpush.bf16.msrb.mxu0 %v13412_v23  ;;  %v18777_v5 = vld [vmem:[%s28958_s29 + $0xa4] sm:$0xf0] }
  0xc4   : > { %3165 = vmatpush.bf16.msrb.mxu1 %v12900_v22  ;;  %v13283_v6 = vld [vmem:[%s28958_s29 + $0x488] sm:$0xf]  ;;  %v12772_v13 = vor.u32 %v18777_v5, %v12771_v4  ;;  %v18805_v5 = vld [vmem:[%s28958_s29 + $0x18c] sm:$0xf] }
  0xc5   : > { %3146 = vmatmul.bf16.vlgmr.msrb.gmra.mxu2 %v21240_v35  ;;  %v18905_v8 = vld [vmem:[%s28958_s29 + $0x4a4] sm:$0xf0] }
  0xc6   : > { %3203 = vmatpush.bf16.msra.mxu2 %v13700_v18  ;;  %3177 = vmatpush.bf16.msra.mxu3 %v13188_v19  ;;  %v13539_v11 = vld [vmem:[%s28958_s29 + $0x688] sm:$0xf]  ;;  %v13284_v14 = vor.u32 %v18905_v8, %v13283_v6  ;;  %v12901_v6 = vld [vmem:[%s28958_s29 + $0x1a8] sm:$0xf0] }
  0xc7   : > { %3192 = vmatpush.bf16.msrb.mxu0 %v13380_v37  ;;  %v18969_v12 = vld [vmem:[%s28958_s29 + $0x6a4] sm:$0xf0]  ;;  %v18869_v8 = vld [vmem:[%s28958_s29 + $0x38c] sm:$0xf] }
  0xc8   : > { %3166 = vmatpush.bf16.msrb.mxu1 %v12868_v36  ;;  %v13027_v15 = vld [vmem:[%s28958_s29 + $0x288] sm:$0xf]  ;;  %v13540_v21 = vor.u32 %v18969_v12, %v13539_v11 }
  0xc9   : > { %v18841_v16 = vld [vmem:[%s28958_s29 + $0x2a4] sm:$0xf0] }
  0xca   : > { %3204 = vmatpush.bf16.msra.mxu2 %v13668_v31  ;;  %3178 = vmatpush.bf16.msra.mxu3 %v13156_v32  ;;  %v12739_v17 = vld [vmem:[%s28958_s29 + $0x48] sm:$0xf]  ;;  %v13028_v22 = vor.u32 %v18841_v16, %v13027_v15 }
  0xcb   : > { %3193 = vmatpush.bf16.msrb.mxu0 %v13348_v50  ;;  %v18769_v18 = vld [vmem:[%s28958_s29 + $0x64] sm:$0xf0] }
  0xcc   : > { %3167 = vmatpush.bf16.msrb.mxu1 %v12836_v49  ;;  %v13251_v19 = vld [vmem:[%s28958_s29 + $0x448] sm:$0xf]  ;;  %v12740_v26 = vor.u32 %v18769_v18, %v12739_v17  ;;  %v18797_v18 = vld [vmem:[%s28958_s29 + $0x14c] sm:$0xf] }
  0xcd   : > { %v18897_v20 = vld [vmem:[%s28958_s29 + $0x464] sm:$0xf0] }
  0xce   : > { %3205 = vmatpush.bf16.msra.mxu2 %v13636_v44  ;;  %3179 = vmatpush.bf16.msra.mxu3 %v13124_v46  ;;  %v12995_v23 = vld [vmem:[%s28958_s29 + $0x248] sm:$0xf]  ;;  %v13252_v27 = vor.u32 %v18897_v20, %v13251_v19  ;;  %v12869_v19 = vld [vmem:[%s28958_s29 + $0x168] sm:$0xf0] }
  0xcf   : > { %3194 = vmatpush.bf16.msrb.mxu0 %v13316_v1  ;;  %v13507_v24 = vld [vmem:[%s28958_s29 + $0x648] sm:$0xf]  ;;  %v18861_v20 = vld [vmem:[%s28958_s29 + $0x34c] sm:$0xf] }
  0xd0   : > { %3168 = vmatpush.bf16.msrb.mxu1 %v12804_v0  ;;  %v18961_v25 = vld [vmem:[%s28958_s29 + $0x664] sm:$0xf0]  ;;  %v12936_v0 = vor.u32 %v18813_v53, %v12933_v54 }
  0xd1   : > { %14266 = vmatmul.msk.bf16.vlgmr.msrb.gmra.mxu3 %vm2978_vm0, %v21142_v45  ;;  %v18833_v28 = vld [vmem:[%s28958_s29 + $0x264] sm:$0xf0]  ;;  %v13508_v36 = vor.u32 %v18961_v25, %v13507_v24  ;;  %v12872_v25 = vor.u32 %v18797_v18, %v12869_v19 }
  0xd2   : > { %3206 = vmatpush.bf16.msra.mxu2 %v13604_v60  ;;  %3180 = vmatpush.bf16.msra.mxu3 %v13092_v61  ;;  %v12707_v29 = vld [vmem:[%s28958_s29 + $0x8] sm:$0xf]  ;;  %v12996_v40 = vor.u32 %v18833_v28, %v12995_v23 }
  0xd3   : > { %3195 = vmatpush.bf16.msrb.mxu0 %v13284_v14  ;;  %v18761_v31 = vld [vmem:[%s28958_s29 + $0x24] sm:$0xf0] }
  0xd4   : > { %3169 = vmatpush.bf16.msrb.mxu1 %v12772_v13  ;;  %v13219_v32 = vld [vmem:[%s28958_s29 + $0x408] sm:$0xf]  ;;  %v12708_v44 = vor.u32 %v18761_v31, %v12707_v29  ;;  %v12904_v13 = vor.u32 %v18805_v5, %v12901_v6  ;;  %v18789_v31 = vld [vmem:[%s28958_s29 + $0x10c] sm:$0xf] }
  0xd5   : > { %v18889_v33 = vld [vmem:[%s28958_s29 + $0x424] sm:$0xf0] }
  0xd6   : > { %3207 = vmatpush.bf16.msra.mxu2 %v13572_v9  ;;  %3181 = vmatpush.bf16.msra.mxu3 %v13060_v10  ;;  %v13955_v34 = vld [vmem:[%s28958_s29 + $0x9c8] sm:$0xf]  ;;  %v13220_v46 = vor.u32 %v18889_v33, %v13219_v32  ;;  %v13157_v9 = vld [vmem:[%s28958_s29 + $0x3a8] sm:$0xf0] }
  0xd7   : > { %v19073_v37 = vld [vmem:[%s28958_s29 + $0x9e4] sm:$0xf0]  ;;  %3196 = vmatpush.bf16.msrb.mxu0 %v13252_v27  ;;  %v13160_v16 = vor.u32 %v18869_v8, %v13157_v9  ;;  %v12837_v32 = vld [vmem:[%s28958_s29 + $0x128] sm:$0xf0] }
  0xd8   : > { %v14243_v38 = vld [vmem:[%s28958_s29 + $0xc08] sm:$0xf]  ;;  %3170 = vmatpush.bf16.msrb.mxu1 %v12740_v26  ;;  %v13956_v50 = vor.u32 %v19073_v37, %v13955_v34  ;;  %v18853_v33 = vld [vmem:[%s28958_s29 + $0x30c] sm:$0xf] }
  0xd9   : > { %v19145_v39 = vld [vmem:[%s28958_s29 + $0xc24] sm:$0xf0]  ;;  %v13093_v34 = vld [vmem:[%s28958_s29 + $0x328] sm:$0xf0] }
  0xda   : > { %3208 = vmatpush.bf16.msra.mxu2 %v13540_v21  ;;  %3182 = vmatpush.bf16.msra.mxu3 %v13028_v22  ;;  %v12963_v41 = vld [vmem:[%s28958_s29 + $0x208] sm:$0xf]  ;;  %v14244_v52 = vor.u32 %v19145_v39, %v14243_v38  ;;  %v13125_v21 = vld [vmem:[%s28958_s29 + $0x368] sm:$0xf0]  ;;  %v12840_v39 = vor.u32 %v18789_v31, %v12837_v32 }
  0xdb   : > { %v13475_v42 = vld [vmem:[%s28958_s29 + $0x608] sm:$0xf]  ;;  %3197 = vmatpush.bf16.msrb.mxu0 %v13220_v46  ;;  %v13128_v28 = vor.u32 %v18861_v20, %v13125_v21  ;;  %v12805_v46 = vld [vmem:[%s28958_s29 + $0xe8] sm:$0xf0] }
  0xdc   : > { %v18953_v43 = vld [vmem:[%s28958_s29 + $0x624] sm:$0xf0]  ;;  %3171 = vmatpush.bf16.msrb.mxu1 %v12708_v44  ;;  %v18781_v44 = vld [vmem:[%s28958_s29 + $0xcc] sm:$0xf] }
  0xdd   : > { %v18825_v47 = vld [vmem:[%s28958_s29 + $0x224] sm:$0xf0]  ;;  %v13476_v58 = vor.u32 %v18953_v43, %v13475_v42  ;;  %v13096_v42 = vor.u32 %v18853_v33, %v13093_v34  ;;  %v12808_v53 = vor.u32 %v18781_v44, %v12805_v46  ;;  %v18765_v9 = vld [vmem:[%s28958_s29 + $0x4c] sm:$0xf] }
  0xde   : > { %v14211_v48 = vld [vmem:[%s28958_s29 + $0xbc8] sm:$0xf]  ;;  %3209 = vmatpush.bf16.msra.mxu2 %v13508_v36  ;;  %3183 = vmatpush.bf16.msra.mxu3 %v12996_v40  ;;  %v12964_v62 = vor.u32 %v18825_v47, %v12963_v41  ;;  %v18845_v47 = vld [vmem:[%s28958_s29 + $0x2cc] sm:$0xf] }
  0xdf   : > { %v19137_v49 = vld [vmem:[%s28958_s29 + $0xbe4] sm:$0xf0]  ;;  %3249 = vmatpush.bf16.msra.mxu0 %v14244_v52  ;;  %3172 = vmatmul.bf16.vlgmr.msrb.gmra.mxu1 %v21034_v55  ;;  %v19069_v31 = vld [vmem:[%s28958_s29 + $0x9cc] sm:$0xf] }
  0xe0   : > { %v13923_v60 = vld [vmem:[%s28958_s29 + $0x988] sm:$0xf]  ;;  %v14212_v63 = vor.u32 %v19137_v49, %v14211_v48  ;;  %3216 = vmatpush.bf16.msra.mxu1 %v13956_v50  ;;  %3198 = vmatmul.bf16.vlgmr.msrb.gmra.mxu0 %v21023_v51  ;;  %v13061_v48 = vld [vmem:[%s28958_s29 + $0x2e8] sm:$0xf0] }
  0xe1   : > { %v19065_v61 = vld [vmem:[%s28958_s29 + $0x9a4] sm:$0xf0]  ;;  %v13957_v32 = vld [vmem:[%s28958_s29 + $0x9e8] sm:$0xf0] }
  0xe2   : > { %v14179_v1 = vld [vmem:[%s28958_s29 + $0xb88] sm:$0xf]  ;;  %v13924_v4 = vor.u32 %v19065_v61, %v13923_v60  ;;  %3210 = vmatpush.bf16.msra.mxu2 %v13476_v58  ;;  %3184 = vmatpush.bf16.msra.mxu3 %v12964_v62  ;;  %v13064_v58 = vor.u32 %v18845_v47, %v13061_v48  ;;  %v18773_v60 = vld [vmem:[%s28958_s29 + $0x8c] sm:$0xf] }
  0xe3   : > { %v19129_v2 = vld [vmem:[%s28958_s29 + $0xba4] sm:$0xf0]  ;;  %3268 = vmatpush.bf16.msrb.mxu0 %v13192_v3  ;;  %v12773_v61 = vld [vmem:[%s28958_s29 + $0xa8] sm:$0xf0] }
  0xe4   : > { %v13891_v10 = vld [vmem:[%s28958_s29 + $0x948] sm:$0xf]  ;;  %v14180_v12 = vor.u32 %v19129_v2, %v14179_v1  ;;  %3217 = vmatpush.bf16.msra.mxu1 %v13924_v4  ;;  %v18837_v62 = vld [vmem:[%s28958_s29 + $0x28c] sm:$0xf]  ;;  %v12776_v3 = vor.u32 %v18773_v60, %v12773_v61 }
  0xe5   : > { %v19057_v11 = vld [vmem:[%s28958_s29 + $0x964] sm:$0xf0]  ;;  %3185 = vmatmul.bf16.vlgmr.msra.gmra.mxu3 %v21065_v7  ;;  %3211 = vmatmul.bf16.vlgmr.msra.gmra.mxu2 %v21036_v57  ;;  %v19133_v33 = vld [vmem:[%s28958_s29 + $0xbcc] sm:$0xf] }
  0xe6   : > { %3229 = vmatpush.bf16.msrb.mxu3 %v14212_v63  ;;  %3255 = vmatpush.bf16.msrb.mxu2 %v12936_v0  ;;  %v14147_v14 = vld [vmem:[%s28958_s29 + $0xb48] sm:$0xf]  ;;  %v13892_v17 = vor.u32 %v19057_v11, %v13891_v10  ;;  %v13029_v63 = vld [vmem:[%s28958_s29 + $0x2a8] sm:$0xf0] }
  0xe7   : > { %v19121_v15 = vld [vmem:[%s28958_s29 + $0xb64] sm:$0xf0]  ;;  %3269 = vmatpush.bf16.msrb.mxu0 %v13160_v16  ;;  %v13032_v6 = vor.u32 %v18837_v62, %v13029_v63  ;;  %v12741_v10 = vld [vmem:[%s28958_s29 + $0x68] sm:$0xf0] }
  0xe8   : > { %v13859_v22 = vld [vmem:[%s28958_s29 + $0x908] sm:$0xf]  ;;  %v14148_v24 = vor.u32 %v19121_v15, %v14147_v14  ;;  %3218 = vmatpush.bf16.msra.mxu1 %v13892_v17  ;;  %v18829_v11 = vld [vmem:[%s28958_s29 + $0x24c] sm:$0xf]  ;;  %v12744_v18 = vor.u32 %v18765_v9, %v12741_v10 }
  0xe9   : > { %v19049_v23 = vld [vmem:[%s28958_s29 + $0x924] sm:$0xf0]  ;;  %v18941_v15 = vld [vmem:[%s28958_s29 + $0x5cc] sm:$0xf] }
  0xea   : > { %3230 = vmatpush.bf16.msrb.mxu3 %v14180_v12  ;;  %3256 = vmatpush.bf16.msrb.mxu2 %v12904_v13  ;;  %v14115_v26 = vld [vmem:[%s28958_s29 + $0xb08] sm:$0xf]  ;;  %v13860_v29 = vor.u32 %v19049_v23, %v13859_v22  ;;  %v12997_v12 = vld [vmem:[%s28958_s29 + $0x268] sm:$0xf0] }
  0xeb   : > { %v19113_v27 = vld [vmem:[%s28958_s29 + $0xb24] sm:$0xf0]  ;;  %3270 = vmatpush.bf16.msrb.mxu0 %v13128_v28  ;;  %v13445_v16 = vld [vmem:[%s28958_s29 + $0x5e8] sm:$0xf0]  ;;  %v13000_v21 = vor.u32 %v18829_v11, %v12997_v12 }
  0xec   : > { %v13827_v36 = vld [vmem:[%s28958_s29 + $0x8c8] sm:$0xf]  ;;  %v14116_v38 = vor.u32 %v19113_v27, %v14115_v26  ;;  %3219 = vmatpush.bf16.msra.mxu1 %v13860_v29  ;;  %v18757_v23 = vld [vmem:[%s28958_s29 + $0xc] sm:$0xf]  ;;  %v13448_v26 = vor.u32 %v18941_v15, %v13445_v16 }
  0xed   : > { %v19041_v37 = vld [vmem:[%s28958_s29 + $0x8e4] sm:$0xf0]  ;;  %v12965_v27 = vld [vmem:[%s28958_s29 + $0x228] sm:$0xf0] }
  0xee   : > { %3231 = vmatpush.bf16.msrb.mxu3 %v14148_v24  ;;  %3257 = vmatpush.bf16.msrb.mxu2 %v12872_v25  ;;  %v14083_v40 = vld [vmem:[%s28958_s29 + $0xac8] sm:$0xf]  ;;  %v13828_v43 = vor.u32 %v19041_v37, %v13827_v36  ;;  %v12709_v24 = vld [vmem:[%s28958_s29 + $0x28] sm:$0xf0] }
  0xef   : > { %v19105_v41 = vld [vmem:[%s28958_s29 + $0xae4] sm:$0xf0]  ;;  %3271 = vmatpush.bf16.msrb.mxu0 %v13096_v42  ;;  %v18821_v25 = vld [vmem:[%s28958_s29 + $0x20c] sm:$0xf]  ;;  %v13960_v42 = vor.u32 %v19069_v31, %v13957_v32 }
  0xf0   : > { %v13795_v49 = vld [vmem:[%s28958_s29 + $0x888] sm:$0xf]  ;;  %v14084_v52 = vor.u32 %v19105_v41, %v14083_v40  ;;  %3220 = vmatpush.bf16.msra.mxu1 %v13828_v43  ;;  %14267 = vmatmul.msk.bf16.vlgmr.msra.gmra.mxu0 %vm2978_vm0, %v21142_v45  ;;  %v19005_v28 = vld [vmem:[%s28958_s29 + $0x7cc] sm:$0xf]  ;;  %v12968_v40 = vor.u32 %v18821_v25, %v12965_v27 }
  0xf1   : > { %v19033_v50 = vld [vmem:[%s28958_s29 + $0x8a4] sm:$0xf0]  ;;  %v13701_v29 = vld [vmem:[%s28958_s29 + $0x7e8] sm:$0xf0] }
  0xf2   : > { %3232 = vmatpush.bf16.msrb.mxu3 %v14116_v38  ;;  %3258 = vmatpush.bf16.msrb.mxu2 %v12840_v39  ;;  %v14051_v54 = vld [vmem:[%s28958_s29 + $0xa88] sm:$0xf]  ;;  %v13796_v59 = vor.u32 %v19033_v50, %v13795_v49  ;;  %v14213_v36 = vld [vmem:[%s28958_s29 + $0xbe8] sm:$0xf0]  ;;  %v12712_v39 = vor.u32 %v18757_v23, %v12709_v24  ;;  %v13704_v41 = vor.u32 %v19005_v28, %v13701_v29  ;;  %v3004_v28 = vpop.f32.mrf.mxu1 }
  0xf3   : > { %v19097_v56 = vld [vmem:[%s28958_s29 + $0xaa4] sm:$0xf0]  ;;  %3272 = vmatpush.bf16.msrb.mxu0 %v13064_v58  ;;  %v18933_v37 = vld [vmem:[%s28958_s29 + $0x58c] sm:$0xf]  ;;  %v14216_v46 = vor.u32 %v19133_v33, %v14213_v36 }
  0xf4   : > { %v13763_v0 = vld [vmem:[%s28958_s29 + $0x848] sm:$0xf]  ;;  %v14052_v2 = vor.u32 %v19097_v56, %v14051_v54  ;;  %3221 = vmatpush.bf16.msra.mxu1 %v13796_v59  ;;  %v13413_v38 = vld [vmem:[%s28958_s29 + $0x5a8] sm:$0xf0]  ;;  %v21868_v56 = vld [vmem:[%s28918_s2] sm:$0xff] }
  0xf5   : > { %v19025_v1 = vld [vmem:[%s28958_s29 + $0x864] sm:$0xf0]  ;;  %v18997_v43 = vld [vmem:[%s28958_s29 + $0x78c] sm:$0xf]  ;;  %v13416_v47 = vor.u32 %v18933_v37, %v13413_v38 }
  0xf6   : > { %3233 = vmatpush.bf16.msrb.mxu3 %v14084_v52  ;;  %3259 = vmatpush.bf16.msrb.mxu2 %v12808_v53  ;;  %v14019_v4 = vld [vmem:[%s28958_s29 + $0xa48] sm:$0xf]  ;;  %v13764_v8 = vor.u32 %v19025_v1, %v13763_v0  ;;  %v13669_v44 = vld [vmem:[%s28958_s29 + $0x7a8] sm:$0xf0]  ;;  %v3017_v38 = vpop.f32.mrf.mxu2 }
  0xf7   : > { %v19089_v5 = vld [vmem:[%s28958_s29 + $0xa64] sm:$0xf0]  ;;  %3273 = vmatpush.bf16.msrb.mxu0 %v13032_v6  ;;  %v19061_v48 = vld [vmem:[%s28958_s29 + $0x98c] sm:$0xf]  ;;  %v13672_v58 = vor.u32 %v18997_v43, %v13669_v44  ;;  %v1002_v6 = vperm.slane %v21868_v56, 0 }
  0xf8   : > { %v13731_v13 = vld [vmem:[%s28958_s29 + $0x808] sm:$0xf]  ;;  %v14020_v17 = vor.u32 %v19089_v5, %v14019_v4  ;;  %3222 = vmatpush.bf16.msra.mxu1 %v13764_v8  ;;  %v13925_v49 = vld [vmem:[%s28958_s29 + $0x9a8] sm:$0xf0] }
  0xf9   : > { %v19017_v14 = vld [vmem:[%s28958_s29 + $0x824] sm:$0xf0]  ;;  %v19125_v50 = vld [vmem:[%s28958_s29 + $0xb8c] sm:$0xf]  ;;  %v13928_v59 = vor.u32 %v19061_v48, %v13925_v49 }
  0xfa   : > { %3234 = vmatpush.bf16.msrb.mxu3 %v14052_v2  ;;  %3260 = vmatpush.bf16.msrb.mxu2 %v12776_v3  ;;  %v13987_v19 = vld [vmem:[%s28958_s29 + $0xa08] sm:$0xf]  ;;  %v13732_v22 = vor.u32 %v19017_v14, %v13731_v13  ;;  %v14181_v52 = vld [vmem:[%s28958_s29 + $0xba8] sm:$0xf0] }
  0xfb   : > { %v19081_v20 = vld [vmem:[%s28958_s29 + $0xa24] sm:$0xf0]  ;;  %3274 = vmatpush.bf16.msrb.mxu0 %v13000_v21  ;;  %v18925_v53 = vld [vmem:[%s28958_s29 + $0x54c] sm:$0xf]  ;;  %v14184_v63 = vor.u32 %v19125_v50, %v14181_v52 }
  0xfc   : > { %v13988_v34 = vor.u32 %v19081_v20, %v13987_v19  ;;  %3223 = vmatpush.bf16.msra.mxu1 %v13732_v22  ;;  %v13381_v54 = vld [vmem:[%s28958_s29 + $0x568] sm:$0xf0] }
  0xfd   : > { %v18989_v60 = vld [vmem:[%s28958_s29 + $0x74c] sm:$0xf]  ;;  %v13384_v0 = vor.u32 %v18925_v53, %v13381_v54 }
  0xfe   : > { %3235 = vmatpush.bf16.msrb.mxu3 %v14020_v17  ;;  %3261 = vmatpush.bf16.msrb.mxu2 %v12744_v18  ;;  %v13637_v61 = vld [vmem:[%s28958_s29 + $0x768] sm:$0xf0]  ;;  %v2991_v17 = vpop.f32.mrf.mxu0 }
  0xff   : > { %3224 = vmatmul.bf16.vlgmr.msra.gmra.mxu1 %v21229_v30  ;;  %3275 = vmatpush.bf16.msrb.mxu0 %v12968_v40  ;;  %v19053_v62 = vld [vmem:[%s28958_s29 + $0x94c] sm:$0xf]  ;;  %v13640_v8 = vor.u32 %v18989_v60, %v13637_v61  ;;  %v2992_v21 = vadd.f32 %v2991_v17, %v1002_v6 }
 0x100   : > { %3281 = vmatpush.bf16.msrb.mxu1 %v13448_v26  ;;  %v13893_v1 = vld [vmem:[%s28958_s29 + $0x968] sm:$0xf0] }
 0x101   : > { %v19117_v2 = vld [vmem:[%s28958_s29 + $0xb4c] sm:$0xf]  ;;  %v13896_v9 = vor.u32 %v19053_v62, %v13893_v1  ;;  %v3005_v33 = vadd.f32 %v3004_v28, %v2992_v21  ;;  %v18882_v28 = vld [vmem:[%s28958_s29 + $0x3ec] sm:$0xf0] }
 0x102   : > { %3236 = vmatpush.bf16.msrb.mxu3 %v13988_v34  ;;  %3262 = vmatpush.bf16.msrb.mxu2 %v12712_v39  ;;  %v14149_v3 = vld [vmem:[%s28958_s29 + $0xb68] sm:$0xf0] }
 0x103   : > { %3320 = vmatpush.bf16.msra.mxu0 %v14216_v46  ;;  %v18917_v4 = vld [vmem:[%s28958_s29 + $0x50c] sm:$0xf]  ;;  %v14152_v12 = vor.u32 %v19117_v2, %v14149_v3 }
 0x104   : > { %3282 = vmatpush.bf16.msrb.mxu1 %v13416_v47  ;;  %v13349_v5 = vld [vmem:[%s28958_s29 + $0x528] sm:$0xf0]  ;;  %3276 = vmatmul.bf16.vlgmr.msrb.gmra.mxu0 %v21065_v7 }
 0x105   : > { %3237 = vmatmul.bf16.vlgmr.msrb.gmra.mxu3 %v21240_v35  ;;  %3263 = vmatmul.bf16.vlgmr.msrb.gmra.mxu2 %v21034_v55  ;;  %v18981_v10 = vld [vmem:[%s28958_s29 + $0x70c] sm:$0xf]  ;;  %v13352_v13 = vor.u32 %v18917_v4, %v13349_v5  ;;  %v3006_v5 = vpop.f32.mrf.mxu1 }
 0x106   : > { %3294 = vmatpush.bf16.msra.mxu3 %v13704_v41  ;;  %3307 = vmatpush.bf16.msra.mxu2 %v13960_v42  ;;  %v13605_v11 = vld [vmem:[%s28958_s29 + $0x728] sm:$0xf0]  ;;  %v3018_v41 = vadd.f32 %v3017_v38, %v3005_v33  ;;  %v3030_v42 = vpop.f32.mrf.mxu3  ;;  %v2993_v52 = vpop.f32.mrf.mxu0  ;;  %v13707_v33 = vld [vmem:[%s28958_s29 + $0x7d0] sm:$0xf] }
 0x107   : > { %3321 = vmatpush.bf16.msra.mxu0 %v14184_v63  ;;  %v19045_v14 = vld [vmem:[%s28958_s29 + $0x90c] sm:$0xf]  ;;  %v13608_v22 = vor.u32 %v18981_v10, %v13605_v11  ;;  %v3019_v10 = vpop.f32.mrf.mxu2  ;;  %v19002_v52 = vld [vmem:[%s28958_s29 + $0x7ac] sm:$0xf0] }
 0x108   : > { %3283 = vmatpush.bf16.msrb.mxu1 %v13384_v0  ;;  %v13861_v15 = vld [vmem:[%s28958_s29 + $0x928] sm:$0xf0]  ;;  %v21961_v53 = vadd.f32 %v3030_v42, %v3018_v41  ;;  %v18810_v41 = vld [vmem:[%s28958_s29 + $0x1ac] sm:$0xf0] }
 0x109   : > { %v19109_v16 = vld [vmem:[%s28958_s29 + $0xb0c] sm:$0xf]  ;;  %v13864_v23 = vor.u32 %v19045_v14, %v13861_v15  ;;  %v18794_v10 = vld [vmem:[%s28958_s29 + $0x12c] sm:$0xf0] }
 0x10a   : > { %3295 = vmatpush.bf16.msra.mxu3 %v13672_v58  ;;  %3308 = vmatpush.bf16.msra.mxu2 %v13928_v59  ;;  %v14117_v18 = vld [vmem:[%s28958_s29 + $0xb28] sm:$0xf0] }
 0x10b   : > { %v18909_v19 = vld [vmem:[%s28958_s29 + $0x4cc] sm:$0xf]  ;;  %3322 = vmatpush.bf16.msra.mxu0 %v14152_v12  ;;  %v14120_v26 = vor.u32 %v19109_v16, %v14117_v18 }
 0x10c   : > { %v13317_v20 = vld [vmem:[%s28958_s29 + $0x4e8] sm:$0xf0]  ;;  %3284 = vmatpush.bf16.msrb.mxu1 %v13352_v13 }
 0x10d   : > { %v18973_v24 = vld [vmem:[%s28958_s29 + $0x6cc] sm:$0xf]  ;;  %v13320_v27 = vor.u32 %v18909_v19, %v13317_v20 }
 0x10e   : > { %3296 = vmatpush.bf16.msra.mxu3 %v13640_v8  ;;  %3309 = vmatpush.bf16.msra.mxu2 %v13896_v9  ;;  %v13573_v25 = vld [vmem:[%s28958_s29 + $0x6e8] sm:$0xf0]  ;;  %v3032_v17 = vpop.f32.mrf.mxu3 }
 0x10f   : > { %v19037_v29 = vld [vmem:[%s28958_s29 + $0x8cc] sm:$0xf]  ;;  %v13576_v39 = vor.u32 %v18973_v24, %v13573_v25  ;;  %3323 = vmatpush.bf16.msra.mxu0 %v14120_v26  ;;  %v12939_v25 = vld [vmem:[%s28958_s29 + $0x1d0] sm:$0xf] }
 0x110   : > { %v13829_v31 = vld [vmem:[%s28958_s29 + $0x8e8] sm:$0xf0]  ;;  %3285 = vmatpush.bf16.msrb.mxu1 %v13320_v27  ;;  %v18818_v26 = vld [vmem:[%s28958_s29 + $0x1ec] sm:$0xf0] }
 0x111   : > { %v19101_v32 = vld [vmem:[%s28958_s29 + $0xacc] sm:$0xf]  ;;  %v13832_v40 = vor.u32 %v19037_v29, %v13829_v31  ;;  %v13195_v27 = vld [vmem:[%s28958_s29 + $0x3d0] sm:$0xf]  ;;  %v12940_v38 = vor.u32 %v18818_v26, %v12939_v25 }
 0x112   : > { %v14085_v34 = vld [vmem:[%s28958_s29 + $0xae8] sm:$0xf0]  ;;  %3297 = vmatpush.bf16.msra.mxu3 %v13608_v22  ;;  %3310 = vmatpush.bf16.msra.mxu2 %v13864_v23  ;;  %v13451_v29 = vld [vmem:[%s28958_s29 + $0x5d0] sm:$0xf] }
 0x113   : > { %v18901_v36 = vld [vmem:[%s28958_s29 + $0x48c] sm:$0xf]  ;;  %v14088_v46 = vor.u32 %v19101_v32, %v14085_v34  ;;  %v18946_v32 = vld [vmem:[%s28958_s29 + $0x5ec] sm:$0xf0]  ;;  %v3043_v5 = vpop.f32.mrf.mxu0 }
 0x114   : > { %v13285_v37 = vld [vmem:[%s28958_s29 + $0x4a8] sm:$0xf0]  ;;  %v19010_v34 = vld [vmem:[%s28958_s29 + $0x7ec] sm:$0xf0]  ;;  %v13452_v42 = vor.u32 %v18946_v32, %v13451_v29 }
 0x115   : > { %v18965_v43 = vld [vmem:[%s28958_s29 + $0x68c] sm:$0xf]  ;;  %v13288_v47 = vor.u32 %v18901_v36, %v13285_v37  ;;  %3324 = vmatpush.bf16.msra.mxu0 %v14088_v46  ;;  %v18874_v46 = vld [vmem:[%s28958_s29 + $0x3ac] sm:$0xf0] }
 0x116   : > { %v13541_v44 = vld [vmem:[%s28958_s29 + $0x6a8] sm:$0xf0]  ;;  %3298 = vmatpush.bf16.msra.mxu3 %v13576_v39  ;;  %3311 = vmatpush.bf16.msra.mxu2 %v13832_v40  ;;  %v13196_v39 = vor.u32 %v18882_v28, %v13195_v27  ;;  %v12907_v40 = vld [vmem:[%s28958_s29 + $0x190] sm:$0xf] }
 0x117   : > { %v19029_v48 = vld [vmem:[%s28958_s29 + $0x88c] sm:$0xf]  ;;  %v13544_v60 = vor.u32 %v18965_v43, %v13541_v44  ;;  %3286 = vmatpush.bf16.msrb.mxu1 %v13288_v47  ;;  %v13708_v43 = vor.u32 %v19010_v34, %v13707_v33  ;;  %v13163_v44 = vld [vmem:[%s28958_s29 + $0x390] sm:$0xf]  ;;  %v1003_v33 = vperm.slane %v21868_v56, 1 }
 0x118   : > { %v13797_v49 = vld [vmem:[%s28958_s29 + $0x8a8] sm:$0xf0]  ;;  %v13419_v47 = vld [vmem:[%s28958_s29 + $0x590] sm:$0xf] }
 0x119   : > { %v19093_v50 = vld [vmem:[%s28958_s29 + $0xa8c] sm:$0xf]  ;;  %v13800_v61 = vor.u32 %v19029_v48, %v13797_v49  ;;  %v3069_v48 = vpop.f32.mrf.mxu2  ;;  %v18938_v49 = vld [vmem:[%s28958_s29 + $0x5ac] sm:$0xf0] }
 0x11a   : > { %v14053_v54 = vld [vmem:[%s28958_s29 + $0xaa8] sm:$0xf0]  ;;  %3299 = vmatpush.bf16.msra.mxu3 %v13544_v60  ;;  %v18802_v60 = vld [vmem:[%s28958_s29 + $0x16c] sm:$0xf0] }
 0x11b   : > { %v18893_v58 = vld [vmem:[%s28958_s29 + $0x44c] sm:$0xf]  ;;  %v14056_v0 = vor.u32 %v19093_v50, %v14053_v54  ;;  %3312 = vmatpush.bf16.msra.mxu2 %v13800_v61  ;;  %v13675_v50 = vld [vmem:[%s28958_s29 + $0x790] sm:$0xf]  ;;  %v12908_v54 = vor.u32 %v18810_v41, %v12907_v40  ;;  %v13420_v61 = vor.u32 %v18938_v49, %v13419_v47 }
 0x11c   : > { %v13253_v59 = vld [vmem:[%s28958_s29 + $0x468] sm:$0xf0]  ;;  %v13355_v17 = vld [vmem:[%s28958_s29 + $0x510] sm:$0xf] }
 0x11d   : > { %v18957_v62 = vld [vmem:[%s28958_s29 + $0x64c] sm:$0xf]  ;;  %v13256_v1 = vor.u32 %v18893_v58, %v13253_v59  ;;  %3325 = vmatpush.bf16.msra.mxu0 %v14056_v0  ;;  %v13164_v58 = vor.u32 %v18874_v46, %v13163_v44  ;;  %v12875_v59 = vld [vmem:[%s28958_s29 + $0x150] sm:$0xf] }
 0x11e   : > { %v13509_v63 = vld [vmem:[%s28958_s29 + $0x668] sm:$0xf0]  ;;  %v18866_v0 = vld [vmem:[%s28958_s29 + $0x36c] sm:$0xf0] }
 0x11f   : > { %v19021_v2 = vld [vmem:[%s28958_s29 + $0x84c] sm:$0xf]  ;;  %v13512_v13 = vor.u32 %v18957_v62, %v13509_v63  ;;  %3287 = vmatpush.bf16.msrb.mxu1 %v13256_v1  ;;  %v13676_v62 = vor.u32 %v19002_v52, %v13675_v50  ;;  %v13131_v63 = vld [vmem:[%s28958_s29 + $0x350] sm:$0xf] }
 0x120   : > { %v13765_v3 = vld [vmem:[%s28958_s29 + $0x868] sm:$0xf0]  ;;  %v13387_v1 = vld [vmem:[%s28958_s29 + $0x550] sm:$0xf] }
 0x121   : > { %v19085_v4 = vld [vmem:[%s28958_s29 + $0xa4c] sm:$0xf]  ;;  %v13768_v14 = vor.u32 %v19021_v2, %v13765_v3  ;;  %3300 = vmatpush.bf16.msra.mxu3 %v13512_v13  ;;  %v18930_v2 = vld [vmem:[%s28958_s29 + $0x56c] sm:$0xf0] }
 0x122   : > { %v14021_v6 = vld [vmem:[%s28958_s29 + $0xa68] sm:$0xf0]  ;;  %v13643_v3 = vld [vmem:[%s28958_s29 + $0x750] sm:$0xf] }
 0x123   : > { %v18885_v8 = vld [vmem:[%s28958_s29 + $0x40c] sm:$0xf]  ;;  %v14024_v18 = vor.u32 %v19085_v4, %v14021_v6  ;;  %3313 = vmatpush.bf16.msra.mxu2 %v13768_v14  ;;  %v18994_v4 = vld [vmem:[%s28958_s29 + $0x76c] sm:$0xf0]  ;;  %v12876_v6 = vor.u32 %v18802_v60, %v12875_v59  ;;  %v3056_v14 = vpop.f32.mrf.mxu1 }
 0x124   : > { %v13221_v9 = vld [vmem:[%s28958_s29 + $0x428] sm:$0xf0]  ;;  %v13644_v13 = vor.u32 %v18994_v4, %v13643_v3  ;;  %v18786_v25 = vld [vmem:[%s28958_s29 + $0xec] sm:$0xf0] }
 0x125   : > { %v19141_v11 = vld [vmem:[%s28958_s29 + $0xc0c] sm:$0xf]  ;;  %v13224_v19 = vor.u32 %v18885_v8, %v13221_v9  ;;  %3326 = vmatpush.bf16.msra.mxu0 %v14024_v18  ;;  %v13132_v8 = vor.u32 %v18866_v0, %v13131_v63  ;;  %v12843_v9 = vld [vmem:[%s28958_s29 + $0x110] sm:$0xf]  ;;  %v3071_v18 = vpop.f32.mrf.mxu2 }
 0x126   : > { %v14245_v12 = vld [vmem:[%s28958_s29 + $0xc28] sm:$0xf0]  ;;  %v13067_v26 = vld [vmem:[%s28958_s29 + $0x2d0] sm:$0xf] }
 0x127   : > { %v18949_v15 = vld [vmem:[%s28958_s29 + $0x60c] sm:$0xf]  ;;  %v14248_v24 = vor.u32 %v19141_v11, %v14245_v12  ;;  %3288 = vmatpush.bf16.msrb.mxu1 %v13224_v19  ;;  %v3044_v11 = vadd.f32 %v3043_v5, %v21961_v53  ;;  %v13388_v12 = vor.u32 %v18930_v2, %v13387_v1  ;;  %v18922_v53 = vld [vmem:[%s28958_s29 + $0x52c] sm:$0xf0] }
 0x128   : > { %v13477_v16 = vld [vmem:[%s28958_s29 + $0x628] sm:$0xf0]  ;;  %v13611_v19 = vld [vmem:[%s28958_s29 + $0x710] sm:$0xf]  ;;  %v13356_v28 = vor.u32 %v18922_v53, %v13355_v17 }
 0x129   : > { %v19013_v20 = vld [vmem:[%s28958_s29 + $0x80c] sm:$0xf]  ;;  %v13480_v31 = vor.u32 %v18949_v15, %v13477_v16  ;;  %v13099_v15 = vld [vmem:[%s28958_s29 + $0x310] sm:$0xf] }
 0x12a   : > { %v13733_v21 = vld [vmem:[%s28958_s29 + $0x828] sm:$0xf0]  ;;  %3289 = vmatmul.bf16.vlgmr.msrb.gmra.mxu1 %v21023_v51  ;;  %v18858_v16 = vld [vmem:[%s28958_s29 + $0x32c] sm:$0xf0] }
 0x12b   : > { %v19077_v22 = vld [vmem:[%s28958_s29 + $0xa0c] sm:$0xf]  ;;  %v13736_v36 = vor.u32 %v19013_v20, %v13733_v21  ;;  %3340 = vmatpush.bf16.msra.mxu1 %v14248_v24  ;;  %3301 = vmatpush.bf16.msra.mxu3 %v13480_v31  ;;  %v18986_v20 = vld [vmem:[%s28958_s29 + $0x72c] sm:$0xf0]  ;;  %v3057_v21 = vadd.f32 %v3056_v14, %v3044_v11  ;;  %v3058_v52 = vpop.f32.mrf.mxu1 }
 0x12c   : > { %v13989_v23 = vld [vmem:[%s28958_s29 + $0xa28] sm:$0xf0]  ;;  %v12811_v24 = vld [vmem:[%s28958_s29 + $0xd0] sm:$0xf]  ;;  %v13612_v29 = vor.u32 %v18986_v20, %v13611_v19 }
 0x12d   : > { %v13992_v37 = vor.u32 %v19077_v22, %v13989_v23  ;;  %3314 = vmatpush.bf16.msra.mxu2 %v13736_v36  ;;  %v12844_v22 = vor.u32 %v18794_v10, %v12843_v9  ;;  %v13100_v23 = vor.u32 %v18858_v16, %v13099_v15  ;;  %v22130_v27 = vadd.f32 %v3069_v48, %v3057_v21  ;;  %v18850_v31 = vld [vmem:[%s28958_s29 + $0x2ec] sm:$0xf0]  ;;  %v3095_v60 = vpop.f32.mrf.mxu2 }
 0x12e   : > { %3302 = vmatmul.bf16.vlgmr.msra.gmra.mxu3 %v21036_v57  ;;  %v13323_v32 = vld [vmem:[%s28958_s29 + $0x4d0] sm:$0xf] }
 0x12f   : > { %3327 = vmatpush.bf16.msra.mxu0 %v13992_v37  ;;  %3346 = vmatpush.bf16.msrb.mxu3 %v12940_v38  ;;  %v18914_v34 = vld [vmem:[%s28958_s29 + $0x4ec] sm:$0xf0]  ;;  %v12812_v38 = vor.u32 %v18786_v25, %v12811_v24  ;;  %20344 = vtanh.f32 %v22130_v27 }
 0x130   : > { %3359 = vmatpush.bf16.msrb.mxu1 %v13196_v39  ;;  %3315 = vmatmul.bf16.vlgmr.msra.gmra.mxu2 %v21229_v30  ;;  %v13579_v36 = vld [vmem:[%s28958_s29 + $0x6d0] sm:$0xf]  ;;  %v13068_v39 = vor.u32 %v18850_v31, %v13067_v26  ;;  %v13324_v44 = vor.u32 %v18914_v34, %v13323_v32  ;;  %v18814_v32 = vld [vmem:[%s28958_s29 + $0x1d4] sm:$0xf] }
 0x131   : > { %3372 = vmatpush.bf16.msrb.mxu2 %v13452_v42  ;;  %v18978_v37 = vld [vmem:[%s28958_s29 + $0x6ec] sm:$0xf0]  ;;  %v3082_v42 = vpop.f32.mrf.mxu3 }
 0x132   : > { %3328 = vmatmul.bf16.vlgmr.msra.gmra.mxu0 %v21240_v35  ;;  %v12779_v40 = vld [vmem:[%s28958_s29 + $0x90] sm:$0xf]  ;;  %v13580_v46 = vor.u32 %v18978_v37, %v13579_v36  ;;  %v3083_v50 = vadd.f32 %v3082_v42, %v1003_v33  ;;  %v12941_v33 = vld [vmem:[%s28958_s29 + $0x1f0] sm:$0xf0] }
 0x133   : > { %3385 = vmatpush.bf16.msrb.mxu0 %v13708_v43  ;;  %3347 = vmatpush.bf16.msrb.mxu3 %v12908_v54  ;;  %v18778_v41 = vld [vmem:[%s28958_s29 + $0xac] sm:$0xf0]  ;;  %v3045_v43 = vpop.f32.mrf.mxu0  ;;  %v13197_v42 = vld [vmem:[%s28958_s29 + $0x3f0] sm:$0xf0] }
 0x134   : > { %3360 = vmatpush.bf16.msrb.mxu1 %v13164_v58  ;;  %v13035_v47 = vld [vmem:[%s28958_s29 + $0x290] sm:$0xf]  ;;  %v12944_v43 = vor.u32 %v18814_v32, %v12941_v33  ;;  %v18782_v33 = vld [vmem:[%s28958_s29 + $0xd4] sm:$0xf] }
 0x135   : > { %3373 = vmatpush.bf16.msrb.mxu2 %v13420_v61  ;;  %v18842_v48 = vld [vmem:[%s28958_s29 + $0x2ac] sm:$0xf0]  ;;  %v22174_v61 = vadd.f32 %v3095_v60, %v3083_v50  ;;  %v3097_v24 = vpop.f32.mrf.mxu2  ;;  %v12909_v50 = vld [vmem:[%s28958_s29 + $0x1b0] sm:$0xf0] }
 0x136   : > { %v13291_v49 = vld [vmem:[%s28958_s29 + $0x490] sm:$0xf]  ;;  %v13036_v63 = vor.u32 %v18842_v48, %v13035_v47  ;;  %v13165_v60 = vld [vmem:[%s28958_s29 + $0x3b0] sm:$0xf0] }
 0x137   : > { %3386 = vmatpush.bf16.msrb.mxu0 %v13676_v62  ;;  %3348 = vmatpush.bf16.msrb.mxu3 %v12876_v6  ;;  %v18906_v54 = vld [vmem:[%s28958_s29 + $0x4ac] sm:$0xf0]  ;;  %v12780_v62 = vor.u32 %v18778_v41, %v12779_v40  ;;  %v18878_v41 = vld [vmem:[%s28958_s29 + $0x3d4] sm:$0xf] }
 0x138   : > { %3361 = vmatpush.bf16.msrb.mxu1 %v13132_v8  ;;  %v13547_v58 = vld [vmem:[%s28958_s29 + $0x690] sm:$0xf]  ;;  %v13292_v2 = vor.u32 %v18906_v54, %v13291_v49  ;;  %v18806_v49 = vld [vmem:[%s28958_s29 + $0x194] sm:$0xf]  ;;  %v13200_v54 = vor.u32 %v18878_v41, %v13197_v42 }
 0x139   : > { %3374 = vmatpush.bf16.msrb.mxu2 %v13388_v12  ;;  %v18970_v59 = vld [vmem:[%s28958_s29 + $0x6ac] sm:$0xf0]  ;;  %v3084_v16 = vpop.f32.mrf.mxu3  ;;  %v13101_v24 = vld [vmem:[%s28958_s29 + $0x330] sm:$0xf0] }
 0x13a   : > { %14268 = vmatmul.msk.bf16.vlgmr.msra.gmra.mxu1 %vm2978_vm0, %v21142_v45  ;;  %v12747_v0 = vld [vmem:[%s28958_s29 + $0x50] sm:$0xf]  ;;  %v13548_v3 = vor.u32 %v18970_v59, %v13547_v58  ;;  %v18870_v59 = vld [vmem:[%s28958_s29 + $0x394] sm:$0xf] }
 0x13b   : > { %3387 = vmatpush.bf16.msrb.mxu0 %v13644_v13  ;;  %3349 = vmatpush.bf16.msrb.mxu3 %v12844_v22  ;;  %v18770_v1 = vld [vmem:[%s28958_s29 + $0x6c] sm:$0xf0]  ;;  %v13069_v41 = vld [vmem:[%s28958_s29 + $0x2f0] sm:$0xf0] }
 0x13c   : > { %3362 = vmatpush.bf16.msrb.mxu1 %v13100_v23  ;;  %v13003_v4 = vld [vmem:[%s28958_s29 + $0x250] sm:$0xf]  ;;  %v12748_v11 = vor.u32 %v18770_v1, %v12747_v0 }
 0x13d   : > { %3375 = vmatpush.bf16.msrb.mxu2 %v13356_v28  ;;  %v18834_v5 = vld [vmem:[%s28958_s29 + $0x26c] sm:$0xf0] }
 0x13e   : > { %v13259_v6 = vld [vmem:[%s28958_s29 + $0x450] sm:$0xf]  ;;  %v13004_v12 = vor.u32 %v18834_v5, %v13003_v4  ;;  %v18798_v4 = vld [vmem:[%s28958_s29 + $0x154] sm:$0xf] }
 0x13f   : > { %3388 = vmatpush.bf16.msrb.mxu0 %v13612_v29  ;;  %3350 = vmatpush.bf16.msrb.mxu3 %v12812_v38  ;;  %v18898_v8 = vld [vmem:[%s28958_s29 + $0x46c] sm:$0xf0]  ;;  %v12877_v5 = vld [vmem:[%s28958_s29 + $0x170] sm:$0xf0] }
 0x140   : > { %3363 = vmatpush.bf16.msrb.mxu1 %v13068_v39  ;;  %v13515_v9 = vld [vmem:[%s28958_s29 + $0x650] sm:$0xf]  ;;  %v13260_v17 = vor.u32 %v18898_v8, %v13259_v6  ;;  %v13168_v6 = vor.u32 %v18870_v59, %v13165_v60  ;;  %v3108_v8 = vpop.f32.mrf.mxu0 }
 0x141   : > { %3376 = vmatpush.bf16.msrb.mxu2 %v13324_v44  ;;  %v18962_v10 = vld [vmem:[%s28958_s29 + $0x66c] sm:$0xf0] }
 0x142   : > { %v12715_v13 = vld [vmem:[%s28958_s29 + $0x10] sm:$0xf]  ;;  %v13516_v18 = vor.u32 %v18962_v10, %v13515_v9  ;;  %v18862_v10 = vld [vmem:[%s28958_s29 + $0x354] sm:$0xf] }
 0x143   : > { %3389 = vmatpush.bf16.msrb.mxu0 %v13580_v46  ;;  %3351 = vmatpush.bf16.msrb.mxu3 %v12780_v62  ;;  %v18762_v14 = vld [vmem:[%s28958_s29 + $0x2c] sm:$0xf0] }
 0x144   : > { %3364 = vmatpush.bf16.msrb.mxu1 %v13036_v63  ;;  %v12971_v15 = vld [vmem:[%s28958_s29 + $0x210] sm:$0xf]  ;;  %v12716_v29 = vor.u32 %v18762_v14, %v12715_v13  ;;  %v12912_v63 = vor.u32 %v18806_v49, %v12909_v50  ;;  %v12880_v14 = vor.u32 %v18798_v4, %v12877_v5 }
 0x145   : > { %3377 = vmatpush.bf16.msrb.mxu2 %v13292_v2  ;;  %v18826_v53 = vld [vmem:[%s28958_s29 + $0x22c] sm:$0xf0] }
 0x146   : > { %v13227_v19 = vld [vmem:[%s28958_s29 + $0x410] sm:$0xf]  ;;  %v12972_v31 = vor.u32 %v18826_v53, %v12971_v15 }
 0x147   : > { %3390 = vmatpush.bf16.msrb.mxu0 %v13548_v3  ;;  %v18890_v20 = vld [vmem:[%s28958_s29 + $0x42c] sm:$0xf0]  ;;  %3352 = vmatpush.bf16.msrb.mxu3 %v12748_v11  ;;  %v13133_v11 = vld [vmem:[%s28958_s29 + $0x370] sm:$0xf0] }
 0x148   : > { %v13483_v21 = vld [vmem:[%s28958_s29 + $0x610] sm:$0xf]  ;;  %3365 = vmatpush.bf16.msrb.mxu1 %v13004_v12  ;;  %v13228_v34 = vor.u32 %v18890_v20, %v13227_v19  ;;  %v3109_v12 = vadd.f32 %v3108_v8, %v22174_v61  ;;  %v18790_v61 = vld [vmem:[%s28958_s29 + $0x114] sm:$0xf]  ;;  %v3110_v42 = vpop.f32.mrf.mxu0  ;;  %v3147_v49 = vpop.f32.mrf.mxu2 }
 0x149   : > { %v18954_v22 = vld [vmem:[%s28958_s29 + $0x62c] sm:$0xf0]  ;;  %3378 = vmatpush.bf16.msrb.mxu2 %v13260_v17  ;;  %v12845_v19 = vld [vmem:[%s28958_s29 + $0x130] sm:$0xf0] }
 0x14a   : > { %v13963_v23 = vld [vmem:[%s28958_s29 + $0x9d0] sm:$0xf]  ;;  %v13484_v36 = vor.u32 %v18954_v22, %v13483_v21  ;;  %v13136_v21 = vor.u32 %v18862_v10, %v13133_v11  ;;  %v18766_v8 = vld [vmem:[%s28958_s29 + $0x54] sm:$0xf] }
 0x14b   : > { %v19074_v25 = vld [vmem:[%s28958_s29 + $0x9ec] sm:$0xf0]  ;;  %3391 = vmatpush.bf16.msrb.mxu0 %v13516_v18  ;;  %3353 = vmatpush.bf16.msrb.mxu3 %v12716_v29  ;;  %v3121_v18 = vpop.f32.mrf.mxu1 }
 0x14c   : > { %v14219_v26 = vld [vmem:[%s28958_s29 + $0xbd0] sm:$0xf]  ;;  %v13964_v38 = vor.u32 %v19074_v25, %v13963_v23  ;;  %3366 = vmatpush.bf16.msrb.mxu1 %v12972_v31  ;;  %v3122_v20 = vadd.f32 %v3121_v18, %v3109_v12  ;;  %v18854_v23 = vld [vmem:[%s28958_s29 + $0x314] sm:$0xf] }
 0x14d   : > { %v19138_v28 = vld [vmem:[%s28958_s29 + $0xbec] sm:$0xf0]  ;;  %3379 = vmatpush.bf16.msrb.mxu2 %v13228_v34  ;;  %v12813_v34 = vld [vmem:[%s28958_s29 + $0xf0] sm:$0xf0] }
 0x14e   : > { %v14251_v37 = vld [vmem:[%s28958_s29 + $0xc10] sm:$0xf]  ;;  %v14220_v39 = vor.u32 %v19138_v28, %v14219_v26  ;;  %3354 = vmatmul.bf16.vlgmr.msrb.gmra.mxu3 %v21034_v55  ;;  %v12848_v26 = vor.u32 %v18790_v61, %v12845_v19  ;;  %v18758_v19 = vld [vmem:[%s28958_s29 + $0x14] sm:$0xf] }
 0x14f   : > { %v19146_v40 = vld [vmem:[%s28958_s29 + $0xc2c] sm:$0xf0]  ;;  %3392 = vmatpush.bf16.msrb.mxu0 %v13484_v36  ;;  %3398 = vmatpush.bf16.msra.mxu3 %v13964_v38  ;;  %v3134_v36 = vpop.f32.mrf.mxu3  ;;  %v13104_v38 = vor.u32 %v18854_v23, %v13101_v24  ;;  %v13453_v23 = vld [vmem:[%s28958_s29 + $0x5f0] sm:$0xf0] }
 0x150   : > { %v13931_v44 = vld [vmem:[%s28958_s29 + $0x990] sm:$0xf]  ;;  %v14252_v52 = vor.u32 %v19146_v40, %v14251_v37  ;;  %3411 = vmatpush.bf16.msra.mxu1 %v14220_v39  ;;  %3380 = vmatmul.bf16.vlgmr.msrb.gmra.mxu2 %v21023_v51  ;;  %v3135_v37 = vadd.f32 %v3134_v36, %v3122_v20  ;;  %v18846_v40 = vld [vmem:[%s28958_s29 + $0x2d4] sm:$0xf] }
 0x151   : > { %v19066_v46 = vld [vmem:[%s28958_s29 + $0x9ac] sm:$0xf0]  ;;  %3367 = vmatmul.bf16.vlgmr.msrb.gmra.mxu1 %v21065_v7  ;;  %v13072_v60 = vor.u32 %v18846_v40, %v13069_v41  ;;  %v12717_v20 = vld [vmem:[%s28958_s29 + $0x30] sm:$0xf0] }
 0x152   : > { %v14187_v47 = vld [vmem:[%s28958_s29 + $0xb90] sm:$0xf]  ;;  %v13932_v58 = vor.u32 %v19066_v46, %v13931_v44  ;;  %3431 = vmatpush.bf16.msra.mxu2 %v14252_v52  ;;  %3393 = vmatmul.bf16.vlgmr.msrb.gmra.mxu0 %v21036_v57  ;;  %v12816_v44 = vor.u32 %v18782_v33, %v12813_v34  ;;  %v18774_v52 = vld [vmem:[%s28958_s29 + $0x94] sm:$0xf]  ;;  %v22373_v59 = vadd.f32 %v3147_v49, %v3135_v37 }
 0x153   : > { %v19130_v48 = vld [vmem:[%s28958_s29 + $0xbac] sm:$0xf0]  ;;  %3437 = vmatpush.bf16.msra.mxu0 %v12944_v43  ;;  %v19006_v24 = vld [vmem:[%s28958_s29 + $0x7d4] sm:$0xf]  ;;  %v12720_v33 = vor.u32 %v18758_v19, %v12717_v20  ;;  %v1004_v19 = vperm.slane %v21868_v56, 2 }
 0x154   : > { %v14188_v62 = vor.u32 %v19130_v48, %v14187_v47  ;;  %v13899_v0 = vld [vmem:[%s28958_s29 + $0x950] sm:$0xf]  ;;  %3399 = vmatpush.bf16.msra.mxu3 %v13932_v58  ;;  %v3123_v58 = vpop.f32.mrf.mxu1  ;;  %v18822_v34 = vld [vmem:[%s28958_s29 + $0x214] sm:$0xf] }
 0x155   : > { %v19058_v1 = vld [vmem:[%s28958_s29 + $0x96c] sm:$0xf0]  ;;  %v12973_v36 = vld [vmem:[%s28958_s29 + $0x230] sm:$0xf0] }
 0x156   : > { %v14155_v2 = vld [vmem:[%s28958_s29 + $0xb50] sm:$0xf]  ;;  %3450 = vmatpush.bf16.msrb.mxu2 %v13200_v54  ;;  %v13900_v9 = vor.u32 %v19058_v1, %v13899_v0  ;;  %3412 = vmatpush.bf16.msra.mxu1 %v14188_v62  ;;  %v12781_v54 = vld [vmem:[%s28958_s29 + $0xb0] sm:$0xf0]  ;;  %v12976_v49 = vor.u32 %v18822_v34, %v12973_v36 }
 0x157   : > { %v19122_v3 = vld [vmem:[%s28958_s29 + $0xb6c] sm:$0xf0]  ;;  %3438 = vmatpush.bf16.msra.mxu0 %v12912_v63  ;;  %v18838_v63 = vld [vmem:[%s28958_s29 + $0x294] sm:$0xf]  ;;  %v3136_v10 = vpop.f32.mrf.mxu3 }
 0x158   : > { %v14156_v13 = vor.u32 %v19122_v3, %v14155_v2  ;;  %v13867_v15 = vld [vmem:[%s28958_s29 + $0x910] sm:$0xf]  ;;  %3400 = vmatpush.bf16.msra.mxu3 %v13900_v9  ;;  %v13037_v0 = vld [vmem:[%s28958_s29 + $0x2b0] sm:$0xf0]  ;;  %v12784_v2 = vor.u32 %v18774_v52, %v12781_v54 }
 0x159   : > { %v19050_v16 = vld [vmem:[%s28958_s29 + $0x92c] sm:$0xf0]  ;;  %v12749_v9 = vld [vmem:[%s28958_s29 + $0x70] sm:$0xf0]  ;;  %v13040_v11 = vor.u32 %v18838_v63, %v13037_v0 }
 0x15a   : > { %v14123_v17 = vld [vmem:[%s28958_s29 + $0xb10] sm:$0xf]  ;;  %3451 = vmatpush.bf16.msrb.mxu2 %v13168_v6  ;;  %v13868_v22 = vor.u32 %v19050_v16, %v13867_v15  ;;  %3413 = vmatpush.bf16.msra.mxu1 %v14156_v13  ;;  %v18830_v13 = vld [vmem:[%s28958_s29 + $0x254] sm:$0xf] }
 0x15b   : > { %v19114_v53 = vld [vmem:[%s28958_s29 + $0xb2c] sm:$0xf0]  ;;  %3439 = vmatpush.bf16.msra.mxu0 %v12880_v14  ;;  %v13005_v14 = vld [vmem:[%s28958_s29 + $0x270] sm:$0xf0] }
 0x15c   : > { %v14124_v25 = vor.u32 %v19114_v53, %v14123_v17  ;;  %v13835_v28 = vld [vmem:[%s28958_s29 + $0x8d0] sm:$0xf]  ;;  %3401 = vmatpush.bf16.msra.mxu3 %v13868_v22  ;;  %v12752_v17 = vor.u32 %v18766_v8, %v12749_v9  ;;  %v3149_v22 = vpop.f32.mrf.mxu2  ;;  %v14221_v40 = vld [vmem:[%s28958_s29 + $0xbf0] sm:$0xf0] }
 0x15d   : > { %v19042_v29 = vld [vmem:[%s28958_s29 + $0x8ec] sm:$0xf0]  ;;  %v18934_v41 = vld [vmem:[%s28958_s29 + $0x594] sm:$0xf] }
 0x15e   : > { %v14091_v31 = vld [vmem:[%s28958_s29 + $0xad0] sm:$0xf]  ;;  %3452 = vmatpush.bf16.msrb.mxu2 %v13136_v21  ;;  %v13836_v39 = vor.u32 %v19042_v29, %v13835_v28  ;;  %3414 = vmatpush.bf16.msra.mxu1 %v14124_v25  ;;  %v18942_v21 = vld [vmem:[%s28958_s29 + $0x5d4] sm:$0xf] }
 0x15f   : > { %v19106_v32 = vld [vmem:[%s28958_s29 + $0xaec] sm:$0xf0]  ;;  %3440 = vmatpush.bf16.msra.mxu0 %v12848_v26  ;;  %v13709_v25 = vld [vmem:[%s28958_s29 + $0x7f0] sm:$0xf0]  ;;  %v13008_v26 = vor.u32 %v18830_v13, %v13005_v14  ;;  %v13456_v37 = vor.u32 %v18942_v21, %v13453_v23  ;;  %v3173_v21 = vpop.f32.mrf.mxu1 }
 0x160   : > { %v14092_v43 = vor.u32 %v19106_v32, %v14091_v31  ;;  %v13803_v46 = vld [vmem:[%s28958_s29 + $0x890] sm:$0xf]  ;;  %3402 = vmatpush.bf16.msra.mxu3 %v13836_v39  ;;  %14269 = vmatmul.msk.bf16.vlgmr.msra.gmra.mxu2 %vm2978_vm0, %v21142_v45  ;;  %v19070_v29 = vld [vmem:[%s28958_s29 + $0x9d4] sm:$0xf] }
 0x161   : > { %v19034_v47 = vld [vmem:[%s28958_s29 + $0x8ac] sm:$0xf0]  ;;  %v13965_v31 = vld [vmem:[%s28958_s29 + $0x9f0] sm:$0xf0] }
 0x162   : > { %v14059_v48 = vld [vmem:[%s28958_s29 + $0xa90] sm:$0xf]  ;;  %3453 = vmatpush.bf16.msrb.mxu2 %v13104_v38  ;;  %v13804_v62 = vor.u32 %v19034_v47, %v13803_v46  ;;  %3415 = vmatpush.bf16.msra.mxu1 %v14092_v43  ;;  %v13712_v38 = vor.u32 %v19006_v24, %v13709_v25  ;;  %v19134_v39 = vld [vmem:[%s28958_s29 + $0xbd4] sm:$0xf]  ;;  %v13968_v42 = vor.u32 %v19070_v29, %v13965_v31  ;;  %v3160_v43 = vpop.f32.mrf.mxu3 }
 0x163   : > { %v19098_v50 = vld [vmem:[%s28958_s29 + $0xaac] sm:$0xf0]  ;;  %3441 = vmatpush.bf16.msra.mxu0 %v12816_v44  ;;  %v13421_v44 = vld [vmem:[%s28958_s29 + $0x5b0] sm:$0xf0]  ;;  %v14224_v54 = vor.u32 %v19134_v39, %v14221_v40 }
 0x164   : > { %v14060_v1 = vor.u32 %v19098_v50, %v14059_v48  ;;  %v13771_v3 = vld [vmem:[%s28958_s29 + $0x850] sm:$0xf]  ;;  %3403 = vmatpush.bf16.msra.mxu3 %v13804_v62  ;;  %v18998_v46 = vld [vmem:[%s28958_s29 + $0x794] sm:$0xf]  ;;  %v22468_v48 = vadd.f32 %v3160_v43, %v22373_v59  ;;  %v13424_v58 = vor.u32 %v18934_v41, %v13421_v44 }
 0x165   : > { %v19026_v4 = vld [vmem:[%s28958_s29 + $0x86c] sm:$0xf0]  ;;  %v13677_v47 = vld [vmem:[%s28958_s29 + $0x7b0] sm:$0xf0] }
 0x166   : > { %v14027_v5 = vld [vmem:[%s28958_s29 + $0xa50] sm:$0xf]  ;;  %3454 = vmatpush.bf16.msrb.mxu2 %v13072_v60  ;;  %v13772_v12 = vor.u32 %v19026_v4, %v13771_v3  ;;  %3416 = vmatpush.bf16.msra.mxu1 %v14060_v1  ;;  %v19062_v50 = vld [vmem:[%s28958_s29 + $0x994] sm:$0xf]  ;;  %v13680_v60 = vor.u32 %v18998_v46, %v13677_v47  ;;  %20346 = vtanh.f32 %v22468_v48  ;;  %v14403_v48 = vld [vmem:[%s28919_s3 + $0x100] sm:$0xf] }
 0x167   : > { %v19090_v6 = vld [vmem:[%s28958_s29 + $0xa6c] sm:$0xf0]  ;;  %3442 = vmatpush.bf16.msra.mxu0 %v12784_v2  ;;  %v13933_v52 = vld [vmem:[%s28958_s29 + $0x9b0] sm:$0xf0] }
 0x168   : > { %v13739_v15 = vld [vmem:[%s28958_s29 + $0x810] sm:$0xf]  ;;  %v14028_v16 = vor.u32 %v19090_v6, %v14027_v5  ;;  %3404 = vmatpush.bf16.msra.mxu3 %v13772_v12  ;;  %v19126_v59 = vld [vmem:[%s28958_s29 + $0xb94] sm:$0xf]  ;;  %v13936_v0 = vor.u32 %v19062_v50, %v13933_v52  ;;  %v3199_v12 = vpop.f32.mrf.mxu0 }
 0x169   : > { %v19018_v18 = vld [vmem:[%s28958_s29 + $0x82c] sm:$0xf0]  ;;  %v14189_v62 = vld [vmem:[%s28958_s29 + $0xbb0] sm:$0xf0] }
 0x16a   : > { %v13995_v53 = vld [vmem:[%s28958_s29 + $0xa10] sm:$0xf]  ;;  %3455 = vmatpush.bf16.msrb.mxu2 %v13040_v11  ;;  %v13740_v28 = vor.u32 %v19018_v18, %v13739_v15  ;;  %3417 = vmatpush.bf16.msra.mxu1 %v14028_v16  ;;  %v18926_v63 = vld [vmem:[%s28958_s29 + $0x554] sm:$0xf]  ;;  %v14192_v6 = vor.u32 %v19126_v59, %v14189_v62  ;;  %v3162_v15 = vpop.f32.mrf.mxu3  ;;  %v3175_v59 = vpop.f32.mrf.mxu1 }
 0x16b   : > { %v19082_v61 = vld [vmem:[%s28958_s29 + $0xa2c] sm:$0xf0]  ;;  %3443 = vmatpush.bf16.msra.mxu0 %v12752_v17  ;;  %v13389_v1 = vld [vmem:[%s28958_s29 + $0x570] sm:$0xf0]  ;;  %v13171_v59 = vld [vmem:[%s28958_s29 + $0x398] sm:$0xf] }
 0x16c   : > { %v13996_v32 = vor.u32 %v19082_v61, %v13995_v53  ;;  %3405 = vmatpush.bf16.msra.mxu3 %v13740_v28  ;;  %v18990_v2 = vld [vmem:[%s28958_s29 + $0x754] sm:$0xf]  ;;  %v13392_v8 = vor.u32 %v18926_v63, %v13389_v1 }
 0x16d   : > { %v13645_v3 = vld [vmem:[%s28958_s29 + $0x770] sm:$0xf0] }
 0x16e   : > { %3456 = vmatpush.bf16.msrb.mxu2 %v13008_v26  ;;  %3418 = vmatpush.bf16.msra.mxu1 %v13996_v32  ;;  %v19054_v4 = vld [vmem:[%s28958_s29 + $0x954] sm:$0xf]  ;;  %v13648_v9 = vor.u32 %v18990_v2, %v13645_v3  ;;  %v3174_v32 = vadd.f32 %v3173_v21, %v1004_v19 }
 0x16f   : > { %3444 = vmatpush.bf16.msra.mxu0 %v12720_v33  ;;  %3406 = vmatmul.bf16.vlgmr.msra.gmra.mxu3 %v21229_v30  ;;  %v13901_v5 = vld [vmem:[%s28958_s29 + $0x970] sm:$0xf0] }
 0x170   : > { %3463 = vmatpush.bf16.msrb.mxu3 %v13456_v37  ;;  %v19118_v10 = vld [vmem:[%s28958_s29 + $0xb54] sm:$0xf]  ;;  %v13904_v14 = vor.u32 %v19054_v4, %v13901_v5  ;;  %v3201_v41 = vpop.f32.mrf.mxu0 }
 0x171   : > { %3419 = vmatmul.bf16.vlgmr.msra.gmra.mxu1 %v21240_v35  ;;  %v14157_v11 = vld [vmem:[%s28958_s29 + $0xb70] sm:$0xf0]  ;;  %v18883_v41 = vld [vmem:[%s28958_s29 + $0x3f4] sm:$0xf0] }
 0x172   : > { %3476 = vmatpush.bf16.msrb.mxu1 %v13712_v38  ;;  %3457 = vmatpush.bf16.msrb.mxu2 %v12976_v49  ;;  %v18918_v13 = vld [vmem:[%s28958_s29 + $0x514] sm:$0xf]  ;;  %v14160_v20 = vor.u32 %v19118_v10, %v14157_v11  ;;  %v3186_v44 = vpop.f32.mrf.mxu3 }
 0x173   : > { %3489 = vmatpush.bf16.msrb.mxu0 %v13968_v42  ;;  %v13357_v16 = vld [vmem:[%s28958_s29 + $0x530] sm:$0xf0]  ;;  %v3187_v50 = vadd.f32 %v3186_v44, %v3174_v32 }
 0x174   : > { %3445 = vmatmul.bf16.vlgmr.msra.gmra.mxu0 %v21034_v55  ;;  %3464 = vmatpush.bf16.msrb.mxu3 %v13424_v58  ;;  %v18982_v17 = vld [vmem:[%s28958_s29 + $0x714] sm:$0xf]  ;;  %v13360_v22 = vor.u32 %v18918_v13, %v13357_v16  ;;  %v3212_v58 = vpop.f32.mrf.mxu2 }
 0x175   : > { %v13613_v18 = vld [vmem:[%s28958_s29 + $0x730] sm:$0xf0]  ;;  %3458 = vmatmul.bf16.vlgmr.msrb.gmra.mxu2 %v21065_v7 }
 0x176   : > { %3502 = vmatpush.bf16.msra.mxu2 %v14224_v54  ;;  %3477 = vmatpush.bf16.msrb.mxu1 %v13680_v60  ;;  %v19046_v53 = vld [vmem:[%s28958_s29 + $0x914] sm:$0xf]  ;;  %v13616_v23 = vor.u32 %v18982_v17, %v13613_v18 }
 0x177   : > { %3490 = vmatpush.bf16.msrb.mxu0 %v13936_v0  ;;  %v13869_v61 = vld [vmem:[%s28958_s29 + $0x930] sm:$0xf0]  ;;  %v3200_v0 = vadd.f32 %v3199_v12, %v3187_v50 }
 0x178   : > { %3465 = vmatpush.bf16.msrb.mxu3 %v13392_v8  ;;  %v19110_v24 = vld [vmem:[%s28958_s29 + $0xb14] sm:$0xf]  ;;  %v13872_v56 = vor.u32 %v19046_v53, %v13869_v61  ;;  %v22618_v61 = vpop.f32.mrf.mxu0 }
 0x179   : > { %v14125_v25 = vld [vmem:[%s28958_s29 + $0xb30] sm:$0xf0] }
 0x17a   : > { %3503 = vmatpush.bf16.msra.mxu2 %v14192_v6  ;;  %3478 = vmatpush.bf16.msrb.mxu1 %v13648_v9  ;;  %v18910_v26 = vld [vmem:[%s28958_s29 + $0x4d4] sm:$0xf]  ;;  %v14128_v36 = vor.u32 %v19110_v24, %v14125_v25  ;;  %v22595_v9 = vadd.f32 %v3212_v58, %v3200_v0  ;;  %v12947_v24 = vld [vmem:[%s28958_s29 + $0x1d8] sm:$0xf] }
 0x17b   : > { %3491 = vmatpush.bf16.msrb.mxu0 %v13904_v14  ;;  %v13325_v28 = vld [vmem:[%s28958_s29 + $0x4f0] sm:$0xf0]  ;;  %v18819_v25 = vld [vmem:[%s28958_s29 + $0x1f4] sm:$0xf0] }
 0x17c   : > { %v18974_v29 = vld [vmem:[%s28958_s29 + $0x6d4] sm:$0xf]  ;;  %3466 = vmatpush.bf16.msrb.mxu3 %v13360_v22  ;;  %v13328_v37 = vor.u32 %v18910_v26, %v13325_v28  ;;  %v13459_v26 = vld [vmem:[%s28958_s29 + $0x5d8] sm:$0xf] }
 0x17d   : > { %v13581_v31 = vld [vmem:[%s28958_s29 + $0x6f0] sm:$0xf0]  ;;  %v18875_v0 = vld [vmem:[%s28958_s29 + $0x3b4] sm:$0xf0] }
 0x17e   : > { %v19038_v33 = vld [vmem:[%s28958_s29 + $0x8d4] sm:$0xf]  ;;  %3504 = vmatpush.bf16.msra.mxu2 %v14160_v20  ;;  %3479 = vmatpush.bf16.msrb.mxu1 %v13616_v23  ;;  %v13584_v38 = vor.u32 %v18974_v29, %v13581_v31  ;;  %v3188_v23 = vpop.f32.mrf.mxu3  ;;  %v18947_v29 = vld [vmem:[%s28958_s29 + $0x5f4] sm:$0xf0] }
 0x17f   : > { %v13837_v34 = vld [vmem:[%s28958_s29 + $0x8f0] sm:$0xf0]  ;;  %3492 = vmatpush.bf16.msrb.mxu0 %v13872_v56  ;;  %v3214_v56 = vpop.f32.mrf.mxu2  ;;  %v13460_v44 = vor.u32 %v18947_v29, %v13459_v26  ;;  %v18859_v26 = vld [vmem:[%s28958_s29 + $0x334] sm:$0xf0] }
 0x180   : > { %v19102_v39 = vld [vmem:[%s28958_s29 + $0xad4] sm:$0xf]  ;;  %v13840_v43 = vor.u32 %v19038_v33, %v13837_v34  ;;  %3467 = vmatpush.bf16.msrb.mxu3 %v13328_v37  ;;  %v13619_v56 = vld [vmem:[%s28958_s29 + $0x718] sm:$0xf] }
 0x181   : > { %v14093_v40 = vld [vmem:[%s28958_s29 + $0xaf0] sm:$0xf0] }
 0x182   : > { %v18902_v42 = vld [vmem:[%s28958_s29 + $0x494] sm:$0xf]  ;;  %3505 = vmatpush.bf16.msra.mxu2 %v14128_v36  ;;  %v14096_v60 = vor.u32 %v19102_v39, %v14093_v40  ;;  %3480 = vmatpush.bf16.msrb.mxu1 %v13584_v38  ;;  %v13203_v38 = vld [vmem:[%s28958_s29 + $0x3d8] sm:$0xf]  ;;  %v12948_v40 = vor.u32 %v18819_v25, %v12947_v24 }
 0x183   : > { %v13293_v46 = vld [vmem:[%s28958_s29 + $0x4b0] sm:$0xf0]  ;;  %3493 = vmatpush.bf16.msrb.mxu0 %v13840_v43  ;;  %v19011_v43 = vld [vmem:[%s28958_s29 + $0x7f4] sm:$0xf0]  ;;  %v13204_v58 = vor.u32 %v18883_v41, %v13203_v38  ;;  %v22763_v41 = vld [vmem:[%s28918_s2] sm:$0xff] }
 0x184   : > { %v18966_v47 = vld [vmem:[%s28958_s29 + $0x694] sm:$0xf]  ;;  %v13296_v62 = vor.u32 %v18902_v42, %v13293_v46  ;;  %v13715_v42 = vld [vmem:[%s28958_s29 + $0x7d8] sm:$0xf] }
 0x185   : > { %v13549_v49 = vld [vmem:[%s28958_s29 + $0x6b0] sm:$0xf0]  ;;  %v13107_v24 = vld [vmem:[%s28958_s29 + $0x318] sm:$0xf] }
 0x186   : > { %v19030_v52 = vld [vmem:[%s28958_s29 + $0x894] sm:$0xf]  ;;  %v13552_v63 = vor.u32 %v18966_v47, %v13549_v49  ;;  %3506 = vmatpush.bf16.msra.mxu2 %v14096_v60  ;;  %3468 = vmatpush.bf16.msrb.mxu3 %v13296_v62  ;;  %v12915_v47 = vld [vmem:[%s28958_s29 + $0x198] sm:$0xf]  ;;  %v13716_v60 = vor.u32 %v19011_v43, %v13715_v42  ;;  %v3253_v62 = vpop.f32.mrf.mxu0  ;;  %v1005_v42 = vperm.slane %v22763_v41, 3 }
 0x187   : > { %v13805_v54 = vld [vmem:[%s28958_s29 + $0x8b0] sm:$0xf0]  ;;  %v18811_v49 = vld [vmem:[%s28958_s29 + $0x1b4] sm:$0xf0] }
 0x188   : > { %v19094_v1 = vld [vmem:[%s28958_s29 + $0xa94] sm:$0xf]  ;;  %v13808_v4 = vor.u32 %v19030_v52, %v13805_v54  ;;  %3481 = vmatpush.bf16.msrb.mxu1 %v13552_v63  ;;  %v13427_v52 = vld [vmem:[%s28958_s29 + $0x598] sm:$0xf]  ;;  %v12916_v63 = vor.u32 %v18811_v49, %v12915_v47  ;;  %v3264_v62 = vpop.f32.mrf.mxu2 }
 0x189   : > { %v14061_v2 = vld [vmem:[%s28958_s29 + $0xab0] sm:$0xf0]  ;;  %v18939_v54 = vld [vmem:[%s28958_s29 + $0x5b4] sm:$0xf0] }
 0x18a   : > { %v18894_v3 = vld [vmem:[%s28958_s29 + $0x454] sm:$0xf]  ;;  %v14064_v12 = vor.u32 %v19094_v1, %v14061_v2  ;;  %3494 = vmatpush.bf16.msrb.mxu0 %v13808_v4  ;;  %v13683_v1 = vld [vmem:[%s28958_s29 + $0x798] sm:$0xf] }
 0x18b   : > { %v13261_v5 = vld [vmem:[%s28958_s29 + $0x470] sm:$0xf0]  ;;  %v19003_v2 = vld [vmem:[%s28958_s29 + $0x7b4] sm:$0xf0] }
 0x18c   : > { %v18958_v6 = vld [vmem:[%s28958_s29 + $0x654] sm:$0xf]  ;;  %v13264_v15 = vor.u32 %v18894_v3, %v13261_v5  ;;  %3507 = vmatpush.bf16.msra.mxu2 %v14064_v12  ;;  %v13428_v3 = vor.u32 %v18939_v54, %v13427_v52  ;;  %v12883_v4 = vld [vmem:[%s28958_s29 + $0x158] sm:$0xf]  ;;  %v3238_v54 = vpop.f32.mrf.mxu3 }
 0x18d   : > { %v13517_v8 = vld [vmem:[%s28958_s29 + $0x670] sm:$0xf0]  ;;  %v18803_v5 = vld [vmem:[%s28958_s29 + $0x174] sm:$0xf0] }
 0x18e   : > { %v19022_v10 = vld [vmem:[%s28958_s29 + $0x854] sm:$0xf]  ;;  %v13520_v16 = vor.u32 %v18958_v6, %v13517_v8  ;;  %3469 = vmatpush.bf16.msrb.mxu3 %v13264_v15  ;;  %v13395_v6 = vld [vmem:[%s28958_s29 + $0x558] sm:$0xf] }
 0x18f   : > { %v13773_v11 = vld [vmem:[%s28958_s29 + $0x870] sm:$0xf0]  ;;  %v18931_v8 = vld [vmem:[%s28958_s29 + $0x574] sm:$0xf0] }
 0x190   : > { %v19086_v13 = vld [vmem:[%s28958_s29 + $0xa54] sm:$0xf]  ;;  %v13776_v19 = vor.u32 %v19022_v10, %v13773_v11  ;;  %3482 = vmatpush.bf16.msrb.mxu1 %v13520_v16  ;;  %v13172_v10 = vor.u32 %v18875_v0, %v13171_v59  ;;  %v13684_v11 = vor.u32 %v19003_v2, %v13683_v1  ;;  %v13139_v12 = vld [vmem:[%s28958_s29 + $0x358] sm:$0xf]  ;;  %v3265_v2 = vadd.f32 %v3264_v62, %v1005_v42 }
 0x191   : > { %v14029_v14 = vld [vmem:[%s28958_s29 + $0xa70] sm:$0xf0]  ;;  %v18867_v15 = vld [vmem:[%s28958_s29 + $0x374] sm:$0xf0] }
 0x192   : > { %v18886_v17 = vld [vmem:[%s28958_s29 + $0x414] sm:$0xf]  ;;  %v14032_v28 = vor.u32 %v19086_v13, %v14029_v14  ;;  %3495 = vmatpush.bf16.msrb.mxu0 %v13776_v19  ;;  %v3225_v13 = vpop.f32.mrf.mxu1  ;;  %v12884_v14 = vor.u32 %v18803_v5, %v12883_v4  ;;  %v13651_v16 = vld [vmem:[%s28958_s29 + $0x758] sm:$0xf] }
 0x193   : > { %v13229_v18 = vld [vmem:[%s28958_s29 + $0x430] sm:$0xf0]  ;;  %v12851_v19 = vld [vmem:[%s28958_s29 + $0x118] sm:$0xf] }
 0x194   : > { %v18950_v53 = vld [vmem:[%s28958_s29 + $0x614] sm:$0xf]  ;;  %v13232_v33 = vor.u32 %v18886_v17, %v13229_v18  ;;  %3508 = vmatpush.bf16.msra.mxu2 %v14032_v28  ;;  %v18995_v17 = vld [vmem:[%s28958_s29 + $0x774] sm:$0xf0]  ;;  %v3226_v18 = vadd.f32 %v3225_v13, %v22595_v9 }
 0x195   : > { %v13485_v20 = vld [vmem:[%s28958_s29 + $0x630] sm:$0xf0]  ;;  %v18923_v9 = vld [vmem:[%s28958_s29 + $0x534] sm:$0xf0]  ;;  %v13652_v23 = vor.u32 %v18995_v17, %v13651_v16 }
 0x196   : > { %v19014_v21 = vld [vmem:[%s28958_s29 + $0x814] sm:$0xf]  ;;  %v13488_v34 = vor.u32 %v18950_v53, %v13485_v20  ;;  %3470 = vmatpush.bf16.msrb.mxu3 %v13232_v33  ;;  %v13396_v53 = vor.u32 %v18931_v8, %v13395_v6  ;;  %v18795_v20 = vld [vmem:[%s28958_s29 + $0x134] sm:$0xf0]  ;;  %v3277_v33 = vpop.f32.mrf.mxu0 }
 0x197   : > { %v13741_v22 = vld [vmem:[%s28958_s29 + $0x830] sm:$0xf0]  ;;  %v12852_v25 = vor.u32 %v18795_v20, %v12851_v19  ;;  %v18987_v28 = vld [vmem:[%s28958_s29 + $0x734] sm:$0xf0]  ;;  %v22805_v13 = vadd.f32 %v3277_v33, %v3265_v2 }
 0x198   : > { %v19142_v31 = vld [vmem:[%s28958_s29 + $0xc14] sm:$0xf]  ;;  %v13744_v39 = vor.u32 %v19014_v21, %v13741_v22  ;;  %3483 = vmatpush.bf16.msrb.mxu1 %v13488_v34  ;;  %v13363_v21 = vld [vmem:[%s28958_s29 + $0x518] sm:$0xf]  ;;  %v13140_v22 = vor.u32 %v18867_v15, %v13139_v12  ;;  %v13620_v38 = vor.u32 %v18987_v28, %v13619_v56  ;;  %v3240_v28 = vpop.f32.mrf.mxu3 }
 0x199   : > { %v14253_v32 = vld [vmem:[%s28958_s29 + $0xc30] sm:$0xf0]  ;;  %3471 = vmatmul.bf16.vlgmr.msrb.gmra.mxu3 %v21023_v51  ;;  %v13364_v29 = vor.u32 %v18923_v9, %v13363_v21  ;;  %v13331_v34 = vld [vmem:[%s28958_s29 + $0x4d8] sm:$0xf] }
 0x19a   : > { %v19078_v36 = vld [vmem:[%s28958_s29 + $0xa14] sm:$0xf]  ;;  %v14256_v46 = vor.u32 %v19142_v31, %v14253_v32  ;;  %3496 = vmatpush.bf16.msrb.mxu0 %v13744_v39  ;;  %v12819_v31 = vld [vmem:[%s28958_s29 + $0xd8] sm:$0xf]  ;;  %v3227_v47 = vpop.f32.mrf.mxu1 }
 0x19b   : > { %v13997_v37 = vld [vmem:[%s28958_s29 + $0xa30] sm:$0xf0]  ;;  %3484 = vmatmul.bf16.vlgmr.msrb.gmra.mxu1 %v21036_v57  ;;  %v18787_v32 = vld [vmem:[%s28958_s29 + $0xf4] sm:$0xf0]  ;;  %v18815_v47 = vld [vmem:[%s28958_s29 + $0x1dc] sm:$0xf] }
 0x19c   : > { %v14000_v50 = vor.u32 %v19078_v36, %v13997_v37  ;;  %3528 = vmatpush.bf16.msra.mxu1 %v12948_v40  ;;  %3522 = vmatpush.bf16.msra.mxu3 %v14256_v46  ;;  %v18915_v36 = vld [vmem:[%s28958_s29 + $0x4f4] sm:$0xf0]  ;;  %v13108_v37 = vor.u32 %v18859_v26, %v13107_v24  ;;  %v12820_v43 = vor.u32 %v18787_v32, %v12819_v31 }
 0x19d   : > { %3497 = vmatmul.bf16.vlgmr.msrb.gmra.mxu0 %v21229_v30  ;;  %v13075_v39 = vld [vmem:[%s28958_s29 + $0x2d8] sm:$0xf]  ;;  %v13332_v49 = vor.u32 %v18915_v36, %v13331_v34 }
 0x19e   : > { %3554 = vmatpush.bf16.msra.mxu0 %v13460_v44  ;;  %3509 = vmatpush.bf16.msra.mxu2 %v14000_v50  ;;  %v18851_v40 = vld [vmem:[%s28958_s29 + $0x2f4] sm:$0xf0] }
 0x19f   : > { %v13587_v44 = vld [vmem:[%s28958_s29 + $0x6d8] sm:$0xf] }
 0x1a0   : > { %3541 = vmatpush.bf16.msrb.mxu3 %v13204_v58  ;;  %3529 = vmatpush.bf16.msra.mxu1 %v12916_v63  ;;  %v18979_v46 = vld [vmem:[%s28958_s29 + $0x6f4] sm:$0xf0]  ;;  %v13076_v58 = vor.u32 %v18851_v40, %v13075_v39  ;;  %v3239_v63 = vadd.f32 %v3238_v54, %v3226_v18  ;;  %v13205_v54 = vld [vmem:[%s28958_s29 + $0x3f8] sm:$0xf0] }
 0x1a1   : > { %3510 = vmatmul.bf16.vlgmr.msra.gmra.mxu2 %v21240_v35  ;;  %v12787_v50 = vld [vmem:[%s28958_s29 + $0x98] sm:$0xf]  ;;  %v13588_v0 = vor.u32 %v18979_v46, %v13587_v44 }
 0x1a2   : > { %3567 = vmatpush.bf16.msrb.mxu2 %v13716_v60  ;;  %3555 = vmatpush.bf16.msra.mxu0 %v13428_v3  ;;  %v18779_v52 = vld [vmem:[%s28958_s29 + $0xb4] sm:$0xf0]  ;;  %v22797_v8 = vadd.f32 %v22618_v61, %v3239_v63 }
 0x1a3   : > { %v13299_v60 = vld [vmem:[%s28958_s29 + $0x498] sm:$0xf]  ;;  %v12788_v3 = vor.u32 %v18779_v52, %v12787_v50  ;;  %v12949_v50 = vld [vmem:[%s28958_s29 + $0x1f8] sm:$0xf0] }
 0x1a4   : > { %3542 = vmatpush.bf16.msrb.mxu3 %v13172_v10  ;;  %3530 = vmatpush.bf16.msra.mxu1 %v12884_v14  ;;  %v18907_v59 = vld [vmem:[%s28958_s29 + $0x4b4] sm:$0xf0]  ;;  %v3279_v14 = vpop.f32.mrf.mxu0  ;;  %v18879_v52 = vld [vmem:[%s28958_s29 + $0x3dc] sm:$0xf]  ;;  %20348 = vtanh.f32 %v22797_v8  ;;  %v14531_v8 = vld [vmem:[%s28919_s3 + $0x200] sm:$0xf] }
 0x1a5   : > { %v13043_v1 = vld [vmem:[%s28958_s29 + $0x298] sm:$0xf]  ;;  %v13300_v10 = vor.u32 %v18907_v59, %v13299_v60 }
 0x1a6   : > { %3568 = vmatpush.bf16.msrb.mxu2 %v13684_v11  ;;  %3556 = vmatpush.bf16.msra.mxu0 %v13396_v53  ;;  %v18843_v4 = vld [vmem:[%s28958_s29 + $0x2b4] sm:$0xf0] }
 0x1a7   : > { %v13555_v5 = vld [vmem:[%s28958_s29 + $0x698] sm:$0xf]  ;;  %v13044_v16 = vor.u32 %v18843_v4, %v13043_v1  ;;  %v13208_v1 = vor.u32 %v18879_v52, %v13205_v54  ;;  %v18807_v4 = vld [vmem:[%s28958_s29 + $0x19c] sm:$0xf] }
 0x1a8   : > { %3543 = vmatpush.bf16.msrb.mxu3 %v13140_v22  ;;  %3531 = vmatpush.bf16.msra.mxu1 %v12852_v25  ;;  %v18971_v6 = vld [vmem:[%s28958_s29 + $0x6b4] sm:$0xf0]  ;;  %v12821_v52 = vld [vmem:[%s28958_s29 + $0xf8] sm:$0xf0] }
 0x1a9   : > { %v12755_v11 = vld [vmem:[%s28958_s29 + $0x58] sm:$0xf]  ;;  %14270 = vmatmul.msk.bf16.vlgmr.msra.gmra.mxu3 %vm2978_vm0, %v21142_v45  ;;  %v13556_v17 = vor.u32 %v18971_v6, %v13555_v5  ;;  %v12917_v6 = vld [vmem:[%s28958_s29 + $0x1b8] sm:$0xf0] }
 0x1aa   : > { %3569 = vmatpush.bf16.msrb.mxu2 %v13652_v23  ;;  %3557 = vmatpush.bf16.msra.mxu0 %v13364_v29  ;;  %v18771_v12 = vld [vmem:[%s28958_s29 + $0x74] sm:$0xf0]  ;;  %v3266_v29 = vpop.f32.mrf.mxu2  ;;  %v18847_v54 = vld [vmem:[%s28958_s29 + $0x2dc] sm:$0xf] }
 0x1ab   : > { %v13267_v61 = vld [vmem:[%s28958_s29 + $0x458] sm:$0xf]  ;;  %v12756_v53 = vor.u32 %v18771_v12, %v12755_v11  ;;  %v13173_v11 = vld [vmem:[%s28958_s29 + $0x3b8] sm:$0xf0] }
 0x1ac   : > { %3544 = vmatpush.bf16.msrb.mxu3 %v13108_v37  ;;  %3532 = vmatpush.bf16.msra.mxu1 %v12820_v43  ;;  %v18899_v15 = vld [vmem:[%s28958_s29 + $0x474] sm:$0xf0] }
 0x1ad   : > { %v13011_v18 = vld [vmem:[%s28958_s29 + $0x258] sm:$0xf]  ;;  %v13268_v9 = vor.u32 %v18899_v15, %v13267_v61  ;;  %v12920_v15 = vor.u32 %v18807_v4, %v12917_v6  ;;  %v18775_v6 = vld [vmem:[%s28958_s29 + $0x9c] sm:$0xf] }
 0x1ae   : > { %3570 = vmatpush.bf16.msrb.mxu2 %v13620_v38  ;;  %3558 = vmatpush.bf16.msra.mxu0 %v13332_v49  ;;  %v18835_v19 = vld [vmem:[%s28958_s29 + $0x274] sm:$0xf0] }
 0x1af   : > { %v13523_v20 = vld [vmem:[%s28958_s29 + $0x658] sm:$0xf]  ;;  %v13012_v31 = vor.u32 %v18835_v19, %v13011_v18  ;;  %v3290_v19 = vpop.f32.mrf.mxu1 }
 0x1b0   : > { %3545 = vmatpush.bf16.msrb.mxu3 %v13076_v58  ;;  %3533 = vmatpush.bf16.msra.mxu1 %v12788_v3  ;;  %v18963_v21 = vld [vmem:[%s28958_s29 + $0x674] sm:$0xf0] }
 0x1b1   : > { %v12723_v22 = vld [vmem:[%s28958_s29 + $0x18] sm:$0xf]  ;;  %v13524_v32 = vor.u32 %v18963_v21, %v13523_v20  ;;  %v12885_v21 = vld [vmem:[%s28958_s29 + $0x178] sm:$0xf0] }
 0x1b2   : > { %3571 = vmatpush.bf16.msrb.mxu2 %v13588_v0  ;;  %3559 = vmatpush.bf16.msra.mxu0 %v13300_v10  ;;  %v18763_v23 = vld [vmem:[%s28958_s29 + $0x34] sm:$0xf0]  ;;  %v12952_v0 = vor.u32 %v18815_v47, %v12949_v50  ;;  %v18871_v10 = vld [vmem:[%s28958_s29 + $0x39c] sm:$0xf] }
 0x1b3   : > { %v13235_v24 = vld [vmem:[%s28958_s29 + $0x418] sm:$0xf]  ;;  %v12724_v37 = vor.u32 %v18763_v23, %v12723_v22  ;;  %v13141_v22 = vld [vmem:[%s28958_s29 + $0x378] sm:$0xf0]  ;;  %v3291_v23 = vadd.f32 %v3290_v19, %v22805_v13 }
 0x1b4   : > { %v18891_v25 = vld [vmem:[%s28958_s29 + $0x434] sm:$0xf0]  ;;  %3546 = vmatpush.bf16.msrb.mxu3 %v13044_v16  ;;  %3534 = vmatpush.bf16.msra.mxu1 %v12756_v53  ;;  %v13176_v16 = vor.u32 %v18871_v10, %v13173_v11  ;;  %v18799_v53 = vld [vmem:[%s28958_s29 + $0x15c] sm:$0xf] }
 0x1b5   : > { %v13971_v26 = vld [vmem:[%s28958_s29 + $0x9d8] sm:$0xf]  ;;  %v13236_v42 = vor.u32 %v18891_v25, %v13235_v24  ;;  %v18783_v47 = vld [vmem:[%s28958_s29 + $0xdc] sm:$0xf] }
 0x1b6   : > { %v19075_v56 = vld [vmem:[%s28958_s29 + $0x9f4] sm:$0xf0]  ;;  %3572 = vmatpush.bf16.msrb.mxu2 %v13556_v17  ;;  %3560 = vmatpush.bf16.msra.mxu0 %v13268_v9  ;;  %v18863_v9 = vld [vmem:[%s28958_s29 + $0x35c] sm:$0xf] }
 0x1b7   : > { %v12979_v33 = vld [vmem:[%s28958_s29 + $0x218] sm:$0xf]  ;;  %v13972_v43 = vor.u32 %v19075_v56, %v13971_v26  ;;  %v12888_v56 = vor.u32 %v18799_v53, %v12885_v21  ;;  %v13144_v28 = vor.u32 %v18863_v9, %v13141_v22  ;;  %v12789_v11 = vld [vmem:[%s28958_s29 + $0xb8] sm:$0xf0] }
 0x1b8   : > { %v14259_v34 = vld [vmem:[%s28958_s29 + $0xc18] sm:$0xf]  ;;  %3547 = vmatpush.bf16.msrb.mxu3 %v13012_v31  ;;  %3535 = vmatpush.bf16.msra.mxu1 %v12724_v37  ;;  %v18791_v31 = vld [vmem:[%s28958_s29 + $0x11c] sm:$0xf]  ;;  %v12792_v19 = vor.u32 %v18775_v6, %v12789_v11 }
 0x1b9   : > { %v19147_v36 = vld [vmem:[%s28958_s29 + $0xc34] sm:$0xf0]  ;;  %v18767_v22 = vld [vmem:[%s28958_s29 + $0x5c] sm:$0xf] }
 0x1ba   : > { %v18827_v38 = vld [vmem:[%s28958_s29 + $0x234] sm:$0xf0]  ;;  %v14260_v49 = vor.u32 %v19147_v36, %v14259_v34  ;;  %3573 = vmatpush.bf16.msrb.mxu2 %v13524_v32  ;;  %3561 = vmatpush.bf16.msra.mxu0 %v13236_v42  ;;  %v18855_v34 = vld [vmem:[%s28958_s29 + $0x31c] sm:$0xf] }
 0x1bb   : > { %v13491_v39 = vld [vmem:[%s28958_s29 + $0x618] sm:$0xf]  ;;  %v12980_v58 = vor.u32 %v18827_v38, %v12979_v33  ;;  %3536 = vmatmul.bf16.vlgmr.msra.gmra.mxu1 %v21034_v55  ;;  %v12853_v33 = vld [vmem:[%s28958_s29 + $0x138] sm:$0xf0] }
 0x1bc   : > { %v18955_v40 = vld [vmem:[%s28958_s29 + $0x634] sm:$0xf0]  ;;  %3580 = vmatpush.bf16.msrb.mxu1 %v13972_v43  ;;  %v13109_v36 = vld [vmem:[%s28958_s29 + $0x338] sm:$0xf0]  ;;  %v12856_v42 = vor.u32 %v18791_v31, %v12853_v33 }
 0x1bd   : > { %v14227_v44 = vld [vmem:[%s28958_s29 + $0xbd8] sm:$0xf]  ;;  %v13492_v60 = vor.u32 %v18955_v40, %v13491_v39  ;;  %3548 = vmatpush.bf16.msrb.mxu3 %v12980_v58  ;;  %3562 = vmatmul.bf16.vlgmr.msra.gmra.mxu0 %v21023_v51  ;;  %v3329_v39 = vpop.f32.mrf.mxu0  ;;  %v13112_v43 = vor.u32 %v18855_v34, %v13109_v36  ;;  %v13077_v58 = vld [vmem:[%s28958_s29 + $0x2f8] sm:$0xf0] }
 0x1be   : > { %v19139_v46 = vld [vmem:[%s28958_s29 + $0xbf4] sm:$0xf0]  ;;  %3613 = vmatpush.bf16.msrb.mxu0 %v14260_v49  ;;  %v3292_v49 = vpop.f32.mrf.mxu1  ;;  %v18943_v31 = vld [vmem:[%s28958_s29 + $0x5dc] sm:$0xf] }
 0x1bf   : > { %v13939_v59 = vld [vmem:[%s28958_s29 + $0x998] sm:$0xf]  ;;  %v14228_v63 = vor.u32 %v19139_v46, %v14227_v44  ;;  %3574 = vmatpush.bf16.msrb.mxu2 %v13492_v60  ;;  %v19007_v49 = vld [vmem:[%s28958_s29 + $0x7dc] sm:$0xf] }
 0x1c0   : > { %v19067_v62 = vld [vmem:[%s28958_s29 + $0x9b4] sm:$0xf0]  ;;  %3549 = vmatmul.bf16.vlgmr.msrb.gmra.mxu3 %v21065_v7  ;;  %v18999_v6 = vld [vmem:[%s28958_s29 + $0x79c] sm:$0xf] }
 0x1c1   : > { %v14195_v2 = vld [vmem:[%s28958_s29 + $0xb98] sm:$0xf]  ;;  %v13940_v5 = vor.u32 %v19067_v62, %v13939_v59  ;;  %3593 = vmatpush.bf16.msra.mxu3 %v14228_v63  ;;  %v3303_v62 = vpop.f32.mrf.mxu3  ;;  %v3316_v63 = vpop.f32.mrf.mxu2  ;;  %v19063_v11 = vld [vmem:[%s28958_s29 + $0x99c] sm:$0xf] }
 0x1c2   : > { %v19131_v3 = vld [vmem:[%s28958_s29 + $0xbb4] sm:$0xf0]  ;;  %3632 = vmatpush.bf16.msra.mxu0 %v13208_v1  ;;  %3575 = vmatmul.bf16.vlgmr.msrb.gmra.mxu2 %v21036_v57  ;;  %v3304_v1 = vadd.f32 %v3303_v62, %v3291_v23 }
 0x1c3   : > { %v13907_v12 = vld [vmem:[%s28958_s29 + $0x958] sm:$0xf]  ;;  %v14196_v61 = vor.u32 %v19131_v3, %v14195_v2  ;;  %3619 = vmatpush.bf16.msra.mxu2 %v12952_v0  ;;  %3581 = vmatpush.bf16.msrb.mxu1 %v13940_v5  ;;  %v12824_v2 = vor.u32 %v18783_v47, %v12821_v52  ;;  %v13080_v3 = vor.u32 %v18847_v54, %v13077_v58  ;;  %v19071_v52 = vld [vmem:[%s28958_s29 + $0x9dc] sm:$0xf] }
 0x1c4   : > { %v19059_v14 = vld [vmem:[%s28958_s29 + $0x974] sm:$0xf0]  ;;  %v13973_v58 = vld [vmem:[%s28958_s29 + $0x9f8] sm:$0xf0] }
 0x1c5   : > { %v14163_v17 = vld [vmem:[%s28958_s29 + $0xb58] sm:$0xf]  ;;  %v13908_v20 = vor.u32 %v19059_v14, %v13907_v12  ;;  %3594 = vmatpush.bf16.msra.mxu3 %v14196_v61  ;;  %v18839_v12 = vld [vmem:[%s28958_s29 + $0x29c] sm:$0xf]  ;;  %v3317_v61 = vadd.f32 %v3316_v63, %v3304_v1 }
 0x1c6   : > { %v19123_v18 = vld [vmem:[%s28958_s29 + $0xb74] sm:$0xf0]  ;;  %3633 = vmatpush.bf16.msra.mxu0 %v13176_v16  ;;  %v13045_v14 = vld [vmem:[%s28958_s29 + $0x2b8] sm:$0xf0]  ;;  %v23025_v23 = vpop.f32.mrf.mxu1 }
 0x1c7   : > { %v13875_v24 = vld [vmem:[%s28958_s29 + $0x918] sm:$0xf]  ;;  %v14164_v26 = vor.u32 %v19123_v18, %v14163_v17  ;;  %3620 = vmatpush.bf16.msra.mxu2 %v12920_v15  ;;  %3582 = vmatpush.bf16.msrb.mxu1 %v13908_v20  ;;  %v3331_v17 = vpop.f32.mrf.mxu0  ;;  %v23014_v53 = vadd.f32 %v3329_v39, %v3317_v61  ;;  %v13048_v20 = vor.u32 %v18839_v12, %v13045_v14  ;;  %v18935_v63 = vld [vmem:[%s28958_s29 + $0x59c] sm:$0xf] }
 0x1c8   : > { %v19051_v25 = vld [vmem:[%s28958_s29 + $0x934] sm:$0xf0]  ;;  %v13941_v14 = vld [vmem:[%s28958_s29 + $0x9b8] sm:$0xf0] }
 0x1c9   : > { %v14131_v13 = vld [vmem:[%s28958_s29 + $0xb18] sm:$0xf]  ;;  %v13876_v32 = vor.u32 %v19051_v25, %v13875_v24  ;;  %3595 = vmatpush.bf16.msra.mxu3 %v14164_v26  ;;  %v12757_v25 = vld [vmem:[%s28958_s29 + $0x78] sm:$0xf0]  ;;  %v3318_v33 = vpop.f32.mrf.mxu2  ;;  %v3305_v34 = vpop.f32.mrf.mxu3 }
 0x1ca   : > { %v19115_v29 = vld [vmem:[%s28958_s29 + $0xb34] sm:$0xf0]  ;;  %3634 = vmatpush.bf16.msra.mxu0 %v13144_v28  ;;  %v18831_v26 = vld [vmem:[%s28958_s29 + $0x25c] sm:$0xf]  ;;  %v12760_v36 = vor.u32 %v18767_v22, %v12757_v25 }
 0x1cb   : > { %v13843_v37 = vld [vmem:[%s28958_s29 + $0x8d8] sm:$0xf]  ;;  %v14132_v40 = vor.u32 %v19115_v29, %v14131_v13  ;;  %3621 = vmatpush.bf16.msra.mxu2 %v12888_v56  ;;  %3583 = vmatpush.bf16.msrb.mxu1 %v13876_v32  ;;  %v13013_v56 = vld [vmem:[%s28958_s29 + $0x278] sm:$0xf0] }
 0x1cc   : > { %v19043_v38 = vld [vmem:[%s28958_s29 + $0x8f4] sm:$0xf0]  ;;  %v13461_v32 = vld [vmem:[%s28958_s29 + $0x5f8] sm:$0xf0] }
 0x1cd   : > { %v14099_v44 = vld [vmem:[%s28958_s29 + $0xad8] sm:$0xf]  ;;  %v13844_v50 = vor.u32 %v19043_v38, %v13843_v37  ;;  %3596 = vmatpush.bf16.msra.mxu3 %v14132_v40  ;;  %14271 = vmatmul.msk.bf16.vlgmr.msrb.gmra.mxu0 %vm2978_vm0, %v21142_v45  ;;  %v13016_v37 = vor.u32 %v18831_v26, %v13013_v56  ;;  %v18759_v40 = vld [vmem:[%s28958_s29 + $0x1c] sm:$0xf]  ;;  %v13464_v47 = vor.u32 %v18943_v31, %v13461_v32 }
 0x1ce   : > { %v19107_v46 = vld [vmem:[%s28958_s29 + $0xaf4] sm:$0xf0]  ;;  %3635 = vmatpush.bf16.msra.mxu0 %v13112_v43  ;;  %v12725_v43 = vld [vmem:[%s28958_s29 + $0x38] sm:$0xf0] }
 0x1cf   : > { %v13811_v60 = vld [vmem:[%s28958_s29 + $0x898] sm:$0xf]  ;;  %v14100_v0 = vor.u32 %v19107_v46, %v14099_v44  ;;  %3622 = vmatpush.bf16.msra.mxu2 %v12856_v42  ;;  %3584 = vmatpush.bf16.msrb.mxu1 %v13844_v50  ;;  %v18823_v44 = vld [vmem:[%s28958_s29 + $0x21c] sm:$0xf]  ;;  %v12728_v62 = vor.u32 %v18759_v40, %v12725_v43  ;;  %v23168_v43 = vpop.f32.mrf.mxu0 }
 0x1d0   : > { %v19035_v59 = vld [vmem:[%s28958_s29 + $0x8b4] sm:$0xf0]  ;;  %v12981_v46 = vld [vmem:[%s28958_s29 + $0x238] sm:$0xf0] }
 0x1d1   : > { %v14067_v4 = vld [vmem:[%s28958_s29 + $0xa98] sm:$0xf]  ;;  %v13812_v10 = vor.u32 %v19035_v59, %v13811_v60  ;;  %3597 = vmatpush.bf16.msra.mxu3 %v14100_v0  ;;  %v13717_v50 = vld [vmem:[%s28958_s29 + $0x7f8] sm:$0xf0]  ;;  %v12984_v1 = vor.u32 %v18823_v44, %v12981_v46 }
 0x1d2   : > { %v19099_v5 = vld [vmem:[%s28958_s29 + $0xab4] sm:$0xf0]  ;;  %3636 = vmatpush.bf16.msra.mxu0 %v13080_v3  ;;  %v19135_v60 = vld [vmem:[%s28958_s29 + $0xbdc] sm:$0xf]  ;;  %v3344_v3 = vpop.f32.mrf.mxu1 }
 0x1d3   : > { %v13779_v15 = vld [vmem:[%s28958_s29 + $0x858] sm:$0xf]  ;;  %v14068_v18 = vor.u32 %v19099_v5, %v14067_v4  ;;  %3623 = vmatpush.bf16.msra.mxu2 %v12824_v2  ;;  %3585 = vmatpush.bf16.msrb.mxu1 %v13812_v10  ;;  %v14229_v59 = vld [vmem:[%s28958_s29 + $0xbf8] sm:$0xf0]  ;;  %v13720_v2 = vor.u32 %v19007_v49, %v13717_v50  ;;  %v13976_v4 = vor.u32 %v19071_v52, %v13973_v58 }
 0x1d4   : > { %v19027_v16 = vld [vmem:[%s28958_s29 + $0x874] sm:$0xf0]  ;;  %v13429_v0 = vld [vmem:[%s28958_s29 + $0x5b8] sm:$0xf0]  ;;  %v14232_v5 = vor.u32 %v19135_v60, %v14229_v59 }
 0x1d5   : > { %v14035_v21 = vld [vmem:[%s28958_s29 + $0xa58] sm:$0xf]  ;;  %v13780_v24 = vor.u32 %v19027_v16, %v13779_v15  ;;  %3598 = vmatpush.bf16.msra.mxu3 %v14068_v18  ;;  %v13685_v10 = vld [vmem:[%s28958_s29 + $0x7b8] sm:$0xf0]  ;;  %v13432_v12 = vor.u32 %v18935_v63, %v13429_v0 }
 0x1d6   : > { %v19091_v9 = vld [vmem:[%s28958_s29 + $0xa74] sm:$0xf0]  ;;  %3637 = vmatpush.bf16.msra.mxu0 %v13048_v20  ;;  %v19127_v61 = vld [vmem:[%s28958_s29 + $0xb9c] sm:$0xf]  ;;  %v13688_v18 = vor.u32 %v18999_v6, %v13685_v10 }
 0x1d7   : > { %v13747_v28 = vld [vmem:[%s28958_s29 + $0x818] sm:$0xf]  ;;  %v14036_v29 = vor.u32 %v19091_v9, %v14035_v21  ;;  %3624 = vmatpush.bf16.msra.mxu2 %v12792_v19  ;;  %3586 = vmatpush.bf16.msrb.mxu1 %v13780_v24  ;;  %v14197_v15 = vld [vmem:[%s28958_s29 + $0xbb8] sm:$0xf0]  ;;  %v13944_v19 = vor.u32 %v19063_v11, %v13941_v14 }
 0x1d8   : > { %v19019_v13 = vld [vmem:[%s28958_s29 + $0x834] sm:$0xf0]  ;;  %v18927_v16 = vld [vmem:[%s28958_s29 + $0x55c] sm:$0xf]  ;;  %v14200_v20 = vor.u32 %v19127_v61, %v14197_v15 }
 0x1d9   : > { %v14003_v38 = vld [vmem:[%s28958_s29 + $0xa18] sm:$0xf]  ;;  %v13748_v42 = vor.u32 %v19019_v13, %v13747_v28  ;;  %3599 = vmatpush.bf16.msra.mxu3 %v14036_v29  ;;  %v13397_v17 = vld [vmem:[%s28958_s29 + $0x578] sm:$0xf0] }
 0x1da   : > { %v19083_v39 = vld [vmem:[%s28958_s29 + $0xa34] sm:$0xf0]  ;;  %3638 = vmatpush.bf16.msra.mxu0 %v13016_v37  ;;  %v18991_v21 = vld [vmem:[%s28958_s29 + $0x75c] sm:$0xf]  ;;  %v13400_v24 = vor.u32 %v18927_v16, %v13397_v17 }
 0x1db   : > { %v14004_v54 = vor.u32 %v19083_v39, %v14003_v38  ;;  %3625 = vmatpush.bf16.msra.mxu2 %v12760_v36  ;;  %3587 = vmatpush.bf16.msrb.mxu1 %v13748_v42  ;;  %v13653_v9 = vld [vmem:[%s28958_s29 + $0x778] sm:$0xf0]  ;;  %v23160_v39 = vpop.f32.mrf.mxu1 }
 0x1dc   : > { %v19055_v22 = vld [vmem:[%s28958_s29 + $0x95c] sm:$0xf]  ;;  %v13656_v29 = vor.u32 %v18991_v21, %v13653_v9 }
 0x1dd   : > { %3600 = vmatpush.bf16.msra.mxu3 %v14004_v54  ;;  %v13909_v25 = vld [vmem:[%s28958_s29 + $0x978] sm:$0xf0] }
 0x1de   : > { %3588 = vmatmul.bf16.vlgmr.msrb.gmra.mxu1 %v21229_v30  ;;  %3639 = vmatpush.bf16.msra.mxu0 %v12984_v1  ;;  %v19119_v26 = vld [vmem:[%s28958_s29 + $0xb5c] sm:$0xf]  ;;  %v13912_v31 = vor.u32 %v19055_v22, %v13909_v25  ;;  %v23196_v1 = vpop.f32.mrf.mxu2 }
 0x1df   : > { %3645 = vmatpush.bf16.msra.mxu1 %v13464_v47  ;;  %3626 = vmatpush.bf16.msra.mxu2 %v12728_v62  ;;  %v14165_v56 = vld [vmem:[%s28958_s29 + $0xb78] sm:$0xf0]  ;;  %v23188_v62 = vpop.f32.mrf.mxu3 }
 0x1e0   : > { %3601 = vmatmul.bf16.vlgmr.msra.gmra.mxu3 %v21240_v35  ;;  %v18919_v28 = vld [vmem:[%s28958_s29 + $0x51c] sm:$0xf]  ;;  %v14168_v32 = vor.u32 %v19119_v26, %v14165_v56 }
 0x1e1   : > { %3658 = vmatpush.bf16.msrb.mxu3 %v13720_v2  ;;  %v13365_v13 = vld [vmem:[%s28958_s29 + $0x538] sm:$0xf0]  ;;  %3640 = vmatmul.bf16.vlgmr.msra.gmra.mxu0 %v21065_v7 }
 0x1e2   : > { %3684 = vmatpush.bf16.msrb.mxu0 %v14232_v5  ;;  %3627 = vmatmul.bf16.vlgmr.msra.gmra.mxu2 %v21034_v55  ;;  %v18983_v33 = vld [vmem:[%s28958_s29 + $0x71c] sm:$0xf]  ;;  %v13368_v7 = vor.u32 %v18919_v28, %v13365_v13 }
 0x1e3   : > { %3671 = vmatpush.bf16.msrb.mxu2 %v13976_v4  ;;  %3646 = vmatpush.bf16.msra.mxu1 %v13432_v12  ;;  %v13621_v34 = vld [vmem:[%s28958_s29 + $0x738] sm:$0xf0]  ;;  %v3370_v15 = vpop.f32.mrf.mxu1 }
 0x1e4   : > { %v19047_v55 = vld [vmem:[%s28958_s29 + $0x91c] sm:$0xf]  ;;  %v13624_v44 = vor.u32 %v18983_v33, %v13621_v34  ;;  %v19206_v15 = vld [vmem:[%s28919_s3 + $0x1cc] sm:$0xf0] }
 0x1e5   : > { %3659 = vmatpush.bf16.msrb.mxu3 %v13688_v18  ;;  %v13877_v36 = vld [vmem:[%s28958_s29 + $0x938] sm:$0xf0]  ;;  %v3396_v18 = vpop.f32.mrf.mxu0 }
 0x1e6   : > { %3685 = vmatpush.bf16.msrb.mxu0 %v14200_v20  ;;  %v19111_v37 = vld [vmem:[%s28958_s29 + $0xb1c] sm:$0xf]  ;;  %v13880_v46 = vor.u32 %v19047_v55, %v13877_v36 }
 0x1e7   : > { %3672 = vmatpush.bf16.msrb.mxu2 %v13944_v19  ;;  %3647 = vmatpush.bf16.msra.mxu1 %v13400_v24  ;;  %v14133_v38 = vld [vmem:[%s28958_s29 + $0xb38] sm:$0xf0] }
 0x1e8   : > { %v18911_v40 = vld [vmem:[%s28958_s29 + $0x4dc] sm:$0xf]  ;;  %v14136_v47 = vor.u32 %v19111_v37, %v14133_v38 }
 0x1e9   : > { %v13333_v42 = vld [vmem:[%s28958_s29 + $0x4f8] sm:$0xf0]  ;;  %3660 = vmatpush.bf16.msrb.mxu3 %v13656_v29 }
 0x1ea   : > { %3686 = vmatpush.bf16.msrb.mxu0 %v14168_v32  ;;  %v18975_v49 = vld [vmem:[%s28958_s29 + $0x6dc] sm:$0xf]  ;;  %v13336_v54 = vor.u32 %v18911_v40, %v13333_v42  ;;  %v3383_v32 = vpop.f32.mrf.mxu2 }
 0x1eb   : > { %3673 = vmatpush.bf16.msrb.mxu2 %v13912_v31  ;;  %v13589_v50 = vld [vmem:[%s28958_s29 + $0x6f8] sm:$0xf0]  ;;  %3648 = vmatpush.bf16.msra.mxu1 %v13368_v7  ;;  %v3357_v31 = vpop.f32.mrf.mxu3 }
 0x1ec   : > { %v19039_v52 = vld [vmem:[%s28958_s29 + $0x8dc] sm:$0xf]  ;;  %v13592_v2 = vor.u32 %v18975_v49, %v13589_v50  ;;  %v14387_v50 = vld [vmem:[%s28919_s3 + $0xe0] sm:$0xf] }
 0x1ed   : > { %v13845_v58 = vld [vmem:[%s28958_s29 + $0x8f8] sm:$0xf0]  ;;  %3661 = vmatpush.bf16.msrb.mxu3 %v13624_v44 }
 0x1ee   : > { %v19103_v60 = vld [vmem:[%s28958_s29 + $0xadc] sm:$0xf]  ;;  %3687 = vmatpush.bf16.msrb.mxu0 %v14136_v47  ;;  %v13848_v3 = vor.u32 %v19039_v52, %v13845_v58  ;;  %v19178_v52 = vld [vmem:[%s28919_s3 + $0xec] sm:$0xf0] }
 0x1ef   : > { %v14101_v59 = vld [vmem:[%s28958_s29 + $0xaf8] sm:$0xf0]  ;;  %3674 = vmatpush.bf16.msrb.mxu2 %v13880_v46  ;;  %3649 = vmatpush.bf16.msra.mxu1 %v13336_v54  ;;  %v14515_v54 = vld [vmem:[%s28919_s3 + $0x1e0] sm:$0xf] }
 0x1f0   : > { %v18903_v63 = vld [vmem:[%s28958_s29 + $0x49c] sm:$0xf]  ;;  %v14104_v4 = vor.u32 %v19103_v60, %v14101_v59  ;;  %v19210_v60 = vld [vmem:[%s28919_s3 + $0x1ec] sm:$0xf0]  ;;  %v14643_v59 = vld [vmem:[%s28919_s3 + $0x2e0] sm:$0xf] }
 0x1f1   : > { %v13301_v0 = vld [vmem:[%s28958_s29 + $0x4b8] sm:$0xf0]  ;;  %3662 = vmatpush.bf16.msrb.mxu3 %v13592_v2  ;;  %v14771_v2 = vld [vmem:[%s28919_s3 + $0x3e0] sm:$0xf] }
 0x1f2   : > { %v18967_v5 = vld [vmem:[%s28958_s29 + $0x69c] sm:$0xf]  ;;  %v13304_v11 = vor.u32 %v18903_v63, %v13301_v0  ;;  %3688 = vmatpush.bf16.msrb.mxu0 %v14104_v4  ;;  %v19242_v63 = vld [vmem:[%s28919_s3 + $0x2ec] sm:$0xf0]  ;;  %v23312_v18 = vpop.f32.mrf.mxu2 }
 0x1f3   : > { %v13557_v6 = vld [vmem:[%s28958_s29 + $0x6b8] sm:$0xf0]  ;;  %3675 = vmatpush.bf16.msrb.mxu2 %v13848_v3  ;;  %v19274_v3 = vld [vmem:[%s28919_s3 + $0x3ec] sm:$0xf0] }
 0x1f4   : > { %v19031_v10 = vld [vmem:[%s28958_s29 + $0x89c] sm:$0xf]  ;;  %v13560_v19 = vor.u32 %v18967_v5, %v13557_v6  ;;  %3650 = vmatpush.bf16.msra.mxu1 %v13304_v11  ;;  %v14388_v5 = vor.u32 %v19178_v52, %v14387_v50  ;;  %v14516_v6 = vor.u32 %v19210_v60, %v14515_v54  ;;  %v14371_v11 = vld [vmem:[%s28919_s3 + $0xc0] sm:$0xf]  ;;  %v19162_v54 = vld [vmem:[%s28919_s3 + $0x6c] sm:$0xf0] }
 0x1f5   : > { %v13813_v12 = vld [vmem:[%s28958_s29 + $0x8b8] sm:$0xf0]  ;;  %v14323_v52 = vld [vmem:[%s28919_s3 + $0x60] sm:$0xf] }
 0x1f6   : > { %v19095_v14 = vld [vmem:[%s28958_s29 + $0xa9c] sm:$0xf]  ;;  %v13816_v20 = vor.u32 %v19031_v10, %v13813_v12  ;;  %3663 = vmatpush.bf16.msrb.mxu3 %v13560_v19  ;;  %v14644_v10 = vor.u32 %v19242_v63, %v14643_v59  ;;  %v19174_v12 = vld [vmem:[%s28919_s3 + $0xcc] sm:$0xf0]  ;;  %v14755_v19 = vld [vmem:[%s28919_s3 + $0x3c0] sm:$0xf] }
 0x1f7   : > { %v14069_v61 = vld [vmem:[%s28958_s29 + $0xab8] sm:$0xf0]  ;;  %v19194_v59 = vld [vmem:[%s28919_s3 + $0x16c] sm:$0xf0]  ;;  %v14579_v63 = vld [vmem:[%s28919_s3 + $0x260] sm:$0xf] }
 0x1f8   : > { %v18895_v16 = vld [vmem:[%s28958_s29 + $0x45c] sm:$0xf]  ;;  %v14072_v21 = vor.u32 %v19095_v14, %v14069_v61  ;;  %3676 = vmatpush.bf16.msrb.mxu2 %v13816_v20  ;;  %v14499_v14 = vld [vmem:[%s28919_s3 + $0x1c0] sm:$0xf]  ;;  %v14772_v61 = vor.u32 %v19274_v3, %v14771_v2  ;;  %v19270_v20 = vld [vmem:[%s28919_s3 + $0x3cc] sm:$0xf0]  ;;  %v23394_v2 = vpop.f32.mrf.mxu3 }
 0x1f9   : > { %v13269_v17 = vld [vmem:[%s28958_s29 + $0x478] sm:$0xf0]  ;;  %v14707_v3 = vld [vmem:[%s28919_s3 + $0x360] sm:$0xf] }
 0x1fa   : > { %v18959_v9 = vld [vmem:[%s28958_s29 + $0x65c] sm:$0xf]  ;;  %v13272_v25 = vor.u32 %v18895_v16, %v13269_v17  ;;  %3689 = vmatpush.bf16.msrb.mxu0 %v14072_v21  ;;  %v14627_v16 = vld [vmem:[%s28919_s3 + $0x2c0] sm:$0xf]  ;;  %v19238_v17 = vld [vmem:[%s28919_s3 + $0x2cc] sm:$0xf0]  ;;  %v14372_v21 = vor.u32 %v19174_v12, %v14371_v11 }
 0x1fb   : > { %v13525_v22 = vld [vmem:[%s28958_s29 + $0x678] sm:$0xf0]  ;;  %v14307_v11 = vld [vmem:[%s28919_s3 + $0x40] sm:$0xf]  ;;  %v19158_v12 = vld [vmem:[%s28919_s3 + $0x4c] sm:$0xf0] }
 0x1fc   : > { %v19023_v24 = vld [vmem:[%s28958_s29 + $0x85c] sm:$0xf]  ;;  %v13528_v33 = vor.u32 %v18959_v9, %v13525_v22  ;;  %3651 = vmatpush.bf16.msra.mxu1 %v13272_v25  ;;  %v14500_v9 = vor.u32 %v19206_v15, %v14499_v14  ;;  %v14628_v22 = vor.u32 %v19238_v17, %v14627_v16  ;;  %v14483_v25 = vld [vmem:[%s28919_s3 + $0x1a0] sm:$0xf]  ;;  %v19190_v15 = vld [vmem:[%s28919_s3 + $0x14c] sm:$0xf0] }
 0x1fd   : > { %v13781_v26 = vld [vmem:[%s28958_s29 + $0x878] sm:$0xf0]  ;;  %v14435_v14 = vld [vmem:[%s28919_s3 + $0x140] sm:$0xf]  ;;  %v19222_v17 = vld [vmem:[%s28919_s3 + $0x24c] sm:$0xf0] }
 0x1fe   : > { %v19087_v56 = vld [vmem:[%s28958_s29 + $0xa5c] sm:$0xf]  ;;  %v13784_v7 = vor.u32 %v19023_v24, %v13781_v26  ;;  %3664 = vmatpush.bf16.msrb.mxu3 %v13528_v33  ;;  %v19170_v24 = vld [vmem:[%s28919_s3 + $0xac] sm:$0xf0]  ;;  %v14756_v26 = vor.u32 %v19270_v20, %v14755_v19  ;;  %v14563_v16 = vld [vmem:[%s28919_s3 + $0x240] sm:$0xf] }
 0x1ff   : > { %v14037_v28 = vld [vmem:[%s28958_s29 + $0xa78] sm:$0xf0]  ;;  %v14691_v20 = vld [vmem:[%s28919_s3 + $0x340] sm:$0xf] }
 0x200   : > { %v18887_v13 = vld [vmem:[%s28958_s29 + $0x41c] sm:$0xf]  ;;  %v14040_v36 = vor.u32 %v19087_v56, %v14037_v28  ;;  %3677 = vmatpush.bf16.msrb.mxu2 %v13784_v7  ;;  %v19202_v56 = vld [vmem:[%s28919_s3 + $0x1ac] sm:$0xf0]  ;;  %v14611_v28 = vld [vmem:[%s28919_s3 + $0x2a0] sm:$0xf] }
 0x201   : > { %v13237_v29 = vld [vmem:[%s28958_s29 + $0x438] sm:$0xf0]  ;;  %v14484_v32 = vor.u32 %v19202_v56, %v14483_v25  ;;  %v19198_v7 = vld [vmem:[%s28919_s3 + $0x18c] sm:$0xf0]  ;;  %v14564_v25 = vor.u32 %v19222_v17, %v14563_v16  ;;  %v14419_v56 = vld [vmem:[%s28919_s3 + $0x120] sm:$0xf] }
 0x202   : > { %v19143_v34 = vld [vmem:[%s28958_s29 + $0xc1c] sm:$0xf]  ;;  %v13240_v42 = vor.u32 %v18887_v13, %v13237_v29  ;;  %3690 = vmatpush.bf16.msrb.mxu0 %v14040_v36  ;;  %v19234_v13 = vld [vmem:[%s28919_s3 + $0x2ac] sm:$0xf0]  ;;  %v14595_v36 = vld [vmem:[%s28919_s3 + $0x280] sm:$0xf] }
 0x203   : > { %v14261_v55 = vld [vmem:[%s28958_s29 + $0xc38] sm:$0xf0]  ;;  %v19266_v29 = vld [vmem:[%s28919_s3 + $0x3ac] sm:$0xf0]  ;;  %v14612_v33 = vor.u32 %v19234_v13, %v14611_v28  ;;  %v3343_v28 = vadd.f32 %v23025_v23, %v23014_v53  ;;  %v14675_v53 = vld [vmem:[%s28919_s3 + $0x320] sm:$0xf] }
 0x204   : > { %v18951_v37 = vld [vmem:[%s28958_s29 + $0x61c] sm:$0xf]  ;;  %v14264_v49 = vor.u32 %v19143_v34, %v14261_v55  ;;  %3652 = vmatpush.bf16.msra.mxu1 %v13240_v42  ;;  %v14467_v34 = vld [vmem:[%s28919_s3 + $0x180] sm:$0xf]  ;;  %v19250_v23 = vld [vmem:[%s28919_s3 + $0x32c] sm:$0xf0] }
 0x205   : > { %v13493_v38 = vld [vmem:[%s28958_s29 + $0x638] sm:$0xf0]  ;;  %v14723_v42 = vld [vmem:[%s28919_s3 + $0x380] sm:$0xf]  ;;  %20350 = vtanh.f32 %v3343_v28 }
 0x206   : > { %v19015_v40 = vld [vmem:[%s28958_s29 + $0x81c] sm:$0xf]  ;;  %v13496_v58 = vor.u32 %v18951_v37, %v13493_v38  ;;  %v19230_v37 = vld [vmem:[%s28919_s3 + $0x28c] sm:$0xf0]  ;;  %v23366_v38 = vpop.f32.mrf.mxu1 }
 0x207   : > { %v13749_v44 = vld [vmem:[%s28958_s29 + $0x838] sm:$0xf0]  ;;  %3653 = vmatmul.bf16.vlgmr.msra.gmra.mxu1 %v21023_v51  ;;  %v14355_v51 = vld [vmem:[%s28919_s3 + $0xa0] sm:$0xf]  ;;  %v14596_v50 = vor.u32 %v19230_v37, %v14595_v36  ;;  %v19214_v36 = vld [vmem:[%s28919_s3 + $0x20c] sm:$0xf0] }
 0x208   : > { %v19079_v46 = vld [vmem:[%s28958_s29 + $0xa1c] sm:$0xf]  ;;  %v13752_v0 = vor.u32 %v19015_v40, %v13749_v44  ;;  %3704 = vmatpush.bf16.msrb.mxu1 %v14264_v49  ;;  %3665 = vmatpush.bf16.msrb.mxu3 %v13496_v58  ;;  %v14356_v31 = vor.u32 %v19170_v24, %v14355_v51  ;;  %v3435_v40 = vpop.f32.mrf.mxu2  ;;  %v19262_v44 = vld [vmem:[%s28919_s3 + $0x38c] sm:$0xf0]  ;;  %v14468_v49 = vor.u32 %v19198_v7, %v14467_v34  ;;  %v14451_v58 = vld [vmem:[%s28919_s3 + $0x160] sm:$0xf] }
 0x209   : > { %v14005_v47 = vld [vmem:[%s28958_s29 + $0xa38] sm:$0xf0]  ;;  %v14724_v60 = vor.u32 %v19262_v44, %v14723_v42  ;;  %v14308_v51 = vor.u32 %v19158_v12, %v14307_v11  ;;  %v14436_v24 = vor.u32 %v19190_v15, %v14435_v14  ;;  %v14676_v7 = vor.u32 %v19250_v23, %v14675_v53  ;;  %v14659_v37 = vld [vmem:[%s28919_s3 + $0x300] sm:$0xf]  ;;  %v19246_v40 = vld [vmem:[%s28919_s3 + $0x30c] sm:$0xf0] }
 0x20a   : > { %v14008_v4 = vor.u32 %v19079_v46, %v14005_v47  ;;  %3678 = vmatpush.bf16.msrb.mxu2 %v13752_v0  ;;  %v23374_v46 = vpop.f32.mrf.mxu0  ;;  %v19226_v0 = vld [vmem:[%s28919_s3 + $0x26c] sm:$0xf0]  ;;  %v14899_v42 = vld [vmem:[%s28919_s3 + $0x4e0] sm:$0xf] }
 0x20b   : > { %3666 = vmatmul.bf16.vlgmr.msrb.gmra.mxu3 %v21036_v57  ;;  %v14739_v57 = vld [vmem:[%s28919_s3 + $0x3a0] sm:$0xf]  ;;  %v19306_v44 = vld [vmem:[%s28919_s3 + $0x4ec] sm:$0xf0] }
 0x20c   : > { %3691 = vmatpush.bf16.msrb.mxu0 %v14008_v4  ;;  %5272 = vmatpush.bf16.msra.mxu3 %v14388_v5  ;;  %v14740_v55 = vor.u32 %v19266_v29, %v14739_v57  ;;  %v19258_v4 = vld [vmem:[%s28919_s3 + $0x36c] sm:$0xf0]  ;;  %v14324_v5 = vor.u32 %v19162_v54, %v14323_v52  ;;  %v14547_v29 = vld [vmem:[%s28919_s3 + $0x220] sm:$0xf] }
 0x20d   : > { %5285 = vmatpush.bf16.msra.mxu1 %v14516_v6  ;;  %3679 = vmatmul.bf16.vlgmr.msrb.gmra.mxu2 %v21229_v30  ;;  %v14339_v30 = vld [vmem:[%s28919_s3 + $0x80] sm:$0xf]  ;;  %v14452_v6 = vor.u32 %v19194_v59, %v14451_v58  ;;  %v19186_v57 = vld [vmem:[%s28919_s3 + $0x12c] sm:$0xf0]  ;;  %v20345_v58 = vpop.eup %20344  ;;  %v14532_v59 = vor.u32 %v19214_v36, %v14531_v8 }
 0x20e   : > { %5298 = vmatpush.bf16.msra.mxu2 %v14644_v10  ;;  %v14580_v10 = vor.u32 %v19226_v0, %v14579_v63  ;;  %v3422_v19 = vpop.f32.mrf.mxu1  ;;  %v14420_v27 = vor.u32 %v19186_v57, %v14419_v56  ;;  %v15027_v52 = vld [vmem:[%s28919_s3 + $0x5e0] sm:$0xf]  ;;  %v19338_v54 = vld [vmem:[%s28919_s3 + $0x5ec] sm:$0xf0]  ;;  %v20347_v63 = vpop.eup %20346  ;;  %v14660_v0 = vor.u32 %v19246_v40, %v14659_v37  ;;  %v23516_v16 = vpack.c.bf16 %v20345_v58, %v20345_v58 }
 0x20f   : > { %3692 = vmatmul.bf16.vlgmr.msrb.gmra.mxu0 %v21240_v35  ;;  %v19166_v35 = vld [vmem:[%s28919_s3 + $0x8c] sm:$0xf0]  ;;  %v23518_v19 = vpack.c.bf16 %v20347_v63, %v20347_v63  ;;  %v23543_v56 = vld [vmem:[%s28918_s2] sm:$0xff] }
 0x210   : > { %5311 = vmatpush.bf16.msra.mxu0 %v14772_v61  ;;  %5273 = vmatpush.bf16.msra.mxu3 %v14372_v21  ;;  %v14340_v47 = vor.u32 %v19166_v35, %v14339_v30  ;;  %v14708_v61 = vor.u32 %v19258_v4, %v14707_v3  ;;  %v19254_v21 = vld [vmem:[%s28919_s3 + $0x34c] sm:$0xf0]  ;;  %v14275_v35 = vld [vmem:[%s28919_s3] sm:$0xf]  ;;  %v14900_v3 = vor.u32 %v19306_v44, %v14899_v42  ;;  %v20349_v4 = vpop.eup %20348  ;;  %v1007_v28 = vperm.slane %v23543_v56, 5 }
 0x211   : > { %5286 = vmatpush.bf16.msra.mxu1 %v14500_v9  ;;  %v23428_v9 = vpop.f32.mrf.mxu2  ;;  %v14692_v13 = vor.u32 %v19254_v21, %v14691_v20  ;;  %v19370_v11 = vld [vmem:[%s28919_s3 + $0x6ec] sm:$0xf0]  ;;  %v20351_v12 = vpop.eup %20350  ;;  %v23520_v20 = vpack.c.bf16 %v20349_v4, %v20349_v4  ;;  %v14867_v21 = vld [vmem:[%s28919_s3 + $0x4a0] sm:$0xf] }
 0x212   : > { %5299 = vmatpush.bf16.msra.mxu2 %v14628_v22  ;;  %v3448_v22 = vpop.f32.mrf.mxu0  ;;  %v19334_v15 = vld [vmem:[%s28919_s3 + $0x5cc] sm:$0xf0]  ;;  %v15107_v37 = vld [vmem:[%s28919_s3 + $0x680] sm:$0xf] }
 0x213   : > { %v23525_v22 = vpack.c.bf16 %v20351_v12, %v20351_v12  ;;  %v19330_v57 = vld [vmem:[%s28919_s3 + $0x5ac] sm:$0xf0]  ;;  %v14963_v42 = vld [vmem:[%s28919_s3 + $0x560] sm:$0xf] }
 0x214   : > { %5312 = vmatpush.bf16.msra.mxu0 %v14756_v26  ;;  %5274 = vmatpush.bf16.msra.mxu3 %v14356_v31  ;;  %v19154_v26 = vld [vmem:[%s28919_s3 + $0x2c] sm:$0xf0]  ;;  %v14947_v63 = vld [vmem:[%s28919_s3 + $0x540] sm:$0xf] }
 0x215   : > { %5287 = vmatpush.bf16.msra.mxu1 %v14484_v32  ;;  %v19218_v31 = vld [vmem:[%s28919_s3 + $0x22c] sm:$0xf0]  ;;  %v3409_v32 = vpop.f32.mrf.mxu3 }
 0x216   : > { %5300 = vmatpush.bf16.msra.mxu2 %v14612_v33  ;;  %v1006_v33 = vperm.slane %v22763_v41, 4  ;;  %v14548_v34 = vor.u32 %v19218_v31, %v14547_v29  ;;  %v19182_v41 = vld [vmem:[%s28919_s3 + $0x10c] sm:$0xf0]  ;;  %v14851_v31 = vld [vmem:[%s28919_s3 + $0x480] sm:$0xf] }
 0x217   : > { %14272 = vmatmul.msk.bf16.vlgmr.msrb.gmra.mxu1 %vm2978_vm0, %v21142_v45  ;;  %v14291_v45 = vld [vmem:[%s28919_s3 + $0x20] sm:$0xf]  ;;  %v19294_v23 = vld [vmem:[%s28919_s3 + $0x48c] sm:$0xf0] }
 0x218   : > { %5313 = vmatpush.bf16.msra.mxu0 %v14740_v55  ;;  %5275 = vmatpush.bf16.msra.mxu3 %v14340_v47  ;;  %v14292_v30 = vor.u32 %v19154_v26, %v14291_v45  ;;  %v19150_v55 = vld [vmem:[%s28919_s3 + $0xc] sm:$0xf0]  ;;  %v15123_v32 = vld [vmem:[%s28919_s3 + $0x6a0] sm:$0xf]  ;;  %v3485_v36 = vpop.f32.mrf.mxu1 }
 0x219   : > { %5288 = vmatpush.bf16.msra.mxu1 %v14468_v49  ;;  %v3461_v47 = vpop.f32.mrf.mxu2  ;;  %v3356_v49 = vadd.f32 %v23188_v62, %v1006_v33  ;;  %v14883_v62 = vld [vmem:[%s28919_s3 + $0x4c0] sm:$0xf]  ;;  %v19366_v45 = vld [vmem:[%s28919_s3 + $0x6cc] sm:$0xf0] }
 0x21a   : > { %5301 = vmatpush.bf16.msra.mxu2 %v14596_v50  ;;  %v14276_v50 = vor.u32 %v19150_v55, %v14275_v35  ;;  %v19362_v33 = vld [vmem:[%s28919_s3 + $0x6ac] sm:$0xf0]  ;;  %v3447_v35 = vadd.f32 %v23374_v46, %v1007_v28  ;;  %v3498_v55 = vpop.f32.mrf.mxu0  ;;  %v14915_v28 = vld [vmem:[%s28919_s3 + $0x500] sm:$0xf] }
 0x21b   : > { %v3369_v14 = vadd.f32 %v23160_v39, %v3356_v49  ;;  %v19290_v8 = vld [vmem:[%s28919_s3 + $0x46c] sm:$0xf0] }
 0x21c   : > { %5314 = vmatpush.bf16.msra.mxu0 %v14724_v60  ;;  %5276 = vmatpush.bf16.msra.mxu3 %v14324_v5  ;;  %v14404_v60 = vor.u32 %v19182_v41, %v14403_v48  ;;  %v15028_v5 = vor.u32 %v19338_v54, %v15027_v52  ;;  %v15124_v48 = vor.u32 %v19362_v33, %v15123_v32  ;;  %v19322_v44 = vld [vmem:[%s28919_s3 + $0x56c] sm:$0xf0]  ;;  %v14819_v54 = vld [vmem:[%s28919_s3 + $0x440] sm:$0xf]  ;;  %v19208_v32 = vld [vmem:[%s28919_s3 + $0x1e4] sm:$0xf] }
 0x21d   : > { %5289 = vmatpush.bf16.msra.mxu1 %v14452_v6  ;;  %v19302_v6 = vld [vmem:[%s28919_s3 + $0x4cc] sm:$0xf0]  ;;  %v3382_v26 = vadd.f32 %v23196_v1, %v3369_v14  ;;  %v3460_v40 = vadd.f32 %v23428_v9, %v3447_v35  ;;  %v3472_v47 = vpop.f32.mrf.mxu3  ;;  %v14964_v9 = vor.u32 %v19322_v44, %v14963_v42  ;;  %v14517_v33 = vld [vmem:[%s28919_s3 + $0x1f0] sm:$0xf0] }
 0x21e   : > { %5302 = vmatpush.bf16.msra.mxu2 %v14580_v10  ;;  %v15155_v10 = vld [vmem:[%s28919_s3 + $0x6e0] sm:$0xf]  ;;  %v14884_v39 = vor.u32 %v19302_v6, %v14883_v62  ;;  %v19286_v58 = vld [vmem:[%s28919_s3 + $0x44c] sm:$0xf0]  ;;  %v14501_v42 = vld [vmem:[%s28919_s3 + $0x1d0] sm:$0xf0] }
 0x21f   : > { %v15156_v17 = vor.u32 %v19370_v11, %v15155_v10  ;;  %v14820_v6 = vor.u32 %v19286_v58, %v14819_v54  ;;  %v14803_v10 = vld [vmem:[%s28919_s3 + $0x420] sm:$0xf]  ;;  %v19282_v12 = vld [vmem:[%s28919_s3 + $0x42c] sm:$0xf0]  ;;  %v19168_v54 = vld [vmem:[%s28919_s3 + $0xa4] sm:$0xf] }
 0x220   : > { %5315 = vmatpush.bf16.msra.mxu0 %v14708_v61  ;;  %5277 = vmatpush.bf16.msra.mxu3 %v14308_v51  ;;  %v15011_v61 = vld [vmem:[%s28919_s3 + $0x5c0] sm:$0xf]  ;;  %v3487_v14 = vpop.f32.mrf.mxu1 }
 0x221   : > { %5290 = vmatpush.bf16.msra.mxu1 %v14436_v24  ;;  %v15012_v51 = vor.u32 %v19334_v15, %v15011_v61  ;;  %v19298_v24 = vld [vmem:[%s28919_s3 + $0x4ac] sm:$0xf0]  ;;  %v15075_v61 = vld [vmem:[%s28919_s3 + $0x640] sm:$0xf]  ;;  %v19232_v14 = vld [vmem:[%s28919_s3 + $0x2a4] sm:$0xf] }
 0x222   : > { %5303 = vmatpush.bf16.msra.mxu2 %v14564_v25  ;;  %v15139_v25 = vld [vmem:[%s28919_s3 + $0x6c0] sm:$0xf]  ;;  %v14868_v29 = vor.u32 %v19298_v24, %v14867_v21  ;;  %v3500_v62 = vpop.f32.mrf.mxu0  ;;  %v14804_v24 = vor.u32 %v19282_v12, %v14803_v10  ;;  %v14341_v10 = vld [vmem:[%s28919_s3 + $0x90] sm:$0xf0]  ;;  %v19196_v12 = vld [vmem:[%s28919_s3 + $0x184] sm:$0xf] }
 0x223   : > { %v15140_v1 = vor.u32 %v19366_v45, %v15139_v25  ;;  %v14787_v25 = vld [vmem:[%s28919_s3 + $0x400] sm:$0xf]  ;;  %v19278_v45 = vld [vmem:[%s28919_s3 + $0x40c] sm:$0xf0] }
 0x224   : > { %5316 = vmatpush.bf16.msra.mxu0 %v14692_v13  ;;  %5278 = vmatpush.bf16.msra.mxu3 %v14292_v30  ;;  %v14995_v13 = vld [vmem:[%s28919_s3 + $0x5a0] sm:$0xf]  ;;  %v3395_v30 = vadd.f32 %v23168_v43, %v3382_v26  ;;  %v14788_v35 = vor.u32 %v19278_v45, %v14787_v25 }
 0x225   : > { %5291 = vmatpush.bf16.msra.mxu1 %v14420_v27  ;;  %v14996_v53 = vor.u32 %v19330_v57, %v14995_v13  ;;  %v14979_v27 = vld [vmem:[%s28919_s3 + $0x580] sm:$0xf]  ;;  %v3474_v21 = vpop.f32.mrf.mxu3  ;;  %v19346_v57 = vld [vmem:[%s28919_s3 + $0x62c] sm:$0xf0] }
 0x226   : > { %5304 = vmatpush.bf16.msra.mxu2 %v14548_v34  ;;  %v19326_v34 = vld [vmem:[%s28919_s3 + $0x58c] sm:$0xf0]  ;;  %v3408_v41 = vadd.f32 %v23394_v2, %v3395_v30  ;;  %v14835_v43 = vld [vmem:[%s28919_s3 + $0x460] sm:$0xf] }
 0x227   : > { %v14980_v46 = vor.u32 %v19326_v34, %v14979_v27  ;;  %v19358_v2 = vld [vmem:[%s28919_s3 + $0x68c] sm:$0xf0]  ;;  %v14836_v52 = vor.u32 %v19290_v8, %v14835_v43  ;;  %v15059_v13 = vld [vmem:[%s28919_s3 + $0x620] sm:$0xf]  ;;  %v14373_v8 = vld [vmem:[%s28919_s3 + $0xd0] sm:$0xf0] }
 0x228   : > { %5317 = vmatpush.bf16.msra.mxu0 %v14676_v7  ;;  %5279 = vmatpush.bf16.msra.mxu3 %v14276_v50  ;;  %v14852_v7 = vor.u32 %v19294_v23, %v14851_v31  ;;  %v15108_v49 = vor.u32 %v19358_v2, %v15107_v37  ;;  %v3421_v50 = vadd.f32 %v23366_v38, %v3408_v41  ;;  %v19354_v38 = vld [vmem:[%s28919_s3 + $0x66c] sm:$0xf0]  ;;  %v19176_v31 = vld [vmem:[%s28919_s3 + $0xe4] sm:$0xf]  ;;  %v14645_v37 = vld [vmem:[%s28919_s3 + $0x2f0] sm:$0xf0] }
 0x229   : > { %5292 = vmatpush.bf16.msra.mxu1 %v14404_v60  ;;  %v15091_v60 = vld [vmem:[%s28919_s3 + $0x660] sm:$0xf]  ;;  %v15060_v30 = vor.u32 %v19346_v57, %v15059_v13  ;;  %v19342_v41 = vld [vmem:[%s28919_s3 + $0x60c] sm:$0xf0]  ;;  %v14325_v13 = vld [vmem:[%s28919_s3 + $0x70] sm:$0xf0] }
 0x22a   : > { %5305 = vmatpush.bf16.msra.mxu2 %v14532_v59  ;;  %v3473_v59 = vadd.f32 %v3472_v47, %v3460_v40  ;;  %v15092_v4 = vor.u32 %v19354_v38, %v15091_v60  ;;  %v19204_v40 = vld [vmem:[%s28919_s3 + $0x1c4] sm:$0xf]  ;;  %v19398_v21 = vld [vmem:[%s28919_s3 + $0x7cc] sm:$0xf0] }
 0x22b   : > { %5280 = vmatmul.bf16.vlgmr.msra.gmra.mxu3 %v23516_v16  ;;  %v14504_v58 = vor.u32 %v19204_v40, %v14501_v42  ;;  %v19200_v60 = vld [vmem:[%s28919_s3 + $0x1a4] sm:$0xf] }
 0x22c   : > { %5318 = vmatpush.bf16.msra.mxu0 %v14660_v0  ;;  %5324 = vmatpush.bf16.msrb.mxu3 %v14900_v3  ;;  %v19318_v0 = vld [vmem:[%s28919_s3 + $0x54c] sm:$0xf0]  ;;  %v3511_v3 = vpop.f32.mrf.mxu2  ;;  %v3486_v15 = vadd.f32 %v3485_v36, %v3473_v59  ;;  %v19240_v36 = vld [vmem:[%s28919_s3 + $0x2e4] sm:$0xf]  ;;  %v14629_v59 = vld [vmem:[%s28919_s3 + $0x2d0] sm:$0xf0] }
 0x22d   : > { %5337 = vmatpush.bf16.msrb.mxu1 %v15028_v5  ;;  %5306 = vmatmul.bf16.vlgmr.msra.gmra.mxu2 %v23520_v20  ;;  %v3434_v5 = vadd.f32 %v23312_v18, %v3421_v50  ;;  %v14948_v11 = vor.u32 %v19318_v0, %v14947_v63  ;;  %v19350_v18 = vld [vmem:[%s28919_s3 + $0x64c] sm:$0xf0]  ;;  %v3524_v2 = vpop.f32.mrf.mxu3  ;;  %v19236_v38 = vld [vmem:[%s28919_s3 + $0x2c4] sm:$0xf]  ;;  %v14485_v63 = vld [vmem:[%s28919_s3 + $0x1b0] sm:$0xf0] }
 0x22e   : > { %5293 = vmatmul.bf16.vlgmr.msra.gmra.mxu1 %v23518_v19  ;;  %5350 = vmatpush.bf16.msrb.mxu2 %v15156_v17  ;;  %v14931_v17 = vld [vmem:[%s28919_s3 + $0x520] sm:$0xf]  ;;  %v14632_v62 = vor.u32 %v19236_v38, %v14629_v59  ;;  %v14565_v38 = vld [vmem:[%s28919_s3 + $0x250] sm:$0xf0] }
 0x22f   : > { %5319 = vmatmul.bf16.vlgmr.msra.gmra.mxu0 %v23525_v22  ;;  %20352 = vtanh.f32 %v3434_v5  ;;  %v15283_v0 = vld [vmem:[%s28919_s3 + $0x7e0] sm:$0xf]  ;;  %v14421_v59 = vld [vmem:[%s28919_s3 + $0x130] sm:$0xf0] }
 0x230   : > { %5325 = vmatpush.bf16.msrb.mxu3 %v14884_v39  ;;  %v19314_v39 = vld [vmem:[%s28919_s3 + $0x52c] sm:$0xf0] }
 0x231   : > { %5338 = vmatpush.bf16.msrb.mxu1 %v15012_v51  ;;  %v15076_v51 = vor.u32 %v19350_v18, %v15075_v61  ;;  %v14932_v26 = vor.u32 %v19314_v39, %v14931_v17  ;;  %v14613_v61 = vld [vmem:[%s28919_s3 + $0x2b0] sm:$0xf0]  ;;  %v15267_v39 = vld [vmem:[%s28919_s3 + $0x7c0] sm:$0xf] }
 0x232   : > { %5351 = vmatpush.bf16.msrb.mxu2 %v15140_v1  ;;  %v3499_v1 = vadd.f32 %v3498_v55, %v3486_v15  ;;  %v19172_v55 = vld [vmem:[%s28919_s3 + $0xc4] sm:$0xf]  ;;  %v14469_v17 = vld [vmem:[%s28919_s3 + $0x190] sm:$0xf0]  ;;  %v15268_v25 = vor.u32 %v19398_v21, %v15267_v39 }
 0x233   : > { %v14472_v57 = vor.u32 %v19196_v12, %v14469_v17  ;;  %v14901_v17 = vld [vmem:[%s28919_s3 + $0x4f0] sm:$0xf0] }
 0x234   : > { %5326 = vmatpush.bf16.msrb.mxu3 %v14868_v29  ;;  %v19310_v29 = vld [vmem:[%s28919_s3 + $0x50c] sm:$0xf0]  ;;  %v3513_v23 = vpop.f32.mrf.mxu2  ;;  %v3512_v43 = vadd.f32 %v3511_v3, %v3499_v1 }
 0x235   : > { %5339 = vmatpush.bf16.msrb.mxu1 %v14996_v53  ;;  %v14389_v53 = vld [vmem:[%s28919_s3 + $0xf0] sm:$0xf0]  ;;  %v14916_v27 = vor.u32 %v19310_v29, %v14915_v28  ;;  %v19402_v3 = vld [vmem:[%s28919_s3 + $0x7ec] sm:$0xf0]  ;;  %v3526_v18 = vpop.f32.mrf.mxu3  ;;  %v19160_v28 = vld [vmem:[%s28919_s3 + $0x64] sm:$0xf] }
 0x236   : > { %5352 = vmatpush.bf16.msrb.mxu2 %v15124_v48  ;;  %v14392_v34 = vor.u32 %v19176_v31, %v14389_v53  ;;  %v15043_v48 = vld [vmem:[%s28919_s3 + $0x600] sm:$0xf]  ;;  %v3525_v47 = vadd.f32 %v3524_v2, %v3512_v43  ;;  %v19192_v29 = vld [vmem:[%s28919_s3 + $0x164] sm:$0xf]  ;;  %v14597_v53 = vld [vmem:[%s28919_s3 + $0x290] sm:$0xf0] }
 0x237   : > { %v15044_v44 = vor.u32 %v19342_v41, %v15043_v48  ;;  %v19228_v31 = vld [vmem:[%s28919_s3 + $0x284] sm:$0xf]  ;;  %v14453_v23 = vld [vmem:[%s28919_s3 + $0x170] sm:$0xf0]  ;;  %v19390_v2 = vld [vmem:[%s28919_s3 + $0x78c] sm:$0xf0] }
 0x238   : > { %5327 = vmatpush.bf16.msrb.mxu3 %v14852_v7  ;;  %v20353_v7 = vpop.eup %20352  ;;  %20354 = vtanh.f32 %v3525_v47  ;;  %v23746_v1 = vpop.f32.mrf.mxu1  ;;  %v14456_v48 = vor.u32 %v19192_v29, %v14453_v23  ;;  %v19188_v41 = vld [vmem:[%s28919_s3 + $0x144] sm:$0xf]  ;;  %v14581_v43 = vld [vmem:[%s28919_s3 + $0x270] sm:$0xf0] }
 0x239   : > { %5340 = vmatpush.bf16.msrb.mxu1 %v14980_v46  ;;  %v14520_v46 = vor.u32 %v19208_v32, %v14517_v33  ;;  %v23685_v50 = vpack.c.bf16 %v20353_v7, %v20353_v7  ;;  %v15251_v32 = vld [vmem:[%s28919_s3 + $0x7a0] sm:$0xf]  ;;  %v19394_v33 = vld [vmem:[%s28919_s3 + $0x7ac] sm:$0xf0]  ;;  %v19224_v7 = vld [vmem:[%s28919_s3 + $0x264] sm:$0xf] }
 0x23a   : > { %5353 = vmatpush.bf16.msrb.mxu2 %v15108_v49  ;;  %v14648_v49 = vor.u32 %v19240_v36, %v14645_v37  ;;  %v23727_v15 = vpop.f32.mrf.mxu0  ;;  %v14437_v36 = vld [vmem:[%s28919_s3 + $0x150] sm:$0xf0]  ;;  %v15235_v37 = vld [vmem:[%s28919_s3 + $0x780] sm:$0xf]  ;;  %v14584_v42 = vor.u32 %v19224_v7, %v14581_v43  ;;  %v19378_v7 = vld [vmem:[%s28919_s3 + $0x72c] sm:$0xf0] }
 0x23b   : > { %v14549_v18 = vld [vmem:[%s28919_s3 + $0x230] sm:$0xf0] }
 0x23c   : > { %5328 = vmatpush.bf16.msrb.mxu3 %v14836_v52  ;;  %v14376_v52 = vor.u32 %v19172_v55, %v14373_v8  ;;  %v14309_v55 = vld [vmem:[%s28919_s3 + $0x50] sm:$0xf0] }
 0x23d   : > { %5341 = vmatpush.bf16.msrb.mxu1 %v14964_v9  ;;  %v14357_v9 = vld [vmem:[%s28919_s3 + $0xb0] sm:$0xf0] }
 0x23e   : > { %5354 = vmatpush.bf16.msrb.mxu2 %v15092_v4  ;;  %v15284_v4 = vor.u32 %v19402_v3, %v15283_v0  ;;  %v14360_v5 = vor.u32 %v19168_v54, %v14357_v9  ;;  %v14440_v54 = vor.u32 %v19188_v41, %v14437_v36  ;;  %v19184_v9 = vld [vmem:[%s28919_s3 + $0x124] sm:$0xf]  ;;  %v19386_v0 = vld [vmem:[%s28919_s3 + $0x76c] sm:$0xf0] }
 0x23f   : > { %v19148_v3 = vld [vmem:[%s28919_s3 + $0x4] sm:$0xf]  ;;  %v14424_v12 = vor.u32 %v19184_v9, %v14421_v59 }
 0x240   : > { %5329 = vmatpush.bf16.msrb.mxu3 %v14820_v6  ;;  %v19164_v6 = vld [vmem:[%s28919_s3 + $0x84] sm:$0xf]  ;;  %5363 = vmatpush.bf16.msrb.mxu0 %v15284_v4 }
 0x241   : > { %5342 = vmatpush.bf16.msrb.mxu1 %v14948_v11  ;;  %v14488_v11 = vor.u32 %v19200_v60, %v14485_v63  ;;  %v19220_v60 = vld [vmem:[%s28919_s3 + $0x244] sm:$0xf]  ;;  %v15219_v63 = vld [vmem:[%s28919_s3 + $0x760] sm:$0xf] }
 0x242   : > { %5355 = vmatpush.bf16.msrb.mxu2 %v15076_v51  ;;  %v20355_v51 = vpop.eup %20354  ;;  %v3565_v8 = vpop.f32.mrf.mxu0  ;;  %v15220_v4 = vor.u32 %v19386_v0, %v15219_v63  ;;  %v19272_v9 = vld [vmem:[%s28919_s3 + $0x3e4] sm:$0xf] }
 0x243   : > { %v23738_v45 = vpack.c.bf16 %v20355_v51, %v20355_v51  ;;  %v15203_v51 = vld [vmem:[%s28919_s3 + $0x740] sm:$0xf]  ;;  %v19292_v0 = vld [vmem:[%s28919_s3 + $0x484] sm:$0xf] }
 0x244   : > { %5330 = vmatpush.bf16.msrb.mxu3 %v14804_v24  ;;  %v14616_v24 = vor.u32 %v19232_v14, %v14613_v61  ;;  %5364 = vmatpush.bf16.msrb.mxu0 %v15268_v25  ;;  %v19304_v14 = vld [vmem:[%s28919_s3 + $0x4e4] sm:$0xf] }
 0x245   : > { %5343 = vmatpush.bf16.msrb.mxu1 %v14932_v26  ;;  %v14344_v26 = vor.u32 %v19164_v6, %v14341_v10  ;;  %v23793_v40 = vpop.f32.mrf.mxu2  ;;  %v14277_v6 = vld [vmem:[%s28919_s3 + $0x10] sm:$0xf0]  ;;  %v19180_v10 = vld [vmem:[%s28919_s3 + $0x104] sm:$0xf]  ;;  %v14904_v23 = vor.u32 %v19304_v14, %v14901_v17 }
 0x246   : > { %5356 = vmatpush.bf16.msrb.mxu2 %v15060_v30  ;;  %v14600_v30 = vor.u32 %v19228_v31, %v14597_v53  ;;  %v19216_v61 = vld [vmem:[%s28919_s3 + $0x224] sm:$0xf]  ;;  %v14280_v29 = vor.u32 %v19148_v3, %v14277_v6  ;;  %v1008_v31 = vperm.slane %v23543_v56, 6  ;;  %v14853_v3 = vld [vmem:[%s28919_s3 + $0x490] sm:$0xf0] }
 0x247   : > { %v19336_v25 = vld [vmem:[%s28919_s3 + $0x5e4] sm:$0xf]  ;;  %v14757_v6 = vld [vmem:[%s28919_s3 + $0x3d0] sm:$0xf0] }
 0x248   : > { %5331 = vmatpush.bf16.msrb.mxu3 %v14788_v35  ;;  %v15252_v35 = vor.u32 %v19394_v33, %v15251_v32  ;;  %v19300_v32 = vld [vmem:[%s28919_s3 + $0x4c4] sm:$0xf]  ;;  %v14885_v33 = vld [vmem:[%s28919_s3 + $0x4d0] sm:$0xf0]  ;;  %v3538_v8 = vadd.f32 %v23746_v1, %v1008_v31  ;;  %v15171_v1 = vld [vmem:[%s28919_s3 + $0x700] sm:$0xf] }
 0x249   : > { %5344 = vmatpush.bf16.msrb.mxu1 %v14916_v27  ;;  %v14328_v27 = vor.u32 %v19160_v28, %v14325_v13  ;;  %v14552_v13 = vor.u32 %v19216_v61, %v14549_v18  ;;  %v14888_v36 = vor.u32 %v19300_v32, %v14885_v33  ;;  %v19288_v61 = vld [vmem:[%s28919_s3 + $0x464] sm:$0xf]  ;;  %v14837_v18 = vld [vmem:[%s28919_s3 + $0x470] sm:$0xf0] }
 0x24a   : > { %5357 = vmatpush.bf16.msrb.mxu2 %v15044_v44  ;;  %5365 = vmatpush.bf16.msrb.mxu0 %v15252_v35  ;;  %v15236_v44 = vor.u32 %v19390_v2, %v15235_v37  ;;  %v23843_v21 = vpop.f32.mrf.mxu0  ;;  %v19212_v35 = vld [vmem:[%s28919_s3 + $0x204] sm:$0xf]  ;;  %v14869_v2 = vld [vmem:[%s28919_s3 + $0x4b0] sm:$0xf0] }
 0x24b   : > { %5332 = vmatmul.bf16.vlgmr.msrb.gmra.mxu3 %v23685_v50  ;;  %v19296_v37 = vld [vmem:[%s28919_s3 + $0x4a4] sm:$0xf]  ;;  %v14725_v33 = vld [vmem:[%s28919_s3 + $0x390] sm:$0xf0] }
 0x24c   : > { %5376 = vmatpush.bf16.msra.mxu3 %v14392_v34  ;;  %5345 = vmatmul.bf16.vlgmr.msrb.gmra.mxu1 %v23738_v45  ;;  %v19156_v34 = vld [vmem:[%s28919_s3 + $0x44] sm:$0xf]  ;;  %v14872_v59 = vor.u32 %v19296_v37, %v14869_v2 }
 0x24d   : > { %5389 = vmatpush.bf16.msra.mxu1 %v14520_v46  ;;  %v23782_v46 = vpop.f32.mrf.mxu3  ;;  %v14312_v47 = vor.u32 %v19156_v34, %v14309_v55  ;;  %v3578_v28 = vpop.f32.mrf.mxu2  ;;  %v15187_v34 = vld [vmem:[%s28919_s3 + $0x720] sm:$0xf]  ;;  %v19332_v55 = vld [vmem:[%s28919_s3 + $0x5c4] sm:$0xf] }
 0x24e   : > { %5402 = vmatpush.bf16.msra.mxu2 %v14648_v49  ;;  %v19152_v49 = vld [vmem:[%s28919_s3 + $0x24] sm:$0xf]  ;;  %5366 = vmatpush.bf16.msrb.mxu0 %v15236_v44  ;;  %v15188_v43 = vor.u32 %v19378_v7, %v15187_v34  ;;  %v14840_v28 = vor.u32 %v19288_v61, %v14837_v18  ;;  %v14805_v7 = vld [vmem:[%s28919_s3 + $0x430] sm:$0xf0]  ;;  %v19175_v61 = vld [vmem:[%s28919_s3 + $0xd4] sm:$0xf0] }
 0x24f   : > { %v19328_v44 = vld [vmem:[%s28919_s3 + $0x5a4] sm:$0xf] }
 0x250   : > { %5377 = vmatpush.bf16.msra.mxu3 %v14376_v52  ;;  %v14293_v52 = vld [vmem:[%s28919_s3 + $0x30] sm:$0xf0]  ;;  %v19320_v17 = vld [vmem:[%s28919_s3 + $0x564] sm:$0xf] }
 0x251   : > { %5390 = vmatpush.bf16.msra.mxu1 %v14504_v58  ;;  %v3539_v58 = vpop.f32.mrf.mxu1  ;;  %v19316_v31 = vld [vmem:[%s28919_s3 + $0x544] sm:$0xf] }
 0x252   : > { %5403 = vmatpush.bf16.msra.mxu2 %v14632_v62  ;;  %v14568_v62 = vor.u32 %v19220_v60, %v14565_v38  ;;  %5367 = vmatpush.bf16.msrb.mxu0 %v15220_v4  ;;  %v14773_v58 = vld [vmem:[%s28919_s3 + $0x3f0] sm:$0xf0]  ;;  %v3551_v38 = vadd.f32 %v23782_v46, %v3538_v8  ;;  %v19260_v32 = vld [vmem:[%s28919_s3 + $0x384] sm:$0xf] }
 0x253   : > { %v14776_v60 = vor.u32 %v19272_v9, %v14773_v58  ;;  %v14981_v46 = vld [vmem:[%s28919_s3 + $0x590] sm:$0xf0]  ;;  %v19256_v2 = vld [vmem:[%s28919_s3 + $0x364] sm:$0xf]  ;;  %v14395_v9 = vld [vmem:[%s28919_s3 + $0xe8] sm:$0xf] }
 0x254   : > { %5378 = vmatpush.bf16.msra.mxu3 %v14360_v5  ;;  %v14296_v5 = vor.u32 %v19152_v49, %v14293_v52  ;;  %v19374_v49 = vld [vmem:[%s28919_s3 + $0x70c] sm:$0xf0]  ;;  %v14997_v52 = vld [vmem:[%s28919_s3 + $0x5b0] sm:$0xf0]  ;;  %v19179_v58 = vld [vmem:[%s28919_s3 + $0xf4] sm:$0xf0] }
 0x255   : > { %5391 = vmatpush.bf16.msra.mxu1 %v14488_v11  ;;  %v14405_v11 = vld [vmem:[%s28919_s3 + $0x110] sm:$0xf0]  ;;  %v3552_v39 = vpop.f32.mrf.mxu3  ;;  %v15000_v63 = vor.u32 %v19328_v44, %v14997_v52  ;;  %v19308_v52 = vld [vmem:[%s28919_s3 + $0x504] sm:$0xf] }
 0x256   : > { %5404 = vmatpush.bf16.msra.mxu2 %v14616_v24  ;;  %v19382_v24 = vld [vmem:[%s28919_s3 + $0x74c] sm:$0xf0]  ;;  %v14408_v53 = vor.u32 %v19180_v10, %v14405_v11  ;;  %v3564_v11 = vadd.f32 %v23727_v15, %v3551_v38  ;;  %v14965_v15 = vld [vmem:[%s28919_s3 + $0x570] sm:$0xf0]  ;;  %v19248_v18 = vld [vmem:[%s28919_s3 + $0x324] sm:$0xf] }
 0x257   : > { %v14693_v38 = vld [vmem:[%s28919_s3 + $0x350] sm:$0xf0] }
 0x258   : > { %5379 = vmatpush.bf16.msra.mxu3 %v14344_v26  ;;  %v15029_v26 = vld [vmem:[%s28919_s3 + $0x5f0] sm:$0xf0] }
 0x259   : > { %5392 = vmatpush.bf16.msra.mxu1 %v14472_v57  ;;  %v15204_v57 = vor.u32 %v19382_v24, %v15203_v51  ;;  %v19264_v51 = vld [vmem:[%s28919_s3 + $0x3a4] sm:$0xf]  ;;  %v14741_v24 = vld [vmem:[%s28919_s3 + $0x3b0] sm:$0xf0] }
 0x25a   : > { %5405 = vmatpush.bf16.msra.mxu2 %v14600_v30  ;;  %v15032_v30 = vor.u32 %v19336_v25, %v15029_v26  ;;  %v14744_v25 = vor.u32 %v19264_v51, %v14741_v24  ;;  %v3577_v26 = vadd.f32 %v23793_v40, %v3564_v11  ;;  %v14949_v40 = vld [vmem:[%s28919_s3 + $0x550] sm:$0xf0]  ;;  %v14379_v11 = vld [vmem:[%s28919_s3 + $0xc8] sm:$0xf] }
 0x25b   : > { %5368 = vmatpush.bf16.msrb.mxu0 %v15204_v57  ;;  %v3589_v4 = vpop.f32.mrf.mxu1  ;;  %v19284_v57 = vld [vmem:[%s28919_s3 + $0x444] sm:$0xf]  ;;  %v14507_v24 = vld [vmem:[%s28919_s3 + $0x1c8] sm:$0xf] }
 0x25c   : > { %5380 = vmatpush.bf16.msra.mxu3 %v14328_v27  ;;  %v14533_v27 = vld [vmem:[%s28919_s3 + $0x210] sm:$0xf0] }
 0x25d   : > { %5393 = vmatpush.bf16.msra.mxu1 %v14456_v48  ;;  %v15013_v48 = vld [vmem:[%s28919_s3 + $0x5d0] sm:$0xf0]  ;;  %v14536_v41 = vor.u32 %v19212_v35, %v14533_v27  ;;  %v14728_v35 = vor.u32 %v19260_v32, %v14725_v33  ;;  %v14491_v33 = vld [vmem:[%s28919_s3 + $0x1a8] sm:$0xf] }
 0x25e   : > { %5406 = vmatpush.bf16.msra.mxu2 %v14584_v42  ;;  %v15016_v42 = vor.u32 %v19332_v55, %v15013_v48  ;;  %v14952_v48 = vor.u32 %v19316_v31, %v14949_v40  ;;  %v19244_v40 = vld [vmem:[%s28919_s3 + $0x304] sm:$0xf] }
 0x25f   : > { %5369 = vmatpush.bf16.msrb.mxu0 %v15188_v43  ;;  %v19312_v43 = vld [vmem:[%s28919_s3 + $0x524] sm:$0xf] }
 0x260   : > { %5381 = vmatpush.bf16.msra.mxu3 %v14312_v47  ;;  %v3617_v47 = vpop.f32.mrf.mxu0 }
 0x261   : > { %5394 = vmatpush.bf16.msra.mxu1 %v14440_v54  ;;  %v15172_v54 = vor.u32 %v19374_v49, %v15171_v1  ;;  %v14789_v1 = vld [vmem:[%s28919_s3 + $0x410] sm:$0xf0] }
 0x262   : > { %5407 = vmatpush.bf16.msra.mxu2 %v14568_v62  ;;  %v19324_v62 = vld [vmem:[%s28919_s3 + $0x584] sm:$0xf] }
 0x263   : > { %5370 = vmatpush.bf16.msrb.mxu0 %v15172_v54  ;;  %v14984_v14 = vor.u32 %v19324_v62, %v14981_v46  ;;  %v14917_v54 = vld [vmem:[%s28919_s3 + $0x510] sm:$0xf0] }
 0x264   : > { %5382 = vmatpush.bf16.msra.mxu3 %v14296_v5  ;;  %v19268_v5 = vld [vmem:[%s28919_s3 + $0x3c4] sm:$0xf]  ;;  %v15157_v46 = vld [vmem:[%s28919_s3 + $0x6f0] sm:$0xf0] }
 0x265   : > { %5395 = vmatpush.bf16.msra.mxu1 %v14424_v12  ;;  %v14760_v10 = vor.u32 %v19268_v5, %v14757_v6  ;;  %v14856_v12 = vor.u32 %v19292_v0, %v14853_v3  ;;  %v23968_v55 = vpop.f32.mrf.mxu2  ;;  %v14920_v6 = vor.u32 %v19308_v52, %v14917_v54  ;;  %v14459_v54 = vld [vmem:[%s28919_s3 + $0x168] sm:$0xf] }
 0x266   : > { %5408 = vmatpush.bf16.msra.mxu2 %v14552_v13  ;;  %v14968_v13 = vor.u32 %v19320_v17, %v14965_v15  ;;  %v14677_v17 = vld [vmem:[%s28919_s3 + $0x330] sm:$0xf0] }
 0x267   : > { %5415 = vmatpush.bf16.msra.mxu0 %v14776_v60  ;;  %v19252_v60 = vld [vmem:[%s28919_s3 + $0x344] sm:$0xf] }
 0x268   : > { %5383 = vmatpush.bf16.msra.mxu3 %v14280_v29  ;;  %v23941_v39 = vpop.f32.mrf.mxu0  ;;  %v14821_v29 = vld [vmem:[%s28919_s3 + $0x450] sm:$0xf0]  ;;  %v14696_v3 = vor.u32 %v19252_v60, %v14693_v38  ;;  %v19352_v38 = vld [vmem:[%s28919_s3 + $0x664] sm:$0xf] }
 0x269   : > { %5396 = vmatpush.bf16.msra.mxu1 %v14408_v53  ;;  %v3590_v53 = vadd.f32 %v3589_v4, %v3577_v26  ;;  %v14824_v34 = vor.u32 %v19284_v57, %v14821_v29  ;;  %v19368_v4 = vld [vmem:[%s28919_s3 + $0x6e4] sm:$0xf]  ;;  %v14380_v57 = vor.u32 %v19175_v61, %v14379_v11  ;;  %v14363_v29 = vld [vmem:[%s28919_s3 + $0xa8] sm:$0xf]  ;;  %v15077_v11 = vld [vmem:[%s28919_s3 + $0x650] sm:$0xf0] }
 0x26a   : > { %5409 = vmatpush.bf16.msra.mxu2 %v14536_v41  ;;  %v19280_v41 = vld [vmem:[%s28919_s3 + $0x424] sm:$0xf]  ;;  %v15160_v51 = vor.u32 %v19368_v4, %v15157_v46  ;;  %v14443_v4 = vld [vmem:[%s28919_s3 + $0x148] sm:$0xf]  ;;  %v19191_v46 = vld [vmem:[%s28919_s3 + $0x154] sm:$0xf0] }
 0x26b   : > { %5384 = vmatmul.bf16.vlgmr.msra.gmra.mxu3 %v23516_v16  ;;  %5416 = vmatpush.bf16.msra.mxu0 %v14760_v10  ;;  %v14808_v47 = vor.u32 %v19280_v41, %v14805_v7  ;;  %v14396_v10 = vor.u32 %v19179_v58, %v14395_v9  ;;  %v19364_v26 = vld [vmem:[%s28919_s3 + $0x6c4] sm:$0xf]  ;;  %v19195_v9 = vld [vmem:[%s28919_s3 + $0x174] sm:$0xf0] }
 0x26c   : > { %5428 = vmatpush.bf16.msrb.mxu3 %v14904_v23  ;;  %5397 = vmatmul.bf16.vlgmr.msra.gmra.mxu1 %v23518_v19  ;;  %v3591_v23 = vpop.f32.mrf.mxu1 }
 0x26d   : > { %5441 = vmatpush.bf16.msrb.mxu1 %v15032_v30  ;;  %v3602_v30 = vpop.f32.mrf.mxu3  ;;  %v3630_v5 = vpop.f32.mrf.mxu2  ;;  %v14661_v23 = vld [vmem:[%s28919_s3 + $0x310] sm:$0xf0] }
 0x26e   : > { %v3603_v27 = vadd.f32 %v3602_v30, %v3590_v53  ;;  %v19171_v53 = vld [vmem:[%s28919_s3 + $0xb4] sm:$0xf0] }
 0x26f   : > { %5417 = vmatpush.bf16.msra.mxu0 %v14744_v25  ;;  %v19207_v25 = vld [vmem:[%s28919_s3 + $0x1d4] sm:$0xf0]  ;;  %v14364_v41 = vor.u32 %v19171_v53, %v14363_v29  ;;  %v19344_v29 = vld [vmem:[%s28919_s3 + $0x624] sm:$0xf] }
 0x270   : > { %5429 = vmatpush.bf16.msrb.mxu3 %v14888_v36  ;;  %v3616_v8 = vadd.f32 %v23843_v21, %v3603_v27  ;;  %v14933_v36 = vld [vmem:[%s28919_s3 + $0x530] sm:$0xf0]  ;;  %v3643_v37 = vpop.f32.mrf.mxu0  ;;  %v19276_v21 = vld [vmem:[%s28919_s3 + $0x404] sm:$0xf]  ;;  %v14508_v31 = vor.u32 %v19207_v25, %v14507_v24  ;;  %v19203_v30 = vld [vmem:[%s28919_s3 + $0x1b4] sm:$0xf0] }
 0x271   : > { %5442 = vmatpush.bf16.msrb.mxu1 %v15016_v42  ;;  %v14709_v42 = vld [vmem:[%s28919_s3 + $0x370] sm:$0xf0]  ;;  %v14936_v49 = vor.u32 %v19312_v43, %v14933_v36  ;;  %v14792_v62 = vor.u32 %v19276_v21, %v14789_v1  ;;  %v19360_v27 = vld [vmem:[%s28919_s3 + $0x6a4] sm:$0xf]  ;;  %v14492_v7 = vor.u32 %v19203_v30, %v14491_v33  ;;  %v19167_v43 = vld [vmem:[%s28919_s3 + $0x94] sm:$0xf0] }
 0x272   : > { %v14712_v44 = vor.u32 %v19256_v2, %v14709_v42  ;;  %20356 = vtanh.f32 %v3616_v8  ;;  %v14475_v36 = vld [vmem:[%s28919_s3 + $0x188] sm:$0xf]  ;;  %v19199_v37 = vld [vmem:[%s28919_s3 + $0x194] sm:$0xf0] }
 0x273   : > { %5418 = vmatpush.bf16.msra.mxu0 %v14728_v35  ;;  %v1009_v35 = vperm.slane %v23543_v56, 7  ;;  %v14347_v56 = vld [vmem:[%s28919_s3 + $0x88] sm:$0xf]  ;;  %v14476_v1 = vor.u32 %v19199_v37, %v14475_v36  ;;  %v19155_v24 = vld [vmem:[%s28919_s3 + $0x34] sm:$0xf0] }
 0x274   : > { %5430 = vmatpush.bf16.msrb.mxu3 %v14872_v59  ;;  %v14523_v59 = vld [vmem:[%s28919_s3 + $0x1e8] sm:$0xf]  ;;  %v14348_v21 = vor.u32 %v19167_v43, %v14347_v56  ;;  %v19151_v33 = vld [vmem:[%s28919_s3 + $0x14] sm:$0xf0]  ;;  %v19340_v43 = vld [vmem:[%s28919_s3 + $0x604] sm:$0xf] }
 0x275   : > { %5443 = vmatpush.bf16.msrb.mxu1 %v15000_v63  ;;  %v19211_v63 = vld [vmem:[%s28919_s3 + $0x1f4] sm:$0xf0]  ;;  %v3604_v0 = vpop.f32.mrf.mxu3  ;;  %v3629_v2 = vadd.f32 %v23968_v55, %v1009_v35  ;;  %v14411_v30 = vld [vmem:[%s28919_s3 + $0x108] sm:$0xf] }
 0x276   : > { %v19163_v55 = vld [vmem:[%s28919_s3 + $0x74] sm:$0xf0]  ;;  %v14460_v0 = vor.u32 %v19195_v9, %v14459_v54 }
 0x277   : > { %5419 = vmatpush.bf16.msra.mxu0 %v14712_v44  ;;  %v19356_v44 = vld [vmem:[%s28919_s3 + $0x684] sm:$0xf]  ;;  %v3642_v58 = vadd.f32 %v23941_v39, %v3629_v2  ;;  %v19159_v39 = vld [vmem:[%s28919_s3 + $0x54] sm:$0xf0] }
 0x278   : > { %5431 = vmatpush.bf16.msrb.mxu3 %v14856_v12  ;;  %v20357_v12 = vpop.eup %20356  ;;  %v19183_v35 = vld [vmem:[%s28919_s3 + $0x114] sm:$0xf0] }
 0x279   : > { %5444 = vmatpush.bf16.msrb.mxu1 %v14984_v14  ;;  %v14524_v14 = vor.u32 %v19211_v63, %v14523_v59  ;;  %v24037_v15 = vpack.c.bf16 %v20357_v12, %v20357_v12  ;;  %v15093_v59 = vld [vmem:[%s28919_s3 + $0x670] sm:$0xf0]  ;;  %v19339_v56 = vld [vmem:[%s28919_s3 + $0x5f4] sm:$0xf0] }
 0x27a   : > { %v19303_v54 = vld [vmem:[%s28919_s3 + $0x4d4] sm:$0xf0] }
 0x27b   : > { %5420 = vmatpush.bf16.msra.mxu0 %v14696_v3  ;;  %5358 = vmatmul.bf16.vlgmr.msrb.gmra.mxu2 %v24037_v15  ;;  %v14315_v3 = vld [vmem:[%s28919_s3 + $0x48] sm:$0xf] }
 0x27c   : > { %5432 = vmatpush.bf16.msrb.mxu3 %v14840_v28  ;;  %v15141_v28 = vld [vmem:[%s28919_s3 + $0x6d0] sm:$0xf0]  ;;  %5454 = vmatpush.bf16.msrb.mxu2 %v15160_v51  ;;  %v14299_v51 = vld [vmem:[%s28919_s3 + $0x28] sm:$0xf] }
 0x27d   : > { %5445 = vmatpush.bf16.msrb.mxu1 %v14968_v13  ;;  %v14680_v13 = vor.u32 %v19248_v18, %v14677_v17  ;;  %v15144_v32 = vor.u32 %v19364_v26, %v15141_v28  ;;  %v14444_v17 = vor.u32 %v19191_v46, %v14443_v4  ;;  %v14427_v26 = vld [vmem:[%s28919_s3 + $0x128] sm:$0xf]  ;;  %v19187_v28 = vld [vmem:[%s28919_s3 + $0x134] sm:$0xf0]  ;;  %v14300_v53 = vor.u32 %v19155_v24, %v14299_v51  ;;  %v19396_v51 = vld [vmem:[%s28919_s3 + $0x7c4] sm:$0xf] }
 0x27e   : > { %v19299_v4 = vld [vmem:[%s28919_s3 + $0x4b4] sm:$0xf0]  ;;  %v15269_v24 = vld [vmem:[%s28919_s3 + $0x7d0] sm:$0xf0] }
 0x27f   : > { %5421 = vmatpush.bf16.msra.mxu0 %v14680_v13 }
 0x280   : > { %5433 = vmatpush.bf16.msrb.mxu3 %v14824_v34  ;;  %v15125_v34 = vld [vmem:[%s28919_s3 + $0x6b0] sm:$0xf0]  ;;  %5455 = vmatpush.bf16.msrb.mxu2 %v15144_v32  ;;  %v14428_v32 = vor.u32 %v19187_v28, %v14427_v26  ;;  %v14859_v26 = vld [vmem:[%s28919_s3 + $0x488] sm:$0xf]  ;;  %v19295_v28 = vld [vmem:[%s28919_s3 + $0x494] sm:$0xf0] }
 0x281   : > { %5446 = vmatpush.bf16.msrb.mxu1 %v14952_v48  ;;  %v14664_v48 = vor.u32 %v19244_v40, %v14661_v23  ;;  %v15128_v8 = vor.u32 %v19360_v27, %v15125_v34  ;;  %v14283_v40 = vld [vmem:[%s28919_s3 + $0x8] sm:$0xf] }
 0x282   : > { %v14907_v34 = vld [vmem:[%s28919_s3 + $0x4e8] sm:$0xf]  ;;  %v14284_v2 = vor.u32 %v19151_v33, %v14283_v40  ;;  %v19231_v40 = vld [vmem:[%s28919_s3 + $0x294] sm:$0xf0]  ;;  %v15253_v33 = vld [vmem:[%s28919_s3 + $0x7b0] sm:$0xf0] }
 0x283   : > { %5422 = vmatpush.bf16.msra.mxu0 %v14664_v48  ;;  %v19307_v48 = vld [vmem:[%s28919_s3 + $0x4f4] sm:$0xf0] }
 0x284   : > { %5434 = vmatpush.bf16.msrb.mxu3 %v14808_v47  ;;  %v3654_v42 = vpop.f32.mrf.mxu1  ;;  %v15109_v47 = vld [vmem:[%s28919_s3 + $0x690] sm:$0xf0]  ;;  %5456 = vmatpush.bf16.msrb.mxu2 %v15128_v8 }
 0x285   : > { %5447 = vmatpush.bf16.msrb.mxu1 %v14936_v49  ;;  %v14331_v49 = vld [vmem:[%s28919_s3 + $0x68] sm:$0xf]  ;;  %v15112_v52 = vor.u32 %v19356_v44, %v15109_v47  ;;  %v3655_v5 = vadd.f32 %v3654_v42, %v3642_v58  ;;  %v15045_v8 = vld [vmem:[%s28919_s3 + $0x610] sm:$0xf0]  ;;  %v19243_v44 = vld [vmem:[%s28919_s3 + $0x2f4] sm:$0xf0] }
 0x286   : > { %v14332_v63 = vor.u32 %v19163_v55, %v14331_v49  ;;  %v14651_v42 = vld [vmem:[%s28919_s3 + $0x2e8] sm:$0xf]  ;;  %v15048_v55 = vor.u32 %v19340_v43, %v15045_v8 }
 0x287   : > { %v14652_v9 = vor.u32 %v19243_v44, %v14651_v42  ;;  %v15019_v58 = vld [vmem:[%s28919_s3 + $0x5c8] sm:$0xf]  ;;  %v19388_v42 = vld [vmem:[%s28919_s3 + $0x784] sm:$0xf]  ;;  %v15237_v44 = vld [vmem:[%s28919_s3 + $0x790] sm:$0xf0] }
 0x288   : > { %5435 = vmatpush.bf16.msrb.mxu3 %v14792_v62  ;;  %5457 = vmatpush.bf16.msrb.mxu2 %v15112_v52  ;;  %v15096_v62 = vor.u32 %v19352_v38, %v15093_v59  ;;  %v14891_v52 = vld [vmem:[%s28919_s3 + $0x4c8] sm:$0xf]  ;;  %v19239_v59 = vld [vmem:[%s28919_s3 + $0x2d4] sm:$0xf0] }
 0x289   : > { %5448 = vmatpush.bf16.msrb.mxu1 %v14920_v6  ;;  %v14635_v38 = vld [vmem:[%s28919_s3 + $0x2c8] sm:$0xf] }
 0x28a   : > { %v14587_v8 = vld [vmem:[%s28919_s3 + $0x268] sm:$0xf] }
 0x28b   : > { %5436 = vmatmul.bf16.vlgmr.msrb.gmra.mxu3 %v23685_v50  ;;  %5410 = vmatmul.bf16.vlgmr.msra.gmra.mxu2 %v23520_v20 }
 0x28c   : > { %5480 = vmatpush.bf16.msra.mxu3 %v14396_v10  ;;  %5449 = vmatmul.bf16.vlgmr.msrb.gmra.mxu1 %v23738_v45  ;;  %v3693_v60 = vpop.f32.mrf.mxu0  ;;  %v3656_v6 = vpop.f32.mrf.mxu1  ;;  %v19348_v10 = vld [vmem:[%s28919_s3 + $0x644] sm:$0xf] }
 0x28d   : > { %5493 = vmatpush.bf16.msra.mxu1 %v14524_v14  ;;  %v14316_v14 = vor.u32 %v19159_v39, %v14315_v3  ;;  %5458 = vmatpush.bf16.msrb.mxu2 %v15096_v62  ;;  %v15080_v25 = vor.u32 %v19348_v10, %v15077_v11  ;;  %v15285_v3 = vld [vmem:[%s28919_s3 + $0x7f0] sm:$0xf0]  ;;  %v14875_v62 = vld [vmem:[%s28919_s3 + $0x4a8] sm:$0xf]  ;;  %v19331_v10 = vld [vmem:[%s28919_s3 + $0x5b4] sm:$0xf0] }
 0x28e   : > { %v3667_v12 = vpop.f32.mrf.mxu3  ;;  %v15003_v6 = vld [vmem:[%s28919_s3 + $0x5a8] sm:$0xf] }
 0x28f   : > { %v3668_v61 = vadd.f32 %v3667_v12, %v3655_v5  ;;  %v14636_v5 = vor.u32 %v19239_v59, %v14635_v38 }
 0x290   : > { %5481 = vmatpush.bf16.msra.mxu3 %v14380_v57  ;;  %v3680_v18 = vpop.f32.mrf.mxu2 }
 0x291   : > { %5494 = vmatpush.bf16.msra.mxu1 %v14508_v31  ;;  %v3681_v13 = vadd.f32 %v3680_v18, %v3668_v61  ;;  %v15061_v31 = vld [vmem:[%s28919_s3 + $0x630] sm:$0xf0]  ;;  %5459 = vmatpush.bf16.msrb.mxu2 %v15080_v25  ;;  %v19235_v61 = vld [vmem:[%s28919_s3 + $0x2b4] sm:$0xf0]  ;;  %v15004_v25 = vor.u32 %v19331_v10, %v15003_v6  ;;  %v14939_v6 = vld [vmem:[%s28919_s3 + $0x528] sm:$0xf] }
 0x292   : > { %v15064_v27 = vor.u32 %v19344_v29, %v15061_v31  ;;  %v19327_v29 = vld [vmem:[%s28919_s3 + $0x594] sm:$0xf0]  ;;  %v15272_v31 = vor.u32 %v19396_v51, %v15269_v24 }
 0x293   : > { %v3694_v23 = vadd.f32 %v3693_v60, %v3681_v13  ;;  %v19335_v60 = vld [vmem:[%s28919_s3 + $0x5d4] sm:$0xf0] }
 0x294   : > { %5482 = vmatpush.bf16.msra.mxu3 %v14364_v41  ;;  %v3695_v57 = vpop.f32.mrf.mxu0  ;;  %v15035_v41 = vld [vmem:[%s28919_s3 + $0x5e8] sm:$0xf]  ;;  %v15020_v39 = vor.u32 %v19335_v60, %v15019_v58  ;;  %v19223_v60 = vld [vmem:[%s28919_s3 + $0x254] sm:$0xf0] }
 0x295   : > { %5495 = vmatpush.bf16.msra.mxu1 %v14492_v7  ;;  %v3706_v7 = vpop.f32.mrf.mxu1  ;;  %5460 = vmatpush.bf16.msrb.mxu2 %v15064_v27  ;;  %v15036_v49 = vor.u32 %v19339_v56, %v15035_v41  ;;  %v14987_v57 = vld [vmem:[%s28919_s3 + $0x588] sm:$0xf]  ;;  %v19291_v27 = vld [vmem:[%s28919_s3 + $0x474] sm:$0xf0] }
 0x296   : > { %v3707_v36 = vadd.f32 %v3706_v7, %v3694_v23  ;;  %v3669_v37 = vpop.f32.mrf.mxu3  ;;  %v14860_v23 = vor.u32 %v19295_v28, %v14859_v26  ;;  %v19323_v41 = vld [vmem:[%s28919_s3 + $0x574] sm:$0xf0]  ;;  %v24283_v7 = vld [vmem:[%s28920_s4] sm:$0xf]  ;;  %v14571_v58 = vld [vmem:[%s28919_s3 + $0x248] sm:$0xf] }
 0x297   : > { %v19315_v10 = vld [vmem:[%s28919_s3 + $0x534] sm:$0xf0]  ;;  %v15205_v26 = vld [vmem:[%s28919_s3 + $0x750] sm:$0xf0]  ;;  %v14795_v28 = vld [vmem:[%s28919_s3 + $0x408] sm:$0xf] }
 0x298   : > { %5483 = vmatpush.bf16.msra.mxu3 %v14348_v21  ;;  %v3682_v47 = vpop.f32.mrf.mxu2  ;;  %v14412_v21 = vor.u32 %v19183_v35, %v14411_v30  ;;  %20358 = vtanh.f32 %v3707_v36  ;;  %v14988_v30 = vor.u32 %v19327_v29, %v14987_v57  ;;  %v14843_v35 = vld [vmem:[%s28919_s3 + $0x468] sm:$0xf]  ;;  %v19227_v36 = vld [vmem:[%s28919_s3 + $0x274] sm:$0xf0]  ;;  %v14940_v57 = vor.u32 %v19315_v10, %v14939_v6  ;;  %v14493_v6 = vld [vmem:[%s28919_s3 + $0x1b8] sm:$0xf0] }
 0x299   : > { %5496 = vmatpush.bf16.msra.mxu1 %v14476_v1  ;;  %v14908_v1 = vor.u32 %v19307_v48, %v14907_v34  ;;  %5461 = vmatpush.bf16.msrb.mxu2 %v15048_v55  ;;  %v14971_v48 = vld [vmem:[%s28919_s3 + $0x568] sm:$0xf]  ;;  %v14588_v55 = vor.u32 %v19227_v36, %v14587_v8  ;;  %v19279_v29 = vld [vmem:[%s28919_s3 + $0x414] sm:$0xf0]  ;;  %v15189_v8 = vld [vmem:[%s28919_s3 + $0x730] sm:$0xf0] }
 0x29a   : > { %v14972_v47 = vor.u32 %v19323_v41, %v14971_v48 }
 0x29c   : > { %5484 = vmatpush.bf16.msra.mxu3 %v14332_v63  ;;  %v14892_v63 = vor.u32 %v19303_v54, %v14891_v52  ;;  %5462 = vmatmul.bf16.vlgmr.msrb.gmra.mxu2 %v24037_v15  ;;  %v14955_v52 = vld [vmem:[%s28919_s3 + $0x548] sm:$0xf]  ;;  %v19319_v54 = vld [vmem:[%s28919_s3 + $0x554] sm:$0xf0] }
 0x29d   : > { %5497 = vmatpush.bf16.msra.mxu1 %v14460_v0  ;;  %v19400_v0 = vld [vmem:[%s28919_s3 + $0x7e4] sm:$0xf]  ;;  %5506 = vmatpush.bf16.msra.mxu2 %v14652_v9  ;;  %v3708_v46 = vpop.f32.mrf.mxu1  ;;  %v15240_v9 = vor.u32 %v19388_v42, %v15237_v44  ;;  %v19371_v44 = vld [vmem:[%s28919_s3 + $0x6f4] sm:$0xf0] }
 0x29e   : > { %v20359_v11 = vpop.eup %20358  ;;  %v15288_v12 = vor.u32 %v19400_v0, %v15285_v3  ;;  %v15221_v0 = vld [vmem:[%s28919_s3 + $0x770] sm:$0xf0]  ;;  %v19283_v46 = vld [vmem:[%s28919_s3 + $0x434] sm:$0xf0] }
 0x29f   : > { %v24234_v18 = vpack.c.bf16 %v20359_v11, %v20359_v11 }
 0x2a0   : > { %5485 = vmatpush.bf16.msra.mxu3 %v14316_v14  ;;  %v14619_v14 = vld [vmem:[%s28919_s3 + $0x2a8] sm:$0xf] }
 0x2a1   : > { %5498 = vmatpush.bf16.msra.mxu1 %v14444_v17  ;;  %v14876_v17 = vor.u32 %v19299_v4, %v14875_v62  ;;  %5507 = vmatpush.bf16.msra.mxu2 %v14636_v5  ;;  %v14620_v13 = vor.u32 %v19235_v61, %v14619_v14  ;;  %v14956_v62 = vor.u32 %v19319_v54, %v14955_v52  ;;  %v14811_v4 = vld [vmem:[%s28919_s3 + $0x428] sm:$0xf]  ;;  %v19205_v52 = vld [vmem:[%s28919_s3 + $0x1cc] sm:$0xf]  ;;  %v14509_v54 = vld [vmem:[%s28919_s3 + $0x1d8] sm:$0xf0] }
 0x2a2   : > { %5371 = vmatmul.bf16.vlgmr.msrb.gmra.mxu0 %v24234_v18  ;;  %v14572_v5 = vor.u32 %v19223_v60, %v14571_v58  ;;  %v14555_v61 = vld [vmem:[%s28919_s3 + $0x228] sm:$0xf]  ;;  %v14812_v24 = vor.u32 %v19283_v46, %v14811_v4  ;;  %v19372_v58 = vld [vmem:[%s28919_s3 + $0x704] sm:$0xf]  ;;  %v15173_v60 = vld [vmem:[%s28919_s3 + $0x710] sm:$0xf0] }
 0x2a3   : > { %5467 = vmatpush.bf16.msrb.mxu0 %v15288_v12  ;;  %v14365_v4 = vld [vmem:[%s28919_s3 + $0xb8] sm:$0xf0]  ;;  %v15176_v46 = vor.u32 %v19372_v58, %v15173_v60  ;;  %v14715_v58 = vld [vmem:[%s28919_s3 + $0x368] sm:$0xf]  ;;  %v19259_v60 = vld [vmem:[%s28919_s3 + $0x374] sm:$0xf0] }
 0x2a4   : > { %5486 = vmatpush.bf16.msra.mxu3 %v14300_v53  ;;  %v14603_v53 = vld [vmem:[%s28919_s3 + $0x288] sm:$0xf] }
 0x2a5   : > { %5499 = vmatpush.bf16.msra.mxu1 %v14428_v32  ;;  %v19392_v32 = vld [vmem:[%s28919_s3 + $0x7a4] sm:$0xf]  ;;  %5508 = vmatpush.bf16.msra.mxu2 %v14620_v13  ;;  %v14604_v34 = vor.u32 %v19231_v40, %v14603_v53  ;;  %v19311_v53 = vld [vmem:[%s28919_s3 + $0x514] sm:$0xf0] }
 0x2a6   : > { %v15256_v43 = vor.u32 %v19392_v32, %v15253_v33  ;;  %v14397_v32 = vld [vmem:[%s28919_s3 + $0xf8] sm:$0xf0]  ;;  %v19209_v33 = vld [vmem:[%s28919_s3 + $0x1ec] sm:$0xf] }
 0x2a7   : > { %5468 = vmatpush.bf16.msrb.mxu0 %v15272_v31  ;;  %v14923_v31 = vld [vmem:[%s28919_s3 + $0x508] sm:$0xf] }
 0x2a8   : > { %5487 = vmatpush.bf16.msra.mxu3 %v14284_v2  ;;  %v14844_v2 = vor.u32 %v19291_v27, %v14843_v35  ;;  %v14525_v35 = vld [vmem:[%s28919_s3 + $0x1f8] sm:$0xf0]  ;;  %v14539_v27 = vld [vmem:[%s28919_s3 + $0x208] sm:$0xf] }
 0x2a9   : > { %5500 = vmatpush.bf16.msra.mxu1 %v14412_v21  ;;  %v3984_v21 = vperm.slane %v24283_v7, 0  ;;  %5509 = vmatpush.bf16.msra.mxu2 %v14604_v34  ;;  %v19215_v34 = vld [vmem:[%s28919_s3 + $0x214] sm:$0xf0] }
 0x2ab   : > { %5488 = vmatmul.bf16.vlgmr.msra.gmra.mxu3 %v23516_v16  ;;  %v5294_v56 = vpop.f32.mrf.mxu1  ;;  %5469 = vmatpush.bf16.msrb.mxu0 %v15256_v43  ;;  %v19376_v43 = vld [vmem:[%s28919_s3 + $0x724] sm:$0xf] }
 0x2ac   : > { %5532 = vmatpush.bf16.msrb.mxu3 %v14908_v1  ;;  %5501 = vmatmul.bf16.vlgmr.msra.gmra.mxu1 %v23518_v19  ;;  %v5320_v37 = vpop.f32.mrf.mxu0  ;;  %v14827_v1 = vld [vmem:[%s28919_s3 + $0x448] sm:$0xf] }
 0x2ad   : > { %5545 = vmatpush.bf16.msrb.mxu1 %v15036_v49  ;;  %v19287_v49 = vld [vmem:[%s28919_s3 + $0x454] sm:$0xf0]  ;;  %5510 = vmatpush.bf16.msra.mxu2 %v14588_v55  ;;  %v15192_v55 = vor.u32 %v19376_v43, %v15189_v8  ;;  %v15099_v43 = vld [vmem:[%s28919_s3 + $0x668] sm:$0xf] }
 0x2ae   : > { %v5281_v38 = vpop.f32.mrf.mxu3  ;;  %v14828_v59 = vor.u32 %v19287_v49, %v14827_v1  ;;  %v19173_v1 = vld [vmem:[%s28919_s3 + $0xcc] sm:$0xf]  ;;  %v14381_v49 = vld [vmem:[%s28919_s3 + $0xd8] sm:$0xf0] }
 0x2af   : > { %v5282_v3 = vadd.f32 %v5281_v38, %v3984_v21  ;;  %5470 = vmatpush.bf16.msrb.mxu0 %v15240_v9  ;;  %v14540_v21 = vor.u32 %v19215_v34, %v14539_v27  ;;  %v15147_v38 = vld [vmem:[%s28919_s3 + $0x6c8] sm:$0xf]  ;;  %v19193_v27 = vld [vmem:[%s28919_s3 + $0x16c] sm:$0xf]  ;;  %v14461_v34 = vld [vmem:[%s28919_s3 + $0x178] sm:$0xf0] }
 0x2b0   : > { %5533 = vmatpush.bf16.msrb.mxu3 %v14892_v63  ;;  %v19384_v63 = vld [vmem:[%s28919_s3 + $0x764] sm:$0xf] }
 0x2b1   : > { %5546 = vmatpush.bf16.msrb.mxu1 %v15020_v39  ;;  %v5307_v39 = vpop.f32.mrf.mxu2  ;;  %v5295_v11 = vadd.f32 %v5294_v56, %v5282_v3  ;;  %v15224_v14 = vor.u32 %v19384_v63, %v15221_v0  ;;  %5511 = vmatpush.bf16.msra.mxu2 %v14572_v5  ;;  %v14796_v56 = vor.u32 %v19279_v29, %v14795_v28  ;;  %v19367_v63 = vld [vmem:[%s28919_s3 + $0x6d4] sm:$0xf0]  ;;  %v14779_v0 = vld [vmem:[%s28919_s3 + $0x3e8] sm:$0xf]  ;;  %v19201_v5 = vld [vmem:[%s28919_s3 + $0x1ac] sm:$0xf] }
 0x2b2   : > { %5423 = vmatmul.bf16.vlgmr.msra.gmra.mxu0 %v23525_v22  ;;  %v19275_v3 = vld [vmem:[%s28919_s3 + $0x3f4] sm:$0xf0]  ;;  %v15148_v10 = vor.u32 %v19367_v63, %v15147_v38  ;;  %v19197_v28 = vld [vmem:[%s28919_s3 + $0x18c] sm:$0xf] }
 0x2b3   : > { %v5296_v12 = vpop.f32.mrf.mxu1  ;;  %v5308_v13 = vadd.f32 %v5307_v39, %v5295_v11  ;;  %5471 = vmatpush.bf16.msrb.mxu0 %v15224_v14  ;;  %v14512_v39 = vor.u32 %v19205_v52, %v14509_v54  ;;  %v14780_v11 = vor.u32 %v19275_v3, %v14779_v0  ;;  %v15083_v52 = vld [vmem:[%s28919_s3 + $0x648] sm:$0xf]  ;;  %v19153_v63 = vld [vmem:[%s28919_s3 + $0x2c] sm:$0xf]  ;;  %v14301_v0 = vld [vmem:[%s28919_s3 + $0x38] sm:$0xf0] }
 0x2b4   : > { %5534 = vmatpush.bf16.msrb.mxu3 %v14876_v17  ;;  %v19219_v17 = vld [vmem:[%s28919_s3 + $0x234] sm:$0xf0]  ;;  %v5322_v51 = vpop.f32.mrf.mxu0  ;;  %v15131_v12 = vld [vmem:[%s28919_s3 + $0x6a8] sm:$0xf] }
 0x2b5   : > { %5547 = vmatpush.bf16.msrb.mxu1 %v15004_v25  ;;  %v19380_v25 = vld [vmem:[%s28919_s3 + $0x744] sm:$0xf]  ;;  %v14556_v40 = vor.u32 %v19219_v17, %v14555_v61  ;;  %v24377_v48 = vadd.f32 %v5320_v37, %v5308_v13  ;;  %v15163_v37 = vld [vmem:[%s28919_s3 + $0x6e8] sm:$0xf]  ;;  %v19363_v61 = vld [vmem:[%s28919_s3 + $0x6b4] sm:$0xf0] }
 0x2b6   : > { %v5283_v41 = vpop.f32.mrf.mxu3  ;;  %v15164_v9 = vor.u32 %v19371_v44, %v15163_v37  ;;  %v14763_v17 = vld [vmem:[%s28919_s3 + $0x3c8] sm:$0xf]  ;;  %v19271_v51 = vld [vmem:[%s28919_s3 + $0x3d4] sm:$0xf0]  ;;  %v14477_v13 = vld [vmem:[%s28919_s3 + $0x198] sm:$0xf0]  ;;  %v14464_v37 = vor.u32 %v19193_v27, %v14461_v34 }
 0x2b7   : > { %5512 = vmatpush.bf16.msra.mxu2 %v14556_v40  ;;  %v14764_v29 = vor.u32 %v19271_v51, %v14763_v17  ;;  %v19359_v40 = vld [vmem:[%s28919_s3 + $0x694] sm:$0xf0]  ;;  %v19157_v44 = vld [vmem:[%s28919_s3 + $0x4c] sm:$0xf]  ;;  %v14285_v51 = vld [vmem:[%s28919_s3 + $0x18] sm:$0xf0] }
 0x2b8   : > { %5535 = vmatpush.bf16.msrb.mxu3 %v14860_v23  ;;  %v19177_v23 = vld [vmem:[%s28919_s3 + $0xec] sm:$0xf] }
 0x2b9   : > { %5548 = vmatpush.bf16.msrb.mxu1 %v14988_v30  ;;  %v15208_v30 = vor.u32 %v19380_v25, %v15205_v26  ;;  %v5309_v36 = vpop.f32.mrf.mxu2  ;;  %v14400_v42 = vor.u32 %v19177_v23, %v14397_v32  ;;  %v19165_v25 = vld [vmem:[%s28919_s3 + $0x8c] sm:$0xf]  ;;  %v14349_v26 = vld [vmem:[%s28919_s3 + $0x98] sm:$0xf0]  ;;  %v14747_v23 = vld [vmem:[%s28919_s3 + $0x3a8] sm:$0xf] }
 0x2ba   : > { %v19267_v32 = vld [vmem:[%s28919_s3 + $0x3b4] sm:$0xf0]  ;;  %v19149_v17 = vld [vmem:[%s28919_s3 + $0xc] sm:$0xf] }
 0x2bb   : > { %5472 = vmatpush.bf16.msrb.mxu0 %v15208_v30  ;;  %5513 = vmatpush.bf16.msra.mxu2 %v14540_v21  ;;  %v19161_v30 = vld [vmem:[%s28919_s3 + $0x6c] sm:$0xf]  ;;  %v19355_v36 = vld [vmem:[%s28919_s3 + $0x674] sm:$0xf0] }
 0x2bc   : > { %5536 = vmatpush.bf16.msrb.mxu3 %v14844_v2  ;;  %v14924_v2 = vor.u32 %v19311_v53, %v14923_v31  ;;  %v15115_v31 = vld [vmem:[%s28919_s3 + $0x688] sm:$0xf]  ;;  %v14352_v53 = vor.u32 %v19165_v25, %v14349_v26  ;;  %v19189_v21 = vld [vmem:[%s28919_s3 + $0x14c] sm:$0xf]  ;;  %v14413_v25 = vld [vmem:[%s28919_s3 + $0x118] sm:$0xf0] }
 0x2bd   : > { %5549 = vmatpush.bf16.msrb.mxu1 %v14972_v47  ;;  %v14528_v47 = vor.u32 %v19209_v33, %v14525_v35  ;;  %v14480_v33 = vor.u32 %v19197_v28, %v14477_v13  ;;  %v14333_v35 = vld [vmem:[%s28919_s3 + $0x78] sm:$0xf0]  ;;  %v15116_v41 = vor.u32 %v19359_v40, %v15115_v31  ;;  %v19305_v26 = vld [vmem:[%s28919_s3 + $0x4ec] sm:$0xf]  ;;  %v14288_v40 = vor.u32 %v19149_v17, %v14285_v51 }
 0x2be   : > { %5514 = vmatmul.bf16.vlgmr.msra.gmra.mxu2 %v23520_v20  ;;  %v14336_v8 = vor.u32 %v19161_v30, %v14333_v35  ;;  %v14909_v28 = vld [vmem:[%s28919_s3 + $0x4f8] sm:$0xf0]  ;;  %v19241_v34 = vld [vmem:[%s28919_s3 + $0x2ec] sm:$0xf] }
 0x2bf   : > { %5473 = vmatpush.bf16.msrb.mxu0 %v15192_v55  ;;  %5558 = vmatpush.bf16.msrb.mxu2 %v15164_v9  ;;  %v19351_v9 = vld [vmem:[%s28919_s3 + $0x654] sm:$0xf0]  ;;  %v15037_v31 = vld [vmem:[%s28919_s3 + $0x5f8] sm:$0xf0]  ;;  %v14912_v27 = vor.u32 %v19305_v26, %v14909_v28  ;;  %v19229_v51 = vld [vmem:[%s28919_s3 + $0x28c] sm:$0xf] }
 0x2c0   : > { %5537 = vmatpush.bf16.msrb.mxu3 %v14828_v59  ;;  %v14384_v59 = vor.u32 %v19173_v1, %v14381_v49  ;;  %v14445_v1 = vld [vmem:[%s28919_s3 + $0x158] sm:$0xf0]  ;;  %v15100_v49 = vor.u32 %v19355_v36, %v15099_v43  ;;  %v19301_v43 = vld [vmem:[%s28919_s3 + $0x4cc] sm:$0xf] }
 0x2c1   : > { %5550 = vmatpush.bf16.msrb.mxu1 %v14956_v62  ;;  %v19169_v62 = vld [vmem:[%s28919_s3 + $0xac] sm:$0xf]  ;;  %v14605_v28 = vld [vmem:[%s28919_s3 + $0x298] sm:$0xf0] }
 0x2c2   : > { %v14368_v14 = vor.u32 %v19169_v62, %v14365_v4  ;;  %v14429_v62 = vld [vmem:[%s28919_s3 + $0x138] sm:$0xf0] }
 0x2c3   : > { %5474 = vmatpush.bf16.msrb.mxu0 %v15176_v46  ;;  %5559 = vmatpush.bf16.msrb.mxu2 %v15148_v10  ;;  %v15084_v46 = vor.u32 %v19351_v9, %v15083_v52  ;;  %v15291_v52 = vld [vmem:[%s28919_s3 + $0x7e8] sm:$0xf] }
 0x2c4   : > { %5538 = vmatpush.bf16.msrb.mxu3 %v14812_v24  ;;  %v14496_v24 = vor.u32 %v19201_v5, %v14493_v6  ;;  %v14716_v5 = vor.u32 %v19259_v60, %v14715_v58  ;;  %v15067_v6 = vld [vmem:[%s28919_s3 + $0x628] sm:$0xf]  ;;  %v14637_v58 = vld [vmem:[%s28919_s3 + $0x2d8] sm:$0xf0]  ;;  %v19297_v60 = vld [vmem:[%s28919_s3 + $0x4ac] sm:$0xf] }
 0x2c5   : > { %5551 = vmatpush.bf16.msrb.mxu1 %v14940_v57  ;;  %v15132_v57 = vor.u32 %v19363_v61, %v15131_v12  ;;  %v14699_v12 = vld [vmem:[%s28919_s3 + $0x348] sm:$0xf] }
 0x2c6   : > { %5475 = vmatmul.bf16.vlgmr.msrb.gmra.mxu0 %v24234_v18 }
 0x2c7   : > { %5519 = vmatpush.bf16.msra.mxu0 %v14780_v11  ;;  %5560 = vmatpush.bf16.msrb.mxu2 %v15132_v57  ;;  %v19347_v11 = vld [vmem:[%s28919_s3 + $0x634] sm:$0xf0] }
 0x2c8   : > { %5539 = vmatpush.bf16.msrb.mxu3 %v14796_v56  ;;  %v14748_v56 = vor.u32 %v19267_v32, %v14747_v23  ;;  %v15068_v13 = vor.u32 %v19347_v11, %v15067_v6  ;;  %v19343_v23 = vld [vmem:[%s28919_s3 + $0x614] sm:$0xf0]  ;;  %v14683_v32 = vld [vmem:[%s28919_s3 + $0x328] sm:$0xf]  ;;  %v19293_v6 = vld [vmem:[%s28919_s3 + $0x48c] sm:$0xf] }
 0x2c9   : > { %5552 = vmatpush.bf16.msrb.mxu1 %v14924_v2  ;;  %v14731_v2 = vld [vmem:[%s28919_s3 + $0x388] sm:$0xf]  ;;  %v5346_v4 = vpop.f32.mrf.mxu1  ;;  %v19325_v11 = vld [vmem:[%s28919_s3 + $0x58c] sm:$0xf] }
 0x2cb   : > { %5540 = vmatmul.bf16.vlgmr.msrb.gmra.mxu3 %v23685_v50  ;;  %5520 = vmatpush.bf16.msra.mxu0 %v14764_v29  ;;  %v19337_v29 = vld [vmem:[%s28919_s3 + $0x5ec] sm:$0xf] }
 0x2cc   : > { %5584 = vmatpush.bf16.msra.mxu3 %v14400_v42  ;;  %5553 = vmatmul.bf16.vlgmr.msrb.gmra.mxu1 %v23738_v45  ;;  %v19263_v42 = vld [vmem:[%s28919_s3 + $0x394] sm:$0xf0] }
 0x2cd   : > { %5597 = vmatpush.bf16.msra.mxu1 %v14528_v47  ;;  %v14317_v47 = vld [vmem:[%s28919_s3 + $0x58] sm:$0xf0]  ;;  %5561 = vmatpush.bf16.msrb.mxu2 %v15116_v41  ;;  %v14732_v55 = vor.u32 %v19263_v42, %v14731_v2  ;;  %v15040_v41 = vor.u32 %v19337_v29, %v15037_v31  ;;  %v19321_v29 = vld [vmem:[%s28919_s3 + $0x56c] sm:$0xf] }
 0x2ce   : > { %v14320_v54 = vor.u32 %v19157_v44, %v14317_v47  ;;  %v5333_v38 = vpop.f32.mrf.mxu3  ;;  %v15021_v44 = vld [vmem:[%s28919_s3 + $0x5d8] sm:$0xf0]  ;;  %v14667_v47 = vld [vmem:[%s28919_s3 + $0x308] sm:$0xf] }
 0x2cf   : > { %5521 = vmatpush.bf16.msra.mxu0 %v14748_v56  ;;  %v5334_v3 = vadd.f32 %v5333_v38, %v24377_v48  ;;  %v14304_v48 = vor.u32 %v19153_v63, %v14301_v0  ;;  %v14653_v56 = vld [vmem:[%s28919_s3 + $0x2f8] sm:$0xf0]  ;;  %v19329_v63 = vld [vmem:[%s28919_s3 + $0x5ac] sm:$0xf] }
 0x2d0   : > { %5585 = vmatpush.bf16.msra.mxu3 %v14384_v59  ;;  %v14448_v59 = vor.u32 %v19189_v21, %v14445_v1  ;;  %v19247_v21 = vld [vmem:[%s28919_s3 + $0x314] sm:$0xf0]  ;;  %v14656_v1 = vor.u32 %v19241_v34, %v14653_v56  ;;  %v14877_v38 = vld [vmem:[%s28919_s3 + $0x4b8] sm:$0xf0] }
 0x2d1   : > { %5598 = vmatpush.bf16.msra.mxu1 %v14512_v39  ;;  %v19185_v39 = vld [vmem:[%s28919_s3 + $0x12c] sm:$0xf]  ;;  %5562 = vmatpush.bf16.msrb.mxu2 %v15100_v49  ;;  %v24537_v10 = vadd.f32 %v5346_v4, %v5334_v3  ;;  %v5348_v36 = vpop.f32.mrf.mxu1  ;;  %v15005_v0 = vld [vmem:[%s28919_s3 + $0x5b8] sm:$0xf0] }
 0x2d2   : > { %v14432_v61 = vor.u32 %v19185_v39, %v14429_v62  ;;  %v14880_v62 = vor.u32 %v19297_v60, %v14877_v38  ;;  %v19233_v4 = vld [vmem:[%s28919_s3 + $0x2ac] sm:$0xf]  ;;  %v14973_v31 = vld [vmem:[%s28919_s3 + $0x578] sm:$0xf0] }
 0x2d3   : > { %5522 = vmatpush.bf16.msra.mxu0 %v14732_v55  ;;  %v19237_v55 = vld [vmem:[%s28919_s3 + $0x2cc] sm:$0xf]  ;;  %v14589_v34 = vld [vmem:[%s28919_s3 + $0x278] sm:$0xf0] }
 0x2d4   : > { %5586 = vmatpush.bf16.msra.mxu3 %v14368_v14  ;;  %v19255_v14 = vld [vmem:[%s28919_s3 + $0x354] sm:$0xf0]  ;;  %v14640_v39 = vor.u32 %v19237_v55, %v14637_v58  ;;  %v14829_v56 = vld [vmem:[%s28919_s3 + $0x458] sm:$0xf0]  ;;  %v19281_v55 = vld [vmem:[%s28919_s3 + $0x42c] sm:$0xf] }
 0x2d5   : > { %5599 = vmatpush.bf16.msra.mxu1 %v14496_v24  ;;  %v19181_v24 = vld [vmem:[%s28919_s3 + $0x10c] sm:$0xf]  ;;  %5563 = vmatpush.bf16.msrb.mxu2 %v15084_v46  ;;  %v14700_v57 = vor.u32 %v19255_v14, %v14699_v12  ;;  %v15275_v46 = vld [vmem:[%s28919_s3 + $0x7c8] sm:$0xf]  ;;  %v14989_v12 = vld [vmem:[%s28919_s3 + $0x598] sm:$0xf0] }
 0x2d6   : > { %v5335_v30 = vpop.f32.mrf.mxu3  ;;  %v14416_v35 = vor.u32 %v19181_v24, %v14413_v25  ;;  %v15259_v24 = vld [vmem:[%s28919_s3 + $0x7a8] sm:$0xf]  ;;  %v19395_v25 = vld [vmem:[%s28919_s3 + $0x7b4] sm:$0xf0]  ;;  %v14992_v26 = vor.u32 %v19325_v11, %v14989_v12  ;;  %v14957_v36 = vld [vmem:[%s28919_s3 + $0x558] sm:$0xf0] }
 0x2d7   : > { %5523 = vmatpush.bf16.msra.mxu0 %v14716_v5  ;;  %v19399_v5 = vld [vmem:[%s28919_s3 + $0x7d4] sm:$0xf0]  ;;  %v15243_v30 = vld [vmem:[%s28919_s3 + $0x788] sm:$0xf]  ;;  %v14941_v58 = vld [vmem:[%s28919_s3 + $0x538] sm:$0xf0] }
 0x2d8   : > { %5587 = vmatpush.bf16.msra.mxu3 %v14352_v53  ;;  %v15051_v53 = vld [vmem:[%s28919_s3 + $0x608] sm:$0xf]  ;;  %v15276_v14 = vor.u32 %v19399_v5, %v15275_v46  ;;  %v19217_v38 = vld [vmem:[%s28919_s3 + $0x22c] sm:$0xf]  ;;  %v19419_v11 = vld [vmem:[%s28921_s5 + $0x74] sm:$0xf0] }
 0x2d9   : > { %5600 = vmatpush.bf16.msra.mxu1 %v14480_v33  ;;  %v19251_v33 = vld [vmem:[%s28919_s3 + $0x334] sm:$0xf0]  ;;  %5564 = vmatpush.bf16.msrb.mxu2 %v15068_v13  ;;  %v15052_v2 = vor.u32 %v19343_v23, %v15051_v53  ;;  %v19289_v13 = vld [vmem:[%s28919_s3 + $0x46c] sm:$0xf]  ;;  %v15260_v53 = vor.u32 %v19395_v25, %v15259_v24  ;;  %v14608_v23 = vor.u32 %v19229_v51, %v14605_v28  ;;  %v14541_v28 = vld [vmem:[%s28919_s3 + $0x218] sm:$0xf0] }
 0x2da   : > { %v14684_v42 = vor.u32 %v19251_v33, %v14683_v32  ;;  %v19225_v33 = vld [vmem:[%s28919_s3 + $0x26c] sm:$0xf]  ;;  %v19379_v51 = vld [vmem:[%s28919_s3 + $0x734] sm:$0xf0] }
 0x2db   : > { %5524 = vmatpush.bf16.msra.mxu0 %v14700_v57  ;;  %v14845_v57 = vld [vmem:[%s28919_s3 + $0x478] sm:$0xf0]  ;;  %v19277_v5 = vld [vmem:[%s28919_s3 + $0x40c] sm:$0xf] }
 0x2dc   : > { %5588 = vmatpush.bf16.msra.mxu3 %v14336_v8  ;;  %v14893_v8 = vld [vmem:[%s28919_s3 + $0x4d8] sm:$0xf0]  ;;  %v14848_v32 = vor.u32 %v19289_v13, %v14845_v57  ;;  %v19369_v13 = vld [vmem:[%s28919_s3 + $0x6ec] sm:$0xf] }
 0x2dd   : > { %5601 = vmatpush.bf16.msra.mxu1 %v14464_v37  ;;  %v19333_v37 = vld [vmem:[%s28919_s3 + $0x5cc] sm:$0xf]  ;;  %v14896_v49 = vor.u32 %v19301_v43, %v14893_v8  ;;  %5565 = vmatpush.bf16.msrb.mxu2 %v15052_v2  ;;  %v3985_v43 = vperm.slane %v24283_v7, 1  ;;  %v15227_v7 = vld [vmem:[%s28919_s3 + $0x768] sm:$0xf] }
 0x2de   : > { %v15024_v9 = vor.u32 %v19333_v37, %v15021_v44  ;;  %v19317_v8 = vld [vmem:[%s28919_s3 + $0x54c] sm:$0xf] }
 0x2df   : > { %5525 = vmatpush.bf16.msra.mxu0 %v14684_v42  ;;  %v14592_v42 = vor.u32 %v19225_v33, %v14589_v34  ;;  %v19221_v44 = vld [vmem:[%s28919_s3 + $0x24c] sm:$0xf]  ;;  %v19375_v33 = vld [vmem:[%s28919_s3 + $0x714] sm:$0xf0]  ;;  %v14781_v34 = vld [vmem:[%s28919_s3 + $0x3f8] sm:$0xf0] }
 0x2e0   : > { %5589 = vmatpush.bf16.msra.mxu3 %v14320_v54  ;;  %v19403_v54 = vld [vmem:[%s28919_s3 + $0x7f4] sm:$0xf0]  ;;  %5566 = vmatmul.bf16.vlgmr.msrb.gmra.mxu2 %v24037_v15 }
 0x2e1   : > { %5602 = vmatpush.bf16.msra.mxu1 %v14448_v59  ;;  %v14668_v59 = vor.u32 %v19247_v21, %v14667_v47  ;;  %v15292_v3 = vor.u32 %v19403_v54, %v15291_v52  ;;  %5610 = vmatpush.bf16.msra.mxu2 %v14656_v1  ;;  %v19387_v47 = vld [vmem:[%s28919_s3 + $0x774] sm:$0xf0]  ;;  %v14960_v1 = vor.u32 %v19317_v8, %v14957_v36  ;;  %v14813_v52 = vld [vmem:[%s28919_s3 + $0x438] sm:$0xf0] }
 0x2e2   : > { %v15228_v60 = vor.u32 %v19387_v47, %v15227_v7  ;;  %v19415_v8 = vld [vmem:[%s28921_s5 + $0x54] sm:$0xf0]  ;;  %v14765_v7 = vld [vmem:[%s28919_s3 + $0x3d8] sm:$0xf0]  ;;  %v15331_v47 = vld [vmem:[%s28921_s5 + $0x40] sm:$0xf] }
 0x2e3   : > { %5526 = vmatpush.bf16.msra.mxu0 %v14668_v59 }
 0x2e4   : > { %5590 = vmatpush.bf16.msra.mxu3 %v14304_v48  ;;  %v14861_v48 = vld [vmem:[%s28919_s3 + $0x498] sm:$0xf0] }
 0x2e5   : > { %5603 = vmatpush.bf16.msra.mxu1 %v14432_v61  ;;  %5611 = vmatpush.bf16.msra.mxu2 %v14640_v39  ;;  %v14864_v17 = vor.u32 %v19293_v6, %v14861_v48  ;;  %v15211_v39 = vld [vmem:[%s28919_s3 + $0x748] sm:$0xf]  ;;  %v14925_v6 = vld [vmem:[%s28919_s3 + $0x518] sm:$0xf0]  ;;  %v15355_v48 = vld [vmem:[%s28921_s5 + $0x70] sm:$0xf] }
 0x2e6   : > { %5527 = vmatmul.bf16.vlgmr.msra.gmra.mxu0 %v23525_v22  ;;  %v15356_v57 = vor.u32 %v19419_v11, %v15355_v48 }
 0x2e7   : > { %5571 = vmatpush.bf16.msrb.mxu0 %v15292_v3  ;;  %v14557_v3 = vld [vmem:[%s28919_s3 + $0x238] sm:$0xf0] }
 0x2e8   : > { %5591 = vmatpush.bf16.msra.mxu3 %v14288_v40 }
 0x2e9   : > { %5604 = vmatpush.bf16.msra.mxu1 %v14416_v35  ;;  %v5398_v40 = vpop.f32.mrf.mxu1  ;;  %v19391_v35 = vld [vmem:[%s28919_s3 + $0x794] sm:$0xf0] }
 0x2ea   : > { %v15244_v2 = vor.u32 %v19391_v35, %v15243_v30  ;;  %v19365_v35 = vld [vmem:[%s28919_s3 + $0x6cc] sm:$0xf] }
 0x2eb   : > { %5592 = vmatmul.bf16.vlgmr.msra.gmra.mxu3 %v23516_v16  ;;  %v15008_v16 = vor.u32 %v19329_v63, %v15005_v0  ;;  %5572 = vmatpush.bf16.msrb.mxu0 %v15276_v14  ;;  %v14816_v0 = vor.u32 %v19281_v55, %v14813_v52  ;;  %v14560_v14 = vor.u32 %v19217_v38, %v14557_v3  ;;  %v19357_v55 = vld [vmem:[%s28919_s3 + $0x68c] sm:$0xf] }
 0x2ec   : > { %5636 = vmatpush.bf16.msrb.mxu3 %v14912_v27  ;;  %5605 = vmatmul.bf16.vlgmr.msra.gmra.mxu1 %v23518_v19  ;;  %v14621_v19 = vld [vmem:[%s28919_s3 + $0x2b8] sm:$0xf0]  ;;  %v14976_v27 = vor.u32 %v19321_v29, %v14973_v31  ;;  %v15347_v31 = vld [vmem:[%s28921_s5 + $0x60] sm:$0xf]  ;;  %v19265_v52 = vld [vmem:[%s28919_s3 + $0x3ac] sm:$0xf] }
 0x2ed   : > { %5649 = vmatpush.bf16.msrb.mxu1 %v15040_v41  ;;  %v14624_v61 = vor.u32 %v19233_v4, %v14621_v19  ;;  %v19285_v41 = vld [vmem:[%s28919_s3 + $0x44c] sm:$0xf]  ;;  %v15165_v29 = vld [vmem:[%s28919_s3 + $0x6f8] sm:$0xf0] }
 0x2ee   : > { %v14832_v37 = vor.u32 %v19285_v41, %v14829_v56  ;;  %v5385_v21 = vpop.f32.mrf.mxu3  ;;  %v19309_v19 = vld [vmem:[%s28919_s3 + $0x50c] sm:$0xf]  ;;  %v15168_v30 = vor.u32 %v19369_v13, %v15165_v29  ;;  %v15149_v56 = vld [vmem:[%s28919_s3 + $0x6d8] sm:$0xf0]  ;;  %v19407_v29 = vld [vmem:[%s28921_s5 + $0x14] sm:$0xf0] }
 0x2ef   : > { %5612 = vmatpush.bf16.msra.mxu2 %v14624_v61  ;;  %5573 = vmatpush.bf16.msrb.mxu0 %v15260_v53  ;;  %v5386_v54 = vadd.f32 %v5385_v21, %v3985_v43  ;;  %v14928_v25 = vor.u32 %v19309_v19, %v14925_v6  ;;  %v19417_v53 = vld [vmem:[%s28921_s5 + $0x64] sm:$0xf0]  ;;  %v15339_v43 = vld [vmem:[%s28921_s5 + $0x50] sm:$0xf]  ;;  %v15315_v19 = vld [vmem:[%s28921_s5 + $0x20] sm:$0xf] }
 0x2f0   : > { %5637 = vmatpush.bf16.msrb.mxu3 %v14896_v49  ;;  %v14573_v49 = vld [vmem:[%s28919_s3 + $0x258] sm:$0xf0]  ;;  %v15348_v41 = vor.u32 %v19417_v53, %v15347_v31  ;;  %v19413_v21 = vld [vmem:[%s28921_s5 + $0x44] sm:$0xf0] }
 0x2f1   : > { %5650 = vmatpush.bf16.msrb.mxu1 %v15024_v9  ;;  %v19313_v9 = vld [vmem:[%s28919_s3 + $0x52c] sm:$0xf]  ;;  %v5400_v59 = vpop.f32.mrf.mxu1  ;;  %v14576_v63 = vor.u32 %v19221_v44, %v14573_v49  ;;  %v24745_v4 = vadd.f32 %v5398_v40, %v5386_v54  ;;  %v14749_v54 = vld [vmem:[%s28919_s3 + $0x3b8] sm:$0xf0]  ;;  %v19409_v6 = vld [vmem:[%s28921_s5 + $0x24] sm:$0xf0] }
 0x2f2   : > { %v14944_v46 = vor.u32 %v19313_v9, %v14941_v58  ;;  %v19269_v44 = vld [vmem:[%s28919_s3 + $0x3cc] sm:$0xf]  ;;  %v15332_v9 = vor.u32 %v19413_v21, %v15331_v47  ;;  %v15323_v58 = vld [vmem:[%s28921_s5 + $0x30] sm:$0xf]  ;;  %v14752_v38 = vor.u32 %v19265_v52, %v14749_v54  ;;  %v15085_v13 = vld [vmem:[%s28919_s3 + $0x658] sm:$0xf0] }
 0x2f3   : > { %5613 = vmatpush.bf16.msra.mxu2 %v14608_v23  ;;  %5574 = vmatpush.bf16.msrb.mxu0 %v15244_v2  ;;  %v19353_v59 = vld [vmem:[%s28919_s3 + $0x66c] sm:$0xf]  ;;  %v15395_v47 = vld [vmem:[%s28921_s5 + $0xc0] sm:$0xf]  ;;  %v19429_v21 = vld [vmem:[%s28921_s5 + $0xc4] sm:$0xf0] }
 0x2f4   : > { %5638 = vmatpush.bf16.msrb.mxu3 %v14880_v62  ;;  %v19383_v62 = vld [vmem:[%s28919_s3 + $0x754] sm:$0xf0]  ;;  %v15396_v54 = vor.u32 %v19429_v21, %v15395_v47 }
 0x2f5   : > { %5651 = vmatpush.bf16.msrb.mxu1 %v15008_v16  ;;  %v14797_v16 = vld [vmem:[%s28919_s3 + $0x418] sm:$0xf0]  ;;  %v15212_v12 = vor.u32 %v19383_v62, %v15211_v39 }
 0x2f6   : > { %v14800_v61 = vor.u32 %v19277_v5, %v14797_v16  ;;  %v5387_v24 = vpop.f32.mrf.mxu3  ;;  %v14733_v39 = vld [vmem:[%s28919_s3 + $0x398] sm:$0xf0]  ;;  %v19435_v5 = vld [vmem:[%s28921_s5 + $0xf4] sm:$0xf0] }
 0x2f7   : > { %5614 = vmatpush.bf16.msra.mxu2 %v14592_v42  ;;  %5575 = vmatpush.bf16.msrb.mxu0 %v15228_v60  ;;  %v15152_v42 = vor.u32 %v19365_v35, %v15149_v56  ;;  %v19411_v60 = vld [vmem:[%s28921_s5 + $0x34] sm:$0xf0]  ;;  %v15101_v16 = vld [vmem:[%s28919_s3 + $0x678] sm:$0xf0]  ;;  %v15316_v24 = vor.u32 %v19409_v6, %v15315_v19  ;;  %v15299_v56 = vld [vmem:[%s28921_s5] sm:$0xf] }
 0x2f8   : > { %5639 = vmatpush.bf16.msrb.mxu3 %v14864_v17  ;;  %v15195_v17 = vld [vmem:[%s28919_s3 + $0x728] sm:$0xf]  ;;  %v15324_v62 = vor.u32 %v19411_v60, %v15323_v58  ;;  %v19245_v60 = vld [vmem:[%s28919_s3 + $0x30c] sm:$0xf]  ;;  %v15341_v19 = vld [vmem:[%s28921_s5 + $0x58] sm:$0xf0] }
 0x2f9   : > { %5652 = vmatpush.bf16.msrb.mxu1 %v14992_v26  ;;  %v19213_v26 = vld [vmem:[%s28919_s3 + $0x20c] sm:$0xf]  ;;  %v15196_v40 = vor.u32 %v19379_v51, %v15195_v17  ;;  %v15104_v17 = vor.u32 %v19353_v59, %v15101_v16  ;;  %v14717_v51 = vld [vmem:[%s28919_s3 + $0x378] sm:$0xf0]  ;;  %v19414_v16 = vld [vmem:[%s28921_s5 + $0x54] sm:$0xf] }
 0x2fa   : > { %v14544_v23 = vor.u32 %v19213_v26, %v14541_v28  ;;  %v19433_v26 = vld [vmem:[%s28921_s5 + $0xe4] sm:$0xf0]  ;;  %v14669_v59 = vld [vmem:[%s28919_s3 + $0x318] sm:$0xf0] }
 0x2fb   : > { %5615 = vmatpush.bf16.msra.mxu2 %v14576_v63  ;;  %5576 = vmatpush.bf16.msrb.mxu0 %v15212_v12  ;;  %v19261_v63 = vld [vmem:[%s28919_s3 + $0x38c] sm:$0xf]  ;;  %v14672_v6 = vor.u32 %v19245_v60, %v14669_v59 }
 0x2fc   : > { %5640 = vmatpush.bf16.msrb.mxu3 %v14848_v32  ;;  %v15179_v32 = vld [vmem:[%s28919_s3 + $0x708] sm:$0xf]  ;;  %v14736_v11 = vor.u32 %v19261_v63, %v14733_v39  ;;  %v19349_v12 = vld [vmem:[%s28919_s3 + $0x64c] sm:$0xf]  ;;  %v15387_v63 = vld [vmem:[%s28921_s5 + $0xb0] sm:$0xf] }
 0x2fd   : > { %5653 = vmatpush.bf16.msrb.mxu1 %v14976_v27  ;;  %v19273_v27 = vld [vmem:[%s28919_s3 + $0x3ec] sm:$0xf]  ;;  %v15180_v36 = vor.u32 %v19375_v33, %v15179_v32  ;;  %v15088_v33 = vor.u32 %v19349_v12, %v15085_v13  ;;  %v15379_v12 = vld [vmem:[%s28921_s5 + $0xa0] sm:$0xf] }
 0x2fe   : > { %v14784_v2 = vor.u32 %v19273_v27, %v14781_v34  ;;  %v15403_v27 = vld [vmem:[%s28921_s5 + $0xd0] sm:$0xf]  ;;  %v19431_v34 = vld [vmem:[%s28921_s5 + $0xd4] sm:$0xf0]  ;;  %v19401_v39 = vld [vmem:[%s28919_s3 + $0x7ec] sm:$0xf] }
 0x2ff   : > { %5616 = vmatpush.bf16.msra.mxu2 %v14560_v14  ;;  %5577 = vmatpush.bf16.msrb.mxu0 %v15196_v40  ;;  %v19257_v14 = vld [vmem:[%s28919_s3 + $0x36c] sm:$0xf] }
 0x300   : > { %5641 = vmatpush.bf16.msrb.mxu3 %v14832_v37  ;;  %v19361_v37 = vld [vmem:[%s28919_s3 + $0x6ac] sm:$0xf]  ;;  %v14720_v53 = vor.u32 %v19257_v14, %v14717_v51  ;;  %v19425_v14 = vld [vmem:[%s28921_s5 + $0xa4] sm:$0xf0]  ;;  %v15277_v51 = vld [vmem:[%s28919_s3 + $0x7d8] sm:$0xf0] }
 0x301   : > { %5654 = vmatpush.bf16.msrb.mxu1 %v14960_v1  ;;  %v14768_v1 = vor.u32 %v19269_v44, %v14765_v7  ;;  %v19345_v40 = vld [vmem:[%s28919_s3 + $0x62c] sm:$0xf] }
 0x302   : > { %v15333_v13 = vld [vmem:[%s28921_s5 + $0x48] sm:$0xf0] }
 0x303   : > { %5617 = vmatpush.bf16.msra.mxu2 %v14544_v23  ;;  %5578 = vmatpush.bf16.msrb.mxu0 %v15180_v36  ;;  %v19253_v23 = vld [vmem:[%s28919_s3 + $0x34c] sm:$0xf]  ;;  %v19418_v36 = vld [vmem:[%s28921_s5 + $0x74] sm:$0xf] }
 0x304   : > { %5642 = vmatpush.bf16.msrb.mxu3 %v14816_v0 }
 0x305   : > { %5655 = vmatpush.bf16.msrb.mxu1 %v14944_v46  ;;  %v15419_v46 = vld [vmem:[%s28921_s5 + $0xf0] sm:$0xf] }
 0x306   : > { %5618 = vmatmul.bf16.vlgmr.msra.gmra.mxu2 %v23520_v20  ;;  %5579 = vmatmul.bf16.vlgmr.msrb.gmra.mxu0 %v24234_v18  ;;  %v15117_v20 = vld [vmem:[%s28919_s3 + $0x698] sm:$0xf0]  ;;  %v15420_v48 = vor.u32 %v19435_v5, %v15419_v46 }
 0x307   : > { %5662 = vmatpush.bf16.msrb.mxu2 %v15168_v30  ;;  %5623 = vmatpush.bf16.msra.mxu0 %v14784_v2  ;;  %v15120_v3 = vor.u32 %v19357_v55, %v15117_v20  ;;  %v14701_v30 = vld [vmem:[%s28919_s3 + $0x358] sm:$0xf0]  ;;  %v15349_v20 = vld [vmem:[%s28921_s5 + $0x68] sm:$0xf0] }
 0x308   : > { %5643 = vmatpush.bf16.msrb.mxu3 %v14800_v61  ;;  %v24885_v61 = vpop.f32.mrf.mxu2  ;;  %v15357_v2 = vld [vmem:[%s28921_s5 + $0x78] sm:$0xf0] }
 0x309   : > { %5656 = vmatpush.bf16.msrb.mxu1 %v14928_v25  ;;  %v24859_v0 = vpop.f32.mrf.mxu1  ;;  %v15411_v25 = vld [vmem:[%s28921_s5 + $0xe0] sm:$0xf]  ;;  %v15053_v55 = vld [vmem:[%s28919_s3 + $0x618] sm:$0xf0]  ;;  %v15360_v52 = vor.u32 %v19418_v36, %v15357_v2 }
 0x30a   : > { %v15412_v31 = vor.u32 %v19433_v26, %v15411_v25  ;;  %v15380_v25 = vor.u32 %v19425_v14, %v15379_v12  ;;  %v19412_v26 = vld [vmem:[%s28921_s5 + $0x44] sm:$0xf]  ;;  %v15245_v36 = vld [vmem:[%s28919_s3 + $0x798] sm:$0xf0] }
 0x30b   : > { %5644 = vmatmul.bf16.vlgmr.msrb.gmra.mxu3 %v23685_v50  ;;  %v15340_v50 = vor.u32 %v19415_v8, %v15339_v43  ;;  %5663 = vmatpush.bf16.msrb.mxu2 %v15152_v42  ;;  %v19405_v43 = vld [vmem:[%s28921_s5 + $0x4] sm:$0xf0]  ;;  %v15404_v8 = vor.u32 %v19431_v34, %v15403_v27  ;;  %v14704_v42 = vor.u32 %v19253_v23, %v14701_v30  ;;  %v19410_v23 = vld [vmem:[%s28921_s5 + $0x34] sm:$0xf]  ;;  %v15363_v30 = vld [vmem:[%s28921_s5 + $0x80] sm:$0xf] }
 0x30c   : > { %6086 = vmatpush.bf16.msra.mxu3 %v15356_v57  ;;  %5657 = vmatmul.bf16.vlgmr.msrb.gmra.mxu1 %v23738_v45  ;;  %v15133_v45 = vld [vmem:[%s28919_s3 + $0x6b8] sm:$0xf0]  ;;  %v15307_v57 = vld [vmem:[%s28921_s5 + $0x10] sm:$0xf] }
 0x30d   : > { %v15136_v49 = vor.u32 %v19361_v37, %v15133_v45  ;;  %5624 = vmatpush.bf16.msra.mxu0 %v14768_v1  ;;  %6099 = vmatpush.bf16.msra.mxu1 %v15420_v48  ;;  %v15308_v35 = vor.u32 %v19407_v29, %v15307_v57  ;;  %v19249_v37 = vld [vmem:[%s28919_s3 + $0x32c] sm:$0xf]  ;;  %v15300_v45 = vor.u32 %v19405_v43, %v15299_v56  ;;  %v15371_v29 = vld [vmem:[%s28921_s5 + $0x90] sm:$0xf]  ;;  %v15421_v56 = vld [vmem:[%s28921_s5 + $0xf8] sm:$0xf0] }
 0x30e   : > { %v24896_v28 = vpop.f32.mrf.mxu3 }
 0x30f   : > { %5664 = vmatpush.bf16.msrb.mxu2 %v15136_v49  ;;  %v19341_v49 = vld [vmem:[%s28919_s3 + $0x60c] sm:$0xf] }
 0x310   : > { %6087 = vmatpush.bf16.msra.mxu3 %v15348_v41  ;;  %v15069_v41 = vld [vmem:[%s28919_s3 + $0x638] sm:$0xf0]  ;;  %v5361_v44 = vpop.f32.mrf.mxu2 }
 0x311   : > { %5625 = vmatpush.bf16.msra.mxu0 %v14752_v38  ;;  %6100 = vmatpush.bf16.msra.mxu1 %v15412_v31  ;;  %v5452_v32 = vpop.f32.mrf.mxu1  ;;  %v15072_v7 = vor.u32 %v19345_v40, %v15069_v41  ;;  %v15056_v38 = vor.u32 %v19341_v49, %v15053_v55  ;;  %v19423_v31 = vld [vmem:[%s28921_s5 + $0x94] sm:$0xf0]  ;;  %v15336_v40 = vor.u32 %v19412_v26, %v15333_v13  ;;  %v15317_v44 = vld [vmem:[%s28921_s5 + $0x28] sm:$0xf0]  ;;  %v19432_v55 = vld [vmem:[%s28921_s5 + $0xe4] sm:$0xf] }
 0x312   : > { %v15372_v32 = vor.u32 %v19423_v31, %v15371_v29  ;;  %v19428_v26 = vld [vmem:[%s28921_s5 + $0xc4] sm:$0xf]  ;;  %v15397_v13 = vld [vmem:[%s28921_s5 + $0xc8] sm:$0xf0] }
 0x313   : > { %5665 = vmatpush.bf16.msrb.mxu2 %v15120_v3  ;;  %v19427_v3 = vld [vmem:[%s28921_s5 + $0xb4] sm:$0xf0]  ;;  %v15400_v31 = vor.u32 %v19428_v26, %v15397_v13  ;;  %v19437_v26 = vld [vmem:[%s28921_s5 + $0x104] sm:$0xf0]  ;;  %v19450_v13 = vld [vmem:[%s28921_s5 + $0x174] sm:$0xf] }
 0x314   : > { %6088 = vmatpush.bf16.msra.mxu3 %v15340_v50  ;;  %v14685_v50 = vld [vmem:[%s28919_s3 + $0x338] sm:$0xf0]  ;;  %v15388_v5 = vor.u32 %v19427_v3, %v15387_v63  ;;  %v19381_v63 = vld [vmem:[%s28919_s3 + $0x74c] sm:$0xf] }
 0x315   : > { %5626 = vmatpush.bf16.msra.mxu0 %v14736_v11  ;;  %6101 = vmatpush.bf16.msra.mxu1 %v15404_v8  ;;  %v14688_v58 = vor.u32 %v19249_v37, %v14685_v50  ;;  %v19389_v8 = vld [vmem:[%s28919_s3 + $0x78c] sm:$0xf]  ;;  %v19408_v37 = vld [vmem:[%s28921_s5 + $0x24] sm:$0xf]  ;;  %v25054_v50 = vld [vmem:[%s28920_s4] sm:$0xf] }
 0x316   : > { %v5439_v1 = vpop.f32.mrf.mxu3  ;;  %v15248_v21 = vor.u32 %v19389_v8, %v15245_v36  ;;  %v19422_v8 = vld [vmem:[%s28921_s5 + $0x94] sm:$0xf]  ;;  %v15373_v36 = vld [vmem:[%s28921_s5 + $0x98] sm:$0xf0] }
 0x317   : > { %5666 = vmatpush.bf16.msrb.mxu2 %v15104_v17  ;;  %v19397_v17 = vld [vmem:[%s28919_s3 + $0x7cc] sm:$0xf] }
 0x318   : > { %6089 = vmatpush.bf16.msra.mxu3 %v15332_v9  ;;  %v19416_v9 = vld [vmem:[%s28921_s5 + $0x64] sm:$0xf]  ;;  %v24985_v48 = vpop.f32.mrf.mxu2  ;;  %v15280_v57 = vor.u32 %v19397_v17, %v15277_v51  ;;  %v19385_v1 = vld [vmem:[%s28919_s3 + $0x76c] sm:$0xf] }
 0x319   : > { %5627 = vmatpush.bf16.msra.mxu0 %v14720_v53  ;;  %6102 = vmatpush.bf16.msra.mxu1 %v15396_v54  ;;  %v15352_v46 = vor.u32 %v19416_v9, %v15349_v20  ;;  %v19393_v53 = vld [vmem:[%s28919_s3 + $0x7ac] sm:$0xf]  ;;  %v19406_v9 = vld [vmem:[%s28921_s5 + $0x14] sm:$0xf]  ;;  %v15309_v20 = vld [vmem:[%s28921_s5 + $0x18] sm:$0xf0] }
 0x31a   : > { %v19377_v17 = vld [vmem:[%s28919_s3 + $0x72c] sm:$0xf] }
 0x31b   : > { %5667 = vmatpush.bf16.msrb.mxu2 %v15088_v33  ;;  %v15325_v33 = vld [vmem:[%s28921_s5 + $0x38] sm:$0xf0] }
 0x31c   : > { %6090 = vmatpush.bf16.msra.mxu3 %v15324_v62  ;;  %v15293_v62 = vld [vmem:[%s28919_s3 + $0x7f8] sm:$0xf0]  ;;  %v15328_v2 = vor.u32 %v19410_v23, %v15325_v33 }
 0x31d   : > { %5628 = vmatpush.bf16.msra.mxu0 %v14704_v42  ;;  %6103 = vmatpush.bf16.msra.mxu1 %v15388_v5  ;;  %v15296_v11 = vor.u32 %v19401_v39, %v15293_v62  ;;  %v15213_v39 = vld [vmem:[%s28919_s3 + $0x758] sm:$0xf0]  ;;  %v15312_v62 = vor.u32 %v19406_v9, %v15309_v20  ;;  %v19430_v5 = vld [vmem:[%s28921_s5 + $0xd4] sm:$0xf]  ;;  %v19447_v9 = vld [vmem:[%s28921_s5 + $0x154] sm:$0xf0] }
 0x31e   : > { %v15216_v14 = vor.u32 %v19381_v63, %v15213_v39  ;;  %v15389_v23 = vld [vmem:[%s28921_s5 + $0xb8] sm:$0xf0]  ;;  %v19443_v39 = vld [vmem:[%s28921_s5 + $0x134] sm:$0xf0] }
 0x31f   : > { %5668 = vmatpush.bf16.msrb.mxu2 %v15072_v7  ;;  %v5360_v7 = vadd.f32 %v24885_v61, %v24537_v10  ;;  %v5372_v47 = vpop.f32.mrf.mxu0  ;;  %v15229_v10 = vld [vmem:[%s28919_s3 + $0x778] sm:$0xf0]  ;;  %v15320_v61 = vor.u32 %v19408_v37, %v15317_v44  ;;  %v19420_v37 = vld [vmem:[%s28921_s5 + $0x84] sm:$0xf] }
 0x320   : > { %6091 = vmatpush.bf16.msra.mxu3 %v15316_v24  ;;  %v15344_v24 = vor.u32 %v19414_v16, %v15341_v19  ;;  %v5413_v27 = vpop.f32.mrf.mxu2  ;;  %v15232_v59 = vor.u32 %v19385_v1, %v15229_v10  ;;  %v15405_v16 = vld [vmem:[%s28921_s5 + $0xd8] sm:$0xf0]  ;;  %v19404_v19 = vld [vmem:[%s28921_s5 + $0x4] sm:$0xf]  ;;  %v19449_v1 = vld [vmem:[%s28921_s5 + $0x164] sm:$0xf0] }
 0x321   : > { %5629 = vmatpush.bf16.msra.mxu0 %v14688_v58  ;;  %6104 = vmatpush.bf16.msra.mxu1 %v15380_v25  ;;  %v5373_v49 = vadd.f32 %v5372_v47, %v5360_v7  ;;  %v15181_v33 = vld [vmem:[%s28919_s3 + $0x718] sm:$0xf0]  ;;  %v15381_v27 = vld [vmem:[%s28921_s5 + $0xa8] sm:$0xf0] }
 0x323   : > { %5669 = vmatpush.bf16.msrb.mxu2 %v15056_v38  ;;  %20360 = vtanh.f32 %v5373_v49 }
 0x324   : > { %6092 = vmatpush.bf16.msra.mxu3 %v15308_v35  ;;  %v19421_v35 = vld [vmem:[%s28921_s5 + $0x84] sm:$0xf0] }
 0x325   : > { %5630 = vmatpush.bf16.msra.mxu0 %v14672_v6  ;;  %6105 = vmatpush.bf16.msra.mxu1 %v15372_v32  ;;  %v15364_v41 = vor.u32 %v19421_v35, %v15363_v30  ;;  %v15301_v6 = vld [vmem:[%s28921_s5 + $0x8] sm:$0xf0]  ;;  %v19424_v35 = vld [vmem:[%s28921_s5 + $0xa4] sm:$0xf] }
 0x326   : > { %5670 = vmatmul.bf16.vlgmr.msrb.gmra.mxu2 %v24037_v15  ;;  %v15261_v15 = vld [vmem:[%s28919_s3 + $0x7b8] sm:$0xf0]  ;;  %v15304_v25 = vor.u32 %v19404_v19, %v15301_v6  ;;  %v19373_v32 = vld [vmem:[%s28919_s3 + $0x70c] sm:$0xf]  ;;  %v15443_v6 = vld [vmem:[%s28921_s5 + $0x120] sm:$0xf] }
 0x327   : > { %v15264_v34 = vor.u32 %v19393_v53, %v15261_v15  ;;  %v5374_v12 = vpop.f32.mrf.mxu0 }
 0x328   : > { %6093 = vmatpush.bf16.msra.mxu3 %v15300_v45  ;;  %5631 = vmatmul.bf16.vlgmr.msra.gmra.mxu0 %v23525_v22  ;;  %v19434_v22 = vld [vmem:[%s28921_s5 + $0xf4] sm:$0xf]  ;;  %v3986_v45 = vperm.slane %v25054_v50, 2  ;;  %v25075_v38 = vpop.f32.mrf.mxu2 }
 0x329   : > { %5675 = vmatpush.bf16.msrb.mxu0 %v15296_v11  ;;  %v5502_v43 = vpop.f32.mrf.mxu1  ;;  %v15424_v42 = vor.u32 %v19434_v22, %v15421_v56  ;;  %6106 = vmatpush.bf16.msra.mxu1 %v15364_v41  ;;  %v15408_v11 = vor.u32 %v19430_v5, %v15405_v16  ;;  %v20361_v51 = vpop.eup %20360  ;;  %v15184_v41 = vor.u32 %v19373_v32, %v15181_v33 }
 0x32a   : > { %v5412_v22 = vadd.f32 %v24985_v48, %v24745_v4  ;;  %v15384_v56 = vor.u32 %v19424_v35, %v15381_v27  ;;  %v15483_v4 = vld [vmem:[%s28921_s5 + $0x170] sm:$0xf]  ;;  %v19451_v48 = vld [vmem:[%s28921_s5 + $0x174] sm:$0xf0]  ;;  %v19446_v27 = vld [vmem:[%s28921_s5 + $0x154] sm:$0xf] }
 0x32b   : > { %v15484_v7 = vor.u32 %v19451_v48, %v15483_v4  ;;  %v19442_v4 = vld [vmem:[%s28921_s5 + $0x134] sm:$0xf]  ;;  %v15453_v48 = vld [vmem:[%s28921_s5 + $0x138] sm:$0xf0] }
 0x32c   : > { %6138 = vmatpush.bf16.msrb.mxu3 %v15360_v52  ;;  %v15413_v52 = vld [vmem:[%s28921_s5 + $0xe8] sm:$0xf0] }
 0x32d   : > { %5676 = vmatpush.bf16.msrb.mxu0 %v15280_v57  ;;  %6151 = vmatpush.bf16.msrb.mxu1 %v15424_v42  ;;  %v15416_v58 = vor.u32 %v19432_v55, %v15413_v52  ;;  %v5692_v57 = vpack.c.bf16 %v20361_v51, %v20361_v51  ;;  %v19439_v51 = vld [vmem:[%s28921_s5 + $0x114] sm:$0xf0] }
 0x32e   : > { %v5489_v54 = vpop.f32.mrf.mxu3  ;;  %6112 = vmatpush.bf16.msra.mxu2 %v15484_v7  ;;  %v15456_v7 = vor.u32 %v19442_v4, %v15453_v48  ;;  %v19460_v48 = vld [vmem:[%s28921_s5 + $0x1c4] sm:$0xf] }
 0x32f   : > { %v5490_v60 = vadd.f32 %v5489_v54, %v3986_v45  ;;  %6094 = vmatmul.bf16.vlgmr.msra.gmra.mxu3 %v5692_v57 }
 0x330   : > { %6139 = vmatpush.bf16.msrb.mxu3 %v15352_v46  ;;  %v5465_v53 = vpop.f32.mrf.mxu2 }
 0x331   : > { %5677 = vmatpush.bf16.msrb.mxu0 %v15264_v34  ;;  %v5504_v3 = vpop.f32.mrf.mxu1  ;;  %v25083_v46 = vadd.f32 %v5502_v43, %v5490_v60  ;;  %6152 = vmatpush.bf16.msrb.mxu1 %v15416_v58  ;;  %v5424_v34 = vpop.f32.mrf.mxu0  ;;  %v15459_v60 = vld [vmem:[%s28921_s5 + $0x140] sm:$0xf] }
 0x332   : > { %v5425_v43 = vadd.f32 %v5424_v34, %v5412_v22  ;;  %v15451_v3 = vld [vmem:[%s28921_s5 + $0x130] sm:$0xf] }
 0x333   : > { %v15452_v5 = vor.u32 %v19443_v39, %v15451_v3 }
 0x334   : > { %6140 = vmatpush.bf16.msrb.mxu3 %v15344_v24  ;;  %v15197_v24 = vld [vmem:[%s28919_s3 + $0x738] sm:$0xf0]  ;;  %v5438_v42 = vadd.f32 %v24896_v28, %v5425_v43  ;;  %v15365_v28 = vld [vmem:[%s28921_s5 + $0x88] sm:$0xf0]  ;;  %v19444_v43 = vld [vmem:[%s28921_s5 + $0x144] sm:$0xf] }
 0x335   : > { %5678 = vmatpush.bf16.msrb.mxu0 %v15248_v21  ;;  %6153 = vmatpush.bf16.msrb.mxu1 %v15408_v11  ;;  %v15200_v15 = vor.u32 %v19377_v17, %v15197_v24  ;;  %v15475_v21 = vld [vmem:[%s28921_s5 + $0x160] sm:$0xf]  ;;  %v19441_v11 = vld [vmem:[%s28921_s5 + $0x124] sm:$0xf0]  ;;  %v15435_v17 = vld [vmem:[%s28921_s5 + $0x110] sm:$0xf] }
 0x336   : > { %v5491_v29 = vpop.f32.mrf.mxu3  ;;  %v5451_v47 = vadd.f32 %v24859_v0, %v5438_v42  ;;  %v15476_v49 = vor.u32 %v19449_v1, %v15475_v21  ;;  %v15467_v0 = vld [vmem:[%s28921_s5 + $0x150] sm:$0xf]  ;;  %v15436_v24 = vor.u32 %v19439_v51, %v15435_v17  ;;  %v19467_v21 = vld [vmem:[%s28921_s5 + $0x1f4] sm:$0xf0]  ;;  %v19438_v1 = vld [vmem:[%s28921_s5 + $0x114] sm:$0xf] }
 0x337   : > { %v15468_v58 = vor.u32 %v19447_v9, %v15467_v0  ;;  %v15485_v29 = vld [vmem:[%s28921_s5 + $0x178] sm:$0xf0]  ;;  %v19436_v9 = vld [vmem:[%s28921_s5 + $0x104] sm:$0xf] }
 0x338   : > { %6141 = vmatpush.bf16.msrb.mxu3 %v15336_v40  ;;  %v19426_v40 = vld [vmem:[%s28921_s5 + $0xb4] sm:$0xf]  ;;  %6113 = vmatpush.bf16.msra.mxu2 %v15476_v49  ;;  %v15437_v49 = vld [vmem:[%s28921_s5 + $0x118] sm:$0xf0] }
 0x339   : > { %5679 = vmatpush.bf16.msrb.mxu0 %v15232_v59  ;;  %6154 = vmatpush.bf16.msrb.mxu1 %v15400_v31  ;;  %v15392_v30 = vor.u32 %v19426_v40, %v15389_v23  ;;  %v5426_v44 = vpop.f32.mrf.mxu0  ;;  %v15488_v31 = vor.u32 %v19450_v13, %v15485_v29  ;;  %v19448_v40 = vld [vmem:[%s28921_s5 + $0x164] sm:$0xf]  ;;  %v15477_v23 = vld [vmem:[%s28921_s5 + $0x168] sm:$0xf0]  ;;  %v15440_v0 = vor.u32 %v19438_v1, %v15437_v49  ;;  %v19457_v29 = vld [vmem:[%s28921_s5 + $0x1a4] sm:$0xf0] }
 0x33a   : > { %v15480_v32 = vor.u32 %v19448_v40, %v15477_v23  ;;  %v15499_v40 = vld [vmem:[%s28921_s5 + $0x190] sm:$0xf]  ;;  %v19455_v23 = vld [vmem:[%s28921_s5 + $0x194] sm:$0xf0]  ;;  %v15509_v1 = vld [vmem:[%s28921_s5 + $0x1a8] sm:$0xf0] }
 0x33c   : > { %6142 = vmatpush.bf16.msrb.mxu3 %v15328_v2  ;;  %v15376_v2 = vor.u32 %v19422_v8, %v15373_v36  ;;  %6114 = vmatpush.bf16.msra.mxu2 %v15468_v58  ;;  %v15461_v8 = vld [vmem:[%s28921_s5 + $0x148] sm:$0xf0] }
 0x33d   : > { %5680 = vmatpush.bf16.msrb.mxu0 %v15216_v14  ;;  %6155 = vmatpush.bf16.msrb.mxu1 %v15392_v30  ;;  %v15444_v14 = vor.u32 %v19441_v11, %v15443_v6  ;;  %v15464_v36 = vor.u32 %v19444_v43, %v15461_v8  ;;  %v15523_v11 = vld [vmem:[%s28921_s5 + $0x1c0] sm:$0xf] }
 0x340   : > { %6143 = vmatpush.bf16.msrb.mxu3 %v15320_v61  ;;  %v5464_v61 = vadd.f32 %v25075_v38, %v5451_v47  ;;  %v19445_v38 = vld [vmem:[%s28921_s5 + $0x144] sm:$0xf0] }
 0x341   : > { %5681 = vmatpush.bf16.msrb.mxu0 %v15200_v15  ;;  %6156 = vmatpush.bf16.msrb.mxu1 %v15384_v56  ;;  %v25161_v54 = vpop.f32.mrf.mxu2  ;;  %v15460_v59 = vor.u32 %v19445_v38, %v15459_v60  ;;  %v3987_v15 = vperm.slane %v25054_v50, 3  ;;  %v15469_v50 = vld [vmem:[%s28921_s5 + $0x158] sm:$0xf0] }
 0x342   : > { %v15472_v22 = vor.u32 %v19446_v27, %v15469_v50  ;;  %v19466_v27 = vld [vmem:[%s28921_s5 + $0x1f4] sm:$0xf]  ;;  %v15549_v50 = vld [vmem:[%s28921_s5 + $0x1f8] sm:$0xf0] }
 0x343   : > { %v5476_v55 = vpop.f32.mrf.mxu0  ;;  %6115 = vmatpush.bf16.msra.mxu2 %v15460_v59  ;;  %v19465_v59 = vld [vmem:[%s28921_s5 + $0x1e4] sm:$0xf0] }
 0x344   : > { %6144 = vmatpush.bf16.msrb.mxu3 %v15312_v62  ;;  %v5477_v52 = vadd.f32 %v5476_v55, %v5464_v61  ;;  %v5516_v55 = vadd.f32 %v25161_v54, %v25083_v46  ;;  %v15539_v54 = vld [vmem:[%s28921_s5 + $0x1e0] sm:$0xf] }
 0x345   : > { %5682 = vmatpush.bf16.msrb.mxu0 %v15184_v41  ;;  %6157 = vmatpush.bf16.msrb.mxu1 %v15376_v2 }
 0x346   : > { %20362 = vtanh.f32 %v5477_v52 }
 0x347   : > { %6116 = vmatpush.bf16.msra.mxu2 %v15452_v5  ;;  %v19463_v5 = vld [vmem:[%s28921_s5 + $0x1d4] sm:$0xf0] }
 0x348   : > { %6145 = vmatpush.bf16.msrb.mxu3 %v15304_v25  ;;  %5683 = vmatmul.bf16.vlgmr.msrb.gmra.mxu0 %v24234_v18  ;;  %v15368_v18 = vor.u32 %v19420_v37, %v15365_v28  ;;  %v15427_v25 = vld [vmem:[%s28921_s5 + $0x100] sm:$0xf]  ;;  %v19440_v37 = vld [vmem:[%s28921_s5 + $0x124] sm:$0xf]  ;;  %v15445_v28 = vld [vmem:[%s28921_s5 + $0x128] sm:$0xf0] }
 0x349   : > { %v25149_v45 = vpop.f32.mrf.mxu1  ;;  %v5517_v19 = vpop.f32.mrf.mxu2  ;;  %v15448_v47 = vor.u32 %v19440_v37, %v15445_v28  ;;  %v15525_v37 = vld [vmem:[%s28921_s5 + $0x1c8] sm:$0xf0]  ;;  %v19458_v28 = vld [vmem:[%s28921_s5 + $0x1b4] sm:$0xf] }
 0x34a   : > { %6158 = vmatpush.bf16.msrb.mxu1 %v15368_v18  ;;  %v15547_v18 = vld [vmem:[%s28921_s5 + $0x1f0] sm:$0xf] }
 0x34b   : > { %6146 = vmatmul.bf16.vlgmr.msrb.gmra.mxu3 %v5692_v57  ;;  %v5478_v62 = vpop.f32.mrf.mxu0  ;;  %6117 = vmatpush.bf16.msra.mxu2 %v15444_v14  ;;  %v15428_v57 = vor.u32 %v19437_v26, %v15427_v25  ;;  %v15548_v61 = vor.u32 %v19467_v21, %v15547_v18  ;;  %v19459_v25 = vld [vmem:[%s28921_s5 + $0x1b4] sm:$0xf0]  ;;  %v15517_v18 = vld [vmem:[%s28921_s5 + $0x1b8] sm:$0xf0]  ;;  %v19456_v21 = vld [vmem:[%s28921_s5 + $0x1a4] sm:$0xf] }
 0x34c   : > { %v20363_v16 = vpop.eup %20362 }
 0x34d   : > { %v5693_v12 = vpack.c.bf16 %v20363_v16, %v20363_v16  ;;  %6125 = vmatpush.bf16.msra.mxu0 %v15548_v61  ;;  %v15512_v61 = vor.u32 %v19456_v21, %v15509_v1  ;;  %v15669_v21 = vld [vmem:[%s28925_s9 + $0x68] sm:$0xf0] }
 0x34e   : > { %v25158_v10 = vpop.f32.mrf.mxu3 }
 0x34f   : > { %6107 = vmatmul.bf16.vlgmr.msra.gmra.mxu1 %v5693_v12  ;;  %6118 = vmatpush.bf16.msra.mxu2 %v15436_v24  ;;  %v15515_v24 = vld [vmem:[%s28921_s5 + $0x1b0] sm:$0xf] }
 0x350   : > { %v15516_v13 = vor.u32 %v19459_v25, %v15515_v24 }
 0x351   : > { %v5556_v20 = vpop.f32.mrf.mxu1 }
 0x352   : > { %v15429_v20 = vld [vmem:[%s28921_s5 + $0x108] sm:$0xf0] }
 0x353   : > { %6119 = vmatpush.bf16.msra.mxu2 %v15428_v57  ;;  %v15432_v60 = vor.u32 %v19436_v9, %v15429_v20  ;;  %v15507_v57 = vld [vmem:[%s28921_s5 + $0x1a0] sm:$0xf]  ;;  %v15501_v9 = vld [vmem:[%s28921_s5 + $0x198] sm:$0xf0] }
 0x356   : > { %v5543_v63 = vpop.f32.mrf.mxu3 }
 0x357   : > { %6164 = vmatpush.bf16.msrb.mxu2 %v15488_v31  ;;  %v15540_v63 = vor.u32 %v19465_v59, %v15539_v54 }
 0x359   : > { %6126 = vmatpush.bf16.msra.mxu0 %v15540_v63 }
 0x35b   : > { %6165 = vmatpush.bf16.msrb.mxu2 %v15480_v32  ;;  %v15500_v32 = vor.u32 %v19455_v23, %v15499_v40  ;;  %v19472_v40 = vld [vmem:[%s28923_s7 + $0x20] sm:$0xff]  ;;  %v19471_v23 = vld [vmem:[%s28923_s7 + $0x18] sm:$0xff] }
 0x35f   : > { %6159 = vmatmul.bf16.vlgmr.msrb.gmra.mxu1 %v5693_v12  ;;  %6166 = vmatpush.bf16.msrb.mxu2 %v15472_v22  ;;  %v19461_v12 = vld [vmem:[%s28921_s5 + $0x1c4] sm:$0xf0]  ;;  %v15541_v22 = vld [vmem:[%s28921_s5 + $0x1e8] sm:$0xf0] }
 0x360   : > { %v15524_v14 = vor.u32 %v19461_v12, %v15523_v11 }
 0x363   : > { %v5528_v30 = vpop.f32.mrf.mxu0  ;;  %v5567_v34 = vpop.f32.mrf.mxu2  ;;  %6167 = vmatpush.bf16.msrb.mxu2 %v15464_v36  ;;  %v19462_v36 = vld [vmem:[%s28921_s5 + $0x1d4] sm:$0xf] }
 0x364   : > { %v5529_v52 = vadd.f32 %v5528_v30, %v5516_v55  ;;  %v19453_v30 = vld [vmem:[%s28921_s5 + $0x184] sm:$0xf0] }
 0x366   : > { %v5542_v58 = vadd.f32 %v25158_v10, %v5529_v52 }
 0x367   : > { %6168 = vmatpush.bf16.msrb.mxu2 %v15456_v7 }
 0x368   : > { %v5555_v46 = vadd.f32 %v25149_v45, %v5542_v58  ;;  %v15531_v45 = vld [vmem:[%s28921_s5 + $0x1d0] sm:$0xf]  ;;  %v19452_v58 = vld [vmem:[%s28921_s5 + $0x184] sm:$0xf] }
 0x369   : > { %v5606_v53 = vpop.f32.mrf.mxu1  ;;  %v15532_v19 = vor.u32 %v19463_v5, %v15531_v45 }
 0x36a   : > { %v5568_v3 = vadd.f32 %v5567_v34, %v5555_v46  ;;  %v15552_v34 = vor.u32 %v19466_v27, %v15549_v50  ;;  %v19469_v50 = vld [vmem:[%s28923_s7 + $0x8] sm:$0xff] }
 0x36b   : > { %v5530_v42 = vpop.f32.mrf.mxu0  ;;  %v5569_v44 = vpop.f32.mrf.mxu2  ;;  %6169 = vmatpush.bf16.msrb.mxu2 %v15448_v47  ;;  %6127 = vmatpush.bf16.msra.mxu0 %v15532_v19  ;;  %v15520_v47 = vor.u32 %v19458_v28, %v15517_v18  ;;  %v19497_v28 = vld [vmem:[%s28925_s9 + $0x64] sm:$0xf0] }
 0x36c   : > { %v15528_v44 = vor.u32 %v19460_v48, %v15525_v37  ;;  %v19498_v48 = vld [vmem:[%s28925_s9 + $0x74] sm:$0xf] }
 0x36e   : > { %v5593_v33 = vpop.f32.mrf.mxu3 }
 0x36f   : > { %v5594_v35 = vadd.f32 %v5593_v33, %v3987_v15  ;;  %6170 = vmatpush.bf16.msrb.mxu2 %v15440_v0  ;;  %6128 = vmatpush.bf16.msra.mxu0 %v15524_v14  ;;  %v15508_v15 = vor.u32 %v19457_v29, %v15507_v57  ;;  %v15491_v33 = vld [vmem:[%s28921_s5 + $0x180] sm:$0xf]  ;;  %v19454_v0 = vld [vmem:[%s28921_s5 + $0x194] sm:$0xf]  ;;  %v19475_v57 = vld [vmem:[%s28923_s7 + $0x38] sm:$0xff] }
 0x370   : > { %v15504_v20 = vor.u32 %v19454_v0, %v15501_v9  ;;  %v19483_v29 = vld [vmem:[%s28923_s7 + $0x78] sm:$0xff]  ;;  %6326 = vmatpush.bf16.msra.mxu3 %v19475_v57  ;;  %v19488_v57 = vld [vmem:[%s28925_s9 + $0x24] sm:$0xf] }
 0x371   : > { %v5608_v41 = vpop.f32.mrf.mxu1  ;;  %v25218_v56 = vadd.f32 %v5606_v53, %v5594_v35  ;;  %v15492_v35 = vor.u32 %v19453_v30, %v15491_v33  ;;  %6339 = vmatpush.bf16.msra.mxu1 %v19483_v29  ;;  %v19470_v30 = vld [vmem:[%s28923_s7 + $0x10] sm:$0xff]  ;;  %v19495_v0 = vld [vmem:[%s28925_s9 + $0x54] sm:$0xf0] }
 0x372   : > { %v19464_v41 = vld [vmem:[%s28921_s5 + $0x1e4] sm:$0xf] }
 0x373   : > { %6171 = vmatpush.bf16.msrb.mxu2 %v15432_v60  ;;  %6129 = vmatpush.bf16.msra.mxu0 %v15516_v13  ;;  %v15544_v43 = vor.u32 %v19464_v41, %v15541_v22  ;;  %v15493_v60 = vld [vmem:[%s28921_s5 + $0x188] sm:$0xf0]  ;;  %v19468_v41 = vld [vmem:[%s28923_s7] sm:$0xff] }
 0x374   : > { %v15496_v46 = vor.u32 %v19452_v58, %v15493_v60  ;;  %v19480_v22 = vld [vmem:[%s28923_s7 + $0x60] sm:$0xff]  ;;  %v15661_v58 = vld [vmem:[%s28925_s9 + $0x58] sm:$0xf0] }
 0x376   : > { %v5595_v2 = vpop.f32.mrf.mxu3 }
 0x377   : > { %6130 = vmatpush.bf16.msra.mxu0 %v15508_v15  ;;  %v15533_v2 = vld [vmem:[%s28921_s5 + $0x1d8] sm:$0xf0] }
 0x378   : > { %v15536_v42 = vor.u32 %v19462_v36, %v15533_v2  ;;  %v19477_v36 = vld [vmem:[%s28923_s7 + $0x48] sm:$0xff]  ;;  %v19476_v2 = vld [vmem:[%s28923_s7 + $0x40] sm:$0xff] }
 0x37b   : > { %6131 = vmatpush.bf16.msra.mxu0 %v15500_v32 }
 0x37f   : > { %6132 = vmatpush.bf16.msra.mxu0 %v15492_v35  ;;  %v19482_v35 = vld [vmem:[%s28923_s7 + $0x70] sm:$0xff] }
 0x380   : > { %6340 = vmatpush.bf16.msra.mxu1 %v19482_v35  ;;  %v15619_v35 = vld [vmem:[%s28925_s9] sm:$0xf] }
 0x383   : > { %v5580_v10 = vpop.f32.mrf.mxu0  ;;  %6177 = vmatpush.bf16.msrb.mxu0 %v15552_v34  ;;  %v19481_v34 = vld [vmem:[%s28923_s7 + $0x68] sm:$0xff] }
 0x384   : > { %v5581_v62 = vadd.f32 %v5580_v10, %v5568_v3  ;;  %6341 = vmatpush.bf16.msra.mxu1 %v19481_v34 }
 0x386   : > { %20364 = vtanh.f32 %v5581_v62 }
 0x387   : > { %6178 = vmatpush.bf16.msrb.mxu0 %v15544_v43  ;;  %v19479_v43 = vld [vmem:[%s28923_s7 + $0x58] sm:$0xff] }
 0x388   : > { %6342 = vmatpush.bf16.msra.mxu1 %v19480_v22 }
 0x389   : > { %v25259_v38 = vpop.f32.mrf.mxu1  ;;  %v5619_v6 = vpop.f32.mrf.mxu2 }
 0x38a   : > { %v5620_v55 = vadd.f32 %v5619_v6, %v25218_v56  ;;  %v5760_v6 = vld [vmem:[#allocation2] sm:$0x3] }
 0x38b   : > { %v5582_v51 = vpop.f32.mrf.mxu0  ;;  %6179 = vmatpush.bf16.msrb.mxu0 %v15536_v42  ;;  %v5762_v11 = vperm.slane %v5760_v6, 0  ;;  %v15675_v42 = vld [vmem:[%s28925_s9 + $0x70] sm:$0xf] }
 0x38c   : > { %v20365_v26 = vpop.eup %20364  ;;  %v5763_v51 = vperm.slane %v5760_v6, 1  ;;  %6343 = vmatpush.bf16.msra.mxu1 %v19479_v43  ;;  %v15923_v43 = vld [vmem:[%s28927_s11 + $0x1e0] sm:$0xf] }
 0x38d   : > { %v5694_v31 = vpack.c.bf16 %v20365_v26, %v20365_v26 }
 0x38e   : > { %v25268_v39 = vpop.f32.mrf.mxu3 }
 0x38f   : > { %6120 = vmatmul.bf16.vlgmr.msra.gmra.mxu2 %v5694_v31  ;;  %6180 = vmatpush.bf16.msrb.mxu0 %v15528_v44  ;;  %v15677_v44 = vld [vmem:[%s28925_s9 + $0x78] sm:$0xf0] }
 0x390   : > { %v15680_v18 = vor.u32 %v19498_v48, %v15677_v44  ;;  %v19558_v48 = vld [vmem:[%s28927_s11 + $0x1cc] sm:$0xf0]  ;;  %v19556_v44 = vld [vmem:[%s28927_s11 + $0x1c4] sm:$0xf] }
 0x391   : > { %v5660_v16 = vpop.f32.mrf.mxu1  ;;  %v5621_v53 = vpop.f32.mrf.mxu2 }
 0x392   : > { %v19473_v53 = vld [vmem:[%s28923_s7 + $0x28] sm:$0xff] }
 0x393   : > { %6181 = vmatpush.bf16.msrb.mxu0 %v15520_v47  ;;  %v19496_v47 = vld [vmem:[%s28925_s9 + $0x64] sm:$0xf] }
 0x396   : > { %v5647_v17 = vpop.f32.mrf.mxu3 }
 0x397   : > { %6182 = vmatpush.bf16.msrb.mxu0 %v15512_v61 }
 0x39b   : > { %6183 = vmatpush.bf16.msrb.mxu0 %v15504_v20  ;;  %v19494_v20 = vld [vmem:[%s28925_s9 + $0x54] sm:$0xf] }
 0x39f   : > { %6172 = vmatmul.bf16.vlgmr.msrb.gmra.mxu2 %v5694_v31  ;;  %6184 = vmatpush.bf16.msrb.mxu0 %v15496_v46  ;;  %v19474_v31 = vld [vmem:[%s28923_s7 + $0x30] sm:$0xff]  ;;  %v15651_v46 = vld [vmem:[%s28925_s9 + $0x40] sm:$0xf] }
 0x3a0   : > { %6327 = vmatpush.bf16.msra.mxu3 %v19474_v31  ;;  %v15637_v31 = vld [vmem:[%s28925_s9 + $0x28] sm:$0xf0] }
 0x3a4   : > { %6328 = vmatpush.bf16.msra.mxu3 %v19473_v53  ;;  %v15640_v53 = vor.u32 %v19488_v57, %v15637_v31  ;;  %v19544_v57 = vld [vmem:[%s28927_s11 + $0x164] sm:$0xf] }
 0x3a5   : > { %v5632_v8 = vpop.f32.mrf.mxu0 }
 0x3a6   : > { %v5633_v52 = vadd.f32 %v5632_v8, %v5620_v55  ;;  %v19478_v8 = vld [vmem:[%s28923_s7 + $0x50] sm:$0xff]  ;;  %v15672_v55 = vor.u32 %v19496_v47, %v15669_v21  ;;  %v19528_v21 = vld [vmem:[%s28927_s11 + $0xe4] sm:$0xf] }
 0x3a7   : > { %6344 = vmatpush.bf16.msra.mxu1 %v19478_v8  ;;  %v19562_v8 = vld [vmem:[%s28927_s11 + $0x1ec] sm:$0xf0] }
 0x3a8   : > { %v5646_v56 = vadd.f32 %v25268_v39, %v5633_v52  ;;  %6329 = vmatpush.bf16.msra.mxu3 %v19472_v40  ;;  %v15659_v52 = vld [vmem:[%s28925_s9 + $0x50] sm:$0xf]  ;;  %v19487_v40 = vld [vmem:[%s28925_s9 + $0x14] sm:$0xf0] }
 0x3a9   : > { %v5671_v4 = vpop.f32.mrf.mxu2  ;;  %v15660_v60 = vor.u32 %v19495_v0, %v15659_v52  ;;  %v19530_v47 = vld [vmem:[%s28927_s11 + $0xec] sm:$0xf0]  ;;  %v15891_v52 = vld [vmem:[%s28927_s11 + $0x1a0] sm:$0xf] }
 0x3aa   : > { %v5659_v54 = vadd.f32 %v25259_v38, %v5646_v56  ;;  %v15664_v56 = vor.u32 %v19494_v20, %v15661_v58  ;;  %v19554_v0 = vld [vmem:[%s28927_s11 + $0x1ac] sm:$0xf0]  ;;  %v15893_v20 = vld [vmem:[%s28927_s11 + $0x1b0] sm:$0xf0]  ;;  %v15779_v58 = vld [vmem:[%s28927_s11 + $0xc0] sm:$0xf] }
 0x3ab   : > { %6345 = vmatpush.bf16.msra.mxu1 %v19477_v36  ;;  %v19560_v36 = vld [vmem:[%s28927_s11 + $0x1e4] sm:$0xf] }
 0x3ac   : > { %v5672_v63 = vadd.f32 %v5671_v4, %v5659_v54  ;;  %6330 = vmatpush.bf16.msra.mxu3 %v19471_v23  ;;  %v19499_v4 = vld [vmem:[%s28925_s9 + $0x74] sm:$0xf0]  ;;  %v19493_v54 = vld [vmem:[%s28925_s9 + $0x44] sm:$0xf0]  ;;  %v19486_v23 = vld [vmem:[%s28925_s9 + $0x14] sm:$0xf] }
 0x3ad   : > { %v5634_v7 = vpop.f32.mrf.mxu0  ;;  %v15676_v37 = vor.u32 %v19499_v4, %v15675_v42  ;;  %v15925_v42 = vld [vmem:[%s28927_s11 + $0x1f0] sm:$0xf0]  ;;  %v15907_v4 = vld [vmem:[%s28927_s11 + $0x1c0] sm:$0xf] }
 0x3ae   : > { %v15667_v7 = vld [vmem:[%s28925_s9 + $0x60] sm:$0xf] }
 0x3af   : > { %6346 = vmatpush.bf16.msra.mxu1 %v19476_v2  ;;  %6455 = vmatpush.bf16.msra.mxu2 %v15676_v37  ;;  %v15924_v2 = vor.u32 %v19562_v8, %v15923_v43  ;;  %v15928_v37 = vor.u32 %v19560_v36, %v15925_v42  ;;  %v15715_v36 = vld [vmem:[%s28927_s11 + $0x40] sm:$0xf]  ;;  %v19510_v42 = vld [vmem:[%s28927_s11 + $0x4c] sm:$0xf0] }
 0x3b0   : > { %6331 = vmatpush.bf16.msra.mxu3 %v19470_v30 }
 0x3b1   : > { %v5673_v49 = vpop.f32.mrf.mxu2 }
 0x3b2   : > { %v6095_v59 = vpop.f32.mrf.mxu3  ;;  %v15668_v49 = vor.u32 %v19497_v28, %v15667_v7  ;;  %v15909_v7 = vld [vmem:[%s28927_s11 + $0x1d0] sm:$0xf0]  ;;  %v15795_v28 = vld [vmem:[%s28927_s11 + $0xe0] sm:$0xf] }
 0x3b3   : > { %v6096_v39 = vadd.f32 %v6095_v59, %v5762_v11  ;;  %v19492_v59 = vld [vmem:[%s28925_s9 + $0x44] sm:$0xf]  ;;  %6892 = vmatpush.bf16.msrb.mxu1 %v15924_v2 }
 0x3b4   : > { %6332 = vmatpush.bf16.msra.mxu3 %v19469_v50  ;;  %6456 = vmatpush.bf16.msra.mxu2 %v15668_v49  ;;  %v19484_v50 = vld [vmem:[%s28925_s9 + $0x4] sm:$0xf]  ;;  %v15912_v49 = vor.u32 %v19556_v44, %v15909_v7  ;;  %v15827_v44 = vld [vmem:[%s28927_s11 + $0x120] sm:$0xf]  ;;  %v19538_v7 = vld [vmem:[%s28927_s11 + $0x12c] sm:$0xf0] }
 0x3b8   : > { %6333 = vmatpush.bf16.msra.mxu3 %v19468_v41  ;;  %6457 = vmatpush.bf16.msra.mxu2 %v15660_v60  ;;  %v15621_v41 = vld [vmem:[%s28925_s9 + $0x8] sm:$0xf0]  ;;  %v19526_v60 = vld [vmem:[%s28927_s11 + $0xcc] sm:$0xf0] }
 0x3b9   : > { %v15624_v22 = vor.u32 %v19484_v50, %v15621_v41  ;;  %v19542_v50 = vld [vmem:[%s28927_s11 + $0x14c] sm:$0xf0]  ;;  %v15845_v41 = vld [vmem:[%s28927_s11 + $0x150] sm:$0xf0] }
 0x3ba   : > { %v6097_v62 = vpop.f32.mrf.mxu3 }
 0x3c5   : > { %v5684_v3 = vpop.f32.mrf.mxu0 }
 0x3c6   : > { %v5685_v10 = vadd.f32 %v5684_v3, %v5672_v63  ;;  %v15653_v63 = vld [vmem:[%s28925_s9 + $0x48] sm:$0xf0]  ;;  %v15652_v3 = vor.u32 %v19493_v54, %v15651_v46  ;;  %v19524_v46 = vld [vmem:[%s28927_s11 + $0xc4] sm:$0xf]  ;;  %v15781_v54 = vld [vmem:[%s28927_s11 + $0xd0] sm:$0xf0] }
 0x3c7   : > { %v15656_v62 = vor.u32 %v19492_v59, %v15653_v63  ;;  %v15892_v59 = vor.u32 %v19554_v0, %v15891_v52  ;;  %v15784_v63 = vor.u32 %v19524_v46, %v15781_v54  ;;  %v19506_v52 = vld [vmem:[%s28927_s11 + $0x2c] sm:$0xf0]  ;;  %v19504_v0 = vld [vmem:[%s28927_s11 + $0x24] sm:$0xf] }
 0x3c8   : > { %20366 = vtanh.f32 %v5685_v10  ;;  %6458 = vmatpush.bf16.msra.mxu2 %v15652_v3  ;;  %v15875_v3 = vld [vmem:[%s28927_s11 + $0x180] sm:$0xf]  ;;  %v19532_v46 = vld [vmem:[%s28927_s11 + $0x104] sm:$0xf] }
 0x3cc   : > { %v6108_v14 = vpop.f32.mrf.mxu1 }
 0x3cd   : > { %v5686_v45 = vpop.f32.mrf.mxu0  ;;  %v6109_v17 = vadd.f32 %v6108_v14, %v6096_v39  ;;  %v15643_v14 = vld [vmem:[%s28925_s9 + $0x30] sm:$0xf] }
 0x3ce   : > { %v20367_v5 = vpop.eup %20366  ;;  %v6147_v19 = vpop.f32.mrf.mxu3 }
 0x3cf   : > { %v5695_v16 = vpack.c.bf16 %v20367_v5, %v20367_v5  ;;  %v6148_v24 = vadd.f32 %v6147_v19, %v5763_v51 }
 0x3d1   : > { %6133 = vmatmul.bf16.vlgmr.msra.gmra.mxu0 %v5695_v16 }
 0x3d2   : > { %6468 = vmatpush.bf16.msra.mxu0 %v15680_v18  ;;  %v15908_v18 = vor.u32 %v19558_v48, %v15907_v4  ;;  %v19508_v4 = vld [vmem:[%s28927_s11 + $0x44] sm:$0xf]  ;;  %v15717_v48 = vld [vmem:[%s28927_s11 + $0x50] sm:$0xf0] }
 0x3d4   : > { %v6110_v38 = vpop.f32.mrf.mxu1  ;;  %6893 = vmatpush.bf16.msrb.mxu1 %v15908_v18  ;;  %v15829_v18 = vld [vmem:[%s28927_s11 + $0x130] sm:$0xf0] }
 0x3d5   : > { %v19490_v38 = vld [vmem:[%s28925_s9 + $0x34] sm:$0xf] }
 0x3d6   : > { %v6149_v12 = vpop.f32.mrf.mxu3  ;;  %6469 = vmatpush.bf16.msra.mxu0 %v15672_v55 }
 0x3d8   : > { %6894 = vmatpush.bf16.msrb.mxu1 %v15892_v59  ;;  %v15813_v59 = vld [vmem:[%s28927_s11 + $0x110] sm:$0xf0] }
 0x3da   : > { %6470 = vmatpush.bf16.msra.mxu0 %v15664_v56  ;;  %v15780_v56 = vor.u32 %v19526_v60, %v15779_v58  ;;  %v15811_v60 = vld [vmem:[%s28927_s11 + $0x100] sm:$0xf] }
 0x3dc   : > { %v6160_v25 = vpop.f32.mrf.mxu1 }
 0x3dd   : > { %v25357_v26 = vadd.f32 %v6160_v25, %v6148_v24  ;;  %v15645_v24 = vld [vmem:[%s28925_s9 + $0x38] sm:$0xf0] }
 0x3de   : > { %6471 = vmatpush.bf16.msra.mxu0 %v15656_v62  ;;  %v15648_v25 = vor.u32 %v19490_v38, %v15645_v24  ;;  %v19518_v38 = vld [vmem:[%s28927_s11 + $0x8c] sm:$0xf0]  ;;  %v15749_v24 = vld [vmem:[%s28927_s11 + $0x90] sm:$0xf0] }
 0x3e1   : > { %6185 = vmatmul.bf16.vlgmr.msrb.gmra.mxu0 %v5695_v16 }
 0x3e2   : > { %6472 = vmatpush.bf16.msra.mxu0 %v15648_v25 }
 0x3e4   : > { %v6162_v13 = vpop.f32.mrf.mxu1 }
 0x3e5   : > { %v19489_v13 = vld [vmem:[%s28925_s9 + $0x24] sm:$0xf0] }
 0x3e6   : > { %6473 = vmatpush.bf16.msra.mxu0 %v15640_v53 }
 0x412   : > { %v6121_v15 = vpop.f32.mrf.mxu2 }
 0x413   : > { %v6122_v1 = vadd.f32 %v6121_v15, %v6109_v17  ;;  %v19491_v17 = vld [vmem:[%s28925_s9 + $0x34] sm:$0xf0]  ;;  %v15627_v15 = vld [vmem:[%s28925_s9 + $0x10] sm:$0xf] }
 0x414   : > { %v15644_v51 = vor.u32 %v19491_v17, %v15643_v14  ;;  %v15747_v14 = vld [vmem:[%s28927_s11 + $0x80] sm:$0xf] }
 0x415   : > { %v15748_v53 = vor.u32 %v19518_v38, %v15747_v14  ;;  %v15915_v14 = vld [vmem:[%s28927_s11 + $0x1c8] sm:$0xf]  ;;  %v19557_v38 = vld [vmem:[%s28927_s11 + $0x1cc] sm:$0xf] }
 0x416   : > { %6459 = vmatpush.bf16.msra.mxu2 %v15644_v51  ;;  %v19516_v51 = vld [vmem:[%s28927_s11 + $0x84] sm:$0xf] }
 0x41a   : > { %v6123_v32 = vpop.f32.mrf.mxu2 }
 0x41b   : > { %v15628_v32 = vor.u32 %v19487_v40, %v15627_v15  ;;  %v15752_v15 = vor.u32 %v19516_v51, %v15749_v24  ;;  %v15731_v40 = vld [vmem:[%s28927_s11 + $0x60] sm:$0xf]  ;;  %v15917_v24 = vld [vmem:[%s28927_s11 + $0x1d8] sm:$0xf0] }
 0x422   : > { %v6173_v33 = vpop.f32.mrf.mxu2 }
 0x423   : > { %v6174_v16 = vadd.f32 %v6173_v33, %v25357_v26  ;;  %v15635_v26 = vld [vmem:[%s28925_s9 + $0x20] sm:$0xf]  ;;  %v15629_v33 = vld [vmem:[%s28925_s9 + $0x18] sm:$0xf0] }
 0x424   : > { %v15636_v29 = vor.u32 %v19489_v13, %v15635_v26  ;;  %v15632_v30 = vor.u32 %v19486_v23, %v15629_v33  ;;  %v15859_v26 = vld [vmem:[%s28927_s11 + $0x160] sm:$0xf]  ;;  %v19546_v13 = vld [vmem:[%s28927_s11 + $0x16c] sm:$0xf0]  ;;  %v19512_v33 = vld [vmem:[%s28927_s11 + $0x64] sm:$0xf] }
 0x425   : > { %v15860_v23 = vor.u32 %v19546_v13, %v15859_v26  ;;  %v19502_v26 = vld [vmem:[%s28927_s11 + $0xc] sm:$0xf0]  ;;  %v15920_v13 = vor.u32 %v19557_v38, %v15917_v24  ;;  %v19539_v38 = vld [vmem:[%s28927_s11 + $0x134] sm:$0xf0] }
 0x426   : > { %6460 = vmatpush.bf16.msra.mxu2 %v15636_v29  ;;  %6474 = vmatpush.bf16.msra.mxu0 %v15632_v30  ;;  %v15861_v29 = vld [vmem:[%s28927_s11 + $0x170] sm:$0xf0] }
 0x427   : > { %v15733_v30 = vld [vmem:[%s28927_s11 + $0x70] sm:$0xf0] }
 0x428   : > { %v15736_v8 = vor.u32 %v19512_v33, %v15733_v30 }
 0x42a   : > { %v6175_v27 = vpop.f32.mrf.mxu2  ;;  %6461 = vmatpush.bf16.msra.mxu2 %v15628_v32  ;;  %6475 = vmatpush.bf16.msra.mxu0 %v15624_v22  ;;  %v19514_v32 = vld [vmem:[%s28927_s11 + $0x6c] sm:$0xf0]  ;;  %v20343_v22 = vld [vmem:[%s28924_s8] ss:$0 sm:$0xff] }
 0x42b   : > { %v19485_v27 = vld [vmem:[%s28925_s9 + $0x4] sm:$0xf0]  ;;  %v15732_v43 = vor.u32 %v19514_v32, %v15731_v40  ;;  %v19531_v40 = vld [vmem:[%s28927_s11 + $0xf4] sm:$0xf0]  ;;  %v15805_v32 = vld [vmem:[%s28927_s11 + $0xf8] sm:$0xf0] }
 0x42c   : > { %v15620_v34 = vor.u32 %v19485_v27, %v15619_v35  ;;  %v15864_v35 = vor.u32 %v19544_v57, %v15861_v29  ;;  %v15843_v27 = vld [vmem:[%s28927_s11 + $0x140] sm:$0xf]  ;;  %v19500_v29 = vld [vmem:[%s28927_s11 + $0x4] sm:$0xf] }
 0x42d   : > { %v15844_v2 = vor.u32 %v19542_v50, %v15843_v27  ;;  %v19555_v27 = vld [vmem:[%s28927_s11 + $0x1b4] sm:$0xf0]  ;;  %v19553_v50 = vld [vmem:[%s28927_s11 + $0x1ac] sm:$0xf] }
 0x42e   : > { %6462 = vmatpush.bf16.msra.mxu2 %v15620_v34  ;;  %6918 = vmatpush.bf16.msrb.mxu0 %v15928_v37  ;;  %v19540_v34 = vld [vmem:[%s28927_s11 + $0x144] sm:$0xf] }
 0x42f   : > { %v15848_v37 = vor.u32 %v19540_v34, %v15845_v41  ;;  %v15901_v41 = vld [vmem:[%s28927_s11 + $0x1b8] sm:$0xf0] }
 0x432   : > { %6919 = vmatpush.bf16.msrb.mxu0 %v15912_v49  ;;  %v15699_v49 = vld [vmem:[%s28927_s11 + $0x20] sm:$0xf] }
 0x44e   : > { %v6134_v61 = vpop.f32.mrf.mxu0 }
 0x44f   : > { %v6135_v9 = vadd.f32 %v6134_v61, %v6122_v1  ;;  %v15797_v1 = vld [vmem:[%s28927_s11 + $0xf0] sm:$0xf0]  ;;  %v15796_v61 = vor.u32 %v19530_v47, %v15795_v28  ;;  %v19536_v28 = vld [vmem:[%s28927_s11 + $0x124] sm:$0xf] }
 0x450   : > { %v15800_v55 = vor.u32 %v19528_v21, %v15797_v1  ;;  %v15716_v21 = vor.u32 %v19510_v42, %v15715_v36  ;;  %v15720_v1 = vor.u32 %v19508_v4, %v15717_v48  ;;  %v15832_v58 = vor.u32 %v19536_v28, %v15829_v18  ;;  %v19525_v36 = vld [vmem:[%s28927_s11 + $0xcc] sm:$0xf]  ;;  %v15789_v42 = vld [vmem:[%s28927_s11 + $0xd8] sm:$0xf0]  ;;  %v15883_v48 = vld [vmem:[%s28927_s11 + $0x188] sm:$0xf] }
 0x451   : > { %20368 = vtanh.f32 %v6135_v9  ;;  %v19552_v9 = vld [vmem:[%s28927_s11 + $0x1a4] sm:$0xf]  ;;  %6879 = vmatpush.bf16.msrb.mxu3 %v15796_v61  ;;  %v15792_v4 = vor.u32 %v19525_v36, %v15789_v42  ;;  %v15885_v28 = vld [vmem:[%s28927_s11 + $0x198] sm:$0xf0]  ;;  %v19503_v42 = vld [vmem:[%s28927_s11 + $0x14] sm:$0xf0] }
 0x452   : > { %6905 = vmatpush.bf16.msrb.mxu2 %v15800_v55  ;;  %v15896_v62 = vor.u32 %v19552_v9, %v15893_v20  ;;  %v15828_v55 = vor.u32 %v19538_v7, %v15827_v44  ;;  %v15701_v9 = vld [vmem:[%s28927_s11 + $0x30] sm:$0xf0]  ;;  %v19549_v44 = vld [vmem:[%s28927_s11 + $0x18c] sm:$0xf] }
 0x453   : > { %v15888_v18 = vor.u32 %v19549_v44, %v15885_v28 }
 0x454   : > { %6920 = vmatpush.bf16.msrb.mxu0 %v15896_v62  ;;  %v15933_v62 = vld [vmem:[%s28927_s11 + $0x1f8] sm:$0xf0] }
 0x455   : > { %6880 = vmatpush.bf16.msrb.mxu3 %v15780_v56  ;;  %v19534_v56 = vld [vmem:[%s28927_s11 + $0x10c] sm:$0xf0] }
 0x456   : > { %v6136_v10 = vpop.f32.mrf.mxu0  ;;  %6906 = vmatpush.bf16.msrb.mxu2 %v15784_v63  ;;  %v15931_v63 = vld [vmem:[%s28927_s11 + $0x1e8] sm:$0xf] }
 0x457   : > { %v20369_v45 = vpop.eup %20368  ;;  %v19550_v10 = vld [vmem:[%s28927_s11 + $0x18c] sm:$0xf0] }
 0x458   : > { %v6192_v5 = vpack.c.bf16 %v20369_v45, %v20369_v45  ;;  %v15763_v45 = vld [vmem:[%s28927_s11 + $0xa0] sm:$0xf]  ;;  %v15876_v17 = vor.u32 %v19550_v10, %v15875_v3  ;;  %v19563_v3 = vld [vmem:[%s28927_s11 + $0x1f4] sm:$0xf0]  ;;  %v19561_v10 = vld [vmem:[%s28927_s11 + $0x1ec] sm:$0xf] }
 0x45a   : > { %6334 = vmatmul.bf16.vlgmr.msra.gmra.mxu3 %v6192_v5  ;;  %v19522_v5 = vld [vmem:[%s28927_s11 + $0xac] sm:$0xf0]  ;;  %6895 = vmatpush.bf16.msrb.mxu1 %v15876_v17  ;;  %v19559_v17 = vld [vmem:[%s28927_s11 + $0x1d4] sm:$0xf0] }
 0x45b   : > { %v15916_v51 = vor.u32 %v19559_v17, %v15915_v14  ;;  %v15741_v14 = vld [vmem:[%s28927_s11 + $0x78] sm:$0xf0]  ;;  %v15835_v17 = vld [vmem:[%s28927_s11 + $0x128] sm:$0xf] }
 0x45c   : > { %v15836_v24 = vor.u32 %v19539_v38, %v15835_v17  ;;  %v19800_v38 = vld [vmem:[#allocation7 + $0x75c] sm:$0xf0] }
 0x45e   : > { %v6186_v19 = vpop.f32.mrf.mxu0  ;;  %6896 = vmatpush.bf16.msrb.mxu1 %v15860_v23  ;;  %v19529_v23 = vld [vmem:[%s28927_s11 + $0xec] sm:$0xf] }
 0x45f   : > { %v6187_v6 = vadd.f32 %v6186_v19, %v6174_v16  ;;  %v19520_v16 = vld [vmem:[%s28927_s11 + $0xa4] sm:$0xf]  ;;  %v15808_v30 = vor.u32 %v19529_v23, %v15805_v32  ;;  %v15819_v23 = vld [vmem:[%s28927_s11 + $0x108] sm:$0xf]  ;;  %v19535_v32 = vld [vmem:[%s28927_s11 + $0x114] sm:$0xf0] }
 0x460   : > { %v19548_v19 = vld [vmem:[%s28927_s11 + $0x184] sm:$0xf] }
 0x461   : > { %20370 = vtanh.f32 %v6187_v6  ;;  %v15877_v6 = vld [vmem:[%s28927_s11 + $0x190] sm:$0xf0] }
 0x462   : > { %v15880_v25 = vor.u32 %v19548_v19, %v15877_v6  ;;  %6897 = vmatpush.bf16.msrb.mxu1 %v15844_v2  ;;  %v15812_v19 = vor.u32 %v19534_v56, %v15811_v60  ;;  %v15816_v6 = vor.u32 %v19532_v46, %v15813_v59  ;;  %v15755_v56 = vld [vmem:[%s28927_s11 + $0x88] sm:$0xf]  ;;  %v19519_v46 = vld [vmem:[%s28927_s11 + $0x94] sm:$0xf0] }
 0x463   : > { %v15756_v59 = vor.u32 %v19519_v46, %v15755_v56  ;;  %v19680_v56 = vld [vmem:[#allocation7 + $0x39c] sm:$0xf0] }
 0x464   : > { %6921 = vmatpush.bf16.msrb.mxu0 %v15880_v25  ;;  %v15683_v25 = vld [vmem:[%s28927_s11] sm:$0xf] }
 0x465   : > { %v15684_v57 = vor.u32 %v19502_v26, %v15683_v25  ;;  %v19537_v25 = vld [vmem:[%s28927_s11 + $0x12c] sm:$0xf]  ;;  %v15837_v26 = vld [vmem:[%s28927_s11 + $0x138] sm:$0xf0] }
 0x466   : > { %v6188_v11 = vpop.f32.mrf.mxu0  ;;  %6898 = vmatpush.bf16.msrb.mxu1 %v15828_v55 }
 0x467   : > { %v20371_v12 = vpop.eup %20370  ;;  %v15765_v11 = vld [vmem:[%s28927_s11 + $0xb0] sm:$0xf0] }
 0x468   : > { %v6193_v39 = vpack.c.bf16 %v20371_v12, %v20371_v12  ;;  %v15764_v12 = vor.u32 %v19522_v5, %v15763_v45  ;;  %6922 = vmatpush.bf16.msrb.mxu0 %v15864_v35  ;;  %v15700_v45 = vor.u32 %v19506_v52, %v15699_v49  ;;  %v15704_v5 = vor.u32 %v19504_v0, %v15701_v9  ;;  %v15899_v35 = vld [vmem:[%s28927_s11 + $0x1a8] sm:$0xf]  ;;  %v19547_v0 = vld [vmem:[%s28927_s11 + $0x174] sm:$0xf0]  ;;  %v19545_v9 = vld [vmem:[%s28927_s11 + $0x16c] sm:$0xf] }
 0x469   : > { %v15900_v34 = vor.u32 %v19555_v27, %v15899_v35  ;;  %v15867_v52 = vld [vmem:[%s28927_s11 + $0x168] sm:$0xf]  ;;  %v15821_v35 = vld [vmem:[%s28927_s11 + $0x118] sm:$0xf0] }
 0x46a   : > { %6347 = vmatmul.bf16.vlgmr.msra.gmra.mxu1 %v6193_v39  ;;  %v15768_v39 = vor.u32 %v19520_v16, %v15765_v11  ;;  %6881 = vmatpush.bf16.msrb.mxu3 %v15764_v12  ;;  %v15932_v11 = vor.u32 %v19563_v3, %v15931_v63  ;;  %v15936_v12 = vor.u32 %v19561_v10, %v15933_v62  ;;  %v15757_v63 = vld [vmem:[%s28927_s11 + $0x98] sm:$0xf0]  ;;  %v15851_v10 = vld [vmem:[%s28927_s11 + $0x148] sm:$0xf]  ;;  %v19543_v62 = vld [vmem:[%s28927_s11 + $0x154] sm:$0xf0] }
 0x46b   : > { %6899 = vmatpush.bf16.msrb.mxu1 %v15812_v19  ;;  %v15707_v27 = vld [vmem:[%s28927_s11 + $0x28] sm:$0xf] }
 0x46c   : > { %6907 = vmatpush.bf16.msrb.mxu2 %v15768_v39  ;;  %6923 = vmatpush.bf16.msrb.mxu0 %v15848_v37  ;;  %v19551_v37 = vld [vmem:[%s28927_s11 + $0x194] sm:$0xf0] }
 0x46d   : > { %v15884_v7 = vor.u32 %v19551_v37, %v15883_v48  ;;  %v15693_v37 = vld [vmem:[%s28927_s11 + $0x18] sm:$0xf0] }
 0x46e   : > { %6882 = vmatpush.bf16.msrb.mxu3 %v15748_v53  ;;  %v15803_v53 = vld [vmem:[%s28927_s11 + $0xe8] sm:$0xf] }
 0x46f   : > { %6944 = vmatpush.bf16.msra.mxu1 %v15932_v11  ;;  %v15804_v33 = vor.u32 %v19531_v40, %v15803_v53  ;;  %v19515_v11 = vld [vmem:[%s28927_s11 + $0x74] sm:$0xf0]  ;;  %v15725_v53 = vld [vmem:[%s28927_s11 + $0x58] sm:$0xf0] }
 0x470   : > { %6908 = vmatpush.bf16.msrb.mxu2 %v15752_v15  ;;  %6924 = vmatpush.bf16.msrb.mxu0 %v15832_v58  ;;  %v15869_v58 = vld [vmem:[%s28927_s11 + $0x178] sm:$0xf0] }
 0x471   : > { %v15872_v60 = vor.u32 %v19545_v9, %v15869_v58  ;;  %v16931_v9 = vld [vmem:[#allocation7 + $0x7c0] sm:$0xf] }
 0x472   : > { %6883 = vmatpush.bf16.msrb.mxu3 %v15732_v43  ;;  %v15787_v43 = vld [vmem:[%s28927_s11 + $0xc8] sm:$0xf] }
 0x473   : > { %6945 = vmatpush.bf16.msra.mxu1 %v15916_v51 }
 0x474   : > { %6909 = vmatpush.bf16.msrb.mxu2 %v15736_v8  ;;  %6925 = vmatpush.bf16.msrb.mxu0 %v15816_v6  ;;  %v19527_v8 = vld [vmem:[%s28927_s11 + $0xd4] sm:$0xf0]  ;;  %v15739_v6 = vld [vmem:[%s28927_s11 + $0x68] sm:$0xf] }
 0x475   : > { %v15788_v2 = vor.u32 %v19527_v8, %v15787_v43  ;;  %v6369_v43 = vld [vmem:[#allocation5] sm:$0x3] }
 0x476   : > { %6884 = vmatpush.bf16.msrb.mxu3 %v15716_v21  ;;  %v19523_v21 = vld [vmem:[%s28927_s11 + $0xb4] sm:$0xf0]  ;;  %v6372_v48 = vperm.slane %v6369_v43, 1 }
 0x477   : > { %6946 = vmatpush.bf16.msra.mxu1 %v15900_v34 }
 0x478   : > { %6910 = vmatpush.bf16.msrb.mxu2 %v15720_v1  ;;  %v19521_v1 = vld [vmem:[%s28927_s11 + $0xac] sm:$0xf] }
 0x47a   : > { %6885 = vmatpush.bf16.msrb.mxu3 %v15700_v45  ;;  %v19541_v45 = vld [vmem:[%s28927_s11 + $0x14c] sm:$0xf] }
 0x47b   : > { %6947 = vmatpush.bf16.msra.mxu1 %v15884_v7 }
 0x47c   : > { %6911 = vmatpush.bf16.msrb.mxu2 %v15704_v5  ;;  %v15852_v5 = vor.u32 %v19543_v62, %v15851_v10  ;;  %v16899_v10 = vld [vmem:[#allocation7 + $0x780] sm:$0xf] }
 0x47d   : > { %v19808_v62 = vld [vmem:[#allocation7 + $0x79c] sm:$0xf0] }
 0x47e   : > { %6886 = vmatpush.bf16.msrb.mxu3 %v15684_v57  ;;  %v15840_v57 = vor.u32 %v19537_v25, %v15837_v26  ;;  %v16643_v25 = vld [vmem:[#allocation7 + $0x580] sm:$0xf] }
 0x47f   : > { %v19744_v26 = vld [vmem:[#allocation7 + $0x59c] sm:$0xf0] }
 0x482   : > { %6931 = vmatpush.bf16.msra.mxu3 %v15804_v33  ;;  %v19533_v33 = vld [vmem:[%s28927_s11 + $0x10c] sm:$0xf] }
 0x483   : > { %v15824_v34 = vor.u32 %v19533_v33, %v15821_v35  ;;  %v19608_v33 = vld [vmem:[#allocation7 + $0x15c] sm:$0xf0] }
 0x484   : > { %v19736_v35 = vld [vmem:[#allocation7 + $0x55c] sm:$0xf0] }
 0x486   : > { %6932 = vmatpush.bf16.msra.mxu3 %v15788_v2  ;;  %v15691_v2 = vld [vmem:[%s28927_s11 + $0x8] sm:$0xf] }
 0x487   : > { %v15692_v44 = vor.u32 %v19503_v42, %v15691_v2  ;;  %v16579_v2 = vld [vmem:[#allocation7 + $0x500] sm:$0xf] }
 0x488   : > { %v19728_v42 = vld [vmem:[#allocation7 + $0x51c] sm:$0xf0] }
 0x4dd   : > { %v6335_v31 = vpop.f32.mrf.mxu3 }
 0x4de   : > { %v6336_v61 = vadd.f32 %v20343_v22, %v6335_v31  ;;  %v15685_v31 = vld [vmem:[%s28927_s11 + $0x10] sm:$0xf0]  ;;  %v15904_v22 = vor.u32 %v19553_v50, %v15901_v41  ;;  %v19507_v50 = vld [vmem:[%s28927_s11 + $0x34] sm:$0xf0]  ;;  %v19505_v41 = vld [vmem:[%s28927_s11 + $0x2c] sm:$0xf] }
 0x4df   : > { %v15688_v15 = vor.u32 %v19500_v29, %v15685_v31  ;;  %v19511_v29 = vld [vmem:[%s28927_s11 + $0x54] sm:$0xf0]  ;;  %v19509_v31 = vld [vmem:[%s28927_s11 + $0x4c] sm:$0xf]  ;;  %v15708_v8 = vor.u32 %v19507_v50, %v15707_v27 }
 0x4e0   : > { %v15728_v40 = vor.u32 %v19509_v31, %v15725_v53  ;;  %v19664_v31 = vld [vmem:[#allocation7 + $0x31c] sm:$0xf0] }
 0x4e1   : > { %6912 = vmatpush.bf16.msrb.mxu2 %v15688_v15  ;;  %v16835_v53 = vld [vmem:[#allocation7 + $0x700] sm:$0xf] }
 0x4e5   : > { %v6337_v47 = vpop.f32.mrf.mxu3 }
 0x4e6   : > { %v15771_v47 = vld [vmem:[%s28927_s11 + $0xa8] sm:$0xf] }
 0x4e7   : > { %v6348_v20 = vpop.f32.mrf.mxu1  ;;  %v15772_v49 = vor.u32 %v19523_v21, %v15771_v47  ;;  %v6371_v47 = vperm.slane %v6369_v43, 0  ;;  %v16067_v43 = vld [vmem:[#allocation7 + $0x100] sm:$0xf] }
 0x4e8   : > { %v6349_v54 = vadd.f32 %v6348_v20, %v6336_v61  ;;  %v15773_v61 = vld [vmem:[%s28927_s11 + $0xb8] sm:$0xf0]  ;;  %v15868_v20 = vor.u32 %v19547_v0, %v15867_v52 }
 0x4e9   : > { %v15776_v55 = vor.u32 %v19521_v1, %v15773_v61  ;;  %6933 = vmatpush.bf16.msra.mxu3 %v15772_v49  ;;  %v16419_v1 = vld [vmem:[#allocation7 + $0x3c0] sm:$0xf] }
 0x4ea   : > { %v6352_v16 = vpack.c.bf16 %v6349_v54, %v6349_v54  ;;  %v19517_v54 = vld [vmem:[%s28927_s11 + $0x8c] sm:$0xf]  ;;  %6948 = vmatpush.bf16.msra.mxu1 %v15868_v20  ;;  %v19688_v49 = vld [vmem:[#allocation7 + $0x3dc] sm:$0xf0] }
 0x4eb   : > { %v15760_v3 = vor.u32 %v19517_v54, %v15757_v63  ;;  %v16420_v0 = vor.u32 %v19688_v49, %v16419_v1  ;;  %v19816_v20 = vld [vmem:[#allocation7 + $0x7dc] sm:$0xf0] }
 0x4ec   : > { %6463 = vmatmul.bf16.vlgmr.msra.gmra.mxu2 %v6352_v16  ;;  %6476 = vmatmul.bf16.vlgmr.msra.gmra.mxu0 %v6352_v16  ;;  %v15853_v16 = vld [vmem:[%s28927_s11 + $0x158] sm:$0xf0]  ;;  %v16932_v46 = vor.u32 %v19816_v20, %v16931_v9  ;;  %v16163_v54 = vld [vmem:[#allocation7 + $0x1c0] sm:$0xf] }
 0x4ed   : > { %6970 = vmatpush.bf16.msra.mxu0 %v15936_v12  ;;  %6957 = vmatpush.bf16.msra.mxu2 %v15808_v30  ;;  %v15856_v19 = vor.u32 %v19541_v45, %v15853_v16  ;;  %v19513_v12 = vld [vmem:[%s28927_s11 + $0x6c] sm:$0xf]  ;;  %v15820_v30 = vor.u32 %v19535_v32, %v15819_v23  ;;  %v16675_v63 = vld [vmem:[#allocation7 + $0x5c0] sm:$0xf]  ;;  %v16644_v32 = vor.u32 %v19744_v26, %v16643_v25  ;;  %v16389_v25 = vld [vmem:[#allocation7 + $0x3a0] sm:$0xf0] }
 0x4ee   : > { %6934 = vmatpush.bf16.msra.mxu3 %v15756_v59  ;;  %6949 = vmatpush.bf16.msra.mxu1 %v15852_v5  ;;  %v15744_v51 = vor.u32 %v19513_v12, %v15741_v14  ;;  %v19624_v59 = vld [vmem:[#allocation7 + $0x1dc] sm:$0xf0]  ;;  %v16900_v5 = vor.u32 %v19808_v62, %v16899_v10  ;;  %v19620_v62 = vld [vmem:[#allocation7 + $0x1c4] sm:$0xf] }
 0x4ef   : > { %v6350_v39 = vpop.f32.mrf.mxu1  ;;  %v16131_v14 = vld [vmem:[#allocation7 + $0x180] sm:$0xf] }
 0x4f0   : > { %v15740_v39 = vor.u32 %v19515_v11, %v15739_v6  ;;  %v19672_v6 = vld [vmem:[#allocation7 + $0x35c] sm:$0xf0] }
 0x4f1   : > { %6971 = vmatpush.bf16.msra.mxu0 %v15920_v13  ;;  %6958 = vmatpush.bf16.msra.mxu2 %v15792_v4  ;;  %v15723_v13 = vld [vmem:[%s28927_s11 + $0x48] sm:$0xf]  ;;  %v19501_v4 = vld [vmem:[%s28927_s11 + $0xc] sm:$0xf]  ;;  %v16867_v11 = vld [vmem:[#allocation7 + $0x740] sm:$0xf] }
 0x4f2   : > { %6935 = vmatpush.bf16.msra.mxu3 %v15740_v39  ;;  %v15724_v15 = vor.u32 %v19511_v29, %v15723_v13  ;;  %6950 = vmatpush.bf16.msra.mxu1 %v15836_v24  ;;  %v15696_v7 = vor.u32 %v19501_v4, %v15693_v37  ;;  %v16164_v39 = vor.u32 %v19624_v59, %v16163_v54  ;;  %v19616_v24 = vld [vmem:[#allocation7 + $0x19c] sm:$0xf0] }
 0x4f3   : > { %v16868_v29 = vor.u32 %v19800_v38, %v16867_v11  ;;  %v16099_v23 = vld [vmem:[#allocation7 + $0x140] sm:$0xf] }
 0x4f4   : > { %v19648_v37 = vld [vmem:[#allocation7 + $0x29c] sm:$0xf0] }
 0x4f5   : > { %6972 = vmatpush.bf16.msra.mxu0 %v15904_v22  ;;  %6959 = vmatpush.bf16.msra.mxu2 %v15776_v55  ;;  %v15709_v22 = vld [vmem:[%s28927_s11 + $0x38] sm:$0xf0]  ;;  %v19640_v1 = vld [vmem:[#allocation7 + $0x25c] sm:$0xf0] }
 0x4f6   : > { %6936 = vmatpush.bf16.msra.mxu3 %v15724_v15  ;;  %v15712_v36 = vor.u32 %v19505_v41, %v15709_v22  ;;  %6951 = vmatpush.bf16.msra.mxu1 %v15820_v30  ;;  %v19792_v15 = vld [vmem:[#allocation7 + $0x71c] sm:$0xf0]  ;;  %v16100_v22 = vor.u32 %v19608_v33, %v16099_v23  ;;  %v16101_v23 = vld [vmem:[#allocation7 + $0x160] sm:$0xf0] }
 0x4f7   : > { %v16611_v30 = vld [vmem:[#allocation7 + $0x540] sm:$0xf]  ;;  %v16836_v50 = vor.u32 %v19792_v15, %v16835_v53 }
 0x4f8   : > { %v19656_v41 = vld [vmem:[#allocation7 + $0x2dc] sm:$0xf0] }
 0x4f9   : > { %6973 = vmatpush.bf16.msra.mxu0 %v15888_v18  ;;  %6960 = vmatpush.bf16.msra.mxu2 %v15760_v3  ;;  %v19752_v3 = vld [vmem:[#allocation7 + $0x5dc] sm:$0xf0] }
 0x4fa   : > { %6937 = vmatpush.bf16.msra.mxu3 %v15708_v8  ;;  %v16676_v17 = vor.u32 %v19752_v3, %v16675_v63  ;;  %v16612_v8 = vor.u32 %v19736_v35, %v16611_v30  ;;  %v19632_v9 = vld [vmem:[#allocation7 + $0x21c] sm:$0xf0]  ;;  %v16357_v30 = vld [vmem:[#allocation7 + $0x360] sm:$0xf0] }
 0x4fb   : > { %v15939_v3 = vld [vmem:[#allocation7] sm:$0xf] }
 0x4fc   : > { %v19568_v10 = vld [vmem:[#allocation7 + $0x1c] sm:$0xf0] }
 0x4fd   : > { %6974 = vmatpush.bf16.msra.mxu0 %v15872_v60  ;;  %6961 = vmatpush.bf16.msra.mxu2 %v15744_v51  ;;  %v16387_v60 = vld [vmem:[#allocation7 + $0x380] sm:$0xf] }
 0x4fe   : > { %6938 = vmatpush.bf16.msra.mxu3 %v15692_v44  ;;  %v16388_v45 = vor.u32 %v19680_v56, %v16387_v60  ;;  %v16421_v60 = vld [vmem:[#allocation7 + $0x3e0] sm:$0xf0]  ;;  %v15971_v56 = vld [vmem:[#allocation7 + $0x40] sm:$0xf] }
 0x4ff   : > { %v16803_v11 = vld [vmem:[#allocation7 + $0x6c0] sm:$0xf] }
 0x500   : > { %v16515_v26 = vld [vmem:[#allocation7 + $0x480] sm:$0xf] }
 0x501   : > { %6975 = vmatpush.bf16.msra.mxu0 %v15856_v19  ;;  %6962 = vmatpush.bf16.msra.mxu2 %v15728_v40  ;;  %v16355_v19 = vld [vmem:[#allocation7 + $0x340] sm:$0xf]  ;;  %v16132_v40 = vor.u32 %v19616_v24, %v16131_v14  ;;  %v19612_v14 = vld [vmem:[#allocation7 + $0x184] sm:$0xf] }
 0x502   : > { %v16356_v13 = vor.u32 %v19672_v6, %v16355_v19  ;;  %v16547_v19 = vld [vmem:[#allocation7 + $0x4c0] sm:$0xf]  ;;  %v19676_v24 = vld [vmem:[#allocation7 + $0x384] sm:$0xf] }
 0x503   : > { %v19720_v6 = vld [vmem:[#allocation7 + $0x4dc] sm:$0xf0] }
 0x505   : > { %6976 = vmatpush.bf16.msra.mxu0 %v15840_v57  ;;  %6963 = vmatpush.bf16.msra.mxu2 %v15712_v36  ;;  %v16323_v57 = vld [vmem:[#allocation7 + $0x300] sm:$0xf] }
 0x506   : > { %v16324_v27 = vor.u32 %v19664_v31, %v16323_v57  ;;  %v19600_v36 = vld [vmem:[#allocation7 + $0x11c] sm:$0xf0] }
 0x507   : > { %v16068_v44 = vor.u32 %v19600_v36, %v16067_v43  ;;  %v19712_v57 = vld [vmem:[#allocation7 + $0x49c] sm:$0xf0]  ;;  %v19596_v43 = vld [vmem:[#allocation7 + $0x104] sm:$0xf] }
 0x508   : > { %v19776_v31 = vld [vmem:[#allocation7 + $0x69c] sm:$0xf0]  ;;  %v16516_v53 = vor.u32 %v19712_v57, %v16515_v26  ;;  %v19796_v26 = vld [vmem:[#allocation7 + $0x744] sm:$0xf] }
 0x509   : > { %6977 = vmatpush.bf16.msra.mxu0 %v15824_v34  ;;  %6964 = vmatpush.bf16.msra.mxu2 %v15696_v7  ;;  %v16291_v34 = vld [vmem:[#allocation7 + $0x2c0] sm:$0xf]  ;;  %v16580_v7 = vor.u32 %v19728_v42, %v16579_v2  ;;  %v19660_v42 = vld [vmem:[#allocation7 + $0x304] sm:$0xf] }
 0x50a   : > { %v16292_v4 = vor.u32 %v19656_v41, %v16291_v34  ;;  %v16739_v34 = vld [vmem:[#allocation7 + $0x640] sm:$0xf] }
 0x569   : > { %v6477_v28 = vpop.f32.mrf.mxu0 }
 0x56a   : > { %v6478_v18 = vadd.f32 %v6477_v28, %v6372_v48  ;;  %v16259_v48 = vld [vmem:[#allocation7 + $0x280] sm:$0xf] }
 0x56b   : > { %v16035_v28 = vld [vmem:[#allocation7 + $0xc0] sm:$0xf] }
 0x56c   : > { %20372 = vtanh.f32 %v6478_v18  ;;  %v19592_v18 = vld [vmem:[#allocation7 + $0xdc] sm:$0xf0] }
 0x56d   : > { %v16036_v49 = vor.u32 %v19592_v18, %v16035_v28  ;;  %v19760_v18 = vld [vmem:[#allocation7 + $0x61c] sm:$0xf0] }
 0x56f   : > { %v6464_v21 = vpop.f32.mrf.mxu2 }
 0x570   : > { %v6465_v61 = vadd.f32 %v6464_v21, %v6371_v47  ;;  %v16260_v47 = vor.u32 %v19648_v37, %v16259_v48  ;;  %v16227_v21 = vld [vmem:[#allocation7 + $0x240] sm:$0xf] }
 0x571   : > { %v6479_v55 = vpop.f32.mrf.mxu0  ;;  %v16451_v37 = vld [vmem:[#allocation7 + $0x400] sm:$0xf] }
 0x572   : > { %v20373_v52 = vpop.eup %20372  ;;  %20374 = vtanh.f32 %v6465_v61  ;;  %v16003_v61 = vld [vmem:[#allocation7 + $0x80] sm:$0xf] }
 0x573   : > { %v25891_v58 = vpack.c.bf16 %v20373_v52, %v20373_v52  ;;  %v19584_v55 = vld [vmem:[#allocation7 + $0x9c] sm:$0xf0]  ;;  %v16228_v52 = vor.u32 %v19640_v1, %v16227_v21  ;;  %v16037_v21 = vld [vmem:[#allocation7 + $0xe0] sm:$0xf0] }
 0x574   : > { %v16004_v20 = vor.u32 %v19584_v55, %v16003_v61  ;;  %v19652_v61 = vld [vmem:[#allocation7 + $0x2c4] sm:$0xf] }
 0x575   : > { %6900 = vmatmul.bf16.vlgmr.msrb.gmra.mxu1 %v25891_v58  ;;  %6926 = vmatmul.bf16.vlgmr.msrb.gmra.mxu0 %v25891_v58  ;;  %v16293_v55 = vld [vmem:[#allocation7 + $0x2e0] sm:$0xf0] }
 0x576   : > { %8558 = vmatpush.bf16.msrb.mxu1 %v16420_v0  ;;  %8584 = vmatpush.bf16.msrb.mxu0 %v16932_v46  ;;  %v16195_v0 = vld [vmem:[#allocation7 + $0x200] sm:$0xf] }
 0x577   : > { %v6466_v16 = vpop.f32.mrf.mxu2  ;;  %v19576_v46 = vld [vmem:[#allocation7 + $0x5c] sm:$0xf0]  ;;  %v16196_v54 = vor.u32 %v19632_v9, %v16195_v0  ;;  %v19748_v0 = vld [vmem:[#allocation7 + $0x5c4] sm:$0xf] }
 0x578   : > { %v20375_v12 = vpop.eup %20374  ;;  %v15972_v63 = vor.u32 %v19576_v46, %v15971_v56  ;;  %v16677_v9 = vld [vmem:[#allocation7 + $0x5e0] sm:$0xf0] }
 0x579   : > { %v6483_v51 = vpack.c.bf16 %v20375_v12, %v20375_v12  ;;  %v16548_v12 = vor.u32 %v19720_v6, %v16547_v19  ;;  %v19580_v46 = vld [vmem:[#allocation7 + $0x84] sm:$0xf] }
 0x57a   : > { %8559 = vmatpush.bf16.msrb.mxu1 %v16388_v45  ;;  %8585 = vmatpush.bf16.msrb.mxu0 %v16900_v5  ;;  %v16165_v45 = vld [vmem:[#allocation7 + $0x1e0] sm:$0xf0]  ;;  %v15940_v5 = vor.u32 %v19568_v10, %v15939_v3 }
 0x57b   : > { %6887 = vmatmul.bf16.vlgmr.msrb.gmra.mxu3 %v6483_v51  ;;  %6913 = vmatmul.bf16.vlgmr.msrb.gmra.mxu2 %v6483_v51  ;;  %v16168_v16 = vor.u32 %v19620_v62, %v16165_v45  ;;  %v16261_v3 = vld [vmem:[#allocation7 + $0x2a0] sm:$0xf0] }
 0x57c   : > { %8545 = vmatpush.bf16.msrb.mxu3 %v16164_v39  ;;  %8571 = vmatpush.bf16.msrb.mxu2 %v16676_v17  ;;  %v19784_v39 = vld [vmem:[#allocation7 + $0x6dc] sm:$0xf0]  ;;  %v16133_v17 = vld [vmem:[#allocation7 + $0x1a0] sm:$0xf0] }
 0x57d   : > { %v16804_v38 = vor.u32 %v19784_v39, %v16803_v11  ;;  %v19740_v10 = vld [vmem:[#allocation7 + $0x584] sm:$0xf] }
 0x57e   : > { %8560 = vmatpush.bf16.msrb.mxu1 %v16356_v13  ;;  %8586 = vmatpush.bf16.msrb.mxu0 %v16868_v29  ;;  %v16392_v13 = vor.u32 %v19676_v24, %v16389_v25  ;;  %v16771_v29 = vld [vmem:[#allocation7 + $0x680] sm:$0xf]  ;;  %v16645_v62 = vld [vmem:[#allocation7 + $0x5a0] sm:$0xf0] }
 0x57f   : > { %v16772_v15 = vor.u32 %v19776_v31, %v16771_v29  ;;  %v16901_v19 = vld [vmem:[#allocation7 + $0x7a0] sm:$0xf0] }
 0x580   : > { %8546 = vmatpush.bf16.msrb.mxu3 %v16132_v40  ;;  %8572 = vmatpush.bf16.msrb.mxu2 %v16644_v32  ;;  %v19604_v40 = vld [vmem:[#allocation7 + $0x144] sm:$0xf] }
 0x581   : > { %v19668_v32 = vld [vmem:[#allocation7 + $0x344] sm:$0xf]  ;;  %v16104_v33 = vor.u32 %v19604_v40, %v16101_v23 }
 0x582   : > { %8561 = vmatpush.bf16.msrb.mxu1 %v16324_v27  ;;  %8587 = vmatpush.bf16.msrb.mxu0 %v16836_v50  ;;  %v16360_v35 = vor.u32 %v19668_v32, %v16357_v30  ;;  %v16483_v27 = vld [vmem:[#allocation7 + $0x440] sm:$0xf]  ;;  %v19572_v11 = vld [vmem:[#allocation7 + $0x44] sm:$0xf] }
 0x583   : > { %v19704_v50 = vld [vmem:[#allocation7 + $0x45c] sm:$0xf0]  ;;  %v19636_v39 = vld [vmem:[#allocation7 + $0x244] sm:$0xf] }
 0x584   : > { %8547 = vmatpush.bf16.msrb.mxu3 %v16100_v22  ;;  %8573 = vmatpush.bf16.msrb.mxu2 %v16612_v8  ;;  %v16484_v41 = vor.u32 %v19704_v50, %v16483_v27  ;;  %v19768_v22 = vld [vmem:[#allocation7 + $0x65c] sm:$0xf0]  ;;  %v16069_v8 = vld [vmem:[#allocation7 + $0x120] sm:$0xf0] }
 0x585   : > { %6952 = vmatmul.bf16.vlgmr.msra.gmra.mxu1 %v25891_v58  ;;  %6978 = vmatmul.bf16.vlgmr.msra.gmra.mxu0 %v25891_v58  ;;  %v19684_v58 = vld [vmem:[#allocation7 + $0x3c4] sm:$0xf]  ;;  %v16740_v36 = vor.u32 %v19768_v22, %v16739_v34  ;;  %v16072_v2 = vor.u32 %v19596_v43, %v16069_v8 }
 0x586   : > { %8562 = vmatpush.bf16.msrb.mxu1 %v16292_v4  ;;  %v16424_v59 = vor.u32 %v19684_v58, %v16421_v60  ;;  %8588 = vmatpush.bf16.msrb.mxu0 %v16804_v38  ;;  %v16325_v4 = vld [vmem:[#allocation7 + $0x320] sm:$0xf0]  ;;  %v16680_v58 = vor.u32 %v19748_v0, %v16677_v9 }
 0x587   : > { %v16328_v48 = vor.u32 %v19660_v42, %v16325_v4  ;;  %v16933_v60 = vld [vmem:[#allocation7 + $0x7e0] sm:$0xf0] }
 0x588   : > { %8548 = vmatpush.bf16.msrb.mxu3 %v16068_v44  ;;  %8574 = vmatpush.bf16.msrb.mxu2 %v16580_v7  ;;  %v19696_v44 = vld [vmem:[#allocation7 + $0x41c] sm:$0xf0]  ;;  %v19732_v38 = vld [vmem:[#allocation7 + $0x544] sm:$0xf] }
 0x589   : > { %v16707_v7 = vld [vmem:[#allocation7 + $0x600] sm:$0xf]  ;;  %v16452_v28 = vor.u32 %v19696_v44, %v16451_v37  ;;  %v19564_v29 = vld [vmem:[#allocation7 + $0x4] sm:$0xf] }
 0x58a   : > { %8563 = vmatpush.bf16.msrb.mxu1 %v16260_v47  ;;  %8589 = vmatpush.bf16.msrb.mxu0 %v16772_v15  ;;  %v19588_v47 = vld [vmem:[#allocation7 + $0xc4] sm:$0xf]  ;;  %v16708_v1 = vor.u32 %v19760_v18, %v16707_v7 }
 0x58b   : > { %6939 = vmatmul.bf16.vlgmr.msra.gmra.mxu3 %v6483_v51  ;;  %6965 = vmatmul.bf16.vlgmr.msra.gmra.mxu2 %v6483_v51  ;;  %v16136_v51 = vor.u32 %v19612_v14, %v16133_v17  ;;  %v16229_v17 = vld [vmem:[#allocation7 + $0x260] sm:$0xf0] }
 0x58c   : > { %8549 = vmatpush.bf16.msrb.mxu3 %v16036_v49  ;;  %8575 = vmatpush.bf16.msrb.mxu2 %v16548_v12  ;;  %v16040_v49 = vor.u32 %v19588_v47, %v16037_v21  ;;  %v15973_v12 = vld [vmem:[#allocation7 + $0x60] sm:$0xf0]  ;;  %v16232_v24 = vor.u32 %v19636_v39, %v16229_v17  ;;  %v19625_v39 = vld [vmem:[#allocation7 + $0x1e4] sm:$0xf0] }
 0x58d   : > { %v15976_v14 = vor.u32 %v19572_v11, %v15973_v12  ;;  %v15941_v31 = vld [vmem:[#allocation7 + $0x20] sm:$0xf0]  ;;  %v16171_v12 = vld [vmem:[#allocation7 + $0x1c8] sm:$0xf] }
 0x58e   : > { %8564 = vmatpush.bf16.msrb.mxu1 %v16228_v52  ;;  %8590 = vmatpush.bf16.msrb.mxu0 %v16740_v36  ;;  %v16296_v52 = vor.u32 %v19652_v61, %v16293_v55  ;;  %v15944_v15 = vor.u32 %v19564_v29, %v15941_v31  ;;  %v16197_v40 = vld [vmem:[#allocation7 + $0x220] sm:$0xf0]  ;;  %v6549_v61 = vld [vmem:[%s28928_s12] sm:$0xf]  ;;  %v19689_v17 = vld [vmem:[#allocation7 + $0x3e4] sm:$0xf0] }
 0x58f   : > { %v19724_v23 = vld [vmem:[#allocation7 + $0x504] sm:$0xf]  ;;  %v16139_v29 = vld [vmem:[#allocation7 + $0x188] sm:$0xf] }
 0x590   : > { %8550 = vmatpush.bf16.msrb.mxu3 %v16004_v20  ;;  %8576 = vmatpush.bf16.msrb.mxu2 %v16516_v53  ;;  %v19812_v20 = vld [vmem:[#allocation7 + $0x7c4] sm:$0xf]  ;;  %v19617_v31 = vld [vmem:[#allocation7 + $0x1a4] sm:$0xf0] }
 0x591   : > { %v16936_v56 = vor.u32 %v19812_v20, %v16933_v60  ;;  %v19628_v53 = vld [vmem:[#allocation7 + $0x204] sm:$0xf]  ;;  %v6551_v60 = vperm.slane %v6549_v61, 0 }
 0x592   : > { %8565 = vmatpush.bf16.msrb.mxu1 %v16196_v54  ;;  %8591 = vmatpush.bf16.msrb.mxu0 %v16708_v1  ;;  %v16005_v54 = vld [vmem:[#allocation7 + $0xa0] sm:$0xf0] }
 0x593   : > { %v16581_v32 = vld [vmem:[#allocation7 + $0x520] sm:$0xf0] }
 0x594   : > { %8551 = vmatpush.bf16.msrb.mxu3 %v15972_v63  ;;  %8577 = vmatpush.bf16.msrb.mxu2 %v16484_v41  ;;  %v16008_v63 = vor.u32 %v19580_v46, %v16005_v54  ;;  %v16584_v30 = vor.u32 %v19724_v23, %v16581_v32  ;;  %v16837_v27 = vld [vmem:[#allocation7 + $0x720] sm:$0xf0]  ;;  %v16395_v23 = vld [vmem:[#allocation7 + $0x388] sm:$0xf] }
 0x595   : > { %v19716_v34 = vld [vmem:[#allocation7 + $0x4c4] sm:$0xf]  ;;  %v19681_v32 = vld [vmem:[#allocation7 + $0x3a4] sm:$0xf0] }
 0x596   : > { %8610 = vmatpush.bf16.msra.mxu1 %v16424_v59  ;;  %v19644_v59 = vld [vmem:[#allocation7 + $0x284] sm:$0xf]  ;;  %8636 = vmatpush.bf16.msra.mxu0 %v16936_v56  ;;  %v6552_v56 = vperm.slane %v6549_v61, 1 }
 0x597   : > { %v16264_v45 = vor.u32 %v19644_v59, %v16261_v3  ;;  %v16549_v41 = vld [vmem:[#allocation7 + $0x4e0] sm:$0xf0] }
 0x598   : > { %8552 = vmatpush.bf16.msrb.mxu3 %v15940_v5  ;;  %8578 = vmatpush.bf16.msrb.mxu2 %v16452_v28  ;;  %v16648_v5 = vor.u32 %v19740_v10, %v16645_v62  ;;  %v16552_v22 = vor.u32 %v19716_v34, %v16549_v41  ;;  %v19780_v43 = vld [vmem:[#allocation7 + $0x6c4] sm:$0xf]  ;;  %v19609_v34 = vld [vmem:[#allocation7 + $0x164] sm:$0xf0] }
 0x599   : > { %v16805_v8 = vld [vmem:[#allocation7 + $0x6e0] sm:$0xf0] }
 0x59a   : > { %8611 = vmatpush.bf16.msra.mxu1 %v16392_v13  ;;  %v16869_v13 = vld [vmem:[#allocation7 + $0x760] sm:$0xf0]  ;;  %v16808_v36 = vor.u32 %v19780_v43, %v16805_v8  ;;  %v16363_v43 = vld [vmem:[#allocation7 + $0x348] sm:$0xf] }
 0x59b   : > { %v16872_v57 = vor.u32 %v19796_v26, %v16869_v13  ;;  %v19708_v4 = vld [vmem:[#allocation7 + $0x484] sm:$0xf]  ;;  %v19673_v8 = vld [vmem:[#allocation7 + $0x364] sm:$0xf0] }
 0x59c   : > { %8597 = vmatpush.bf16.msra.mxu3 %v16168_v16  ;;  %8623 = vmatpush.bf16.msra.mxu2 %v16680_v58  ;;  %v19804_v16 = vld [vmem:[#allocation7 + $0x784] sm:$0xf] }
 0x59d   : > { %v16904_v6 = vor.u32 %v19804_v16, %v16901_v19  ;;  %v19772_v37 = vld [vmem:[#allocation7 + $0x684] sm:$0xf] }
 0x59e   : > { %8612 = vmatpush.bf16.msra.mxu1 %v16360_v35  ;;  %v19788_v35 = vld [vmem:[#allocation7 + $0x704] sm:$0xf] }
 0x59f   : > { %8637 = vmatpush.bf16.msra.mxu0 %v16904_v6  ;;  %v16840_v50 = vor.u32 %v19788_v35, %v16837_v27  ;;  %v16773_v7 = vld [vmem:[#allocation7 + $0x6a0] sm:$0xf0]  ;;  %v16396_v27 = vor.u32 %v19681_v32, %v16395_v23  ;;  %v15947_v23 = vld [vmem:[#allocation7 + $0x8] sm:$0xf] }
 0x5a0   : > { %8598 = vmatpush.bf16.msra.mxu3 %v16136_v51  ;;  %8624 = vmatpush.bf16.msra.mxu2 %v16648_v5  ;;  %v16613_v51 = vld [vmem:[#allocation7 + $0x560] sm:$0xf0]  ;;  %v16776_v28 = vor.u32 %v19772_v37, %v16773_v7  ;;  %v19601_v37 = vld [vmem:[#allocation7 + $0x124] sm:$0xf0] }
 0x5a1   : > { %v16616_v25 = vor.u32 %v19732_v38, %v16613_v51  ;;  %v19700_v18 = vld [vmem:[#allocation7 + $0x444] sm:$0xf]  ;;  %v16172_v51 = vor.u32 %v19625_v39, %v16171_v12  ;;  %v19665_v7 = vld [vmem:[#allocation7 + $0x324] sm:$0xf0] }
 0x5a2   : > { %8613 = vmatpush.bf16.msra.mxu1 %v16328_v48  ;;  %v16517_v48 = vld [vmem:[#allocation7 + $0x4a0] sm:$0xf0]  ;;  %v19569_v32 = vld [vmem:[#allocation7 + $0x24] sm:$0xf0] }
 0x5a3   : > { %8638 = vmatpush.bf16.msra.mxu0 %v16872_v57  ;;  %v16520_v44 = vor.u32 %v19708_v4, %v16517_v48  ;;  %v16485_v47 = vld [vmem:[#allocation7 + $0x460] sm:$0xf0]  ;;  %v16364_v4 = vor.u32 %v19673_v8, %v16363_v43  ;;  %v16075_v48 = vld [vmem:[#allocation7 + $0x108] sm:$0xf]  ;;  %v19621_v43 = vld [vmem:[#allocation7 + $0x1cc] sm:$0xf] }
 0x5a4   : > { %8599 = vmatpush.bf16.msra.mxu3 %v16104_v33  ;;  %8625 = vmatpush.bf16.msra.mxu2 %v16616_v25  ;;  %v16200_v33 = vor.u32 %v19628_v53, %v16197_v40  ;;  %v19764_v21 = vld [vmem:[#allocation7 + $0x644] sm:$0xf]  ;;  %v16488_v1 = vor.u32 %v19700_v18, %v16485_v47  ;;  %v6554_v40 = vperm.slane %v6549_v61, 3  ;;  %v16173_v8 = vld [vmem:[#allocation7 + $0x1e8] sm:$0xf0] }
 0x5a5   : > { %v19692_v9 = vld [vmem:[#allocation7 + $0x404] sm:$0xf] }
 0x5a6   : > { %8614 = vmatpush.bf16.msra.mxu1 %v16296_v52  ;;  %v16453_v20 = vld [vmem:[#allocation7 + $0x420] sm:$0xf0] }
 0x5a7   : > { %8639 = vmatpush.bf16.msra.mxu0 %v16840_v50  ;;  %v19756_v58 = vld [vmem:[#allocation7 + $0x604] sm:$0xf]  ;;  %v16456_v46 = vor.u32 %v19692_v9, %v16453_v20  ;;  %v16107_v50 = vld [vmem:[#allocation7 + $0x148] sm:$0xf] }
 0x5a8   : > { %8600 = vmatpush.bf16.msra.mxu3 %v16072_v2  ;;  %8626 = vmatpush.bf16.msra.mxu2 %v16584_v30  ;;  %v16709_v54 = vld [vmem:[#allocation7 + $0x620] sm:$0xf0]  ;;  %v16939_v9 = vld [vmem:[#allocation7 + $0x7c8] sm:$0xf] }
 0x5a9   : > { %v16712_v59 = vor.u32 %v19756_v58, %v16709_v54  ;;  %v19817_v20 = vld [vmem:[#allocation7 + $0x7e4] sm:$0xf0] }
 0x5aa   : > { %8615 = vmatpush.bf16.msra.mxu1 %v16264_v45 }
 0x5ab   : > { %8640 = vmatpush.bf16.msra.mxu0 %v16808_v36 }
 0x5ac   : > { %8601 = vmatpush.bf16.msra.mxu3 %v16040_v49  ;;  %8627 = vmatpush.bf16.msra.mxu2 %v16552_v22  ;;  %v16741_v49 = vld [vmem:[#allocation7 + $0x660] sm:$0xf0] }
 0x5ad   : > { %v16744_v55 = vor.u32 %v19764_v21, %v16741_v49  ;;  %v19593_v49 = vld [vmem:[#allocation7 + $0xe4] sm:$0xf0] }
 0x5ae   : > { %8616 = vmatpush.bf16.msra.mxu1 %v16232_v24 }
 0x5af   : > { %8641 = vmatpush.bf16.msra.mxu0 %v16776_v28  ;;  %v16076_v28 = vor.u32 %v19601_v37, %v16075_v48 }
 0x5b0   : > { %8602 = vmatpush.bf16.msra.mxu3 %v16008_v63  ;;  %8628 = vmatpush.bf16.msra.mxu2 %v16520_v44  ;;  %v16331_v44 = vld [vmem:[#allocation7 + $0x308] sm:$0xf] }
 0x5b1   : > { %v16332_v21 = vor.u32 %v19665_v7, %v16331_v44  ;;  %v16555_v44 = vld [vmem:[#allocation7 + $0x4c8] sm:$0xf] }
 0x5b2   : > { %8617 = vmatpush.bf16.msra.mxu1 %v16200_v33  ;;  %v16140_v33 = vor.u32 %v19617_v31, %v16139_v29  ;;  %v16875_v29 = vld [vmem:[#allocation7 + $0x748] sm:$0xf] }
 0x5b3   : > { %8642 = vmatpush.bf16.msra.mxu0 %v16744_v55  ;;  %v19657_v55 = vld [vmem:[#allocation7 + $0x2e4] sm:$0xf0] }
 0x5b4   : > { %8603 = vmatpush.bf16.msra.mxu3 %v15976_v14  ;;  %8629 = vmatpush.bf16.msra.mxu2 %v16488_v1  ;;  %v16427_v14 = vld [vmem:[#allocation7 + $0x3c8] sm:$0xf] }
 0x5b5   : > { %v16428_v57 = vor.u32 %v19689_v17, %v16427_v14  ;;  %v16043_v1 = vld [vmem:[#allocation7 + $0xc8] sm:$0xf] }
 0x5b6   : > { %v15979_v14 = vld [vmem:[#allocation7 + $0x48] sm:$0xf] }
 0x5b7   : > { %8643 = vmatpush.bf16.msra.mxu0 %v16712_v59  ;;  %v16011_v59 = vld [vmem:[#allocation7 + $0x88] sm:$0xf] }
 0x5b8   : > { %8604 = vmatpush.bf16.msra.mxu3 %v15944_v15  ;;  %8630 = vmatpush.bf16.msra.mxu2 %v16456_v46  ;;  %v6553_v15 = vperm.slane %v6549_v61, 2  ;;  %v16299_v61 = vld [vmem:[#allocation7 + $0x2c8] sm:$0xf]  ;;  %v16044_v46 = vor.u32 %v19593_v49, %v16043_v1  ;;  %v19613_v1 = vld [vmem:[#allocation7 + $0x18c] sm:$0xf] }
 0x5b9   : > { %v16300_v54 = vor.u32 %v19657_v55, %v16299_v61  ;;  %v19577_v17 = vld [vmem:[#allocation7 + $0x64] sm:$0xf0]  ;;  %v16141_v49 = vld [vmem:[#allocation7 + $0x1a8] sm:$0xf0] }
 0x5ba   : > { %v19801_v31 = vld [vmem:[#allocation7 + $0x764] sm:$0xf0]  ;;  %v19677_v61 = vld [vmem:[#allocation7 + $0x38c] sm:$0xf] }
 0x5bb   : > { %v19721_v7 = vld [vmem:[#allocation7 + $0x4e4] sm:$0xf0]  ;;  %v16397_v55 = vld [vmem:[#allocation7 + $0x3a8] sm:$0xf0] }
 0x5f2   : > { %v6901_v2 = vpop.f32.mrf.mxu1  ;;  %v6927_v42 = vpop.f32.mrf.mxu0 }
 0x5fa   : > { %v6903_v52 = vpop.f32.mrf.mxu1  ;;  %v6929_v0 = vpop.f32.mrf.mxu0 }
 0x5fb   : > { %v16683_v52 = vld [vmem:[#allocation7 + $0x5c8] sm:$0xf] }
 0x5fc   : > { %v19753_v0 = vld [vmem:[#allocation7 + $0x5e4] sm:$0xf0] }
 0x5fe   : > { %v6888_v63 = vpop.f32.mrf.mxu3  ;;  %v6914_v3 = vpop.f32.mrf.mxu2 }
 0x5ff   : > { %v6889_v10 = vadd.f32 %v6888_v63, %v6551_v60  ;;  %v6915_v62 = vadd.f32 %v6914_v3, %v6552_v56  ;;  %v19585_v63 = vld [vmem:[#allocation7 + $0xa4] sm:$0xf0] }
 0x600   : > { %v16012_v12 = vor.u32 %v19585_v63, %v16011_v59  ;;  %v19605_v59 = vld [vmem:[#allocation7 + $0x14c] sm:$0xf] }
 0x601   : > { %v6902_v45 = vadd.f32 %v6901_v2, %v6889_v10  ;;  %v6928_v5 = vadd.f32 %v6927_v42, %v6915_v62  ;;  %v16108_v42 = vor.u32 %v19609_v34, %v16107_v50  ;;  %v16684_v10 = vor.u32 %v19753_v0, %v16683_v52  ;;  %v16587_v50 = vld [vmem:[#allocation7 + $0x508] sm:$0xf]  ;;  %v16109_v63 = vld [vmem:[#allocation7 + $0x168] sm:$0xf0] }
 0x602   : > { %v6953_v16 = vpop.f32.mrf.mxu1  ;;  %v6979_v19 = vpop.f32.mrf.mxu0  ;;  %v16940_v62 = vor.u32 %v19817_v20, %v16939_v9  ;;  %v19729_v34 = vld [vmem:[#allocation7 + $0x524] sm:$0xf0]  ;;  %v16556_v52 = vor.u32 %v19721_v7, %v16555_v44  ;;  %v19741_v44 = vld [vmem:[#allocation7 + $0x58c] sm:$0xf] }
 0x603   : > { %20376 = vtanh.f32 %v6902_v45  ;;  %v16267_v45 = vld [vmem:[#allocation7 + $0x288] sm:$0xf]  ;;  %v16588_v48 = vor.u32 %v19729_v34, %v16587_v50  ;;  %v19813_v50 = vld [vmem:[#allocation7 + $0x7cc] sm:$0xf] }
 0x604   : > { %20378 = vtanh.f32 %v6928_v5  ;;  %v19649_v5 = vld [vmem:[#allocation7 + $0x2a4] sm:$0xf0]  ;;  %v16941_v34 = vld [vmem:[#allocation7 + $0x7e8] sm:$0xf0] }
 0x605   : > { %v16268_v39 = vor.u32 %v19649_v5, %v16267_v45  ;;  %v16523_v9 = vld [vmem:[#allocation7 + $0x488] sm:$0xf]  ;;  %v16653_v7 = vld [vmem:[#allocation7 + $0x5a8] sm:$0xf0] }
 0x606   : > { %v6890_v6 = vpop.f32.mrf.mxu3  ;;  %v6916_v11 = vpop.f32.mrf.mxu2  ;;  %v19713_v20 = vld [vmem:[#allocation7 + $0x4a4] sm:$0xf0] }
 0x607   : > { %v16907_v6 = vld [vmem:[#allocation7 + $0x788] sm:$0xf]  ;;  %v16524_v45 = vor.u32 %v19713_v20, %v16523_v9  ;;  %v19733_v9 = vld [vmem:[#allocation7 + $0x54c] sm:$0xf] }
 0x608   : > { %v19809_v11 = vld [vmem:[#allocation7 + $0x7a4] sm:$0xf0]  ;;  %v16621_v20 = vld [vmem:[#allocation7 + $0x568] sm:$0xf0] }
 0x609   : > { %v20377_v38 = vpop.eup %20376 }
 0x60a   : > { %v20379_v24 = vpop.eup %20378  ;;  %v25900_v25 = vpack.c.bf16 %v20377_v38, %v20377_v38  ;;  %v6955_v26 = vpop.f32.mrf.mxu1 }
 0x60b   : > { %v6981_v13 = vpop.f32.mrf.mxu0  ;;  %v25902_v53 = vpack.c.bf16 %v20379_v24, %v20379_v24  ;;  %v16235_v24 = vld [vmem:[#allocation7 + $0x248] sm:$0xf] }
 0x60c   : > { %8553 = vmatmul.bf16.vlgmr.msrb.gmra.mxu3 %v25900_v25  ;;  %v19641_v26 = vld [vmem:[#allocation7 + $0x264] sm:$0xf0] }
 0x60d   : > { %8566 = vmatmul.bf16.vlgmr.msrb.gmra.mxu1 %v25902_v53  ;;  %8649 = vmatpush.bf16.msrb.mxu3 %v16172_v51  ;;  %v16908_v51 = vor.u32 %v19809_v11, %v16907_v6  ;;  %v16619_v13 = vld [vmem:[#allocation7 + $0x548] sm:$0xf]  ;;  %v16112_v6 = vor.u32 %v19605_v59, %v16109_v63  ;;  %v19565_v59 = vld [vmem:[#allocation7 + $0xc] sm:$0xf] }
 0x60e   : > { %8662 = vmatpush.bf16.msrb.mxu1 %v16428_v57  ;;  %v6940_v30 = vpop.f32.mrf.mxu3  ;;  %v6966_v35 = vpop.f32.mrf.mxu2  ;;  %v19737_v57 = vld [vmem:[#allocation7 + $0x564] sm:$0xf0]  ;;  %v15949_v63 = vld [vmem:[#allocation7 + $0x28] sm:$0xf0] }
 0x60f   : > { %v6941_v41 = vadd.f32 %v6940_v30, %v6553_v15  ;;  %v6967_v22 = vadd.f32 %v6966_v35, %v6554_v40  ;;  %v15980_v15 = vor.u32 %v19577_v17, %v15979_v14  ;;  %v16236_v40 = vor.u32 %v19641_v26, %v16235_v24  ;;  %v19597_v14 = vld [vmem:[#allocation7 + $0x10c] sm:$0xf] }
 0x610   : > { %v16620_v30 = vor.u32 %v19737_v57, %v16619_v13  ;;  %v16876_v35 = vor.u32 %v19801_v31, %v16875_v29  ;;  %v16077_v17 = vld [vmem:[#allocation7 + $0x128] sm:$0xf0]  ;;  %v16459_v13 = vld [vmem:[#allocation7 + $0x408] sm:$0xf] }
 0x611   : > { %v6954_v36 = vadd.f32 %v6953_v16, %v6941_v41  ;;  %v6980_v2 = vadd.f32 %v6979_v19, %v6967_v22  ;;  %8650 = vmatpush.bf16.msrb.mxu3 %v16140_v33  ;;  %v16651_v16 = vld [vmem:[#allocation7 + $0x588] sm:$0xf]  ;;  %v16080_v31 = vor.u32 %v19597_v14, %v16077_v17  ;;  %v16435_v14 = vld [vmem:[#allocation7 + $0x3d0] sm:$0xf] }
 0x612   : > { %8663 = vmatpush.bf16.msrb.mxu1 %v16396_v27  ;;  %v19745_v19 = vld [vmem:[#allocation7 + $0x5a4] sm:$0xf0]  ;;  %v19690_v17 = vld [vmem:[#allocation7 + $0x3ec] sm:$0xf0] }
 0x613   : > { %20380 = vtanh.f32 %v6954_v36  ;;  %v16652_v38 = vor.u32 %v19745_v19, %v16651_v16  ;;  %v16203_v33 = vld [vmem:[#allocation7 + $0x208] sm:$0xf]  ;;  %v19685_v36 = vld [vmem:[#allocation7 + $0x3cc] sm:$0xf] }
 0x614   : > { %20382 = vtanh.f32 %v6980_v2  ;;  %v19633_v27 = vld [vmem:[#allocation7 + $0x224] sm:$0xf0]  ;;  %v16429_v2 = vld [vmem:[#allocation7 + $0x3e8] sm:$0xf0] }
 0x615   : > { %8651 = vmatpush.bf16.msrb.mxu3 %v16108_v42  ;;  %v16843_v41 = vld [vmem:[#allocation7 + $0x708] sm:$0xf]  ;;  %v15948_v42 = vor.u32 %v19569_v32, %v15947_v23  ;;  %v19589_v23 = vld [vmem:[#allocation7 + $0xcc] sm:$0xf] }
 0x616   : > { %8664 = vmatpush.bf16.msrb.mxu1 %v16364_v4  ;;  %v6942_v18 = vpop.f32.mrf.mxu3  ;;  %v6968_v47 = vpop.f32.mrf.mxu2  ;;  %v19793_v22 = vld [vmem:[#allocation7 + $0x724] sm:$0xf0]  ;;  %v16204_v4 = vor.u32 %v19633_v27, %v16203_v33  ;;  %v16045_v32 = vld [vmem:[#allocation7 + $0xe8] sm:$0xf0] }
 0x617   : > { %v16844_v37 = vor.u32 %v19793_v22, %v16843_v41  ;;  %v16432_v18 = vor.u32 %v19685_v36, %v16429_v2  ;;  %v16811_v47 = vld [vmem:[#allocation7 + $0x6c8] sm:$0xf]  ;;  %v19653_v33 = vld [vmem:[#allocation7 + $0x2cc] sm:$0xf] }
 0x618   : > { %v16491_v16 = vld [vmem:[#allocation7 + $0x448] sm:$0xf]  ;;  %v16685_v27 = vld [vmem:[#allocation7 + $0x5e8] sm:$0xf0] }
 0x619   : > { %v20381_v58 = vpop.eup %20380  ;;  %8652 = vmatpush.bf16.msrb.mxu3 %v16076_v28  ;;  %v16176_v28 = vor.u32 %v19621_v43, %v16173_v8  ;;  %v19705_v19 = vld [vmem:[#allocation7 + $0x464] sm:$0xf0]  ;;  %v16048_v43 = vor.u32 %v19589_v23, %v16045_v32  ;;  %v19581_v36 = vld [vmem:[#allocation7 + $0x8c] sm:$0xf]  ;;  %v16147_v23 = vld [vmem:[#allocation7 + $0x190] sm:$0xf] }
 0x61a   : > { %v20383_v60 = vpop.eup %20382  ;;  %v25906_v56 = vpack.c.bf16 %v20381_v58, %v20381_v58  ;;  %8665 = vmatpush.bf16.msrb.mxu1 %v16332_v21  ;;  %v19785_v21 = vld [vmem:[#allocation7 + $0x6e4] sm:$0xf0]  ;;  %v16144_v58 = vor.u32 %v19613_v1, %v16141_v49  ;;  %v16492_v24 = vor.u32 %v19705_v19, %v16491_v16  ;;  %v16013_v2 = vld [vmem:[#allocation7 + $0xa8] sm:$0xf0]  ;;  %v19618_v32 = vld [vmem:[#allocation7 + $0x1ac] sm:$0xf0] }
 0x61b   : > { %v25908_v3 = vpack.c.bf16 %v20383_v60, %v20383_v60  ;;  %v16812_v0 = vor.u32 %v19785_v21, %v16811_v47  ;;  %v16400_v60 = vor.u32 %v19677_v61, %v16397_v55  ;;  %v19697_v57 = vld [vmem:[#allocation7 + $0x424] sm:$0xf0]  ;;  %v16016_v47 = vor.u32 %v19581_v36, %v16013_v2  ;;  %v19573_v1 = vld [vmem:[#allocation7 + $0x4c] sm:$0xf]  ;;  %v16115_v36 = vld [vmem:[#allocation7 + $0x150] sm:$0xf] }
 0x61c   : > { %8579 = vmatmul.bf16.vlgmr.msrb.gmra.mxu2 %v25906_v56  ;;  %8605 = vmatmul.bf16.vlgmr.msra.gmra.mxu3 %v25900_v25  ;;  %v16715_v29 = vld [vmem:[#allocation7 + $0x608] sm:$0xf]  ;;  %v16460_v41 = vor.u32 %v19697_v57, %v16459_v13  ;;  %v15981_v49 = vld [vmem:[#allocation7 + $0x68] sm:$0xf0]  ;;  %v16656_v61 = vor.u32 %v19741_v44, %v16653_v7  ;;  %v19610_v2 = vld [vmem:[#allocation7 + $0x16c] sm:$0xf0] }
 0x61d   : > { %8592 = vmatmul.bf16.vlgmr.msrb.gmra.mxu0 %v25908_v3  ;;  %8618 = vmatmul.bf16.vlgmr.msra.gmra.mxu1 %v25902_v53  ;;  %v19725_v16 = vld [vmem:[#allocation7 + $0x50c] sm:$0xf] }
 0x61e   : > { %8653 = vmatpush.bf16.msrb.mxu3 %v16044_v46  ;;  %8666 = vmatpush.bf16.msrb.mxu1 %v16300_v54  ;;  %v16779_v46 = vld [vmem:[#allocation7 + $0x688] sm:$0xf]  ;;  %v16589_v19 = vld [vmem:[#allocation7 + $0x528] sm:$0xf0] }
 0x61f   : > { %8675 = vmatpush.bf16.msrb.mxu2 %v16684_v10  ;;  %8688 = vmatpush.bf16.msrb.mxu0 %v16940_v62  ;;  %v19777_v54 = vld [vmem:[#allocation7 + $0x6a4] sm:$0xf0]  ;;  %v19669_v10 = vld [vmem:[#allocation7 + $0x34c] sm:$0xf] }
 0x620   : > { %v16365_v62 = vld [vmem:[#allocation7 + $0x368] sm:$0xf0]  ;;  %v16780_v5 = vor.u32 %v19777_v54, %v16779_v46  ;;  %v15984_v46 = vor.u32 %v19573_v1, %v15981_v49  ;;  %v16083_v1 = vld [vmem:[#allocation7 + $0x110] sm:$0xf] }
 0x621   : > { %v16368_v11 = vor.u32 %v19669_v10, %v16365_v62  ;;  %v19629_v10 = vld [vmem:[#allocation7 + $0x20c] sm:$0xf]  ;;  %v16624_v62 = vor.u32 %v19733_v9, %v16621_v20  ;;  %v19602_v49 = vld [vmem:[#allocation7 + $0x12c] sm:$0xf0] }
 0x622   : > { %8654 = vmatpush.bf16.msrb.mxu3 %v16012_v12  ;;  %8667 = vmatpush.bf16.msrb.mxu1 %v16268_v39  ;;  %v16747_v12 = vld [vmem:[#allocation7 + $0x648] sm:$0xf]  ;;  %v19717_v13 = vld [vmem:[#allocation7 + $0x4cc] sm:$0xf] }
 0x623   : > { %8676 = vmatpush.bf16.msrb.mxu2 %v16652_v38  ;;  %8689 = vmatpush.bf16.msrb.mxu0 %v16908_v51  ;;  %v19769_v39 = vld [vmem:[#allocation7 + $0x664] sm:$0xf0]  ;;  %v19661_v38 = vld [vmem:[#allocation7 + $0x30c] sm:$0xf] }
 0x624   : > { %v16333_v51 = vld [vmem:[#allocation7 + $0x328] sm:$0xf0]  ;;  %v16748_v26 = vor.u32 %v19769_v39, %v16747_v12  ;;  %v16179_v12 = vld [vmem:[#allocation7 + $0x1d0] sm:$0xf] }
 0x625   : > { %v19626_v39 = vld [vmem:[#allocation7 + $0x1ec] sm:$0xf0]  ;;  %v16557_v57 = vld [vmem:[#allocation7 + $0x4e8] sm:$0xf0] }
 0x626   : > { %8655 = vmatpush.bf16.msrb.mxu3 %v15980_v15  ;;  %8668 = vmatpush.bf16.msrb.mxu1 %v16236_v40  ;;  %v16336_v15 = vor.u32 %v19661_v38, %v16333_v51  ;;  %v19761_v40 = vld [vmem:[#allocation7 + $0x624] sm:$0xf0]  ;;  %v15952_v38 = vor.u32 %v19565_v59, %v15949_v63  ;;  %v19701_v44 = vld [vmem:[#allocation7 + $0x44c] sm:$0xf]  ;;  %v16051_v59 = vld [vmem:[#allocation7 + $0xd0] sm:$0xf] }
 0x627   : > { %8677 = vmatpush.bf16.msrb.mxu2 %v16620_v30  ;;  %8690 = vmatpush.bf16.msrb.mxu0 %v16876_v35  ;;  %v16301_v30 = vld [vmem:[#allocation7 + $0x2e8] sm:$0xf0]  ;;  %v16716_v22 = vor.u32 %v19761_v40, %v16715_v29  ;;  %v16180_v29 = vor.u32 %v19626_v39, %v16179_v12  ;;  %v19594_v63 = vld [vmem:[#allocation7 + $0xec] sm:$0xf0] }
 0x628   : > { %v19749_v35 = vld [vmem:[#allocation7 + $0x5cc] sm:$0xf]  ;;  %v16304_v8 = vor.u32 %v19653_v33, %v16301_v30  ;;  %v16403_v33 = vld [vmem:[#allocation7 + $0x390] sm:$0xf]  ;;  %v16052_v12 = vor.u32 %v19594_v63, %v16051_v59  ;;  %v19614_v59 = vld [vmem:[#allocation7 + $0x194] sm:$0xf] }
 0x629   : > { %v16813_v40 = vld [vmem:[#allocation7 + $0x6e8] sm:$0xf0]  ;;  %v19682_v30 = vld [vmem:[#allocation7 + $0x3ac] sm:$0xf0]  ;;  %v16149_v63 = vld [vmem:[#allocation7 + $0x1b0] sm:$0xf0] }
 0x62a   : > { %8656 = vmatpush.bf16.msrb.mxu3 %v15948_v42  ;;  %8669 = vmatpush.bf16.msrb.mxu1 %v16204_v4  ;;  %v16688_v42 = vor.u32 %v19749_v35, %v16685_v27  ;;  %v16944_v4 = vor.u32 %v19813_v50, %v16941_v34  ;;  %v16560_v35 = vor.u32 %v19717_v13, %v16557_v57  ;;  %v19709_v50 = vld [vmem:[#allocation7 + $0x48c] sm:$0xf]  ;;  %v16659_v13 = vld [vmem:[#allocation7 + $0x590] sm:$0xf] }
 0x62b   : > { %8678 = vmatpush.bf16.msrb.mxu2 %v16588_v48  ;;  %8691 = vmatpush.bf16.msrb.mxu0 %v16844_v37  ;;  %v19645_v48 = vld [vmem:[#allocation7 + $0x28c] sm:$0xf]  ;;  %v19746_v57 = vld [vmem:[#allocation7 + $0x5ac] sm:$0xf0] }
 0x62c   : > { %8631 = vmatmul.bf16.vlgmr.msra.gmra.mxu2 %v25906_v56  ;;  %v16269_v37 = vld [vmem:[#allocation7 + $0x2a8] sm:$0xf0] }
 0x62d   : > { %8644 = vmatmul.bf16.vlgmr.msra.gmra.mxu0 %v25908_v3  ;;  %8657 = vmatmul.bf16.vlgmr.msrb.gmra.mxu3 %v25900_v25  ;;  %v16272_v21 = vor.u32 %v19645_v48, %v16269_v37  ;;  %v16525_v34 = vld [vmem:[#allocation7 + $0x4a8] sm:$0xf0] }
 0x62e   : > { %8701 = vmatpush.bf16.msra.mxu3 %v16176_v28  ;;  %8714 = vmatpush.bf16.msra.mxu1 %v16432_v18  ;;  %v19805_v28 = vld [vmem:[#allocation7 + $0x78c] sm:$0xf]  ;;  %v16528_v48 = vor.u32 %v19709_v50, %v16525_v34  ;;  %v16627_v50 = vld [vmem:[#allocation7 + $0x550] sm:$0xf] }
 0x62f   : > { %8670 = vmatmul.bf16.vlgmr.msrb.gmra.mxu1 %v25902_v53  ;;  %8679 = vmatpush.bf16.msrb.mxu2 %v16556_v52  ;;  %v16909_v18 = vld [vmem:[#allocation7 + $0x7a8] sm:$0xf0]  ;;  %v19738_v34 = vld [vmem:[#allocation7 + $0x56c] sm:$0xf0] }
 0x630   : > { %8692 = vmatpush.bf16.msrb.mxu0 %v16812_v0  ;;  %v16912_v55 = vor.u32 %v19805_v28, %v16909_v18  ;;  %v19637_v52 = vld [vmem:[#allocation7 + $0x24c] sm:$0xf]  ;;  %v16116_v28 = vor.u32 %v19610_v2, %v16115_v36  ;;  %v15955_v36 = vld [vmem:[#allocation7 + $0x10] sm:$0xf] }
 0x631   : > { %v16237_v0 = vld [vmem:[#allocation7 + $0x268] sm:$0xf0]  ;;  %v19570_v2 = vld [vmem:[#allocation7 + $0x2c] sm:$0xf0] }
 0x632   : > { %8702 = vmatpush.bf16.msra.mxu3 %v16144_v58  ;;  %8715 = vmatpush.bf16.msra.mxu1 %v16400_v60  ;;  %v19797_v58 = vld [vmem:[#allocation7 + $0x74c] sm:$0xf]  ;;  %v16240_v54 = vor.u32 %v19637_v52, %v16237_v0 }
 0x633   : > { %8680 = vmatpush.bf16.msrb.mxu2 %v16524_v45  ;;  %v16877_v60 = vld [vmem:[#allocation7 + $0x768] sm:$0xf0] }
 0x634   : > { %8693 = vmatpush.bf16.msrb.mxu0 %v16780_v5  ;;  %v16880_v45 = vor.u32 %v19797_v58, %v16877_v60  ;;  %v16205_v5 = vld [vmem:[#allocation7 + $0x228] sm:$0xf0]  ;;  %v16084_v60 = vor.u32 %v19602_v49, %v16083_v1  ;;  %v19686_v1 = vld [vmem:[#allocation7 + $0x3d4] sm:$0xf] }
 0x635   : > { %v16208_v51 = vor.u32 %v19629_v10, %v16205_v5  ;;  %v16493_v7 = vld [vmem:[#allocation7 + $0x468] sm:$0xf0]  ;;  %v16307_v10 = vld [vmem:[#allocation7 + $0x2d0] sm:$0xf]  ;;  %v16437_v49 = vld [vmem:[#allocation7 + $0x3f0] sm:$0xf0] }
 0x636   : > { %8703 = vmatpush.bf16.msra.mxu3 %v16112_v6  ;;  %8716 = vmatpush.bf16.msra.mxu1 %v16368_v11  ;;  %v19789_v6 = vld [vmem:[#allocation7 + $0x70c] sm:$0xf]  ;;  %v16496_v52 = vor.u32 %v19701_v44, %v16493_v7  ;;  %v19754_v5 = vld [vmem:[#allocation7 + $0x5ec] sm:$0xf0] }
 0x637   : > { %8681 = vmatpush.bf16.msrb.mxu2 %v16492_v24  ;;  %v16845_v11 = vld [vmem:[#allocation7 + $0x728] sm:$0xf0]  ;;  %v16592_v24 = vor.u32 %v19725_v16, %v16589_v19  ;;  %v16947_v16 = vld [vmem:[#allocation7 + $0x7d0] sm:$0xf] }
 0x638   : > { %8694 = vmatpush.bf16.msrb.mxu0 %v16748_v26  ;;  %v16848_v26 = vor.u32 %v19789_v6, %v16845_v11  ;;  %v19693_v9 = vld [vmem:[#allocation7 + $0x40c] sm:$0xf]  ;;  %v19818_v19 = vld [vmem:[#allocation7 + $0x7ec] sm:$0xf0] }
 0x639   : > { %v16461_v20 = vld [vmem:[#allocation7 + $0x428] sm:$0xf0]  ;;  %v16595_v44 = vld [vmem:[#allocation7 + $0x510] sm:$0xf] }
 0x63a   : > { %8704 = vmatpush.bf16.msra.mxu3 %v16080_v31  ;;  %8717 = vmatpush.bf16.msra.mxu1 %v16336_v15  ;;  %v16436_v31 = vor.u32 %v19690_v17, %v16435_v14  ;;  %v19781_v15 = vld [vmem:[#allocation7 + $0x6cc] sm:$0xf]  ;;  %v16464_v6 = vor.u32 %v19693_v9, %v16461_v20  ;;  %v16019_v14 = vld [vmem:[#allocation7 + $0x90] sm:$0xf] }
 0x63b   : > { %8682 = vmatpush.bf16.msrb.mxu2 %v16460_v41  ;;  %v16816_v27 = vor.u32 %v19781_v15, %v16813_v40  ;;  %v16148_v41 = vor.u32 %v19618_v32, %v16147_v23  ;;  %v19757_v58 = vld [vmem:[#allocation7 + $0x60c] sm:$0xf]  ;;  %v19586_v17 = vld [vmem:[#allocation7 + $0xac] sm:$0xf0] }
 0x63c   : > { %8695 = vmatpush.bf16.msrb.mxu0 %v16716_v22  ;;  %v16404_v22 = vor.u32 %v19682_v30, %v16403_v33  ;;  %v16020_v15 = vor.u32 %v19586_v17, %v16019_v14  ;;  %v15987_v23 = vld [vmem:[#allocation7 + $0x50] sm:$0xf]  ;;  %v16660_v33 = vor.u32 %v19746_v57, %v16659_v13  ;;  %v19606_v14 = vld [vmem:[#allocation7 + $0x154] sm:$0xf] }
 0x63d   : > { %v19578_v32 = vld [vmem:[#allocation7 + $0x6c] sm:$0xf0]  ;;  %v16117_v17 = vld [vmem:[#allocation7 + $0x170] sm:$0xf0] }
 0x63e   : > { %8705 = vmatpush.bf16.msra.mxu3 %v16048_v43  ;;  %8718 = vmatpush.bf16.msra.mxu1 %v16304_v8  ;;  %v19773_v43 = vld [vmem:[#allocation7 + $0x68c] sm:$0xf]  ;;  %v19730_v7 = vld [vmem:[#allocation7 + $0x52c] sm:$0xf0] }
 0x63f   : > { %8727 = vmatpush.bf16.msra.mxu2 %v16688_v42  ;;  %8696 = vmatmul.bf16.vlgmr.msrb.gmra.mxu0 %v25908_v3  ;;  %v16781_v8 = vld [vmem:[#allocation7 + $0x6a8] sm:$0xf0]  ;;  %v16371_v42 = vld [vmem:[#allocation7 + $0x350] sm:$0xf] }
 0x640   : > { %8740 = vmatpush.bf16.msra.mxu0 %v16944_v4  ;;  %8683 = vmatmul.bf16.vlgmr.msrb.gmra.mxu2 %v25906_v56  ;;  %v19674_v4 = vld [vmem:[#allocation7 + $0x36c] sm:$0xf0]  ;;  %v16784_v37 = vor.u32 %v19773_v43, %v16781_v8  ;;  %v15988_v43 = vor.u32 %v19578_v32, %v15987_v23  ;;  %v19598_v23 = vld [vmem:[#allocation7 + $0x114] sm:$0xf] }
 0x641   : > { %v16372_v18 = vor.u32 %v19674_v4, %v16371_v42  ;;  %v16211_v42 = vld [vmem:[#allocation7 + $0x210] sm:$0xf]  ;;  %v16628_v4 = vor.u32 %v19738_v34, %v16627_v50  ;;  %v16085_v32 = vld [vmem:[#allocation7 + $0x130] sm:$0xf0] }
 0x642   : > { %8706 = vmatpush.bf16.msra.mxu3 %v16016_v47  ;;  %8719 = vmatpush.bf16.msra.mxu1 %v16272_v21  ;;  %v19765_v47 = vld [vmem:[#allocation7 + $0x64c] sm:$0xf]  ;;  %v16563_v9 = vld [vmem:[#allocation7 + $0x4d0] sm:$0xf] }
 0x643   : > { %8728 = vmatpush.bf16.msra.mxu2 %v16656_v61  ;;  %v16749_v21 = vld [vmem:[#allocation7 + $0x668] sm:$0xf0]  ;;  %v16339_v61 = vld [vmem:[#allocation7 + $0x310] sm:$0xf] }
 0x644   : > { %8741 = vmatpush.bf16.msra.mxu0 %v16912_v55  ;;  %v19666_v55 = vld [vmem:[#allocation7 + $0x32c] sm:$0xf0]  ;;  %v16752_v0 = vor.u32 %v19765_v47, %v16749_v21  ;;  %v19622_v47 = vld [vmem:[#allocation7 + $0x1d4] sm:$0xf] }
 0x645   : > { %v16181_v21 = vld [vmem:[#allocation7 + $0x1f0] sm:$0xf0]  ;;  %v19722_v20 = vld [vmem:[#allocation7 + $0x4ec] sm:$0xf0] }
 0x646   : > { %8707 = vmatpush.bf16.msra.mxu3 %v15984_v46  ;;  %8720 = vmatpush.bf16.msra.mxu1 %v16240_v54  ;;  %v16340_v46 = vor.u32 %v19666_v55, %v16339_v61  ;;  %v16717_v54 = vld [vmem:[#allocation7 + $0x628] sm:$0xf0]  ;;  %v15956_v61 = vor.u32 %v19570_v2, %v15955_v36  ;;  %v16499_v13 = vld [vmem:[#allocation7 + $0x450] sm:$0xf]  ;;  %v19590_v36 = vld [vmem:[#allocation7 + $0xd4] sm:$0xf] }
 0x647   : > { %8729 = vmatpush.bf16.msra.mxu2 %v16624_v62  ;;  %v19658_v62 = vld [vmem:[#allocation7 + $0x2ec] sm:$0xf0]  ;;  %v16720_v11 = vor.u32 %v19757_v58, %v16717_v54  ;;  %v16184_v58 = vor.u32 %v19622_v47, %v16181_v21  ;;  %v16053_v2 = vld [vmem:[#allocation7 + $0xf0] sm:$0xf0] }
 0x648   : > { %8742 = vmatpush.bf16.msra.mxu0 %v16880_v45  ;;  %v16691_v45 = vld [vmem:[#allocation7 + $0x5d0] sm:$0xf]  ;;  %v16308_v39 = vor.u32 %v19658_v62, %v16307_v10  ;;  %v19678_v10 = vld [vmem:[#allocation7 + $0x394] sm:$0xf]  ;;  %v16056_v47 = vor.u32 %v19590_v36, %v16053_v2  ;;  %v16155_v36 = vld [vmem:[#allocation7 + $0x198] sm:$0xf] }
 0x649   : > { %v19786_v54 = vld [vmem:[#allocation7 + $0x6ec] sm:$0xf0]  ;;  %v16405_v62 = vld [vmem:[#allocation7 + $0x3b0] sm:$0xf0]  ;;  %v19619_v2 = vld [vmem:[#allocation7 + $0x1b4] sm:$0xf0] }
 0x64a   : > { %8708 = vmatpush.bf16.msra.mxu3 %v15952_v38  ;;  %8721 = vmatpush.bf16.msra.mxu1 %v16208_v51  ;;  %v16692_v38 = vor.u32 %v19754_v5, %v16691_v45  ;;  %v16948_v51 = vor.u32 %v19818_v19, %v16947_v16  ;;  %v16564_v45 = vor.u32 %v19722_v20, %v16563_v9  ;;  %v16531_v16 = vld [vmem:[#allocation7 + $0x490] sm:$0xf]  ;;  %v19742_v9 = vld [vmem:[#allocation7 + $0x594] sm:$0xf] }
 0x64b   : > { %8730 = vmatpush.bf16.msra.mxu2 %v16592_v24  ;;  %v16275_v24 = vld [vmem:[#allocation7 + $0x290] sm:$0xf]  ;;  %v16661_v20 = vld [vmem:[#allocation7 + $0x5b0] sm:$0xf0] }
 0x64c   : > { %8743 = vmatpush.bf16.msra.mxu0 %v16848_v26  ;;  %v19650_v26 = vld [vmem:[#allocation7 + $0x2ac] sm:$0xf0] }
 0x64d   : > { %8709 = vmatmul.bf16.vlgmr.msra.gmra.mxu3 %v25900_v25  ;;  %8722 = vmatmul.bf16.vlgmr.msra.gmra.mxu1 %v25902_v53  ;;  %v16276_v40 = vor.u32 %v19650_v26, %v16275_v24  ;;  %v19714_v19 = vld [vmem:[#allocation7 + $0x4ac] sm:$0xf0] }
 0x64e   : > { %8753 = vmatpush.bf16.msrb.mxu3 %v16180_v29  ;;  %8766 = vmatpush.bf16.msrb.mxu1 %v16436_v31  ;;  %v16915_v29 = vld [vmem:[#allocation7 + $0x790] sm:$0xf]  ;;  %v16532_v24 = vor.u32 %v19714_v19, %v16531_v16  ;;  %v19734_v16 = vld [vmem:[#allocation7 + $0x554] sm:$0xf] }
 0x64f   : > { %8731 = vmatpush.bf16.msra.mxu2 %v16560_v35  ;;  %v19810_v31 = vld [vmem:[#allocation7 + $0x7ac] sm:$0xf0]  ;;  %v16629_v19 = vld [vmem:[#allocation7 + $0x570] sm:$0xf0] }
 0x650   : > { %8744 = vmatpush.bf16.msra.mxu0 %v16816_v27  ;;  %v16916_v30 = vor.u32 %v19810_v31, %v16915_v29  ;;  %v16243_v35 = vld [vmem:[#allocation7 + $0x250] sm:$0xf]  ;;  %v16120_v29 = vor.u32 %v19606_v14, %v16117_v17  ;;  %v19566_v14 = vld [vmem:[#allocation7 + $0x14] sm:$0xf] }
 0x651   : > { %v19642_v27 = vld [vmem:[#allocation7 + $0x26c] sm:$0xf0]  ;;  %v15957_v17 = vld [vmem:[#allocation7 + $0x30] sm:$0xf0] }
 0x652   : > { %8754 = vmatpush.bf16.msrb.mxu3 %v16148_v41  ;;  %8767 = vmatpush.bf16.msrb.mxu1 %v16404_v22  ;;  %v16883_v41 = vld [vmem:[#allocation7 + $0x750] sm:$0xf]  ;;  %v16244_v8 = vor.u32 %v19642_v27, %v16243_v35 }
 0x653   : > { %8732 = vmatpush.bf16.msra.mxu2 %v16528_v48  ;;  %v19802_v22 = vld [vmem:[#allocation7 + $0x76c] sm:$0xf0] }
 0x654   : > { %8745 = vmatpush.bf16.msra.mxu0 %v16784_v37  ;;  %v16884_v48 = vor.u32 %v19802_v22, %v16883_v41  ;;  %v19634_v37 = vld [vmem:[#allocation7 + $0x22c] sm:$0xf0]  ;;  %v16088_v22 = vor.u32 %v19598_v23, %v16085_v32  ;;  %v16443_v23 = vld [vmem:[#allocation7 + $0x3d8] sm:$0xf] }
 0x655   : > { %v16212_v55 = vor.u32 %v19634_v37, %v16211_v42  ;;  %v19706_v57 = vld [vmem:[#allocation7 + $0x46c] sm:$0xf0]  ;;  %v19654_v42 = vld [vmem:[#allocation7 + $0x2d4] sm:$0xf]  ;;  %v19691_v32 = vld [vmem:[#allocation7 + $0x3f4] sm:$0xf0] }
 0x656   : > { %8755 = vmatpush.bf16.msrb.mxu3 %v16116_v28  ;;  %8768 = vmatpush.bf16.msrb.mxu1 %v16372_v18  ;;  %v16851_v28 = vld [vmem:[#allocation7 + $0x710] sm:$0xf]  ;;  %v16500_v35 = vor.u32 %v19706_v57, %v16499_v13  ;;  %v16693_v37 = vld [vmem:[#allocation7 + $0x5f0] sm:$0xf0] }
 0x657   : > { %8733 = vmatpush.bf16.msra.mxu2 %v16496_v52  ;;  %v19794_v18 = vld [vmem:[#allocation7 + $0x72c] sm:$0xf0]  ;;  %v16596_v52 = vor.u32 %v19730_v7, %v16595_v44  ;;  %v19814_v44 = vld [vmem:[#allocation7 + $0x7d4] sm:$0xf] }
 0x658   : > { %8746 = vmatpush.bf16.msra.mxu0 %v16752_v0  ;;  %v16852_v0 = vor.u32 %v19794_v18, %v16851_v28  ;;  %v16467_v50 = vld [vmem:[#allocation7 + $0x410] sm:$0xf]  ;;  %v16949_v7 = vld [vmem:[#allocation7 + $0x7f0] sm:$0xf0] }
 0x659   : > { %v19698_v34 = vld [vmem:[#allocation7 + $0x42c] sm:$0xf0]  ;;  %v19726_v13 = vld [vmem:[#allocation7 + $0x514] sm:$0xf] }
 0x65a   : > { %8756 = vmatpush.bf16.msrb.mxu3 %v16084_v60  ;;  %8769 = vmatpush.bf16.msrb.mxu1 %v16340_v46  ;;  %v16440_v60 = vor.u32 %v19686_v1, %v16437_v49  ;;  %v16819_v46 = vld [vmem:[#allocation7 + $0x6d0] sm:$0xf]  ;;  %v16468_v28 = vor.u32 %v19698_v34, %v16467_v50  ;;  %v19582_v1 = vld [vmem:[#allocation7 + $0x94] sm:$0xf] }
 0x65b   : > { %8734 = vmatpush.bf16.msra.mxu2 %v16464_v6  ;;  %v16820_v5 = vor.u32 %v19786_v54, %v16819_v46  ;;  %v16152_v6 = vor.u32 %v19614_v59, %v16149_v63  ;;  %v16723_v41 = vld [vmem:[#allocation7 + $0x610] sm:$0xf]  ;;  %v16021_v49 = vld [vmem:[#allocation7 + $0xb0] sm:$0xf0] }
 0x65c   : > { %8747 = vmatpush.bf16.msra.mxu0 %v16720_v11  ;;  %v16408_v11 = vor.u32 %v19678_v10, %v16405_v62  ;;  %v16024_v46 = vor.u32 %v19582_v1, %v16021_v49  ;;  %v19574_v59 = vld [vmem:[#allocation7 + $0x54] sm:$0xf]  ;;  %v16664_v10 = vor.u32 %v19742_v9, %v16661_v20  ;;  %v16123_v1 = vld [vmem:[#allocation7 + $0x158] sm:$0xf] }
 0x65d   : > { %v15989_v63 = vld [vmem:[#allocation7 + $0x70] sm:$0xf0]  ;;  %v19611_v49 = vld [vmem:[#allocation7 + $0x174] sm:$0xf0] }
 0x65e   : > { %8757 = vmatpush.bf16.msrb.mxu3 %v16052_v12  ;;  %8770 = vmatpush.bf16.msrb.mxu1 %v16308_v39  ;;  %v16787_v12 = vld [vmem:[#allocation7 + $0x690] sm:$0xf]  ;;  %v16597_v57 = vld [vmem:[#allocation7 + $0x530] sm:$0xf0] }
 0x65f   : > { %8779 = vmatpush.bf16.msrb.mxu2 %v16692_v38  ;;  %8748 = vmatmul.bf16.vlgmr.msra.gmra.mxu0 %v25908_v3  ;;  %v19778_v39 = vld [vmem:[#allocation7 + $0x6ac] sm:$0xf0]  ;;  %v19670_v38 = vld [vmem:[#allocation7 + $0x354] sm:$0xf] }
 0x660   : > { %8792 = vmatpush.bf16.msrb.mxu0 %v16948_v51  ;;  %8735 = vmatmul.bf16.vlgmr.msra.gmra.mxu2 %v25906_v56  ;;  %v16373_v51 = vld [vmem:[#allocation7 + $0x370] sm:$0xf0]  ;;  %v16788_v26 = vor.u32 %v19778_v39, %v16787_v12  ;;  %v15992_v12 = vor.u32 %v19574_v59, %v15989_v63 }
 0x661   : > { %v16376_v31 = vor.u32 %v19670_v38, %v16373_v51  ;;  %v19630_v38 = vld [vmem:[#allocation7 + $0x214] sm:$0xf]  ;;  %v16632_v51 = vor.u32 %v19734_v16, %v16629_v19 }
 0x662   : > { %8758 = vmatpush.bf16.msrb.mxu3 %v16020_v15  ;;  %8771 = vmatpush.bf16.msrb.mxu1 %v16276_v40  ;;  %v16755_v15 = vld [vmem:[#allocation7 + $0x650] sm:$0xf]  ;;  %v19718_v50 = vld [vmem:[#allocation7 + $0x4d4] sm:$0xf] }
 0x663   : > { %8780 = vmatpush.bf16.msrb.mxu2 %v16660_v33  ;;  %v19770_v40 = vld [vmem:[#allocation7 + $0x66c] sm:$0xf0]  ;;  %v19662_v33 = vld [vmem:[#allocation7 + $0x314] sm:$0xf] }
 0x664   : > { %8793 = vmatpush.bf16.msrb.mxu0 %v16916_v30  ;;  %v16341_v30 = vld [vmem:[#allocation7 + $0x330] sm:$0xf0]  ;;  %v16756_v27 = vor.u32 %v19770_v40, %v16755_v15  ;;  %v16187_v15 = vld [vmem:[#allocation7 + $0x1d8] sm:$0xf] }
 0x665   : > { %v19627_v40 = vld [vmem:[#allocation7 + $0x1f4] sm:$0xf0]  ;;  %v16565_v34 = vld [vmem:[#allocation7 + $0x4f0] sm:$0xf0] }
 0x666   : > { %8759 = vmatpush.bf16.msrb.mxu3 %v15988_v43  ;;  %8772 = vmatpush.bf16.msrb.mxu1 %v16244_v8  ;;  %v16344_v43 = vor.u32 %v19662_v33, %v16341_v30  ;;  %v19762_v8 = vld [vmem:[#allocation7 + $0x62c] sm:$0xf0]  ;;  %v15960_v33 = vor.u32 %v19566_v14, %v15957_v17  ;;  %v19702_v9 = vld [vmem:[#allocation7 + $0x454] sm:$0xf] }
 0x667   : > { %8781 = vmatpush.bf16.msrb.mxu2 %v16628_v4  ;;  %v16309_v4 = vld [vmem:[#allocation7 + $0x2f0] sm:$0xf0]  ;;  %v16724_v18 = vor.u32 %v19762_v8, %v16723_v41  ;;  %v16188_v41 = vor.u32 %v19627_v40, %v16187_v15  ;;  %v19755_v15 = vld [vmem:[#allocation7 + $0x5f4] sm:$0xf0] }
 0x668   : > { %8794 = vmatpush.bf16.msrb.mxu0 %v16884_v48  ;;  %v19750_v48 = vld [vmem:[#allocation7 + $0x5d4] sm:$0xf]  ;;  %v16312_v21 = vor.u32 %v19654_v42, %v16309_v4  ;;  %v16411_v42 = vld [vmem:[#allocation7 + $0x398] sm:$0xf] }
 0x669   : > { %v16821_v8 = vld [vmem:[#allocation7 + $0x6f0] sm:$0xf0]  ;;  %v19683_v4 = vld [vmem:[#allocation7 + $0x3b4] sm:$0xf0] }
 0x66a   : > { %8760 = vmatpush.bf16.msrb.mxu3 %v15956_v61  ;;  %8773 = vmatpush.bf16.msrb.mxu1 %v16212_v55  ;;  %v16696_v61 = vor.u32 %v19750_v48, %v16693_v37  ;;  %v16952_v55 = vor.u32 %v19814_v44, %v16949_v7  ;;  %v16568_v48 = vor.u32 %v19718_v50, %v16565_v34  ;;  %v19710_v44 = vld [vmem:[#allocation7 + $0x494] sm:$0xf]  ;;  %v16955_v40 = vld [vmem:[#allocation7 + $0x7d8] sm:$0xf] }
 0x66b   : > { %8782 = vmatpush.bf16.msrb.mxu2 %v16596_v52  ;;  %v19646_v52 = vld [vmem:[#allocation7 + $0x294] sm:$0xf]  ;;  %v16027_v50 = vld [vmem:[#allocation7 + $0x98] sm:$0xf] }
 0x66c   : > { %8795 = vmatpush.bf16.msrb.mxu0 %v16852_v0  ;;  %v16277_v0 = vld [vmem:[#allocation7 + $0x2b0] sm:$0xf0]  ;;  %v19587_v34 = vld [vmem:[#allocation7 + $0xb4] sm:$0xf0] }
 0x66d   : > { %8761 = vmatmul.bf16.vlgmr.msrb.gmra.mxu3 %v25900_v25  ;;  %8774 = vmatmul.bf16.vlgmr.msrb.gmra.mxu1 %v25902_v53  ;;  %v16280_v54 = vor.u32 %v19646_v52, %v16277_v0  ;;  %v16533_v7 = vld [vmem:[#allocation7 + $0x4b0] sm:$0xf0] }
 0x66e   : > { %8805 = vmatpush.bf16.msra.mxu3 %v16184_v58  ;;  %8818 = vmatpush.bf16.msra.mxu1 %v16440_v60  ;;  %v19806_v58 = vld [vmem:[#allocation7 + $0x794] sm:$0xf]  ;;  %v16536_v52 = vor.u32 %v19710_v44, %v16533_v7  ;;  %v15995_v7 = vld [vmem:[#allocation7 + $0x58] sm:$0xf] }
 0x66f   : > { %8783 = vmatpush.bf16.msrb.mxu2 %v16564_v45  ;;  %v16917_v60 = vld [vmem:[#allocation7 + $0x7b0] sm:$0xf0] }
 0x670   : > { %8796 = vmatpush.bf16.msrb.mxu0 %v16820_v5  ;;  %v16920_v62 = vor.u32 %v19806_v58, %v16917_v60  ;;  %v19638_v45 = vld [vmem:[#allocation7 + $0x254] sm:$0xf]  ;;  %v25933_v58 = vld [vmem:[%s28930_s14] sm:$0xff]  ;;  %v16124_v60 = vor.u32 %v19611_v49, %v16123_v1  ;;  %v16251_v1 = vld [vmem:[#allocation7 + $0x258] sm:$0xf] }
 0x671   : > { %v16245_v5 = vld [vmem:[#allocation7 + $0x270] sm:$0xf0]  ;;  %v7249_v16 = vperm.slane %v25933_v58, 0  ;;  %v19643_v49 = vld [vmem:[#allocation7 + $0x274] sm:$0xf0] }
 0x672   : > { %8806 = vmatpush.bf16.msra.mxu3 %v16152_v6  ;;  %8819 = vmatpush.bf16.msra.mxu1 %v16408_v11  ;;  %v19798_v6 = vld [vmem:[#allocation7 + $0x754] sm:$0xf]  ;;  %v16248_v39 = vor.u32 %v19638_v45, %v16245_v5  ;;  %v16347_v45 = vld [vmem:[#allocation7 + $0x318] sm:$0xf] }
 0x673   : > { %8784 = vmatpush.bf16.msrb.mxu2 %v16532_v24  ;;  %v16885_v11 = vld [vmem:[#allocation7 + $0x770] sm:$0xf0]  ;;  %v19667_v5 = vld [vmem:[#allocation7 + $0x334] sm:$0xf0] }
 0x674   : > { %8797 = vmatpush.bf16.msrb.mxu0 %v16788_v26  ;;  %v16888_v24 = vor.u32 %v19798_v6, %v16885_v11  ;;  %v16213_v26 = vld [vmem:[#allocation7 + $0x230] sm:$0xf0]  ;;  %v16348_v17 = vor.u32 %v19667_v5, %v16347_v45  ;;  %v19635_v45 = vld [vmem:[#allocation7 + $0x234] sm:$0xf0] }
 0x675   : > { %v16216_v30 = vor.u32 %v19630_v38, %v16213_v26  ;;  %v16501_v20 = vld [vmem:[#allocation7 + $0x470] sm:$0xf0]  ;;  %v16603_v5 = vld [vmem:[#allocation7 + $0x518] sm:$0xf] }
 0x676   : > { %8807 = vmatpush.bf16.msra.mxu3 %v16120_v29  ;;  %8820 = vmatpush.bf16.msra.mxu1 %v16376_v31  ;;  %v19790_v29 = vld [vmem:[#allocation7 + $0x714] sm:$0xf]  ;;  %v16504_v19 = vor.u32 %v19702_v9, %v16501_v20  ;;  %v16252_v20 = vor.u32 %v19643_v49, %v16251_v1  ;;  %v16507_v1 = vld [vmem:[#allocation7 + $0x458] sm:$0xf] }
 0x677   : > { %8785 = vmatpush.bf16.msrb.mxu2 %v16500_v35  ;;  %v16853_v31 = vld [vmem:[#allocation7 + $0x730] sm:$0xf0]  ;;  %v16600_v35 = vor.u32 %v19726_v13, %v16597_v57  ;;  %v16315_v13 = vld [vmem:[#allocation7 + $0x2d8] sm:$0xf] }
 0x678   : > { %8798 = vmatpush.bf16.msrb.mxu0 %v16756_v27  ;;  %v16856_v27 = vor.u32 %v19790_v29, %v16853_v31  ;;  %v19766_v59 = vld [vmem:[#allocation7 + $0x654] sm:$0xf]  ;;  %v19659_v57 = vld [vmem:[#allocation7 + $0x2f4] sm:$0xf0] }
 0x679   : > { %v16757_v63 = vld [vmem:[#allocation7 + $0x670] sm:$0xf0]  ;;  %v16699_v29 = vld [vmem:[#allocation7 + $0x5d8] sm:$0xf] }
 0x67a   : > { %8808 = vmatpush.bf16.msra.mxu3 %v16088_v22  ;;  %8821 = vmatpush.bf16.msra.mxu1 %v16344_v43  ;;  %v16444_v22 = vor.u32 %v19691_v32, %v16443_v23  ;;  %v19782_v43 = vld [vmem:[#allocation7 + $0x6d4] sm:$0xf]  ;;  %v16760_v6 = vor.u32 %v19766_v59, %v16757_v63  ;;  %v19819_v23 = vld [vmem:[#allocation7 + $0x7f4] sm:$0xf0] }
 0x67b   : > { %8786 = vmatpush.bf16.msrb.mxu2 %v16468_v28  ;;  %v16824_v37 = vor.u32 %v19782_v43, %v16821_v8  ;;  %v16156_v28 = vor.u32 %v19619_v2, %v16155_v36  ;;  %v19694_v11 = vld [vmem:[#allocation7 + $0x414] sm:$0xf]  ;;  %v16956_v43 = vor.u32 %v19819_v23, %v16955_v40  ;;  %v16283_v8 = vld [vmem:[#allocation7 + $0x298] sm:$0xf] }
 0x67c   : > { %8799 = vmatpush.bf16.msrb.mxu0 %v16724_v18  ;;  %v16412_v18 = vor.u32 %v19683_v4, %v16411_v42  ;;  %v16725_v38 = vld [vmem:[#allocation7 + $0x630] sm:$0xf0]  ;;  %v19651_v36 = vld [vmem:[#allocation7 + $0x2b4] sm:$0xf0] }
 0x67d   : > { %v16667_v2 = vld [vmem:[#allocation7 + $0x598] sm:$0xf]  ;;  %v16284_v44 = vor.u32 %v19651_v36, %v16283_v8 }
 0x67e   : > { %8809 = vmatpush.bf16.msra.mxu3 %v16056_v47  ;;  %8822 = vmatpush.bf16.msra.mxu1 %v16312_v21  ;;  %v19774_v47 = vld [vmem:[#allocation7 + $0x694] sm:$0xf]  ;;  %v19747_v42 = vld [vmem:[#allocation7 + $0x5b4] sm:$0xf0] }
 0x67f   : > { %8831 = vmatpush.bf16.msra.mxu2 %v16696_v61  ;;  %8800 = vmatmul.bf16.vlgmr.msrb.gmra.mxu0 %v25908_v3  ;;  %v16789_v21 = vld [vmem:[#allocation7 + $0x6b0] sm:$0xf0]  ;;  %v16379_v61 = vld [vmem:[#allocation7 + $0x358] sm:$0xf] }
 0x680   : > { %8844 = vmatpush.bf16.msra.mxu0 %v16952_v55  ;;  %8787 = vmatmul.bf16.vlgmr.msrb.gmra.mxu2 %v25906_v56  ;;  %v19675_v55 = vld [vmem:[#allocation7 + $0x374] sm:$0xf0]  ;;  %v16792_v0 = vor.u32 %v19774_v47, %v16789_v21 }
 0x681   : > { %v16923_v4 = vld [vmem:[#allocation7 + $0x798] sm:$0xf] }
 0x682   : > { %8810 = vmatpush.bf16.msra.mxu3 %v16024_v46  ;;  %8823 = vmatpush.bf16.msra.mxu1 %v16280_v54  ;;  %v16380_v46 = vor.u32 %v19675_v55, %v16379_v61  ;;  %v16635_v61 = vld [vmem:[#allocation7 + $0x558] sm:$0xf] }
 0x683   : > { %8832 = vmatpush.bf16.msra.mxu2 %v16664_v10  ;;  %v16091_v10 = vld [vmem:[#allocation7 + $0x118] sm:$0xf] }
 0x684   : > { %8845 = vmatpush.bf16.msra.mxu0 %v16920_v62  ;;  %v19603_v62 = vld [vmem:[#allocation7 + $0x134] sm:$0xf0] }
 0x685   : > { %v16092_v14 = vor.u32 %v19603_v62, %v16091_v10  ;;  %v19739_v55 = vld [vmem:[#allocation7 + $0x574] sm:$0xf0] }
 0x686   : > { %8811 = vmatpush.bf16.msra.mxu3 %v15992_v12  ;;  %8824 = vmatpush.bf16.msra.mxu1 %v16248_v39  ;;  %v16469_v12 = vld [vmem:[#allocation7 + $0x430] sm:$0xf0]  ;;  %v19571_v59 = vld [vmem:[#allocation7 + $0x34] sm:$0xf0]  ;;  %v16636_v10 = vor.u32 %v19739_v55, %v16635_v61 }
 0x687   : > { %8833 = vmatpush.bf16.msra.mxu2 %v16632_v51  ;;  %v19758_v39 = vld [vmem:[#allocation7 + $0x614] sm:$0xf]  ;;  %v16059_v51 = vld [vmem:[#allocation7 + $0xd8] sm:$0xf]  ;;  %v16472_v32 = vor.u32 %v19694_v11, %v16469_v12  ;;  %v19623_v11 = vld [vmem:[#allocation7 + $0x1dc] sm:$0xf] }
 0x688   : > { %8846 = vmatpush.bf16.msra.mxu0 %v16888_v24  ;;  %v19595_v24 = vld [vmem:[#allocation7 + $0xf4] sm:$0xf0]  ;;  %v16189_v12 = vld [vmem:[#allocation7 + $0x1f8] sm:$0xf0] }
 0x689   : > { %v16219_v63 = vld [vmem:[#allocation7 + $0x218] sm:$0xf] }
 0x68a   : > { %8812 = vmatpush.bf16.msra.mxu3 %v15960_v33  ;;  %8825 = vmatpush.bf16.msra.mxu1 %v16216_v30  ;;  %v8567_v54 = vpop.f32.mrf.mxu1  ;;  %v16728_v33 = vor.u32 %v19758_v39, %v16725_v38  ;;  %v16060_v30 = vor.u32 %v19595_v24, %v16059_v51  ;;  %v19687_v39 = vld [vmem:[#allocation7 + $0x3dc] sm:$0xf]  ;;  %v16220_v38 = vor.u32 %v19635_v45, %v16219_v63  ;;  %v16827_v40 = vld [vmem:[#allocation7 + $0x6d8] sm:$0xf] }
 0x68b   : > { %8834 = vmatpush.bf16.msra.mxu2 %v16600_v35  ;;  %v16316_v35 = vor.u32 %v19659_v57, %v16315_v13  ;;  %v16571_v57 = vld [vmem:[#allocation7 + $0x4d8] sm:$0xf] }
 0x68c   : > { %8847 = vmatpush.bf16.msra.mxu0 %v16856_v27  ;;  %v19787_v23 = vld [vmem:[#allocation7 + $0x6f4] sm:$0xf0] }
 0x68d   : > { %8813 = vmatmul.bf16.vlgmr.msra.gmra.mxu3 %v25900_v25  ;;  %8826 = vmatmul.bf16.vlgmr.msra.gmra.mxu1 %v25902_v53  ;;  %v19715_v8 = vld [vmem:[#allocation7 + $0x4b4] sm:$0xf0] }
 0x68e   : > { %8857 = vmatpush.bf16.msrb.mxu3 %v16188_v41  ;;  %8870 = vmatpush.bf16.msrb.mxu1 %v16444_v22  ;;  %v16700_v22 = vor.u32 %v19755_v15, %v16699_v29  ;;  %v19723_v29 = vld [vmem:[#allocation7 + $0x4f4] sm:$0xf0] }
 0x68f   : > { %8835 = vmatpush.bf16.msra.mxu2 %v16568_v48  ;;  %v8554_v26 = vpop.f32.mrf.mxu3  ;;  %v19811_v48 = vld [vmem:[#allocation7 + $0x7b4] sm:$0xf0] }
 0x690   : > { %8848 = vmatpush.bf16.msra.mxu0 %v16824_v37  ;;  %v8555_v31 = vadd.f32 %v8554_v26, %v7249_v16  ;;  %v16028_v37 = vor.u32 %v19587_v34, %v16027_v50  ;;  %v16924_v47 = vor.u32 %v19811_v48, %v16923_v4  ;;  %v19731_v16 = vld [vmem:[#allocation7 + $0x534] sm:$0xf0]  ;;  %v16572_v34 = vor.u32 %v19723_v29, %v16571_v57  ;;  %v19607_v48 = vld [vmem:[#allocation7 + $0x15c] sm:$0xf] }
 0x691   : > { %v16604_v51 = vor.u32 %v19731_v16, %v16603_v5  ;;  %v19779_v4 = vld [vmem:[#allocation7 + $0x6b4] sm:$0xf0]  ;;  %v19815_v57 = vld [vmem:[#allocation7 + $0x7dc] sm:$0xf] }
 0x692   : > { %8858 = vmatpush.bf16.msrb.mxu3 %v16156_v28  ;;  %8871 = vmatpush.bf16.msrb.mxu1 %v16412_v18  ;;  %v8569_v27 = vpop.f32.mrf.mxu1  ;;  %v25936_v41 = vadd.f32 %v8567_v54, %v8555_v31  ;;  %v19579_v28 = vld [vmem:[#allocation7 + $0x74] sm:$0xf0]  ;;  %v16668_v18 = vor.u32 %v19747_v42, %v16667_v2  ;;  %v16192_v31 = vor.u32 %v19623_v11, %v16189_v12  ;;  %v16957_v29 = vld [vmem:[#allocation7 + $0x7f8] sm:$0xf0] }
 0x693   : > { %8836 = vmatpush.bf16.msra.mxu2 %v16536_v52  ;;  %v16891_v52 = vld [vmem:[#allocation7 + $0x758] sm:$0xf]  ;;  %v15996_v9 = vor.u32 %v19579_v28, %v15995_v7  ;;  %v16381_v7 = vld [vmem:[#allocation7 + $0x378] sm:$0xf0] }
 0x694   : > { %8849 = vmatpush.bf16.msra.mxu0 %v16792_v0  ;;  %v19803_v0 = vld [vmem:[#allocation7 + $0x774] sm:$0xf0] }
 0x695   : > { %v15963_v54 = vld [vmem:[#allocation7 + $0x18] sm:$0xf]  ;;  %v16892_v62 = vor.u32 %v19803_v0, %v16891_v52 }
 0x696   : > { %8859 = vmatpush.bf16.msrb.mxu3 %v16124_v60  ;;  %8872 = vmatpush.bf16.msrb.mxu1 %v16380_v46  ;;  %v16795_v42 = vld [vmem:[#allocation7 + $0x698] sm:$0xf] }
 0x697   : > { %8837 = vmatpush.bf16.msra.mxu2 %v16504_v19  ;;  %v8556_v21 = vpop.f32.mrf.mxu3  ;;  %v16859_v19 = vld [vmem:[#allocation7 + $0x718] sm:$0xf] }
 0x698   : > { %8850 = vmatpush.bf16.msra.mxu0 %v16760_v6  ;;  %v19795_v6 = vld [vmem:[#allocation7 + $0x734] sm:$0xf0] }
 0x699   : > { %v16860_v24 = vor.u32 %v19795_v6, %v16859_v19  ;;  %v19707_v49 = vld [vmem:[#allocation7 + $0x474] sm:$0xf0] }
 0x69a   : > { %8860 = vmatpush.bf16.msrb.mxu3 %v16092_v14  ;;  %8873 = vmatpush.bf16.msrb.mxu1 %v16348_v17  ;;  %v25940_v60 = vpop.f32.mrf.mxu0  ;;  %v25942_v46 = vpop.f32.mrf.mxu1  ;;  %v16445_v14 = vld [vmem:[#allocation7 + $0x3f8] sm:$0xf0]  ;;  %v15964_v17 = vor.u32 %v19571_v59, %v15963_v54  ;;  %v16763_v52 = vld [vmem:[#allocation7 + $0x658] sm:$0xf] }
 0x69b   : > { %8838 = vmatpush.bf16.msra.mxu2 %v16472_v32  ;;  %v16448_v15 = vor.u32 %v19687_v39, %v16445_v14  ;;  %v19615_v32 = vld [vmem:[#allocation7 + $0x19c] sm:$0xf]  ;;  %v19771_v0 = vld [vmem:[#allocation7 + $0x674] sm:$0xf0] }
 0x69c   : > { %8851 = vmatpush.bf16.msra.mxu0 %v16728_v33  ;;  %v16157_v33 = vld [vmem:[#allocation7 + $0x1b8] sm:$0xf0]  ;;  %v16475_v5 = vld [vmem:[#allocation7 + $0x418] sm:$0xf] }
 0x69d   : > { %v16160_v36 = vor.u32 %v19615_v32, %v16157_v33  ;;  %v19663_v54 = vld [vmem:[#allocation7 + $0x31c] sm:$0xf]  ;;  %v19699_v16 = vld [vmem:[#allocation7 + $0x434] sm:$0xf0] }
 0x69e   : > { %8861 = vmatpush.bf16.msrb.mxu3 %v16060_v30  ;;  %8874 = vmatpush.bf16.msrb.mxu1 %v16316_v35  ;;  %v19679_v30 = vld [vmem:[#allocation7 + $0x39c] sm:$0xf]  ;;  %v16731_v19 = vld [vmem:[#allocation7 + $0x618] sm:$0xf] }
 0x69f   : > { %8883 = vmatpush.bf16.msrb.mxu2 %v16700_v22  ;;  %8852 = vmatmul.bf16.vlgmr.msra.gmra.mxu0 %v25908_v3  ;;  %v25944_v26 = vpop.f32.mrf.mxu2  ;;  %v25946_v13 = vpop.f32.mrf.mxu3  ;;  %v16413_v35 = vld [vmem:[#allocation7 + $0x3b8] sm:$0xf0]  ;;  %v16828_v22 = vor.u32 %v19787_v23, %v16827_v40  ;;  %v19763_v12 = vld [vmem:[#allocation7 + $0x634] sm:$0xf0] }
 0x6a0   : > { %8896 = vmatpush.bf16.msrb.mxu0 %v16956_v43  ;;  %8839 = vmatmul.bf16.vlgmr.msra.gmra.mxu2 %v25906_v56  ;;  %v16539_v43 = vld [vmem:[#allocation7 + $0x498] sm:$0xf]  ;;  %v16416_v2 = vor.u32 %v19679_v30, %v16413_v35  ;;  %v16349_v59 = vld [vmem:[#allocation7 + $0x338] sm:$0xf0] }
 0x6a1   : > { %v16540_v28 = vor.u32 %v19715_v8, %v16539_v43  ;;  %v16352_v11 = vor.u32 %v19663_v54, %v16349_v59  ;;  %v19591_v39 = vld [vmem:[#allocation7 + $0xdc] sm:$0xf] }
 0x6a2   : > { %8862 = vmatpush.bf16.msrb.mxu3 %v16028_v37  ;;  %8875 = vmatpush.bf16.msrb.mxu1 %v16284_v44  ;;  %v8595_v27 = vpop.f32.mrf.mxu0  ;;  %v8621_v50 = vpop.f32.mrf.mxu1  ;;  %v16125_v37 = vld [vmem:[#allocation7 + $0x178] sm:$0xf0] }
 0x6a3   : > { %8884 = vmatpush.bf16.msrb.mxu2 %v16668_v18  ;;  %v19671_v44 = vld [vmem:[#allocation7 + $0x35c] sm:$0xf]  ;;  %v16796_v18 = vor.u32 %v19779_v4, %v16795_v42  ;;  %v16128_v61 = vor.u32 %v19607_v48, %v16125_v37  ;;  %v16960_v27 = vor.u32 %v19815_v57, %v16957_v29 }
 0x6a4   : > { %8897 = vmatpush.bf16.msrb.mxu0 %v16924_v47  ;;  %v16384_v55 = vor.u32 %v19671_v44, %v16381_v7  ;;  %v16061_v14 = vld [vmem:[#allocation7 + $0xf8] sm:$0xf0] }
 0x6a5   : > { %v16064_v40 = vor.u32 %v19591_v39, %v16061_v14  ;;  %v19583_v33 = vld [vmem:[#allocation7 + $0x9c] sm:$0xf]  ;;  %v17159_v39 = vld [vmem:[%s28931_s15 + $0x188] sm:$0xf] }
 0x6a6   : > { %8863 = vmatpush.bf16.msrb.mxu3 %v15996_v9  ;;  %8876 = vmatpush.bf16.msrb.mxu1 %v16252_v20  ;;  %v19599_v9 = vld [vmem:[#allocation7 + $0x11c] sm:$0xf] }
 0x6a7   : > { %8885 = vmatpush.bf16.msrb.mxu2 %v16636_v10  ;;  %v8582_v47 = vpop.f32.mrf.mxu2  ;;  %v8608_v21 = vpop.f32.mrf.mxu3  ;;  %v16093_v20 = vld [vmem:[#allocation7 + $0x138] sm:$0xf0]  ;;  %v16508_v10 = vor.u32 %v19707_v49, %v16507_v1 }
 0x6a8   : > { %8898 = vmatpush.bf16.msrb.mxu0 %v16892_v62  ;;  %v16764_v62 = vor.u32 %v19771_v0, %v16763_v52  ;;  %v16096_v6 = vor.u32 %v19599_v9, %v16093_v20  ;;  %v16029_v30 = vld [vmem:[#allocation7 + $0xb8] sm:$0xf0] }
 0x6a9   : > { %v19743_v43 = vld [vmem:[#allocation7 + $0x59c] sm:$0xf]  ;;  %v16032_v48 = vor.u32 %v19583_v33, %v16029_v30 }
 0x6aa   : > { %8864 = vmatpush.bf16.msrb.mxu3 %v15964_v17  ;;  %8877 = vmatpush.bf16.msrb.mxu1 %v16220_v38  ;;  %v25950_v63 = vpop.f32.mrf.mxu0  ;;  %v19655_v17 = vld [vmem:[#allocation7 + $0x2dc] sm:$0xf] }
 0x6ab   : > { %8886 = vmatpush.bf16.msrb.mxu2 %v16604_v51  ;;  %v16317_v38 = vld [vmem:[#allocation7 + $0x2f8] sm:$0xf0] }
 0x6ac   : > { %8899 = vmatpush.bf16.msrb.mxu0 %v16860_v24  ;;  %v25952_v45 = vpop.f32.mrf.mxu1  ;;  %v19751_v51 = vld [vmem:[#allocation7 + $0x5dc] sm:$0xf]  ;;  %v16320_v23 = vor.u32 %v19655_v17, %v16317_v38  ;;  %v19872_v17 = vld [vmem:[%s28931_s15 + $0x1a0] sm:$0xf0]  ;;  %v17383_v38 = vld [vmem:[%s28931_s15 + $0x348] sm:$0xf] }
 0x6ad   : > { %8865 = vmatmul.bf16.vlgmr.msrb.gmra.mxu3 %v25900_v25  ;;  %8878 = vmatmul.bf16.vlgmr.msrb.gmra.mxu1 %v25902_v53  ;;  %v16701_v24 = vld [vmem:[#allocation7 + $0x5f8] sm:$0xf0] }
 0x6ae   : > { %8909 = vmatpush.bf16.msra.mxu3 %v16192_v31  ;;  %8922 = vmatpush.bf16.msra.mxu1 %v16448_v15  ;;  %v16476_v31 = vor.u32 %v19699_v16, %v16475_v5  ;;  %v16732_v15 = vor.u32 %v19763_v12, %v16731_v19  ;;  %v16704_v35 = vor.u32 %v19751_v51, %v16701_v24  ;;  %v16925_v42 = vld [vmem:[#allocation7 + $0x7b8] sm:$0xf0]  ;;  %v19928_v51 = vld [vmem:[%s28931_s15 + $0x360] sm:$0xf0] }
 0x6af   : > { %8887 = vmatpush.bf16.msrb.mxu2 %v16572_v34  ;;  %v25954_v32 = vpop.f32.mrf.mxu2  ;;  %v19647_v34 = vld [vmem:[#allocation7 + $0x29c] sm:$0xf]  ;;  %v17384_v33 = vor.u32 %v19928_v51, %v17383_v38 }
 0x6b0   : > { %8900 = vmatpush.bf16.msrb.mxu0 %v16828_v22  ;;  %v25956_v50 = vpop.f32.mrf.mxu3  ;;  %v16285_v22 = vld [vmem:[#allocation7 + $0x2b8] sm:$0xf0] }
 0x6b1   : > { %v16288_v37 = vor.u32 %v19647_v34, %v16285_v22  ;;  %v19575_v44 = vld [vmem:[#allocation7 + $0x5c] sm:$0xf]  ;;  %v19865_v34 = vld [vmem:[%s28931_s15 + $0x168] sm:$0xf0]  ;;  %v17355_v22 = vld [vmem:[%s28931_s15 + $0x310] sm:$0xf] }
 0x6b2   : > { %8910 = vmatpush.bf16.msra.mxu3 %v16160_v36  ;;  %8923 = vmatpush.bf16.msra.mxu1 %v16416_v2  ;;  %v8647_v8 = vpop.f32.mrf.mxu0  ;;  %v16669_v36 = vld [vmem:[#allocation7 + $0x5b8] sm:$0xf0] }
 0x6b3   : > { %8888 = vmatpush.bf16.msrb.mxu2 %v16540_v28  ;;  %v19807_v2 = vld [vmem:[#allocation7 + $0x79c] sm:$0xf]  ;;  %v16672_v28 = vor.u32 %v19743_v43, %v16669_v36  ;;  %v19921_v43 = vld [vmem:[%s28931_s15 + $0x328] sm:$0xf0]  ;;  %v7250_v8 = vperm.slane %v25933_v58, 1 }
 0x6b4   : > { %8901 = vmatpush.bf16.msrb.mxu0 %v16796_v18  ;;  %v8673_v4 = vpop.f32.mrf.mxu1  ;;  %v15997_v7 = vld [vmem:[#allocation7 + $0x78] sm:$0xf0]  ;;  %v16928_v18 = vor.u32 %v19807_v2, %v16925_v42 }
 0x6b5   : > { %v19639_v47 = vld [vmem:[#allocation7 + $0x25c] sm:$0xf]  ;;  %v16000_v52 = vor.u32 %v19575_v44, %v15997_v7  ;;  %v17356_v44 = vor.u32 %v19921_v43, %v17355_v22  ;;  %v17019_v43 = vld [vmem:[%s28931_s15 + $0x70] sm:$0xf] }
 0x6b6   : > { %8911 = vmatpush.bf16.msra.mxu3 %v16128_v61  ;;  %8924 = vmatpush.bf16.msra.mxu1 %v16384_v55  ;;  %v16253_v21 = vld [vmem:[#allocation7 + $0x278] sm:$0xf0] }
 0x6b7   : > { %8889 = vmatpush.bf16.msrb.mxu2 %v16508_v10  ;;  %v19735_v1 = vld [vmem:[#allocation7 + $0x55c] sm:$0xf]  ;;  %v16256_v0 = vor.u32 %v19639_v47, %v16253_v21  ;;  %v8634_v9 = vpop.f32.mrf.mxu2  ;;  %v19858_v21 = vld [vmem:[%s28931_s15 + $0x130] sm:$0xf0] }
 0x6b8   : > { %8902 = vmatpush.bf16.msrb.mxu0 %v16764_v62  ;;  %v16637_v49 = vld [vmem:[#allocation7 + $0x578] sm:$0xf0]  ;;  %v8660_v5 = vpop.f32.mrf.mxu3 }
 0x6b9   : > { %v19799_v61 = vld [vmem:[#allocation7 + $0x75c] sm:$0xf]  ;;  %v16640_v10 = vor.u32 %v19735_v1, %v16637_v49  ;;  %v17327_v1 = vld [vmem:[%s28931_s15 + $0x2d8] sm:$0xf]  ;;  %v19914_v49 = vld [vmem:[%s28931_s15 + $0x2f0] sm:$0xf0] }
 0x6ba   : > { %8912 = vmatpush.bf16.msra.mxu3 %v16096_v6  ;;  %8925 = vmatpush.bf16.msra.mxu1 %v16352_v11  ;;  %v16893_v55 = vld [vmem:[#allocation7 + $0x778] sm:$0xf0]  ;;  %v19907_v5 = vld [vmem:[%s28931_s15 + $0x2b8] sm:$0xf0] }
 0x6bb   : > { %8890 = vmatpush.bf16.msrb.mxu2 %v16476_v31  ;;  %v19567_v20 = vld [vmem:[#allocation7 + $0x1c] sm:$0xf]  ;;  %v16896_v62 = vor.u32 %v19799_v61, %v16893_v55 }
 0x6bc   : > { %8903 = vmatpush.bf16.msrb.mxu0 %v16732_v15  ;;  %v15965_v54 = vld [vmem:[#allocation7 + $0x38] sm:$0xf0]  ;;  %v25963_v14 = vpop.f32.mrf.mxu0 }
 0x6bd   : > { %v19631_v59 = vld [vmem:[#allocation7 + $0x21c] sm:$0xf]  ;;  %v15968_v24 = vor.u32 %v19567_v20, %v15965_v54 }
 0x6be   : > { %8913 = vmatpush.bf16.msra.mxu3 %v16064_v40  ;;  %8926 = vmatpush.bf16.msra.mxu1 %v16320_v23  ;;  %v16221_v16 = vld [vmem:[#allocation7 + $0x238] sm:$0xf0]  ;;  %v17160_v23 = vor.u32 %v19872_v17, %v17159_v39 }
 0x6bf   : > { %8935 = vmatpush.bf16.msra.mxu2 %v16704_v35  ;;  %8904 = vmatmul.bf16.vlgmr.msrb.gmra.mxu0 %v25908_v3  ;;  %v19727_v19 = vld [vmem:[#allocation7 + $0x51c] sm:$0xf]  ;;  %v16224_v57 = vor.u32 %v19631_v59, %v16221_v16  ;;  %v8607_v59 = vadd.f32 %v25946_v13, %v7250_v8  ;;  %v19837_v8 = vld [vmem:[%s28931_s15 + $0x88] sm:$0xf0] }
 0x6c0   : > { %8948 = vmatpush.bf16.msra.mxu0 %v16960_v27  ;;  %8891 = vmatmul.bf16.vlgmr.msrb.gmra.mxu2 %v25906_v56  ;;  %v16605_v6 = vld [vmem:[#allocation7 + $0x538] sm:$0xf0]  ;;  %v17131_v27 = vld [vmem:[%s28931_s15 + $0x150] sm:$0xf] }
 0x6c1   : > { %v19791_v11 = vld [vmem:[#allocation7 + $0x71c] sm:$0xf]  ;;  %v16608_v29 = vor.u32 %v19727_v19, %v16605_v6 }
 0x6c2   : > { %8914 = vmatpush.bf16.msra.mxu3 %v16032_v48  ;;  %8927 = vmatpush.bf16.msra.mxu1 %v16288_v37  ;;  %v16861_v12 = vld [vmem:[#allocation7 + $0x738] sm:$0xf0]  ;;  %v17132_v37 = vor.u32 %v19865_v34, %v17131_v27 }
 0x6c3   : > { %8936 = vmatpush.bf16.msra.mxu2 %v16672_v28  ;;  %v16864_v31 = vor.u32 %v19791_v11, %v16861_v12  ;;  %v19719_v15 = vld [vmem:[#allocation7 + $0x4dc] sm:$0xf]  ;;  %v25987_v42 = vpop.f32.mrf.mxu2 }
 0x6c4   : > { %8949 = vmatpush.bf16.msra.mxu0 %v16928_v18  ;;  %v16573_v40 = vld [vmem:[#allocation7 + $0x4f8] sm:$0xf0]  ;;  %v17103_v18 = vld [vmem:[%s28931_s15 + $0x118] sm:$0xf]  ;;  %v8699_v47 = vpop.f32.mrf.mxu0 }
 0x6c5   : > { %v19783_v30 = vld [vmem:[#allocation7 + $0x6dc] sm:$0xf]  ;;  %v16576_v36 = vor.u32 %v19719_v15, %v16573_v40  ;;  %v19900_v15 = vld [vmem:[%s28931_s15 + $0x280] sm:$0xf0]  ;;  %v17607_v40 = vld [vmem:[%s28931_s15 + $0x508] sm:$0xf] }
 0x6c6   : > { %8915 = vmatpush.bf16.msra.mxu3 %v16000_v52  ;;  %8928 = vmatpush.bf16.msra.mxu1 %v16256_v0  ;;  %v16829_v35 = vld [vmem:[#allocation7 + $0x6f8] sm:$0xf0]  ;;  %v17328_v0 = vor.u32 %v19914_v49, %v17327_v1  ;;  %v16991_v1 = vld [vmem:[%s28931_s15 + $0x38] sm:$0xf]  ;;  %v19830_v49 = vld [vmem:[%s28931_s15 + $0x50] sm:$0xf0] }
 0x6c7   : > { %8937 = vmatpush.bf16.msra.mxu2 %v16640_v10  ;;  %v16832_v2 = vor.u32 %v19783_v30, %v16829_v35  ;;  %v19711_v4 = vld [vmem:[#allocation7 + $0x49c] sm:$0xf]  ;;  %v19851_v10 = vld [vmem:[%s28931_s15 + $0xf8] sm:$0xf0]  ;;  %v20040_v30 = vld [vmem:[%s28931_s15 + $0x6e0] sm:$0xf0] }
 0x6c8   : > { %8950 = vmatpush.bf16.msra.mxu0 %v16896_v62  ;;  %v16541_v48 = vld [vmem:[#allocation7 + $0x4b8] sm:$0xf0] }
 0x6c9   : > { %v19775_v7 = vld [vmem:[#allocation7 + $0x69c] sm:$0xf]  ;;  %v16544_v61 = vor.u32 %v19711_v4, %v16541_v48  ;;  %v19893_v4 = vld [vmem:[%s28931_s15 + $0x248] sm:$0xf0]  ;;  %v17579_v48 = vld [vmem:[%s28931_s15 + $0x4d0] sm:$0xf] }
 0x6ca   : > { %8916 = vmatpush.bf16.msra.mxu3 %v15968_v24  ;;  %8929 = vmatpush.bf16.msra.mxu1 %v16224_v57  ;;  %v16797_v28 = vld [vmem:[#allocation7 + $0x6b8] sm:$0xf0]  ;;  %v26016_v16 = vpop.f32.mrf.mxu1  ;;  %v17047_v24 = vld [vmem:[%s28931_s15 + $0xa8] sm:$0xf]  ;;  %v19844_v57 = vld [vmem:[%s28931_s15 + $0xc0] sm:$0xf0] }
 0x6cb   : > { %8938 = vmatpush.bf16.msra.mxu2 %v16608_v29  ;;  %v16800_v55 = vor.u32 %v19775_v7, %v16797_v28  ;;  %v16509_v52 = vld [vmem:[#allocation7 + $0x478] sm:$0xf0]  ;;  %v8686_v11 = vpop.f32.mrf.mxu2  ;;  %v8620_v29 = vadd.f32 %v25942_v46, %v8607_v59  ;;  %v17831_v46 = vld [vmem:[%s28931_s15 + $0x6c8] sm:$0xf]  ;;  %v19977_v7 = vld [vmem:[%s28931_s15 + $0x4e8] sm:$0xf0] }
 0x6cc   : > { %8951 = vmatpush.bf16.msra.mxu0 %v16864_v31  ;;  %v19767_v9 = vld [vmem:[#allocation7 + $0x65c] sm:$0xf]  ;;  %v17271_v31 = vld [vmem:[%s28931_s15 + $0x268] sm:$0xf]  ;;  %v17803_v28 = vld [vmem:[%s28931_s15 + $0x690] sm:$0xf] }
 0x6cd   : > { %8917 = vmatmul.bf16.vlgmr.msra.gmra.mxu3 %v25900_v25  ;;  %8930 = vmatmul.bf16.vlgmr.msra.gmra.mxu1 %v25902_v53  ;;  %v19703_v25 = vld [vmem:[#allocation7 + $0x45c] sm:$0xf]  ;;  %v17104_v53 = vor.u32 %v19858_v21, %v17103_v18  ;;  %v8633_v35 = vadd.f32 %v25954_v32, %v8620_v29  ;;  %v17243_v32 = vld [vmem:[%s28931_s15 + $0x230] sm:$0xf]  ;;  %v20033_v18 = vld [vmem:[%s28931_s15 + $0x6a8] sm:$0xf0] }
 0x6ce   : > { %11809 = vmatpush.bf16.msrb.mxu3 %v17160_v23  ;;  %11822 = vmatpush.bf16.msrb.mxu1 %v17384_v33  ;;  %v16765_v20 = vld [vmem:[#allocation7 + $0x678] sm:$0xf0]  ;;  %v16512_v19 = vor.u32 %v19703_v25, %v16509_v52  ;;  %v8581_v23 = vadd.f32 %v25944_v26, %v25936_v41  ;;  %v19984_v33 = vld [vmem:[%s28931_s15 + $0x520] sm:$0xf0]  ;;  %v17048_v41 = vor.u32 %v19844_v57, %v17047_v24  ;;  %v19886_v25 = vld [vmem:[%s28931_s15 + $0x210] sm:$0xf0] }
 0x6cf   : > { %8939 = vmatpush.bf16.msra.mxu2 %v16576_v36  ;;  %v17075_v54 = vld [vmem:[%s28931_s15 + $0xe0] sm:$0xf]  ;;  %v16768_v6 = vor.u32 %v19767_v9, %v16765_v20  ;;  %v17272_v26 = vor.u32 %v19900_v15, %v17271_v31  ;;  %v17608_v36 = vor.u32 %v19984_v33, %v17607_v40  ;;  %v8646_v47 = vadd.f32 %v25950_v63, %v8633_v35  ;;  %v17215_v63 = vld [vmem:[%s28931_s15 + $0x1f8] sm:$0xf]  ;;  %v20026_v9 = vld [vmem:[%s28931_s15 + $0x670] sm:$0xf0] }
 0x6d0   : > { %8952 = vmatpush.bf16.msra.mxu0 %v16832_v2  ;;  %v17299_v62 = vld [vmem:[%s28931_s15 + $0x2a0] sm:$0xf]  ;;  %v17076_v17 = vor.u32 %v19851_v10, %v17075_v54  ;;  %v8710_v22 = vpop.f32.mrf.mxu3  ;;  %v17832_v2 = vor.u32 %v20040_v30, %v17831_v46  ;;  %v17244_v21 = vor.u32 %v19893_v4, %v17243_v32  ;;  %v17551_v52 = vld [vmem:[%s28931_s15 + $0x498] sm:$0xf]  ;;  %v7251_v20 = vperm.slane %v25933_v58, 2 }
 0x6d1   : > { %v19695_v13 = vld [vmem:[#allocation7 + $0x41c] sm:$0xf]  ;;  %v17300_v38 = vor.u32 %v19907_v5, %v17299_v62  ;;  %v7252_v54 = vperm.slane %v25933_v58, 3  ;;  %v19823_v62 = vld [vmem:[%s28931_s15 + $0x18] sm:$0xf0] }
 0x6d2   : > { %11810 = vmatpush.bf16.msrb.mxu3 %v17132_v37  ;;  %11823 = vmatpush.bf16.msrb.mxu1 %v17356_v44  ;;  %v16477_v12 = vld [vmem:[#allocation7 + $0x438] sm:$0xf0]  ;;  %v8594_v37 = vadd.f32 %v25940_v60, %v8581_v23  ;;  %v8725_v44 = vpop.f32.mrf.mxu1  ;;  %v17020_v60 = vor.u32 %v19837_v8, %v17019_v43  ;;  %v20096_v24 = vld [vmem:[%s28931_s15 + $0x8a0] sm:$0xf0]  ;;  %v18279_v57 = vld [vmem:[%s28931_s15 + $0xa48] sm:$0xf] }
 0x6d3   : > { %8940 = vmatpush.bf16.msra.mxu2 %v16544_v61  ;;  %v19759_v39 = vld [vmem:[#allocation7 + $0x61c] sm:$0xf]  ;;  %v16480_v27 = vor.u32 %v19695_v13, %v16477_v12  ;;  %v17580_v61 = vor.u32 %v19977_v7, %v17579_v48  ;;  %v19963_v13 = vld [vmem:[%s28931_s15 + $0x478] sm:$0xf0]  ;;  %v20152_v29 = vld [vmem:[%s28931_s15 + $0xa60] sm:$0xf0]  ;;  %v8711_v15 = vadd.f32 %v8710_v22, %v7252_v54 }
 0x6d4   : > { %8953 = vmatpush.bf16.msra.mxu0 %v16800_v55  ;;  %v16733_v51 = vld [vmem:[#allocation7 + $0x638] sm:$0xf0]  ;;  %v17804_v55 = vor.u32 %v20033_v18, %v17803_v28  ;;  %20384 = vtanh.f32 %v8594_v37  ;;  %v17495_v30 = vld [vmem:[%s28931_s15 + $0x428] sm:$0xf]  ;;  %v19956_v35 = vld [vmem:[%s28931_s15 + $0x440] sm:$0xf0]  ;;  %v18280_v22 = vor.u32 %v20152_v29, %v18279_v57 }
 0x6d5   : > { %v16736_v34 = vor.u32 %v19759_v39, %v16733_v51  ;;  %20386 = vtanh.f32 %v8646_v47  ;;  %v16963_v10 = vld [vmem:[%s28931_s15] sm:$0xf]  ;;  %v20019_v39 = vld [vmem:[%s28931_s15 + $0x638] sm:$0xf0]  ;;  %v20089_v8 = vld [vmem:[%s28931_s15 + $0x868] sm:$0xf0]  ;;  %v17496_v37 = vor.u32 %v19956_v35, %v17495_v30 }
 0x6d6   : > { %11811 = vmatpush.bf16.msrb.mxu3 %v17104_v53  ;;  %11824 = vmatpush.bf16.msrb.mxu1 %v17328_v0  ;;  %v19970_v53 = vld [vmem:[%s28931_s15 + $0x4b0] sm:$0xf0]  ;;  %v17775_v0 = vld [vmem:[%s28931_s15 + $0x658] sm:$0xf]  ;;  %v17187_v5 = vld [vmem:[%s28931_s15 + $0x1c0] sm:$0xf]  ;;  %v16964_v40 = vor.u32 %v19823_v62, %v16963_v10 }
 0x6d7   : > { %8941 = vmatpush.bf16.msra.mxu2 %v16512_v19  ;;  %v17552_v58 = vor.u32 %v19970_v53, %v17551_v52  ;;  %v17776_v19 = vor.u32 %v20026_v9, %v17775_v0  ;;  %v17523_v11 = vld [vmem:[%s28931_s15 + $0x460] sm:$0xf]  ;;  %v17467_v28 = vld [vmem:[%s28931_s15 + $0x3f0] sm:$0xf]  ;;  %v19949_v18 = vld [vmem:[%s28931_s15 + $0x408] sm:$0xf0] }
 0x6d8   : > { %8954 = vmatpush.bf16.msra.mxu0 %v16768_v6  ;;  %v8712_v59 = vpop.f32.mrf.mxu3  ;;  %v19879_v6 = vld [vmem:[%s28931_s15 + $0x1d8] sm:$0xf0]  ;;  %v17747_v12 = vld [vmem:[%s28931_s15 + $0x620] sm:$0xf]  ;;  %v17524_v33 = vor.u32 %v19963_v13, %v17523_v11  ;;  %v17468_v53 = vor.u32 %v19949_v18, %v17467_v28  ;;  %v17439_v9 = vld [vmem:[%s28931_s15 + $0x3b8] sm:$0xf] }
 0x6d9   : > { %v17188_v23 = vor.u32 %v19879_v6, %v17187_v5  ;;  %v17748_v46 = vor.u32 %v20019_v39, %v17747_v12  ;;  %v20075_v10 = vld [vmem:[%s28931_s15 + $0x7f8] sm:$0xf0]  ;;  %v18195_v62 = vld [vmem:[%s28931_s15 + $0x9a0] sm:$0xf]  ;;  %v20068_v57 = vld [vmem:[%s28931_s15 + $0x7c0] sm:$0xf0] }
 0x6da   : > { %11812 = vmatpush.bf16.msrb.mxu3 %v17076_v17  ;;  %11825 = vmatpush.bf16.msrb.mxu1 %v17300_v38  ;;  %v18055_v17 = vld [vmem:[%s28931_s15 + $0x888] sm:$0xf]  ;;  %v8659_v38 = vadd.f32 %v25956_v50, %v7251_v20  ;;  %v20385_v31 = vpop.eup %20384  ;;  %v19942_v20 = vld [vmem:[%s28931_s15 + $0x3d0] sm:$0xf0]  ;;  %v20131_v5 = vld [vmem:[%s28931_s15 + $0x9b8] sm:$0xf0] }
 0x6db   : > { %8942 = vmatpush.bf16.msra.mxu2 %v16480_v27  ;;  %v20387_v50 = vpop.eup %20386  ;;  %v18056_v27 = vor.u32 %v20096_v24, %v18055_v17  ;;  %v26162_v32 = vpack.c.bf16 %v20385_v31, %v20385_v31  ;;  %v17411_v13 = vld [vmem:[%s28931_s15 + $0x380] sm:$0xf]  ;;  %v19935_v12 = vld [vmem:[%s28931_s15 + $0x398] sm:$0xf0]  ;;  %v18196_v24 = vor.u32 %v20131_v5, %v18195_v62  ;;  %v18167_v29 = vld [vmem:[%s28931_s15 + $0x968] sm:$0xf] }
 0x6dc   : > { %8955 = vmatpush.bf16.msra.mxu0 %v16736_v34  ;;  %v8749_v51 = vpop.f32.mrf.mxu0  ;;  %v17719_v34 = vld [vmem:[%s28931_s15 + $0x5e8] sm:$0xf]  ;;  %v8672_v43 = vadd.f32 %v25952_v45, %v8659_v38  ;;  %v26164_v4 = vpack.c.bf16 %v20387_v50, %v20387_v50  ;;  %v8724_v45 = vadd.f32 %v26016_v16, %v8711_v15  ;;  %v20005_v16 = vld [vmem:[%s28931_s15 + $0x5c8] sm:$0xf0]  ;;  %v17635_v17 = vld [vmem:[%s28931_s15 + $0x540] sm:$0xf] }
 0x6dd   : > { %v19991_v38 = vld [vmem:[%s28931_s15 + $0x558] sm:$0xf0]  ;;  %v20124_v31 = vld [vmem:[%s28931_s15 + $0x980] sm:$0xf0]  ;;  %v18503_v35 = vld [vmem:[%s28931_s15 + $0xc08] sm:$0xf] }
 0x6de   : > { %11813 = vmatpush.bf16.msrb.mxu3 %v17048_v41  ;;  %11826 = vmatpush.bf16.msrb.mxu1 %v17272_v26  ;;  %v20012_v41 = vld [vmem:[%s28931_s15 + $0x600] sm:$0xf0]  ;;  %v18027_v26 = vld [vmem:[%s28931_s15 + $0x850] sm:$0xf]  ;;  %v8685_v48 = vadd.f32 %v25987_v42, %v8672_v43  ;;  %v18168_v30 = vor.u32 %v20124_v31, %v18167_v29  ;;  %v20054_v28 = vld [vmem:[%s28931_s15 + $0x750] sm:$0xf0] }
 0x6df   : > { %11835 = vmatpush.bf16.msrb.mxu2 %v17608_v36  ;;  %8956 = vmatmul.bf16.vlgmr.msra.gmra.mxu0 %v25908_v3  ;;  %v17216_v3 = vor.u32 %v19886_v25, %v17215_v63  ;;  %v18251_v36 = vld [vmem:[%s28931_s15 + $0xa10] sm:$0xf]  ;;  %v17720_v44 = vor.u32 %v20012_v41, %v17719_v34  ;;  %v20138_v63 = vld [vmem:[%s28931_s15 + $0x9f0] sm:$0xf0]  ;;  %v20061_v41 = vld [vmem:[%s28931_s15 + $0x788] sm:$0xf0] }
 0x6e0   : > { %11848 = vmatpush.bf16.msrb.mxu0 %v17832_v2  ;;  %8943 = vmatmul.bf16.vlgmr.msra.gmra.mxu2 %v25906_v56  ;;  %v16992_v56 = vor.u32 %v19830_v49, %v16991_v1  ;;  %v20145_v2 = vld [vmem:[%s28931_s15 + $0xa28] sm:$0xf0]  ;;  %v17691_v42 = vld [vmem:[%s28931_s15 + $0x5b0] sm:$0xf]  ;;  %v8698_v52 = vadd.f32 %v25963_v14, %v8685_v48  ;;  %v19998_v14 = vld [vmem:[%s28931_s15 + $0x590] sm:$0xf0] }
 0x6e1   : > { %v18252_v1 = vor.u32 %v20145_v2, %v18251_v36  ;;  %v17692_v0 = vor.u32 %v20005_v16, %v17691_v42  ;;  %v17887_v48 = vld [vmem:[%s28931_s15 + $0x738] sm:$0xf]  ;;  %v26290_v42 = vld [vmem:[%s28930_s14] sm:$0xff]  ;;  %v20187_v5 = vld [vmem:[%s28931_s15 + $0xb78] sm:$0xf0] }
 0x6e2   : > { %11814 = vmatpush.bf16.msrb.mxu3 %v17020_v60  ;;  %11827 = vmatpush.bf16.msrb.mxu1 %v17244_v21  ;;  %v18028_v60 = vor.u32 %v20089_v8, %v18027_v26  ;;  %v17999_v21 = vld [vmem:[%s28931_s15 + $0x818] sm:$0xf]  ;;  %v18139_v26 = vld [vmem:[%s28931_s15 + $0x930] sm:$0xf]  ;;  %v7253_v16 = vperm.slane %v26290_v42, 4 }
 0x6e3   : > { %11836 = vmatpush.bf16.msrb.mxu2 %v17580_v61  ;;  %v8736_v7 = vpop.f32.mrf.mxu2  ;;  %v20082_v61 = vld [vmem:[%s28931_s15 + $0x830] sm:$0xf0]  ;;  %v18111_v18 = vld [vmem:[%s28931_s15 + $0x8f8] sm:$0xf]  ;;  %v18419_v62 = vld [vmem:[%s28931_s15 + $0xb60] sm:$0xf] }
 0x6e4   : > { %11849 = vmatpush.bf16.msrb.mxu0 %v17804_v55  ;;  %v8737_v47 = vadd.f32 %v8736_v7, %v8724_v45  ;;  %v8751_v49 = vpop.f32.mrf.mxu0  ;;  %v18223_v55 = vld [vmem:[%s28931_s15 + $0x9d8] sm:$0xf]  ;;  %v18000_v54 = vor.u32 %v20082_v61, %v17999_v21  ;;  %v20201_v7 = vld [vmem:[%s28931_s15 + $0xbe8] sm:$0xf0]  ;;  %v17859_v21 = vld [vmem:[%s28931_s15 + $0x700] sm:$0xf] }
 0x6e5   : > { %v18224_v59 = vor.u32 %v20138_v63, %v18223_v55  ;;  %v20047_v61 = vld [vmem:[%s28931_s15 + $0x718] sm:$0xf0]  ;;  %v18447_v63 = vld [vmem:[%s28931_s15 + $0xb98] sm:$0xf] }
 0x6e6   : > { %11815 = vmatpush.bf16.msrb.mxu3 %v16992_v56  ;;  %11828 = vmatpush.bf16.msrb.mxu1 %v17216_v3  ;;  %v8750_v25 = vadd.f32 %v8749_v51, %v8737_v47  ;;  %v17663_v56 = vld [vmem:[%s28931_s15 + $0x578] sm:$0xf]  ;;  %v17971_v3 = vld [vmem:[%s28931_s15 + $0x7e0] sm:$0xf]  ;;  %v17943_v51 = vld [vmem:[%s28931_s15 + $0x7a8] sm:$0xf] }
 0x6e7   : > { %11837 = vmatpush.bf16.msrb.mxu2 %v17552_v58  ;;  %v17664_v6 = vor.u32 %v19998_v14, %v17663_v56  ;;  %v17972_v39 = vor.u32 %v20075_v10, %v17971_v3  ;;  %v17944_v50 = vor.u32 %v20068_v57, %v17943_v51  ;;  %v20110_v47 = vld [vmem:[%s28931_s15 + $0x910] sm:$0xf0]  ;;  %v17385_v56 = vld [vmem:[%s28931_s15 + $0x364] sm:$0xf0]  ;;  %v19855_v31 = vld [vmem:[%s28931_s15 + $0x11c] sm:$0xf] }
 0x6e8   : > { %11850 = vmatpush.bf16.msrb.mxu0 %v17776_v19  ;;  %20388 = vtanh.f32 %v8750_v25  ;;  %v17440_v19 = vor.u32 %v19942_v20, %v17439_v9  ;;  %v18112_v55 = vor.u32 %v20110_v47, %v18111_v18  ;;  %v20194_v25 = vld [vmem:[%s28931_s15 + $0xbb0] sm:$0xf0]  ;;  %v17161_v20 = vld [vmem:[%s28931_s15 + $0x1a4] sm:$0xf0]  ;;  %v19841_v18 = vld [vmem:[%s28931_s15 + $0xac] sm:$0xf] }
 0x6e9   : > { %20390 = vtanh.f32 %v8698_v52  ;;  %v19869_v52 = vld [vmem:[%s28931_s15 + $0x18c] sm:$0xf]  ;;  %v18448_v9 = vor.u32 %v20194_v25, %v18447_v63  ;;  %v18391_v51 = vld [vmem:[%s28931_s15 + $0xb28] sm:$0xf]  ;;  %v18307_v63 = vld [vmem:[%s28931_s15 + $0xa80] sm:$0xf] }
 0x6ea   : > { %11816 = vmatpush.bf16.msrb.mxu3 %v16964_v40  ;;  %11829 = vmatpush.bf16.msrb.mxu1 %v17188_v23  ;;  %v26219_v58 = vpop.f32.mrf.mxu1  ;;  %v17412_v40 = vor.u32 %v19935_v12, %v17411_v13  ;;  %v17636_v23 = vor.u32 %v19991_v38, %v17635_v17  ;;  %v17133_v13 = vld [vmem:[%s28931_s15 + $0x16c] sm:$0xf0]  ;;  %v19918_v12 = vld [vmem:[%s28931_s15 + $0x314] sm:$0xf]  ;;  %v18420_v17 = vor.u32 %v20187_v5, %v18419_v62  ;;  %v20159_v25 = vld [vmem:[%s28931_s15 + $0xa98] sm:$0xf0] }
 0x6eb   : > { %11838 = vmatpush.bf16.msrb.mxu2 %v17524_v33  ;;  %v8738_v11 = vpop.f32.mrf.mxu2  ;;  %v17609_v62 = vld [vmem:[%s28931_s15 + $0x524] sm:$0xf0] }
 0x6ec   : > { %11851 = vmatpush.bf16.msrb.mxu0 %v17748_v46  ;;  %v17915_v46 = vld [vmem:[%s28931_s15 + $0x770] sm:$0xf] }
 0x6ed   : > { %11817 = vmatmul.bf16.vlgmr.msrb.gmra.mxu3 %v26162_v32  ;;  %11830 = vmatmul.bf16.vlgmr.msrb.gmra.mxu1 %v26164_v4  ;;  %v17916_v45 = vor.u32 %v20061_v41, %v17915_v46  ;;  %v19848_v41 = vld [vmem:[%s28931_s15 + $0xe4] sm:$0xf] }
 0x6ee   : > { %11861 = vmatpush.bf16.msra.mxu3 %v18056_v27  ;;  %11874 = vmatpush.bf16.msra.mxu1 %v18280_v22  ;;  %v20389_v15 = vpop.eup %20388  ;;  %v20208_v27 = vld [vmem:[%s28931_s15 + $0xc20] sm:$0xf0]  ;;  %v20117_v22 = vld [vmem:[%s28931_s15 + $0x948] sm:$0xf0] }
 0x6ef   : > { %11839 = vmatpush.bf16.msrb.mxu2 %v17496_v37  ;;  %v20391_v34 = vpop.eup %20390  ;;  %v18504_v43 = vor.u32 %v20208_v27, %v18503_v35  ;;  %v26263_v8 = vpack.c.bf16 %v20389_v15, %v20389_v15  ;;  %v18140_v37 = vor.u32 %v20117_v22, %v18139_v26  ;;  %v18363_v35 = vld [vmem:[%s28931_s15 + $0xaf0] sm:$0xf]  ;;  %v20173_v27 = vld [vmem:[%s28931_s15 + $0xb08] sm:$0xf0]  ;;  %v17077_v22 = vld [vmem:[%s28931_s15 + $0xfc] sm:$0xf0] }
 0x6f0   : > { %11852 = vmatpush.bf16.msrb.mxu0 %v17720_v44  ;;  %v8762_v33 = vpop.f32.mrf.mxu3  ;;  %v26265_v2 = vpack.c.bf16 %v20391_v34, %v20391_v34  ;;  %v18475_v44 = vld [vmem:[%s28931_s15 + $0xbd0] sm:$0xf] }
 0x6f1   : > { %v8763_v3 = vadd.f32 %v8762_v33, %v7253_v16  ;;  %v19897_v16 = vld [vmem:[%s28931_s15 + $0x26c] sm:$0xf] }
 0x6f2   : > { %11862 = vmatpush.bf16.msra.mxu3 %v18028_v60  ;;  %11875 = vmatpush.bf16.msra.mxu1 %v18252_v1  ;;  %v8777_v36 = vpop.f32.mrf.mxu1  ;;  %v18476_v60 = vor.u32 %v20201_v7, %v18475_v44  ;;  %v17888_v1 = vor.u32 %v20054_v28, %v17887_v48  ;;  %v20166_v44 = vld [vmem:[%s28931_s15 + $0xad0] sm:$0xf0]  ;;  %v17080_v28 = vor.u32 %v19848_v41, %v17077_v22  ;;  %v20093_v22 = vld [vmem:[%s28931_s15 + $0x88c] sm:$0xf] }
 0x6f3   : > { %11840 = vmatpush.bf16.msrb.mxu2 %v17468_v53  ;;  %v18083_v53 = vld [vmem:[%s28931_s15 + $0x8c0] sm:$0xf]  ;;  %v8776_v38 = vadd.f32 %v26219_v58, %v8763_v3  ;;  %v17105_v58 = vld [vmem:[%s28931_s15 + $0x134] sm:$0xf0]  ;;  %v18308_v3 = vor.u32 %v20159_v25, %v18307_v63  ;;  %v20236_v63 = vld [vmem:[%s28931_s15 + $0xd00] sm:$0xf0] }
 0x6f4   : > { %11853 = vmatpush.bf16.msrb.mxu0 %v17692_v0  ;;  %v20103_v0 = vld [vmem:[%s28931_s15 + $0x8d8] sm:$0xf0]  ;;  %v17108_v34 = vor.u32 %v19855_v31, %v17105_v58  ;;  %v17301_v36 = vld [vmem:[%s28931_s15 + $0x2bc] sm:$0xf0]  ;;  %v19953_v25 = vld [vmem:[%s28931_s15 + $0x42c] sm:$0xf] }
 0x6f5   : > { %v18084_v10 = vor.u32 %v20103_v0, %v18083_v53  ;;  %v16965_v58 = vld [vmem:[%s28931_s15 + $0x1c] sm:$0xf0] }
 0x6f6   : > { %11863 = vmatpush.bf16.msra.mxu3 %v18000_v54  ;;  %11876 = vmatpush.bf16.msra.mxu1 %v18224_v59  ;;  %v19925_v54 = vld [vmem:[%s28931_s15 + $0x34c] sm:$0xf]  ;;  %v17860_v59 = vor.u32 %v20047_v61, %v17859_v21  ;;  %v17273_v21 = vld [vmem:[%s28931_s15 + $0x284] sm:$0xf0]  ;;  %v19834_v61 = vld [vmem:[%s28931_s15 + $0x74] sm:$0xf] }
 0x6f7   : > { %11841 = vmatpush.bf16.msrb.mxu2 %v17440_v19  ;;  %v17164_v19 = vor.u32 %v19869_v52, %v17161_v20  ;;  %v17388_v11 = vor.u32 %v19925_v54, %v17385_v56  ;;  %v17276_v0 = vor.u32 %v19897_v16, %v17273_v21  ;;  %v18727_v20 = vld [vmem:[%s28931_s15 + $0xdc8] sm:$0xf]  ;;  %v20264_v54 = vld [vmem:[%s28931_s15 + $0xde0] sm:$0xf0]  ;;  %v17525_v21 = vld [vmem:[%s28931_s15 + $0x47c] sm:$0xf0] }
 0x6f8   : > { %11854 = vmatpush.bf16.msrb.mxu0 %v17664_v6  ;;  %v8764_v49 = vpop.f32.mrf.mxu3  ;;  %v19862_v6 = vld [vmem:[%s28931_s15 + $0x154] sm:$0xf] }
 0x6f9   : > { %v17136_v29 = vor.u32 %v19862_v6, %v17133_v13  ;;  %v19827_v6 = vld [vmem:[%s28931_s15 + $0x3c] sm:$0xf] }
 0x6fa   : > { %11864 = vmatpush.bf16.msra.mxu3 %v17972_v39  ;;  %11877 = vmatpush.bf16.msra.mxu1 %v18196_v24  ;;  %v17357_v39 = vld [vmem:[%s28931_s15 + $0x32c] sm:$0xf0]  ;;  %v20180_v24 = vld [vmem:[%s28931_s15 + $0xb40] sm:$0xf0] }
 0x6fb   : > { %11842 = vmatpush.bf16.msrb.mxu2 %v17412_v40  ;;  %v17360_v15 = vor.u32 %v19918_v12, %v17357_v39  ;;  %v18392_v33 = vor.u32 %v20180_v24, %v18391_v51  ;;  %v18699_v39 = vld [vmem:[%s28931_s15 + $0xd90] sm:$0xf]  ;;  %v19883_v51 = vld [vmem:[%s28931_s15 + $0x1fc] sm:$0xf]  ;;  %v17217_v24 = vld [vmem:[%s28931_s15 + $0x214] sm:$0xf0] }
 0x6fc   : > { %11855 = vmatpush.bf16.msrb.mxu0 %v17636_v23  ;;  %v8801_v14 = vpop.f32.mrf.mxu0  ;;  %v19911_v23 = vld [vmem:[%s28931_s15 + $0x2dc] sm:$0xf] }
 0x6fe   : > { %11865 = vmatpush.bf16.msra.mxu3 %v17944_v50  ;;  %11878 = vmatpush.bf16.msra.mxu1 %v18168_v30  ;;  %v17329_v50 = vld [vmem:[%s28931_s15 + $0x2f4] sm:$0xf0] }
 0x6ff   : > { %11887 = vmatpush.bf16.msra.mxu2 %v18504_v43  ;;  %11856 = vmatmul.bf16.vlgmr.msrb.gmra.mxu0 %v26263_v8  ;;  %v17332_v26 = vor.u32 %v19911_v23, %v17329_v50  ;;  %v19904_v43 = vld [vmem:[%s28931_s15 + $0x2a4] sm:$0xf]  ;;  %v17220_v50 = vor.u32 %v19883_v51, %v17217_v24  ;;  %v20222_v51 = vld [vmem:[%s28931_s15 + $0xc90] sm:$0xf0]  ;;  %v19939_v24 = vld [vmem:[%s28931_s15 + $0x3bc] sm:$0xf] }
 0x700   : > { %11843 = vmatmul.bf16.vlgmr.msrb.gmra.mxu2 %v26265_v2  ;;  %v17304_v47 = vor.u32 %v19904_v43, %v17301_v36  ;;  %v18057_v43 = vld [vmem:[%s28931_s15 + $0x8a4] sm:$0xf0] }
 0x702   : > { %11866 = vmatpush.bf16.msra.mxu3 %v17916_v45  ;;  %11879 = vmatpush.bf16.msra.mxu1 %v18140_v37  ;;  %v18364_v45 = vor.u32 %v20173_v27, %v18363_v35  ;;  %v18335_v37 = vld [vmem:[%s28931_s15 + $0xab8] sm:$0xf]  ;;  %v19876_v27 = vld [vmem:[%s28931_s15 + $0x1c4] sm:$0xf] }
 0x703   : > { %11888 = vmatpush.bf16.msra.mxu2 %v18476_v60  ;;  %v8788_v57 = vpop.f32.mrf.mxu2  ;;  %v17049_v60 = vld [vmem:[%s28931_s15 + $0xc4] sm:$0xf0] }
 0x704   : > { %v8789_v40 = vadd.f32 %v8788_v57, %v8776_v38  ;;  %v8803_v46 = vpop.f32.mrf.mxu0  ;;  %v17052_v53 = vor.u32 %v19841_v18, %v17049_v60  ;;  %v19974_v38 = vld [vmem:[%s28931_s15 + $0x4d4] sm:$0xf]  ;;  %v19960_v18 = vld [vmem:[%s28931_s15 + $0x464] sm:$0xf]  ;;  %v18060_v60 = vor.u32 %v20093_v22, %v18057_v43  ;;  %v17917_v43 = vld [vmem:[%s28931_s15 + $0x78c] sm:$0xf0] }
 0x705   : > { %v20250_v46 = vld [vmem:[%s28931_s15 + $0xd70] sm:$0xf0] }
 0x706   : > { %11867 = vmatpush.bf16.msra.mxu3 %v17888_v1  ;;  %11880 = vmatpush.bf16.msra.mxu1 %v18112_v55  ;;  %v8802_v30 = vadd.f32 %v8801_v14, %v8789_v40  ;;  %v18336_v1 = vor.u32 %v20166_v44, %v18335_v37  ;;  %v17021_v55 = vld [vmem:[%s28931_s15 + $0x8c] sm:$0xf0]  ;;  %v19820_v40 = vld [vmem:[%s28931_s15 + $0x4] sm:$0xf] }
 0x707   : > { %11889 = vmatpush.bf16.msra.mxu2 %v18448_v9  ;;  %v19890_v9 = vld [vmem:[%s28931_s15 + $0x234] sm:$0xf]  ;;  %v17245_v14 = vld [vmem:[%s28931_s15 + $0x24c] sm:$0xf0]  ;;  %v17024_v13 = vor.u32 %v19834_v61, %v17021_v55  ;;  %v16968_v37 = vor.u32 %v19820_v40, %v16965_v58  ;;  %v17528_v61 = vor.u32 %v19960_v18, %v17525_v21  ;;  %v18615_v55 = vld [vmem:[%s28931_s15 + $0xce8] sm:$0xf] }
 0x708   : > { %20392 = vtanh.f32 %v8802_v30  ;;  %v17248_v12 = vor.u32 %v19890_v9, %v17245_v14  ;;  %v19967_v30 = vld [vmem:[%s28931_s15 + $0x49c] sm:$0xf]  ;;  %v18616_v9 = vor.u32 %v20236_v63, %v18615_v55  ;;  %v18001_v14 = vld [vmem:[%s28931_s15 + $0x834] sm:$0xf0]  ;;  %v20037_v18 = vld [vmem:[%s28931_s15 + $0x6cc] sm:$0xf] }
 0x709   : > { %v17441_v40 = vld [vmem:[%s28931_s15 + $0x3d4] sm:$0xf0]  ;;  %v20030_v55 = vld [vmem:[%s28931_s15 + $0x694] sm:$0xf]  ;;  %v17805_v63 = vld [vmem:[%s28931_s15 + $0x6ac] sm:$0xf0] }
 0x70a   : > { %11868 = vmatpush.bf16.msra.mxu3 %v17860_v59  ;;  %11881 = vmatpush.bf16.msra.mxu1 %v18084_v10  ;;  %v26378_v48 = vpop.f32.mrf.mxu1  ;;  %v18728_v59 = vor.u32 %v20264_v54, %v18727_v20  ;;  %v19981_v10 = vld [vmem:[%s28931_s15 + $0x50c] sm:$0xf]  ;;  %v17497_v20 = vld [vmem:[%s28931_s15 + $0x444] sm:$0xf0] }
 0x70b   : > { %11890 = vmatpush.bf16.msra.mxu2 %v18420_v17  ;;  %v8790_v7 = vpop.f32.mrf.mxu2  ;;  %v17612_v5 = vor.u32 %v19981_v10, %v17609_v62  ;;  %v20257_v17 = vld [vmem:[%s28931_s15 + $0xda8] sm:$0xf0]  ;;  %v18587_v10 = vld [vmem:[%s28931_s15 + $0xcb0] sm:$0xf] }
 0x70c   : > { %11900 = vmatpush.bf16.msra.mxu0 %v18728_v59  ;;  %v18700_v57 = vor.u32 %v20257_v17, %v18699_v39  ;;  %v18643_v7 = vld [vmem:[%s28931_s15 + $0xd20] sm:$0xf]  ;;  %v20229_v62 = vld [vmem:[%s28931_s15 + $0xcc8] sm:$0xf0] }
 0x70d   : > { %v17973_v39 = vld [vmem:[%s28931_s15 + $0x7fc] sm:$0xf0] }
 0x70e   : > { %11913 = vmatpush.bf16.msrb.mxu3 %v17164_v19  ;;  %11926 = vmatpush.bf16.msrb.mxu1 %v17388_v11  ;;  %v20393_v49 = vpop.eup %20392  ;;  %v16993_v11 = vld [vmem:[%s28931_s15 + $0x54] sm:$0xf0] }
 0x70f   : > { %11891 = vmatpush.bf16.msra.mxu2 %v18392_v33  ;;  %v26410_v52 = vpack.c.bf16 %v20393_v49, %v20393_v49  ;;  %v16996_v23 = vor.u32 %v19827_v6, %v16993_v11  ;;  %v18671_v33 = vld [vmem:[%s28931_s15 + $0xd58] sm:$0xf]  ;;  %v18029_v49 = vld [vmem:[%s28931_s15 + $0x86c] sm:$0xf0]  ;;  %v18588_v11 = vor.u32 %v20229_v62, %v18587_v10  ;;  %v18197_v10 = vld [vmem:[%s28931_s15 + $0x9bc] sm:$0xf0] }
 0x710   : > { %v8814_v56 = vpop.f32.mrf.mxu3  ;;  %11901 = vmatpush.bf16.msra.mxu0 %v18700_v57  ;;  %v18672_v41 = vor.u32 %v20250_v46, %v18671_v33  ;;  %v18281_v33 = vld [vmem:[%s28931_s15 + $0xa64] sm:$0xf0]  ;;  %v17444_v46 = vor.u32 %v19939_v24, %v17441_v40  ;;  %v20121_v24 = vld [vmem:[%s28931_s15 + $0x96c] sm:$0xf]  ;;  %v17139_v40 = vld [vmem:[%s28931_s15 + $0x158] sm:$0xf] }
 0x711   : > { %11869 = vmatmul.bf16.vlgmr.msra.gmra.mxu3 %v26410_v52 }
 0x712   : > { %11914 = vmatpush.bf16.msrb.mxu3 %v17136_v29  ;;  %11927 = vmatpush.bf16.msrb.mxu1 %v17360_v15  ;;  %v8829_v19 = vpop.f32.mrf.mxu1  ;;  %v17581_v29 = vld [vmem:[%s28931_s15 + $0x4ec] sm:$0xf0]  ;;  %v7254_v15 = vperm.slane %v26290_v42, 5 }
 0x713   : > { %11892 = vmatpush.bf16.msra.mxu2 %v18364_v45  ;;  %v17584_v31 = vor.u32 %v19974_v38, %v17581_v29  ;;  %v18559_v38 = vld [vmem:[%s28931_s15 + $0xc78] sm:$0xf] }
 0x714   : > { %11902 = vmatpush.bf16.msra.mxu0 %v18672_v41 }
 0x716   : > { %11915 = vmatpush.bf16.msrb.mxu3 %v17108_v34  ;;  %11928 = vmatpush.bf16.msrb.mxu1 %v17332_v26  ;;  %v17189_v34 = vld [vmem:[%s28931_s15 + $0x1dc] sm:$0xf0]  ;;  %v17553_v26 = vld [vmem:[%s28931_s15 + $0x4b4] sm:$0xf0] }
 0x717   : > { %11893 = vmatpush.bf16.msra.mxu2 %v18336_v1  ;;  %v17556_v36 = vor.u32 %v19967_v30, %v17553_v26  ;;  %v17192_v44 = vor.u32 %v19876_v27, %v17189_v34  ;;  %v20086_v1 = vld [vmem:[%s28931_s15 + $0x854] sm:$0xf]  ;;  %v20215_v27 = vld [vmem:[%s28931_s15 + $0xc58] sm:$0xf0]  ;;  %v19932_v34 = vld [vmem:[%s28931_s15 + $0x384] sm:$0xf] }
 0x718   : > { %v8816_v35 = vpop.f32.mrf.mxu3  ;;  %v20058_v30 = vld [vmem:[%s28931_s15 + $0x774] sm:$0xf] }
 0x719   : > { %v18531_v35 = vld [vmem:[%s28931_s15 + $0xc40] sm:$0xf] }
 0x71a   : > { %11916 = vmatpush.bf16.msrb.mxu3 %v17080_v28  ;;  %11929 = vmatpush.bf16.msrb.mxu1 %v17304_v47  ;;  %v20243_v28 = vld [vmem:[%s28931_s15 + $0xd38] sm:$0xf0]  ;;  %v8815_v47 = vadd.f32 %v8814_v56, %v7254_v15  ;;  %v18560_v15 = vor.u32 %v20222_v51, %v18559_v38 }
 0x71b   : > { %11894 = vmatpush.bf16.msra.mxu2 %v18308_v3  ;;  %v18644_v16 = vor.u32 %v20243_v28, %v18643_v7  ;;  %v20079_v56 = vld [vmem:[%s28931_s15 + $0x81c] sm:$0xf]  ;;  %v17500_v3 = vor.u32 %v19953_v25, %v17497_v20  ;;  %v18253_v7 = vld [vmem:[%s28931_s15 + $0xa2c] sm:$0xf0]  ;;  %v17889_v25 = vld [vmem:[%s28931_s15 + $0x754] sm:$0xf0] }
 0x71c   : > { %v8853_v45 = vpop.f32.mrf.mxu0  ;;  %v18004_v6 = vor.u32 %v20079_v56, %v18001_v14  ;;  %v20044_v56 = vld [vmem:[%s28931_s15 + $0x704] sm:$0xf]  ;;  %v20023_v14 = vld [vmem:[%s28931_s15 + $0x65c] sm:$0xf] }
 0x71d   : > { %11903 = vmatpush.bf16.msra.mxu0 %v18644_v16 }
 0x71e   : > { %11917 = vmatpush.bf16.msrb.mxu3 %v17052_v53  ;;  %11930 = vmatpush.bf16.msrb.mxu1 %v17276_v0  ;;  %v8828_v53 = vadd.f32 %v26378_v48, %v8815_v47  ;;  %v18032_v0 = vor.u32 %v20086_v1, %v18029_v49  ;;  %v17833_v47 = vld [vmem:[%s28931_s15 + $0x6e4] sm:$0xf0]  ;;  %v17920_v1 = vor.u32 %v20058_v30, %v17917_v43  ;;  %v20114_v30 = vld [vmem:[%s28931_s15 + $0x934] sm:$0xf] }
 0x71f   : > { %11939 = vmatpush.bf16.msrb.mxu2 %v17612_v5  ;;  %v19946_v5 = vld [vmem:[%s28931_s15 + $0x3f4] sm:$0xf]  ;;  %v17836_v16 = vor.u32 %v20037_v18, %v17833_v47  ;;  %v18113_v18 = vld [vmem:[%s28931_s15 + $0x914] sm:$0xf0] }
 0x721   : > { %11904 = vmatpush.bf16.msra.mxu0 %v18616_v9  ;;  %v17808_v9 = vor.u32 %v20030_v55, %v17805_v63  ;;  %v20100_v63 = vld [vmem:[%s28931_s15 + $0x8c4] sm:$0xf] }
 0x722   : > { %11918 = vmatpush.bf16.msrb.mxu3 %v17024_v13  ;;  %11931 = vmatpush.bf16.msrb.mxu1 %v17248_v12  ;;  %v17469_v13 = vld [vmem:[%s28931_s15 + $0x40c] sm:$0xf0]  ;;  %v20072_v12 = vld [vmem:[%s28931_s15 + $0x7e4] sm:$0xf] }
 0x723   : > { %11940 = vmatpush.bf16.msrb.mxu2 %v17584_v31  ;;  %v8840_v54 = vpop.f32.mrf.mxu2  ;;  %v17472_v17 = vor.u32 %v19946_v5, %v17469_v13  ;;  %v17976_v29 = vor.u32 %v20072_v12, %v17973_v39  ;;  %v20065_v31 = vld [vmem:[%s28931_s15 + $0x7ac] sm:$0xf]  ;;  %v7255_v5 = vperm.slane %v26290_v42, 6  ;;  %v20016_v39 = vld [vmem:[%s28931_s15 + $0x624] sm:$0xf] }
 0x724   : > { %v8841_v59 = vadd.f32 %v8840_v54, %v8828_v53  ;;  %v8855_v48 = vpop.f32.mrf.mxu0  ;;  %v20135_v53 = vld [vmem:[%s28931_s15 + $0x9dc] sm:$0xf] }
 0x725   : > { %11905 = vmatpush.bf16.msra.mxu0 %v18588_v11  ;;  %v20128_v48 = vld [vmem:[%s28931_s15 + $0x9a4] sm:$0xf]  ;;  %v19873_v11 = vld [vmem:[%s28931_s15 + $0x1a8] sm:$0xf0] }
 0x726   : > { %11919 = vmatpush.bf16.msrb.mxu3 %v16996_v23  ;;  %11932 = vmatpush.bf16.msrb.mxu1 %v17220_v50  ;;  %v8854_v19 = vadd.f32 %v8853_v45, %v8841_v59  ;;  %v17945_v23 = vld [vmem:[%s28931_s15 + $0x7c4] sm:$0xf0]  ;;  %v20149_v50 = vld [vmem:[%s28931_s15 + $0xa4c] sm:$0xf]  ;;  %v18532_v45 = vor.u32 %v20215_v27, %v18531_v35  ;;  %v17861_v59 = vld [vmem:[%s28931_s15 + $0x71c] sm:$0xf0]  ;;  %v18200_v12 = vor.u32 %v20128_v48, %v18197_v10 }
 0x727   : > { %11941 = vmatpush.bf16.msrb.mxu2 %v17556_v36  ;;  %v17948_v26 = vor.u32 %v20065_v31, %v17945_v23  ;;  %v18284_v22 = vor.u32 %v20149_v50, %v18281_v33  ;;  %v20142_v36 = vld [vmem:[%s28931_s15 + $0xa14] sm:$0xf]  ;;  %v17864_v13 = vor.u32 %v20044_v56, %v17861_v59  ;;  %v20009_v50 = vld [vmem:[%s28931_s15 + $0x5ec] sm:$0xf]  ;;  %v17721_v33 = vld [vmem:[%s28931_s15 + $0x604] sm:$0xf0] }
 0x728   : > { %20394 = vtanh.f32 %v8854_v19  ;;  %v18256_v49 = vor.u32 %v20142_v36, %v18253_v7  ;;  %v18141_v35 = vld [vmem:[%s28931_s15 + $0x94c] sm:$0xf0]  ;;  %v17724_v27 = vor.u32 %v20009_v50, %v17721_v33  ;;  %v19929_v59 = vld [vmem:[%s28931_s15 + $0x368] sm:$0xf0]  ;;  %v19988_v10 = vld [vmem:[%s28931_s15 + $0x544] sm:$0xf] }
 0x729   : > { %11906 = vmatpush.bf16.msra.mxu0 %v18560_v15  ;;  %v18144_v36 = vor.u32 %v20114_v30, %v18141_v35  ;;  %v16999_v50 = vld [vmem:[%s28931_s15 + $0x40] sm:$0xf]  ;;  %v19831_v33 = vld [vmem:[%s28931_s15 + $0x58] sm:$0xf0]  ;;  %v18449_v30 = vld [vmem:[%s28931_s15 + $0xbb4] sm:$0xf0] }
 0x72a   : > { %11920 = vmatpush.bf16.msrb.mxu3 %v16968_v37  ;;  %11933 = vmatpush.bf16.msrb.mxu1 %v17192_v44  ;;  %v26551_v57 = vpop.f32.mrf.mxu1  ;;  %v17413_v37 = vld [vmem:[%s28931_s15 + $0x39c] sm:$0xf0] }
 0x72b   : > { %11942 = vmatpush.bf16.msrb.mxu2 %v17528_v61  ;;  %v8842_v58 = vpop.f32.mrf.mxu2  ;;  %v17416_v28 = vor.u32 %v19932_v34, %v17413_v37  ;;  %v20051_v61 = vld [vmem:[%s28931_s15 + $0x73c] sm:$0xf]  ;;  %v17335_v35 = vld [vmem:[%s28931_s15 + $0x2e0] sm:$0xf] }
 0x72c   : > { %v17892_v20 = vor.u32 %v20051_v61, %v17889_v25  ;;  %v19866_v58 = vld [vmem:[%s28931_s15 + $0x170] sm:$0xf0]  ;;  %v17665_v61 = vld [vmem:[%s28931_s15 + $0x594] sm:$0xf0]  ;;  %v18085_v25 = vld [vmem:[%s28931_s15 + $0x8dc] sm:$0xf0] }
 0x72d   : > { %11921 = vmatmul.bf16.vlgmr.msrb.gmra.mxu3 %v26162_v32  ;;  %11907 = vmatpush.bf16.msra.mxu0 %v18532_v45  ;;  %v17693_v45 = vld [vmem:[%s28931_s15 + $0x5cc] sm:$0xf0]  ;;  %v18088_v48 = vor.u32 %v20100_v63, %v18085_v25  ;;  %v18393_v63 = vld [vmem:[%s28931_s15 + $0xb44] sm:$0xf0] }
 0x72e   : > { %11965 = vmatpush.bf16.msra.mxu3 %v18060_v60  ;;  %v20395_v41 = vpop.eup %20394 }
 0x72f   : > { %11943 = vmatpush.bf16.msrb.mxu2 %v17500_v3  ;;  %v26589_v44 = vpack.c.bf16 %v20395_v41, %v20395_v41  ;;  %v17777_v3 = vld [vmem:[%s28931_s15 + $0x674] sm:$0xf0]  ;;  %v17111_v41 = vld [vmem:[%s28931_s15 + $0x120] sm:$0xf] }
 0x730   : > { %v8866_v60 = vpop.f32.mrf.mxu3  ;;  %v17780_v62 = vor.u32 %v20023_v14, %v17777_v3  ;;  %v18505_v14 = vld [vmem:[%s28931_s15 + $0xc24] sm:$0xf0]  ;;  %v17391_v3 = vld [vmem:[%s28931_s15 + $0x350] sm:$0xf] }
 0x731   : > { %11882 = vmatmul.bf16.vlgmr.msra.gmra.mxu1 %v26589_v44  ;;  %11952 = vmatpush.bf16.msrb.mxu0 %v17836_v16  ;;  %v8867_v15 = vadd.f32 %v8866_v60, %v7255_v5  ;;  %v17083_v16 = vld [vmem:[%s28931_s15 + $0xe8] sm:$0xf] }
 0x732   : > { %11966 = vmatpush.bf16.msra.mxu3 %v18032_v0  ;;  %11978 = vmatpush.bf16.msra.mxu1 %v18284_v22  ;;  %v8881_v21 = vpop.f32.mrf.mxu1  ;;  %v18225_v0 = vld [vmem:[%s28931_s15 + $0x9f4] sm:$0xf0] }
 0x733   : > { %11944 = vmatpush.bf16.msrb.mxu2 %v17472_v17  ;;  %v18228_v54 = vor.u32 %v20135_v53, %v18225_v0  ;;  %v17749_v17 = vld [vmem:[%s28931_s15 + $0x63c] sm:$0xf0]  ;;  %v8880_v34 = vadd.f32 %v26551_v57, %v8867_v15  ;;  %v20002_v57 = vld [vmem:[%s28931_s15 + $0x5b4] sm:$0xf]  ;;  %v19852_v21 = vld [vmem:[%s28931_s15 + $0x100] sm:$0xf0] }
 0x734   : > { %v17752_v31 = vor.u32 %v20016_v39, %v17749_v17  ;;  %v17696_v47 = vor.u32 %v20002_v57, %v17693_v45  ;;  %v17084_v55 = vor.u32 %v19852_v21, %v17083_v16  ;;  %v20198_v39 = vld [vmem:[%s28931_s15 + $0xbd4] sm:$0xf]  ;;  %v20097_v57 = vld [vmem:[%s28931_s15 + $0x8a8] sm:$0xf0]  ;;  %v20184_v45 = vld [vmem:[%s28931_s15 + $0xb64] sm:$0xf] }
 0x735   : > { %11953 = vmatpush.bf16.msrb.mxu0 %v17808_v9  ;;  %v17055_v9 = vld [vmem:[%s28931_s15 + $0xb0] sm:$0xf] }
 0x736   : > { %11967 = vmatpush.bf16.msra.mxu3 %v18004_v6  ;;  %11979 = vmatpush.bf16.msra.mxu1 %v18256_v49  ;;  %v17167_v6 = vld [vmem:[%s28931_s15 + $0x190] sm:$0xf]  ;;  %v19995_v49 = vld [vmem:[%s28931_s15 + $0x57c] sm:$0xf] }
 0x737   : > { %11945 = vmatpush.bf16.msrb.mxu2 %v17444_v46  ;;  %v17168_v51 = vor.u32 %v19873_v11, %v17167_v6  ;;  %v17140_v46 = vor.u32 %v19866_v58, %v17139_v40  ;;  %v17668_v53 = vor.u32 %v19995_v49, %v17665_v61  ;;  %v17392_v11 = vor.u32 %v19929_v59, %v17391_v3  ;;  %v20090_v61 = vld [vmem:[%s28931_s15 + $0x870] sm:$0xf0]  ;;  %v20083_v3 = vld [vmem:[%s28931_s15 + $0x838] sm:$0xf0] }
 0x738   : > { %v8868_v19 = vpop.f32.mrf.mxu3  ;;  %v20170_v59 = vld [vmem:[%s28931_s15 + $0xaf4] sm:$0xf] }
 0x739   : > { %11954 = vmatpush.bf16.msrb.mxu0 %v17780_v62  ;;  %v17637_v62 = vld [vmem:[%s28931_s15 + $0x55c] sm:$0xf0] }
 0x73a   : > { %11968 = vmatpush.bf16.msra.mxu3 %v17976_v29  ;;  %11980 = vmatpush.bf16.msra.mxu1 %v18228_v54  ;;  %v18169_v29 = vld [vmem:[%s28931_s15 + $0x984] sm:$0xf0]  ;;  %v20205_v54 = vld [vmem:[%s28931_s15 + $0xc0c] sm:$0xf] }
 0x73b   : > { %11946 = vmatpush.bf16.msrb.mxu2 %v17416_v28  ;;  %v18172_v23 = vor.u32 %v20121_v24, %v18169_v29  ;;  %v20107_v28 = vld [vmem:[%s28931_s15 + $0x8fc] sm:$0xf]  ;;  %v18508_v6 = vor.u32 %v20205_v54, %v18505_v14  ;;  %v19922_v24 = vld [vmem:[%s28931_s15 + $0x330] sm:$0xf0]  ;;  %v17640_v29 = vor.u32 %v19988_v10, %v17637_v62  ;;  %v17251_v62 = vld [vmem:[%s28931_s15 + $0x238] sm:$0xf] }
 0x73c   : > { %v8905_v38 = vpop.f32.mrf.mxu0 }
 0x73d   : > { %11955 = vmatpush.bf16.msrb.mxu0 %v17752_v31 }
 0x73e   : > { %11969 = vmatpush.bf16.msra.mxu3 %v17948_v26  ;;  %11981 = vmatpush.bf16.msra.mxu1 %v18200_v12  ;;  %v19859_v26 = vld [vmem:[%s28931_s15 + $0x138] sm:$0xf0]  ;;  %v19838_v12 = vld [vmem:[%s28931_s15 + $0x90] sm:$0xf0] }
 0x73f   : > { %v17112_v7 = vor.u32 %v19859_v26, %v17111_v41 }
 0x741   : > { %11934 = vmatmul.bf16.vlgmr.msrb.gmra.mxu1 %v26164_v4  ;;  %11956 = vmatpush.bf16.msrb.mxu0 %v17724_v27  ;;  %v19915_v27 = vld [vmem:[%s28931_s15 + $0x2f8] sm:$0xf0] }
 0x742   : > { %11970 = vmatpush.bf16.msra.mxu3 %v17920_v1  ;;  %11982 = vmatpush.bf16.msra.mxu1 %v18172_v23  ;;  %v18116_v1 = vor.u32 %v20107_v28, %v18113_v18  ;;  %v17336_v26 = vor.u32 %v19915_v27, %v17335_v35  ;;  %v17307_v18 = vld [vmem:[%s28931_s15 + $0x2a8] sm:$0xf]  ;;  %v18309_v35 = vld [vmem:[%s28931_s15 + $0xa9c] sm:$0xf0] }
 0x743   : > { %v8892_v22 = vpop.f32.mrf.mxu2 }
 0x744   : > { %v8893_v43 = vadd.f32 %v8892_v22, %v8880_v34  ;;  %v8907_v37 = vpop.f32.mrf.mxu0  ;;  %v17000_v34 = vor.u32 %v19831_v33, %v16999_v50  ;;  %v16971_v22 = vld [vmem:[%s28931_s15 + $0x8] sm:$0xf]  ;;  %v20069_v50 = vld [vmem:[%s28931_s15 + $0x7c8] sm:$0xf0] }
 0x745   : > { %11957 = vmatpush.bf16.msrb.mxu0 %v17696_v47  ;;  %v18421_v37 = vld [vmem:[%s28931_s15 + $0xb7c] sm:$0xf0]  ;;  %v19908_v47 = vld [vmem:[%s28931_s15 + $0x2c0] sm:$0xf0] }
 0x746   : > { %11971 = vmatpush.bf16.msra.mxu3 %v17892_v20  ;;  %v8906_v60 = vadd.f32 %v8905_v38, %v8893_v43  ;;  %11983 = vmatpush.bf16.msra.mxu1 %v18144_v36  ;;  %v19845_v20 = vld [vmem:[%s28931_s15 + $0xc8] sm:$0xf0]  ;;  %v18477_v38 = vld [vmem:[%s28931_s15 + $0xbec] sm:$0xf0]  ;;  %v19824_v43 = vld [vmem:[%s28931_s15 + $0x20] sm:$0xf0]  ;;  %v18424_v21 = vor.u32 %v20184_v45, %v18421_v37  ;;  %v17308_v49 = vor.u32 %v19908_v47, %v17307_v18 }
 0x747   : > { %v17056_v5 = vor.u32 %v19845_v20, %v17055_v9  ;;  %v18480_v58 = vor.u32 %v20198_v39, %v18477_v38  ;;  %v18063_v36 = vld [vmem:[%s28931_s15 + $0x890] sm:$0xf]  ;;  %v19901_v9 = vld [vmem:[%s28931_s15 + $0x288] sm:$0xf0]  ;;  %v20076_v38 = vld [vmem:[%s28931_s15 + $0x800] sm:$0xf0] }
 0x748   : > { %20396 = vtanh.f32 %v8906_v60  ;;  %v16972_v60 = vor.u32 %v19824_v43, %v16971_v22  ;;  %v18064_v16 = vor.u32 %v20097_v57, %v18063_v36  ;;  %v18729_v43 = vld [vmem:[%s28931_s15 + $0xde4] sm:$0xf0]  ;;  %v17615_v36 = vld [vmem:[%s28931_s15 + $0x510] sm:$0xf]  ;;  %v19985_v57 = vld [vmem:[%s28931_s15 + $0x528] sm:$0xf0] }
 0x749   : > { %11958 = vmatpush.bf16.msrb.mxu0 %v17668_v53  ;;  %v17279_v53 = vld [vmem:[%s28931_s15 + $0x270] sm:$0xf] }
 0x74a   : > { %11972 = vmatpush.bf16.msra.mxu3 %v17864_v13  ;;  %v26713_v0 = vpop.f32.mrf.mxu1  ;;  %11984 = vmatpush.bf16.msra.mxu1 %v18116_v1  ;;  %v17027_v13 = vld [vmem:[%s28931_s15 + $0x78] sm:$0xf]  ;;  %v17280_v14 = vor.u32 %v19901_v9, %v17279_v53  ;;  %v19978_v53 = vld [vmem:[%s28931_s15 + $0x4f0] sm:$0xf0] }
 0x74b   : > { %v8894_v56 = vpop.f32.mrf.mxu2  ;;  %v17028_v15 = vor.u32 %v19838_v12, %v17027_v13  ;;  %v18035_v1 = vld [vmem:[%s28931_s15 + $0x858] sm:$0xf] }
 0x74c   : > { %v18036_v20 = vor.u32 %v20090_v61, %v18035_v1  ;;  %v18007_v56 = vld [vmem:[%s28931_s15 + $0x820] sm:$0xf] }
 0x74d   : > { %11973 = vmatmul.bf16.vlgmr.msra.gmra.mxu3 %v26410_v52  ;;  %11959 = vmatpush.bf16.msrb.mxu0 %v17640_v29 }
 0x74e   : > { %12017 = vmatpush.bf16.msrb.mxu3 %v17168_v51  ;;  %v20397_v19 = vpop.eup %20396  ;;  %v17363_v51 = vld [vmem:[%s28931_s15 + $0x318] sm:$0xf]  ;;  %11985 = vmatpush.bf16.msra.mxu1 %v18088_v48  ;;  %v18365_v48 = vld [vmem:[%s28931_s15 + $0xb0c] sm:$0xf0] }
 0x74f   : > { %v26748_v17 = vpack.c.bf16 %v20397_v19, %v20397_v19  ;;  %v17364_v23 = vor.u32 %v19922_v24, %v17363_v51  ;;  %v18368_v13 = vor.u32 %v20170_v59, %v18365_v48  ;;  %v20163_v51 = vld [vmem:[%s28931_s15 + $0xabc] sm:$0xf]  ;;  %v18337_v24 = vld [vmem:[%s28931_s15 + $0xad4] sm:$0xf0] }
 0x750   : > { %v8918_v31 = vpop.f32.mrf.mxu3  ;;  %v20055_v59 = vld [vmem:[%s28931_s15 + $0x758] sm:$0xf0] }
 0x751   : > { %11895 = vmatmul.bf16.vlgmr.msra.gmra.mxu2 %v26748_v17  ;;  %11986 = vmatmul.bf16.vlgmr.msra.gmra.mxu1 %v26589_v44 }
 0x752   : > { %12018 = vmatpush.bf16.msrb.mxu3 %v17140_v46  ;;  %11991 = vmatpush.bf16.msra.mxu2 %v18508_v6  ;;  %v8933_v40 = vpop.f32.mrf.mxu1  ;;  %v20191_v46 = vld [vmem:[%s28931_s15 + $0xb9c] sm:$0xf] }
 0x753   : > { %12030 = vmatpush.bf16.msrb.mxu1 %v17392_v11  ;;  %v18452_v41 = vor.u32 %v20191_v46, %v18449_v30  ;;  %v18008_v11 = vor.u32 %v20083_v3, %v18007_v56  ;;  %v26870_v46 = vld [vmem:[%s28932_s16] sm:$0x7f]  ;;  %v20146_v56 = vld [vmem:[%s28931_s15 + $0xa30] sm:$0xf0] }
 0x754   : > { %v20156_v30 = vld [vmem:[%s28931_s15 + $0xa84] sm:$0xf]  ;;  %v9491_v18 = vperm.slane %v26870_v46, 0  ;;  %v17895_v3 = vld [vmem:[%s28931_s15 + $0x740] sm:$0xf] }
 0x755   : > { %v18312_v37 = vor.u32 %v20156_v30, %v18309_v35  ;;  %v19964_v30 = vld [vmem:[%s28931_s15 + $0x480] sm:$0xf0] }
 0x756   : > { %12019 = vmatpush.bf16.msrb.mxu3 %v17112_v7  ;;  %11992 = vmatpush.bf16.msra.mxu2 %v18480_v58  ;;  %v7256_v7 = vperm.slane %v26290_v42, 7  ;;  %v18340_v58 = vor.u32 %v20163_v51, %v18337_v24  ;;  %v17867_v51 = vld [vmem:[%s28931_s15 + $0x708] sm:$0xf]  ;;  %v20048_v24 = vld [vmem:[%s28931_s15 + $0x720] sm:$0xf0] }
 0x757   : > { %12031 = vmatpush.bf16.msrb.mxu1 %v17364_v23  ;;  %v17951_v23 = vld [vmem:[%s28931_s15 + $0x7b0] sm:$0xf] }
 0x758   : > { %v8920_v28 = vpop.f32.mrf.mxu3  ;;  %v8919_v25 = vadd.f32 %v8918_v31, %v7256_v7  ;;  %v17223_v31 = vld [vmem:[%s28931_s15 + $0x200] sm:$0xf]  ;;  %v17952_v45 = vor.u32 %v20069_v50, %v17951_v23  ;;  %v18287_v7 = vld [vmem:[%s28931_s15 + $0xa50] sm:$0xf] }
 0x759   : > { %v20153_v28 = vld [vmem:[%s28931_s15 + $0xa68] sm:$0xf0]  ;;  %v18645_v50 = vld [vmem:[%s28931_s15 + $0xd3c] sm:$0xf0] }
 0x75a   : > { %12020 = vmatpush.bf16.msrb.mxu3 %v17084_v55  ;;  %11993 = vmatpush.bf16.msra.mxu2 %v18452_v41  ;;  %v20177_v55 = vld [vmem:[%s28931_s15 + $0xb2c] sm:$0xf]  ;;  %v8932_v10 = vadd.f32 %v26713_v0, %v8919_v25  ;;  %v17979_v0 = vld [vmem:[%s28931_s15 + $0x7e8] sm:$0xf]  ;;  %v19880_v41 = vld [vmem:[%s28931_s15 + $0x1e0] sm:$0xf0] }
 0x75b   : > { %12032 = vmatpush.bf16.msrb.mxu1 %v17336_v26  ;;  %v18396_v54 = vor.u32 %v20177_v55, %v18393_v63  ;;  %v17980_v40 = vor.u32 %v20076_v38, %v17979_v0  ;;  %v20261_v26 = vld [vmem:[%s28931_s15 + $0xdcc] sm:$0xf]  ;;  %v18288_v55 = vor.u32 %v20153_v28, %v18287_v7  ;;  %v18701_v63 = vld [vmem:[%s28931_s15 + $0xdac] sm:$0xf0]  ;;  %v17587_v25 = vld [vmem:[%s28931_s15 + $0x4d8] sm:$0xf] }
 0x75c   : > { %v8957_v42 = vpop.f32.mrf.mxu0  ;;  %v18732_v1 = vor.u32 %v20261_v26, %v18729_v43  ;;  %v20139_v38 = vld [vmem:[%s28931_s15 + $0x9f8] sm:$0xf0]  ;;  %v18617_v28 = vld [vmem:[%s28931_s15 + $0xd04] sm:$0xf0] }
 0x75e   : > { %12021 = vmatpush.bf16.msrb.mxu3 %v17056_v5  ;;  %11994 = vmatpush.bf16.msra.mxu2 %v18424_v21  ;;  %v19894_v5 = vld [vmem:[%s28931_s15 + $0x250] sm:$0xf0] }
 0x75f   : > { %12033 = vmatpush.bf16.msrb.mxu1 %v17308_v49  ;;  %v17252_v39 = vor.u32 %v19894_v5, %v17251_v62  ;;  %v20254_v49 = vld [vmem:[%s28931_s15 + $0xd94] sm:$0xf]  ;;  %v17588_v62 = vor.u32 %v19978_v53, %v17587_v25  ;;  %v20247_v5 = vld [vmem:[%s28931_s15 + $0xd5c] sm:$0xf]  ;;  %v18589_v53 = vld [vmem:[%s28931_s15 + $0xccc] sm:$0xf0] }
 0x761   : > { %11947 = vmatmul.bf16.vlgmr.msrb.gmra.mxu2 %v26265_v2 }
 0x762   : > { %12022 = vmatpush.bf16.msrb.mxu3 %v17028_v15  ;;  %11995 = vmatpush.bf16.msra.mxu2 %v18396_v54  ;;  %v19887_v15 = vld [vmem:[%s28931_s15 + $0x218] sm:$0xf0]  ;;  %v18259_v54 = vld [vmem:[%s28931_s15 + $0xa18] sm:$0xf] }
 0x763   : > { %v8944_v19 = vpop.f32.mrf.mxu2  ;;  %12034 = vmatpush.bf16.msrb.mxu1 %v17280_v14  ;;  %v17224_v33 = vor.u32 %v19887_v15, %v17223_v31  ;;  %v19870_v15 = vld [vmem:[%s28931_s15 + $0x194] sm:$0xf] }
 0x764   : > { %v8945_v6 = vadd.f32 %v8944_v19, %v8932_v10  ;;  %v8959_v12 = vpop.f32.mrf.mxu0  ;;  %v18704_v10 = vor.u32 %v20254_v49, %v18701_v63  ;;  %v18260_v19 = vor.u32 %v20146_v56, %v18259_v54  ;;  %v19856_v49 = vld [vmem:[%s28931_s15 + $0x124] sm:$0xf]  ;;  %v20226_v63 = vld [vmem:[%s28931_s15 + $0xcb4] sm:$0xf]  ;;  %v18147_v54 = vld [vmem:[%s28931_s15 + $0x938] sm:$0xf] }
 0x765   : > { %v17896_v12 = vor.u32 %v20055_v59, %v17895_v3  ;;  %v20118_v56 = vld [vmem:[%s28931_s15 + $0x950] sm:$0xf0] }
 0x766   : > { %12023 = vmatpush.bf16.msrb.mxu3 %v17000_v34  ;;  %v8958_v29 = vadd.f32 %v8957_v42, %v8945_v6  ;;  %11996 = vmatpush.bf16.msra.mxu2 %v18368_v13  ;;  %v17195_v34 = vld [vmem:[%s28931_s15 + $0x1c8] sm:$0xf]  ;;  %v17616_v42 = vor.u32 %v19985_v57, %v17615_v36  ;;  %v18673_v6 = vld [vmem:[%s28931_s15 + $0xd74] sm:$0xf0]  ;;  %v19971_v13 = vld [vmem:[%s28931_s15 + $0x4b8] sm:$0xf0] }
 0x767   : > { %12035 = vmatpush.bf16.msrb.mxu1 %v17252_v39  ;;  %v17196_v47 = vor.u32 %v19880_v41, %v17195_v34  ;;  %v18231_v39 = vld [vmem:[%s28931_s15 + $0x9e0] sm:$0xf]  ;;  %v18203_v34 = vld [vmem:[%s28931_s15 + $0x9a8] sm:$0xf]  ;;  %v20132_v41 = vld [vmem:[%s28931_s15 + $0x9c0] sm:$0xf0] }
 0x768   : > { %20398 = vtanh.f32 %v8958_v29  ;;  %v18676_v29 = vor.u32 %v20247_v5, %v18673_v6  ;;  %v18232_v23 = vor.u32 %v20139_v38, %v18231_v39  ;;  %v19863_v36 = vld [vmem:[%s28931_s15 + $0x15c] sm:$0xf]  ;;  %v17141_v57 = vld [vmem:[%s28931_s15 + $0x174] sm:$0xf0]  ;;  %v18204_v7 = vor.u32 %v20132_v41, %v18203_v34  ;;  %v17085_v5 = vld [vmem:[%s28931_s15 + $0x104] sm:$0xf0] }
 0x769   : > { %v18119_v39 = vld [vmem:[%s28931_s15 + $0x900] sm:$0xf]  ;;  %v20111_v38 = vld [vmem:[%s28931_s15 + $0x918] sm:$0xf0]  ;;  %v17839_v34 = vld [vmem:[%s28931_s15 + $0x6d0] sm:$0xf] }
 0x76a   : > { %12024 = vmatpush.bf16.msrb.mxu3 %v16972_v60  ;;  %v11831_v27 = vpop.f32.mrf.mxu1  ;;  %11997 = vmatpush.bf16.msra.mxu2 %v18340_v58  ;;  %v17923_v60 = vld [vmem:[%s28931_s15 + $0x778] sm:$0xf]  ;;  %v20240_v58 = vld [vmem:[%s28931_s15 + $0xd24] sm:$0xf]  ;;  %v20041_v41 = vld [vmem:[%s28931_s15 + $0x6e8] sm:$0xf0] }
 0x76b   : > { %v8946_v22 = vpop.f32.mrf.mxu2  ;;  %12036 = vmatpush.bf16.msrb.mxu1 %v17224_v33  ;;  %v17531_v33 = vld [vmem:[%s28931_s15 + $0x468] sm:$0xf] }
 0x76c   : > { %v18648_v22 = vor.u32 %v20240_v58, %v18645_v50  ;;  %v17532_v43 = vor.u32 %v19964_v30, %v17531_v33  ;;  %v20212_v58 = vld [vmem:[%s28931_s15 + $0xc44] sm:$0xf]  ;;  %v17419_v50 = vld [vmem:[%s28931_s15 + $0x388] sm:$0xf]  ;;  %v18120_v33 = vor.u32 %v20111_v38, %v18119_v39 }
 0x76d   : > { %12025 = vmatmul.bf16.vlgmr.msrb.gmra.mxu3 %v26162_v32  ;;  %v19936_v30 = vld [vmem:[%s28931_s15 + $0x3a0] sm:$0xf0] }
 0x76e   : > { %12069 = vmatpush.bf16.msra.mxu3 %v18064_v16  ;;  %v20062_v16 = vld [vmem:[%s28931_s15 + $0x790] sm:$0xf0]  ;;  %v20399_v21 = vpop.eup %20398  ;;  %11998 = vmatpush.bf16.msra.mxu2 %v18312_v37 }
 0x76f   : > { %v26912_v61 = vpack.c.bf16 %v20399_v21, %v20399_v21  ;;  %12037 = vmatpush.bf16.msrb.mxu1 %v17196_v47  ;;  %v19957_v47 = vld [vmem:[%s28931_s15 + $0x448] sm:$0xf0]  ;;  %v17144_v21 = vor.u32 %v19863_v36, %v17141_v57  ;;  %v19926_v57 = vld [vmem:[%s28931_s15 + $0x354] sm:$0xf] }
 0x770   : > { %v11818_v9 = vpop.f32.mrf.mxu3  ;;  %v20209_v36 = vld [vmem:[%s28931_s15 + $0xc28] sm:$0xf0] }
 0x771   : > { %v11819_v14 = vadd.f32 %v11818_v9, %v9491_v18  ;;  %11908 = vmatmul.bf16.vlgmr.msra.gmra.mxu0 %v26912_v61  ;;  %11999 = vmatmul.bf16.vlgmr.msra.gmra.mxu2 %v26748_v17  ;;  %v17503_v18 = vld [vmem:[%s28931_s15 + $0x430] sm:$0xf]  ;;  %v17475_v9 = vld [vmem:[%s28931_s15 + $0x3f8] sm:$0xf] }
 0x772   : > { %12070 = vmatpush.bf16.msra.mxu3 %v18036_v20  ;;  %v17924_v20 = vor.u32 %v20062_v16, %v17923_v60  ;;  %12004 = vmatpush.bf16.msra.mxu0 %v18732_v1  ;;  %v11833_v48 = vpop.f32.mrf.mxu1  ;;  %v18175_v60 = vld [vmem:[%s28931_s15 + $0x970] sm:$0xf]  ;;  %v20125_v16 = vld [vmem:[%s28931_s15 + $0x988] sm:$0xf0] }
 0x773   : > { %12043 = vmatpush.bf16.msrb.mxu2 %v17616_v42  ;;  %12082 = vmatpush.bf16.msra.mxu1 %v18288_v55  ;;  %v26949_v0 = vadd.f32 %v11831_v27, %v11819_v14  ;;  %v17868_v27 = vor.u32 %v20048_v24, %v17867_v51  ;;  %v17504_v42 = vor.u32 %v19957_v47, %v17503_v18  ;;  %v17113_v55 = vld [vmem:[%s28931_s15 + $0x13c] sm:$0xf0]  ;;  %v17029_v18 = vld [vmem:[%s28931_s15 + $0x94] sm:$0xf0] }
 0x774   : > { %12038 = vmatmul.bf16.vlgmr.msrb.gmra.mxu1 %v26164_v4  ;;  %v18176_v25 = vor.u32 %v20125_v16, %v18175_v60  ;;  %v17116_v3 = vor.u32 %v19856_v49, %v17113_v55  ;;  %v18592_v48 = vor.u32 %v20226_v63, %v18589_v53  ;;  %v17840_v60 = vor.u32 %v20041_v41, %v17839_v34  ;;  %v18483_v49 = vld [vmem:[%s28931_s15 + $0xbd8] sm:$0xf]  ;;  %v20202_v63 = vld [vmem:[%s28931_s15 + $0xbf0] sm:$0xf0]  ;;  %v17727_v41 = vld [vmem:[%s28931_s15 + $0x5f0] sm:$0xf] }
 0x775   : > { %v17365_v53 = vld [vmem:[%s28931_s15 + $0x334] sm:$0xf0] }
 0x776   : > { %12071 = vmatpush.bf16.msra.mxu3 %v18008_v11  ;;  %v17559_v11 = vld [vmem:[%s28931_s15 + $0x4a0] sm:$0xf]  ;;  %12005 = vmatpush.bf16.msra.mxu0 %v18704_v10 }
 0x777   : > { %12044 = vmatpush.bf16.msrb.mxu2 %v17588_v62  ;;  %v17560_v31 = vor.u32 %v19971_v13, %v17559_v11  ;;  %12083 = vmatpush.bf16.msra.mxu1 %v18260_v19  ;;  %v19849_v62 = vld [vmem:[%s28931_s15 + $0xec] sm:$0xf]  ;;  %v20219_v19 = vld [vmem:[%s28931_s15 + $0xc7c] sm:$0xf]  ;;  %v18148_v11 = vor.u32 %v20118_v56, %v18147_v54  ;;  %v18561_v13 = vld [vmem:[%s28931_s15 + $0xc94] sm:$0xf0]  ;;  %v18484_v56 = vor.u32 %v20202_v63, %v18483_v49 }
 0x778   : > { %v11820_v35 = vpop.f32.mrf.mxu3  ;;  %v17088_v24 = vor.u32 %v19849_v62, %v17085_v5  ;;  %v20195_v62 = vld [vmem:[%s28931_s15 + $0xbb8] sm:$0xf0]  ;;  %v19912_v5 = vld [vmem:[%s28931_s15 + $0x2e4] sm:$0xf] }
 0x779   : > { %v18091_v35 = vld [vmem:[%s28931_s15 + $0x8c8] sm:$0xf]  ;;  %v19891_v49 = vld [vmem:[%s28931_s15 + $0x23c] sm:$0xf] }
 0x77a   : > { %12072 = vmatpush.bf16.msra.mxu3 %v17980_v40  ;;  %v17169_v40 = vld [vmem:[%s28931_s15 + $0x1ac] sm:$0xf0]  ;;  %12006 = vmatpush.bf16.msra.mxu0 %v18676_v29  ;;  %v19842_v29 = vld [vmem:[%s28931_s15 + $0xb4] sm:$0xf] }
 0x77b   : > { %v17172_v26 = vor.u32 %v19870_v15, %v17169_v40  ;;  %12045 = vmatpush.bf16.msrb.mxu2 %v17560_v31  ;;  %12084 = vmatpush.bf16.msra.mxu1 %v18232_v23  ;;  %v17057_v31 = vld [vmem:[%s28931_s15 + $0xcc] sm:$0xf0]  ;;  %v18564_v15 = vor.u32 %v20219_v19, %v18561_v13  ;;  %v18533_v23 = vld [vmem:[%s28931_s15 + $0xc5c] sm:$0xf0] }
 0x77c   : > { %v11857_v37 = vpop.f32.mrf.mxu0  ;;  %v17337_v19 = vld [vmem:[%s28931_s15 + $0x2fc] sm:$0xf0] }
 0x77d   : > { %v17340_v38 = vor.u32 %v19912_v5, %v17337_v19 }
 0x77e   : > { %12073 = vmatpush.bf16.msra.mxu3 %v17952_v45  ;;  %v20233_v45 = vld [vmem:[%s28931_s15 + $0xcec] sm:$0xf]  ;;  %12007 = vmatpush.bf16.msra.mxu0 %v18648_v22 }
 0x77f   : > { %12046 = vmatpush.bf16.msrb.mxu2 %v17532_v43  ;;  %v18620_v1 = vor.u32 %v20233_v45, %v18617_v28  ;;  %12085 = vmatpush.bf16.msra.mxu1 %v18204_v7  ;;  %v17060_v43 = vor.u32 %v19842_v29, %v17057_v31  ;;  %v17393_v45 = vld [vmem:[%s28931_s15 + $0x36c] sm:$0xf0]  ;;  %v17420_v7 = vor.u32 %v19936_v30, %v17419_v50  ;;  %v19835_v28 = vld [vmem:[%s28931_s15 + $0x7c] sm:$0xf]  ;;  %v20020_v29 = vld [vmem:[%s28931_s15 + $0x640] sm:$0xf0] }
 0x780   : > { %v17032_v55 = vor.u32 %v19835_v28, %v17029_v18  ;;  %v18427_v31 = vld [vmem:[%s28931_s15 + $0xb68] sm:$0xf]  ;;  %v20087_v30 = vld [vmem:[%s28931_s15 + $0x85c] sm:$0xf]  ;;  %v20080_v18 = vld [vmem:[%s28931_s15 + $0x824] sm:$0xf] }
 0x781   : > { %11960 = vmatmul.bf16.vlgmr.msrb.gmra.mxu0 %v26263_v8 }
 0x782   : > { %12074 = vmatpush.bf16.msra.mxu3 %v17924_v20  ;;  %v19950_v20 = vld [vmem:[%s28931_s15 + $0x410] sm:$0xf0]  ;;  %12008 = vmatpush.bf16.msra.mxu0 %v18620_v1  ;;  %v17811_v1 = vld [vmem:[%s28931_s15 + $0x698] sm:$0xf] }
 0x783   : > { %v11844_v14 = vpop.f32.mrf.mxu2  ;;  %12047 = vmatpush.bf16.msrb.mxu2 %v17504_v42  ;;  %v17476_v10 = vor.u32 %v19950_v20, %v17475_v9  ;;  %12086 = vmatpush.bf16.msra.mxu1 %v18176_v25  ;;  %v20034_v42 = vld [vmem:[%s28931_s15 + $0x6b0] sm:$0xf0]  ;;  %v19919_v25 = vld [vmem:[%s28931_s15 + $0x31c] sm:$0xf]  ;;  %v19828_v9 = vld [vmem:[%s28931_s15 + $0x44] sm:$0xf] }
 0x784   : > { %v11845_v59 = vadd.f32 %v11844_v14, %v26949_v0  ;;  %v11859_v6 = vpop.f32.mrf.mxu0  ;;  %v17447_v0 = vld [vmem:[%s28931_s15 + $0x3c0] sm:$0xf]  ;;  %v17812_v54 = vor.u32 %v20034_v42, %v17811_v1  ;;  %v17368_v14 = vor.u32 %v19919_v25, %v17365_v53  ;;  %v18371_v1 = vld [vmem:[%s28931_s15 + $0xaf8] sm:$0xf]  ;;  %v20174_v42 = vld [vmem:[%s28931_s15 + $0xb10] sm:$0xf0] }
 0x785   : > { %v17001_v20 = vld [vmem:[%s28931_s15 + $0x5c] sm:$0xf0]  ;;  %v19821_v6 = vld [vmem:[%s28931_s15 + $0xc] sm:$0xf] }
 0x786   : > { %12075 = vmatpush.bf16.msra.mxu3 %v17896_v12  ;;  %v19943_v12 = vld [vmem:[%s28931_s15 + $0x3d8] sm:$0xf0]  ;;  %v27063_v51 = vadd.f32 %v11857_v37, %v11845_v59  ;;  %12009 = vmatpush.bf16.msra.mxu0 %v18592_v48  ;;  %v18536_v37 = vor.u32 %v20212_v58, %v18533_v23  ;;  %v18455_v48 = vld [vmem:[%s28931_s15 + $0xba0] sm:$0xf]  ;;  %v19905_v58 = vld [vmem:[%s28931_s15 + $0x2ac] sm:$0xf] }
 0x787   : > { %12048 = vmatpush.bf16.msrb.mxu2 %v17476_v10  ;;  %v17448_v40 = vor.u32 %v19943_v12, %v17447_v0  ;;  %12087 = vmatpush.bf16.msra.mxu1 %v18148_v11  ;;  %v20027_v59 = vld [vmem:[%s28931_s15 + $0x678] sm:$0xf0]  ;;  %v17004_v10 = vor.u32 %v19828_v9, %v17001_v20  ;;  %v16973_v11 = vld [vmem:[%s28931_s15 + $0x24] sm:$0xf0]  ;;  %v20094_v0 = vld [vmem:[%s28931_s15 + $0x894] sm:$0xf]  ;;  %v18456_v39 = vor.u32 %v20195_v62, %v18455_v48 }
 0x788   : > { %v18065_v12 = vld [vmem:[%s28931_s15 + $0x8ac] sm:$0xf0]  ;;  %v17309_v23 = vld [vmem:[%s28931_s15 + $0x2c4] sm:$0xf0]  ;;  %v20073_v53 = vld [vmem:[%s28931_s15 + $0x7ec] sm:$0xf]  ;;  %v18372_v20 = vor.u32 %v20174_v42, %v18371_v1 }
 0x789   : > { %v18068_v50 = vor.u32 %v20094_v0, %v18065_v12  ;;  %v17312_v34 = vor.u32 %v19905_v58, %v17309_v23  ;;  %v17981_v9 = vld [vmem:[%s28931_s15 + $0x804] sm:$0xf0]  ;;  %v19884_v48 = vld [vmem:[%s28931_s15 + $0x204] sm:$0xf]  ;;  %v20265_v58 = vld [vmem:[%s28931_s15 + $0xde8] sm:$0xf0] }
 0x78a   : > { %12076 = vmatpush.bf16.msra.mxu3 %v17868_v27  ;;  %v20104_v27 = vld [vmem:[%s28931_s15 + $0x8e0] sm:$0xf0]  ;;  %12010 = vmatpush.bf16.msra.mxu0 %v18564_v15  ;;  %v16976_v15 = vor.u32 %v19821_v6, %v16973_v11  ;;  %v17984_v5 = vor.u32 %v20073_v53, %v17981_v9  ;;  %v20066_v6 = vld [vmem:[%s28931_s15 + $0x7b4] sm:$0xf]  ;;  %v17953_v11 = vld [vmem:[%s28931_s15 + $0x7cc] sm:$0xf0] }
 0x78b   : > { %v11846_v22 = vpop.f32.mrf.mxu2  ;;  %12049 = vmatpush.bf16.msrb.mxu2 %v17448_v40  ;;  %12088 = vmatpush.bf16.msra.mxu1 %v18120_v33  ;;  %v18092_v47 = vor.u32 %v20104_v27, %v18091_v35  ;;  %v20188_v40 = vld [vmem:[%s28931_s15 + $0xb80] sm:$0xf0]  ;;  %v18037_v35 = vld [vmem:[%s28931_s15 + $0x874] sm:$0xf0]  ;;  %v19982_v23 = vld [vmem:[%s28931_s15 + $0x514] sm:$0xf] }
 0x78c   : > { %v18428_v27 = vor.u32 %v20188_v40, %v18427_v31  ;;  %v18399_v22 = vld [vmem:[%s28931_s15 + $0xb30] sm:$0xf]  ;;  %v17197_v31 = vld [vmem:[%s28931_s15 + $0x1e4] sm:$0xf0]  ;;  %v17956_v40 = vor.u32 %v20066_v6, %v17953_v11  ;;  %v20052_v1 = vld [vmem:[%s28931_s15 + $0x744] sm:$0xf] }
 0x78d   : > { %12077 = vmatmul.bf16.vlgmr.msra.gmra.mxu3 %v26410_v52  ;;  %v17897_v42 = vld [vmem:[%s28931_s15 + $0x75c] sm:$0xf0]  ;;  %v20136_v9 = vld [vmem:[%s28931_s15 + $0x9e4] sm:$0xf]  ;;  %v19961_v11 = vld [vmem:[%s28931_s15 + $0x46c] sm:$0xf] }
 0x78e   : > { %12121 = vmatpush.bf16.msrb.mxu3 %v17172_v26  ;;  %v18511_v26 = vld [vmem:[%s28931_s15 + $0xc10] sm:$0xf]  ;;  %12011 = vmatpush.bf16.msra.mxu0 %v18536_v37  ;;  %v18040_v37 = vor.u32 %v20087_v30, %v18037_v35  ;;  %v20150_v30 = vld [vmem:[%s28931_s15 + $0xa54] sm:$0xf]  ;;  %v17561_v53 = vld [vmem:[%s28931_s15 + $0x4bc] sm:$0xf0] }
 0x78f   : > { %v18512_v16 = vor.u32 %v20209_v36, %v18511_v26  ;;  %12050 = vmatpush.bf16.msrb.mxu2 %v17420_v7  ;;  %12089 = vmatpush.bf16.msra.mxu1 %v18092_v47  ;;  %v20013_v26 = vld [vmem:[%s28931_s15 + $0x608] sm:$0xf0]  ;;  %v19898_v36 = vld [vmem:[%s28931_s15 + $0x274] sm:$0xf]  ;;  %v18009_v47 = vld [vmem:[%s28931_s15 + $0x83c] sm:$0xf0] }
 0x790   : > { %v17728_v28 = vor.u32 %v20013_v26, %v17727_v41  ;;  %v18012_v63 = vor.u32 %v20080_v18, %v18009_v47  ;;  %v18289_v35 = vld [vmem:[%s28931_s15 + $0xa6c] sm:$0xf0]  ;;  %v20143_v47 = vld [vmem:[%s28931_s15 + $0xa1c] sm:$0xf]  ;;  %v20244_v6 = vld [vmem:[%s28931_s15 + $0xd40] sm:$0xf0] }
 0x791   : > { %12012 = vmatmul.bf16.vlgmr.msra.gmra.mxu0 %v26912_v61 }
 0x792   : > { %12122 = vmatpush.bf16.msrb.mxu3 %v17144_v21  ;;  %v17396_v21 = vor.u32 %v19926_v57, %v17393_v45  ;;  %12056 = vmatpush.bf16.msrb.mxu0 %v17840_v60  ;;  %v17281_v57 = vld [vmem:[%s28931_s15 + $0x28c] sm:$0xf0] }
 0x793   : > { %12095 = vmatpush.bf16.msra.mxu2 %v18512_v16  ;;  %12090 = vmatmul.bf16.vlgmr.msra.gmra.mxu1 %v26589_v44  ;;  %v17284_v16 = vor.u32 %v19898_v36, %v17281_v57  ;;  %v18707_v36 = vld [vmem:[%s28931_s15 + $0xd98] sm:$0xf]  ;;  %v18292_v57 = vor.u32 %v20150_v30, %v18289_v35  ;;  %v17505_v30 = vld [vmem:[%s28931_s15 + $0x44c] sm:$0xf0]  ;;  %v20122_v35 = vld [vmem:[%s28931_s15 + $0x974] sm:$0xf] }
 0x794   : > { %12134 = vmatpush.bf16.msrb.mxu1 %v17396_v21  ;;  %12051 = vmatmul.bf16.vlgmr.msrb.gmra.mxu2 %v26265_v2  ;;  %v11870_v45 = vpop.f32.mrf.mxu3  ;;  %v17699_v21 = vld [vmem:[%s28931_s15 + $0x5b8] sm:$0xf] }
 0x795   : > { %v27213_v7 = vadd.f32 %v11870_v45, %v27063_v51  ;;  %v20006_v51 = vld [vmem:[%s28931_s15 + $0x5d0] sm:$0xf0] }
 0x796   : > { %12123 = vmatpush.bf16.msrb.mxu3 %v17116_v3  ;;  %v17783_v3 = vld [vmem:[%s28931_s15 + $0x660] sm:$0xf]  ;;  %12057 = vmatpush.bf16.msrb.mxu0 %v17812_v54  ;;  %v17700_v25 = vor.u32 %v20006_v51, %v17699_v21  ;;  %v20258_v45 = vld [vmem:[%s28931_s15 + $0xdb0] sm:$0xf0] }
 0x797   : > { %v17784_v13 = vor.u32 %v20027_v59, %v17783_v3  ;;  %12096 = vmatpush.bf16.msra.mxu2 %v18484_v56  ;;  %v17671_v56 = vld [vmem:[%s28931_s15 + $0x580] sm:$0xf]  ;;  %v20167_v59 = vld [vmem:[%s28931_s15 + $0xad8] sm:$0xf0]  ;;  %v18708_v21 = vor.u32 %v20258_v45, %v18707_v36  ;;  %v18595_v45 = vld [vmem:[%s28931_s15 + $0xcb8] sm:$0xf] }
 0x798   : > { %12135 = vmatpush.bf16.msrb.mxu1 %v17368_v14  ;;  %v19999_v14 = vld [vmem:[%s28931_s15 + $0x598] sm:$0xf0]  ;;  %v18343_v3 = vld [vmem:[%s28931_s15 + $0xac0] sm:$0xf] }
 0x799   : > { %v17672_v19 = vor.u32 %v19999_v14, %v17671_v56  ;;  %v18344_v0 = vor.u32 %v20167_v59, %v18343_v3  ;;  %v20045_v56 = vld [vmem:[%s28931_s15 + $0x70c] sm:$0xf]  ;;  %v17869_v59 = vld [vmem:[%s28931_s15 + $0x724] sm:$0xf0] }
 0x79a   : > { %12124 = vmatpush.bf16.msrb.mxu3 %v17088_v24  ;;  %v17755_v24 = vld [vmem:[%s28931_s15 + $0x628] sm:$0xf]  ;;  %12058 = vmatpush.bf16.msrb.mxu0 %v17784_v13 }
 0x79b   : > { %v17756_v33 = vor.u32 %v20020_v29, %v17755_v24  ;;  %12097 = vmatpush.bf16.msra.mxu2 %v18456_v39  ;;  %v17643_v13 = vld [vmem:[%s28931_s15 + $0x548] sm:$0xf]  ;;  %v19992_v39 = vld [vmem:[%s28931_s15 + $0x560] sm:$0xf0]  ;;  %v19877_v29 = vld [vmem:[%s28931_s15 + $0x1cc] sm:$0xf] }
 0x79c   : > { %12136 = vmatpush.bf16.msrb.mxu1 %v17340_v38  ;;  %v11872_v62 = vpop.f32.mrf.mxu3  ;;  %v18315_v38 = vld [vmem:[%s28931_s15 + $0xa88] sm:$0xf]  ;;  %v20160_v24 = vld [vmem:[%s28931_s15 + $0xaa0] sm:$0xf0] }
 0x79e   : > { %12125 = vmatpush.bf16.msrb.mxu3 %v17060_v43  ;;  %v20181_v43 = vld [vmem:[%s28931_s15 + $0xb48] sm:$0xf0]  ;;  %12059 = vmatpush.bf16.msrb.mxu0 %v17756_v33  ;;  %v17644_v33 = vor.u32 %v19992_v39, %v17643_v13  ;;  %v18205_v39 = vld [vmem:[%s28931_s15 + $0x9c4] sm:$0xf0] }
 0x79f   : > { %12098 = vmatpush.bf16.msra.mxu2 %v18428_v27  ;;  %v18400_v60 = vor.u32 %v20181_v43, %v18399_v22  ;;  %v18316_v27 = vor.u32 %v20160_v24, %v18315_v38  ;;  %v20059_v22 = vld [vmem:[%s28931_s15 + $0x77c] sm:$0xf]  ;;  %v17925_v43 = vld [vmem:[%s28931_s15 + $0x794] sm:$0xf0]  ;;  %v17872_v38 = vor.u32 %v20045_v56, %v17869_v59 }
 0x7a0   : > { %12137 = vmatpush.bf16.msrb.mxu1 %v17312_v34  ;;  %v17200_v34 = vor.u32 %v19877_v29, %v17197_v31  ;;  %v17147_v31 = vld [vmem:[%s28931_s15 + $0x160] sm:$0xf]  ;;  %v17063_v59 = vld [vmem:[%s28931_s15 + $0xb8] sm:$0xf] }
 0x7a2   : > { %12126 = vmatpush.bf16.msrb.mxu3 %v17032_v55  ;;  %v17253_v55 = vld [vmem:[%s28931_s15 + $0x254] sm:$0xf0]  ;;  %12060 = vmatpush.bf16.msrb.mxu0 %v17728_v28 }
 0x7a3   : > { %12099 = vmatpush.bf16.msra.mxu2 %v18400_v60  ;;  %v17256_v54 = vor.u32 %v19891_v49, %v17253_v55  ;;  %v17589_v28 = vld [vmem:[%s28931_s15 + $0x4f4] sm:$0xf0]  ;;  %v18679_v49 = vld [vmem:[%s28931_s15 + $0xd60] sm:$0xf] }
 0x7a4   : > { %12138 = vmatpush.bf16.msrb.mxu1 %v17284_v16  ;;  %v18261_v60 = vld [vmem:[%s28931_s15 + $0xa34] sm:$0xf0]  ;;  %v17928_v16 = vor.u32 %v20059_v22, %v17925_v43  ;;  %v19860_v22 = vld [vmem:[%s28931_s15 + $0x140] sm:$0xf0] }
 0x7a5   : > { %v18264_v55 = vor.u32 %v20143_v47, %v18261_v60  ;;  %v17477_v47 = vld [vmem:[%s28931_s15 + $0x414] sm:$0xf0]  ;;  %v20115_v60 = vld [vmem:[%s28931_s15 + $0x93c] sm:$0xf] }
 0x7a6   : > { %12127 = vmatpush.bf16.msrb.mxu3 %v17004_v10  ;;  %v17225_v10 = vld [vmem:[%s28931_s15 + $0x21c] sm:$0xf0]  ;;  %12061 = vmatpush.bf16.msrb.mxu0 %v17700_v25  ;;  %v19968_v25 = vld [vmem:[%s28931_s15 + $0x4a4] sm:$0xf] }
 0x7a7   : > { %12100 = vmatpush.bf16.msra.mxu2 %v18372_v20  ;;  %v17228_v12 = vor.u32 %v19884_v48, %v17225_v10  ;;  %v18233_v20 = vld [vmem:[%s28931_s15 + $0x9fc] sm:$0xf0]  ;;  %v17564_v3 = vor.u32 %v19968_v25, %v17561_v53  ;;  %v17175_v48 = vld [vmem:[%s28931_s15 + $0x198] sm:$0xf]  ;;  %v19874_v10 = vld [vmem:[%s28931_s15 + $0x1b0] sm:$0xf0] }
 0x7a8   : > { %12139 = vmatpush.bf16.msrb.mxu1 %v17256_v54  ;;  %v17900_v54 = vor.u32 %v20052_v1, %v17897_v42  ;;  %v18236_v62 = vor.u32 %v20136_v9, %v18233_v20  ;;  %v17176_v24 = vor.u32 %v19874_v10, %v17175_v48  ;;  %v17091_v42 = vld [vmem:[%s28931_s15 + $0xf0] sm:$0xf]  ;;  %v20223_v25 = vld [vmem:[%s28931_s15 + $0xc98] sm:$0xf0]  ;;  %v19940_v53 = vld [vmem:[%s28931_s15 + $0x3c4] sm:$0xf] }
 0x7a9   : > { %v17449_v9 = vld [vmem:[%s28931_s15 + $0x3dc] sm:$0xf0]  ;;  %v20108_v20 = vld [vmem:[%s28931_s15 + $0x904] sm:$0xf]  ;;  %v19846_v48 = vld [vmem:[%s28931_s15 + $0xd0] sm:$0xf0] }
 0x7aa   : > { %12128 = vmatpush.bf16.msrb.mxu3 %v16976_v15  ;;  %v18735_v15 = vld [vmem:[%s28931_s15 + $0xdd0] sm:$0xf]  ;;  %12062 = vmatpush.bf16.msrb.mxu0 %v17672_v19  ;;  %v18651_v19 = vld [vmem:[%s28931_s15 + $0xd28] sm:$0xf] }
 0x7ab   : > { %12101 = vmatpush.bf16.msra.mxu2 %v18344_v0  ;;  %v18736_v41 = vor.u32 %v20265_v58, %v18735_v15  ;;  %v17533_v0 = vld [vmem:[%s28931_s15 + $0x484] sm:$0xf0]  ;;  %v18652_v29 = vor.u32 %v20244_v6, %v18651_v19  ;;  %v19867_v15 = vld [vmem:[%s28931_s15 + $0x178] sm:$0xf0]  ;;  %v20216_v6 = vld [vmem:[%s28931_s15 + $0xc60] sm:$0xf0] }
 0x7ac   : > { %12140 = vmatpush.bf16.msrb.mxu1 %v17228_v12  ;;  %v20129_v12 = vld [vmem:[%s28931_s15 + $0x9ac] sm:$0xf]  ;;  %v18539_v10 = vld [vmem:[%s28931_s15 + $0xc48] sm:$0xf] }
 0x7ad   : > { %12129 = vmatmul.bf16.vlgmr.msrb.gmra.mxu3 %v26162_v32  ;;  %v18208_v58 = vor.u32 %v20129_v12, %v18205_v39  ;;  %v20101_v12 = vld [vmem:[%s28931_s15 + $0x8cc] sm:$0xf]  ;;  %v18093_v39 = vld [vmem:[%s28931_s15 + $0x8e4] sm:$0xf0] }
 0x7ae   : > { %12173 = vmatpush.bf16.msra.mxu3 %v18068_v50  ;;  %v17617_v50 = vld [vmem:[%s28931_s15 + $0x52c] sm:$0xf0]  ;;  %12063 = vmatpush.bf16.msrb.mxu0 %v17644_v33  ;;  %v19954_v33 = vld [vmem:[%s28931_s15 + $0x434] sm:$0xf] }
 0x7af   : > { %v17620_v26 = vor.u32 %v19982_v23, %v17617_v50  ;;  %12102 = vmatpush.bf16.msra.mxu2 %v18316_v27  ;;  %v18623_v23 = vld [vmem:[%s28931_s15 + $0xcf0] sm:$0xf]  ;;  %v20237_v50 = vld [vmem:[%s28931_s15 + $0xd08] sm:$0xf0]  ;;  %v17508_v43 = vor.u32 %v19954_v33, %v17505_v30  ;;  %v18096_v33 = vor.u32 %v20101_v12, %v18093_v39 }
 0x7b0   : > { %v27324_v18 = vpop.f32.mrf.mxu3  ;;  %12141 = vmatpush.bf16.msrb.mxu1 %v17200_v34  ;;  %v18177_v27 = vld [vmem:[%s28931_s15 + $0x98c] sm:$0xf0]  ;;  %v17148_v34 = vor.u32 %v19867_v15, %v17147_v31  ;;  %v17064_v15 = vor.u32 %v19846_v48, %v17063_v59 }
 0x7b1   : > { %12064 = vmatmul.bf16.vlgmr.msrb.gmra.mxu0 %v26263_v8  ;;  %v18180_v36 = vor.u32 %v20122_v35, %v18177_v27  ;;  %v18513_v31 = vld [vmem:[%s28931_s15 + $0xc2c] sm:$0xf0]  ;;  %v17035_v27 = vld [vmem:[%s28931_s15 + $0x80] sm:$0xf] }
 0x7b2   : > { %12174 = vmatpush.bf16.msra.mxu3 %v18040_v37  ;;  %v19975_v37 = vld [vmem:[%s28931_s15 + $0x4dc] sm:$0xf]  ;;  %12108 = vmatpush.bf16.msra.mxu0 %v18736_v41  ;;  %v18624_v41 = vor.u32 %v20237_v50, %v18623_v23  ;;  %v19930_v23 = vld [vmem:[%s28931_s15 + $0x370] sm:$0xf0] }
 0x7b3   : > { %12147 = vmatpush.bf16.msrb.mxu2 %v17620_v26  ;;  %v17592_v51 = vor.u32 %v19975_v37, %v17589_v28  ;;  %12142 = vmatmul.bf16.vlgmr.msrb.gmra.mxu1 %v26164_v4  ;;  %v17119_v26 = vld [vmem:[%s28931_s15 + $0x128] sm:$0xf]  ;;  %v20230_v37 = vld [vmem:[%s28931_s15 + $0xcd0] sm:$0xf0]  ;;  %v19947_v28 = vld [vmem:[%s28931_s15 + $0x3fc] sm:$0xf] }
 0x7b4   : > { %12186 = vmatpush.bf16.msra.mxu1 %v18292_v57  ;;  %12103 = vmatmul.bf16.vlgmr.msra.gmra.mxu2 %v26748_v17  ;;  %v18596_v1 = vor.u32 %v20230_v37, %v18595_v45  ;;  %v17371_v45 = vld [vmem:[%s28931_s15 + $0x320] sm:$0xf]  ;;  %v19923_v37 = vld [vmem:[%s28931_s15 + $0x338] sm:$0xf0] }
 0x7b6   : > { %12175 = vmatpush.bf16.msra.mxu3 %v18012_v63  ;;  %v20251_v63 = vld [vmem:[%s28931_s15 + $0xd78] sm:$0xf0]  ;;  %12109 = vmatpush.bf16.msra.mxu0 %v18708_v21  ;;  %v9492_v21 = vperm.slane %v26870_v46, 1  ;;  %v18567_v46 = vld [vmem:[%s28931_s15 + $0xc80] sm:$0xf] }
 0x7b7   : > { %12148 = vmatpush.bf16.msrb.mxu2 %v17592_v51  ;;  %v18680_v14 = vor.u32 %v20251_v63, %v18679_v49  ;;  %v17120_v51 = vor.u32 %v19860_v22, %v17119_v26  ;;  %v19853_v49 = vld [vmem:[%s28931_s15 + $0x108] sm:$0xf0] }
 0x7b8   : > { %12187 = vmatpush.bf16.msra.mxu1 %v18264_v55  ;;  %v11924_v13 = vpop.f32.mrf.mxu3  ;;  %v17480_v55 = vor.u32 %v19947_v28, %v17477_v47  ;;  %v11923_v56 = vadd.f32 %v27324_v18, %v9492_v21  ;;  %v17007_v21 = vld [vmem:[%s28931_s15 + $0x48] sm:$0xf] }
 0x7b9   : > { %v17421_v13 = vld [vmem:[%s28931_s15 + $0x3a4] sm:$0xf0] }
 0x7ba   : > { %12176 = vmatpush.bf16.msra.mxu3 %v17984_v5  ;;  %v27371_v5 = vpop.f32.mrf.mxu1  ;;  %12110 = vmatpush.bf16.msra.mxu0 %v18680_v14  ;;  %v17092_v14 = vor.u32 %v19853_v49, %v17091_v42  ;;  %v17372_v42 = vor.u32 %v19923_v37, %v17371_v45  ;;  %v17785_v49 = vld [vmem:[%s28931_s15 + $0x67c] sm:$0xf0]  ;;  %v17701_v45 = vld [vmem:[%s28931_s15 + $0x5d4] sm:$0xf0]  ;;  %v20171_v37 = vld [vmem:[%s28931_s15 + $0xafc] sm:$0xf] }
 0x7bb   : > { %12149 = vmatpush.bf16.msrb.mxu2 %v17564_v3  ;;  %v18568_v3 = vor.u32 %v20223_v25, %v18567_v46  ;;  %v17343_v46 = vld [vmem:[%s28931_s15 + $0x2e8] sm:$0xf]  ;;  %v19916_v25 = vld [vmem:[%s28931_s15 + $0x300] sm:$0xf0] }
 0x7bc   : > { %12188 = vmatpush.bf16.msra.mxu1 %v18236_v62  ;;  %v17452_v62 = vor.u32 %v19940_v53, %v17449_v9  ;;  %v16979_v9 = vld [vmem:[%s28931_s15 + $0x10] sm:$0xf]  ;;  %v17344_v48 = vor.u32 %v19916_v25, %v17343_v46  ;;  %v17673_v46 = vld [vmem:[%s28931_s15 + $0x59c] sm:$0xf0]  ;;  %v20164_v25 = vld [vmem:[%s28931_s15 + $0xac4] sm:$0xf] }
 0x7be   : > { %12177 = vmatpush.bf16.msra.mxu3 %v17956_v40  ;;  %v17536_v40 = vor.u32 %v19961_v11, %v17533_v0  ;;  %12111 = vmatpush.bf16.msra.mxu0 %v18652_v29  ;;  %v19933_v11 = vld [vmem:[%s28931_s15 + $0x38c] sm:$0xf]  ;;  %v20206_v29 = vld [vmem:[%s28931_s15 + $0xc14] sm:$0xf] }
 0x7bf   : > { %v17424_v50 = vor.u32 %v19933_v11, %v17421_v13  ;;  %v18516_v35 = vor.u32 %v20206_v29, %v18513_v31  ;;  %v19909_v11 = vld [vmem:[%s28931_s15 + $0x2c8] sm:$0xf0]  ;;  %v20091_v29 = vld [vmem:[%s28931_s15 + $0x878] sm:$0xf0] }
 0x7c0   : > { %12150 = vmatpush.bf16.msrb.mxu2 %v17536_v40  ;;  %12189 = vmatpush.bf16.msra.mxu1 %v18208_v58  ;;  %v18540_v40 = vor.u32 %v20216_v6, %v18539_v10  ;;  %v17399_v58 = vld [vmem:[%s28931_s15 + $0x358] sm:$0xf]  ;;  %v20017_v10 = vld [vmem:[%s28931_s15 + $0x62c] sm:$0xf]  ;;  %v17315_v6 = vld [vmem:[%s28931_s15 + $0x2b0] sm:$0xf] }
 0x7c1   : > { %v17400_v22 = vor.u32 %v19930_v23, %v17399_v58  ;;  %v17729_v58 = vld [vmem:[%s28931_s15 + $0x60c] sm:$0xf0]  ;;  %v20178_v23 = vld [vmem:[%s28931_s15 + $0xb34] sm:$0xf] }
 0x7c2   : > { %12178 = vmatpush.bf16.msra.mxu3 %v17928_v16  ;;  %v11885_v57 = vpop.f32.mrf.mxu1  ;;  %v18149_v16 = vld [vmem:[%s28931_s15 + $0x954] sm:$0xf0]  ;;  %12112 = vmatpush.bf16.msra.mxu0 %v18624_v41  ;;  %v20031_v41 = vld [vmem:[%s28931_s15 + $0x69c] sm:$0xf] }
 0x7c3   : > { %v18152_v63 = vor.u32 %v20115_v60, %v18149_v16  ;;  %v18485_v57 = vld [vmem:[%s28931_s15 + $0xbf4] sm:$0xf0] }
 0x7c4   : > { %12151 = vmatpush.bf16.msrb.mxu2 %v17508_v43  ;;  %12190 = vmatpush.bf16.msra.mxu1 %v18180_v36  ;;  %v17813_v43 = vld [vmem:[%s28931_s15 + $0x6b4] sm:$0xf0]  ;;  %v20199_v36 = vld [vmem:[%s28931_s15 + $0xbdc] sm:$0xf] }
 0x7c5   : > { %v17816_v60 = vor.u32 %v20031_v41, %v17813_v43  ;;  %v18488_v16 = vor.u32 %v20199_v36, %v18485_v57  ;;  %v18015_v41 = vld [vmem:[%s28931_s15 + $0x828] sm:$0xf]  ;;  %v20003_v57 = vld [vmem:[%s28931_s15 + $0x5bc] sm:$0xf] }
 0x7c6   : > { %12179 = vmatpush.bf16.msra.mxu3 %v17900_v54  ;;  %v18121_v54 = vld [vmem:[%s28931_s15 + $0x91c] sm:$0xf0]  ;;  %12113 = vmatpush.bf16.msra.mxu0 %v18596_v1  ;;  %v20024_v1 = vld [vmem:[%s28931_s15 + $0x664] sm:$0xf] }
 0x7c7   : > { %v18124_v18 = vor.u32 %v20108_v20, %v18121_v54  ;;  %v17788_v20 = vor.u32 %v20024_v1, %v17785_v49  ;;  %v17987_v1 = vld [vmem:[%s28931_s15 + $0x7f0] sm:$0xf] }
 0x7c8   : > { %12152 = vmatpush.bf16.msrb.mxu2 %v17480_v55  ;;  %12191 = vmatpush.bf16.msra.mxu1 %v18152_v63  ;;  %v20192_v55 = vld [vmem:[%s28931_s15 + $0xba4] sm:$0xf]  ;;  %v18457_v63 = vld [vmem:[%s28931_s15 + $0xbbc] sm:$0xf0] }
 0x7c9   : > { %v18460_v54 = vor.u32 %v20192_v55, %v18457_v63  ;;  %v19996_v63 = vld [vmem:[%s28931_s15 + $0x584] sm:$0xf] }
 0x7ca   : > { %12180 = vmatpush.bf16.msra.mxu3 %v17872_v38  ;;  %v11935_v19 = vpop.f32.mrf.mxu1  ;;  %v20038_v38 = vld [vmem:[%s28931_s15 + $0x6d4] sm:$0xf]  ;;  %12114 = vmatpush.bf16.msra.mxu0 %v18568_v3 }
 0x7cb   : > { %v27484_v0 = vadd.f32 %v11935_v19, %v11923_v56  ;;  %v19825_v56 = vld [vmem:[%s28931_s15 + $0x28] sm:$0xf0]  ;;  %v20098_v3 = vld [vmem:[%s28931_s15 + $0x8b0] sm:$0xf0]  ;;  %v18429_v19 = vld [vmem:[%s28931_s15 + $0xb84] sm:$0xf0] }
 0x7cc   : > { %12153 = vmatpush.bf16.msrb.mxu2 %v17452_v62  ;;  %12192 = vmatpush.bf16.msra.mxu1 %v18124_v18  ;;  %v17757_v62 = vld [vmem:[%s28931_s15 + $0x644] sm:$0xf0]  ;;  %v20185_v18 = vld [vmem:[%s28931_s15 + $0xb6c] sm:$0xf]  ;;  %v16980_v13 = vor.u32 %v19825_v56, %v16979_v9 }
 0x7cd   : > { %12181 = vmatmul.bf16.vlgmr.msra.gmra.mxu3 %v26410_v52  ;;  %v18432_v31 = vor.u32 %v20185_v18, %v18429_v19  ;;  %v17231_v9 = vld [vmem:[%s28931_s15 + $0x208] sm:$0xf]  ;;  %v20157_v19 = vld [vmem:[%s28931_s15 + $0xa8c] sm:$0xf] }
 0x7ce   : > { %12225 = vmatpush.bf16.msrb.mxu3 %v17176_v24  ;;  %v17841_v24 = vld [vmem:[%s28931_s15 + $0x6ec] sm:$0xf0]  ;;  %12115 = vmatpush.bf16.msra.mxu0 %v18540_v40  ;;  %v20010_v40 = vld [vmem:[%s28931_s15 + $0x5f4] sm:$0xf]  ;;  %v17645_v18 = vld [vmem:[%s28931_s15 + $0x564] sm:$0xf0] }
 0x7cf   : > { %v17844_v30 = vor.u32 %v20038_v38, %v17841_v24  ;;  %v17760_v38 = vor.u32 %v20017_v10, %v17757_v62  ;;  %v18043_v24 = vld [vmem:[%s28931_s15 + $0x860] sm:$0xf] }
 0x7d0   : > { %v27519_v26 = vpop.f32.mrf.mxu3  ;;  %12154 = vmatpush.bf16.msrb.mxu2 %v17424_v50  ;;  %12193 = vmatpush.bf16.msra.mxu1 %v18096_v33  ;;  %v18401_v50 = vld [vmem:[%s28931_s15 + $0xb4c] sm:$0xf0]  ;;  %v17287_v33 = vld [vmem:[%s28931_s15 + $0x278] sm:$0xf] }
 0x7d1   : > { %12116 = vmatmul.bf16.vlgmr.msra.gmra.mxu0 %v26912_v61  ;;  %v18404_v43 = vor.u32 %v20178_v23, %v18401_v50 }
 0x7d2   : > { %12226 = vmatpush.bf16.msrb.mxu3 %v17148_v34  ;;  %v19839_v34 = vld [vmem:[%s28931_s15 + $0x98] sm:$0xf0]  ;;  %v11937_v47 = vpop.f32.mrf.mxu1  ;;  %12160 = vmatpush.bf16.msrb.mxu0 %v17844_v30  ;;  %v19902_v30 = vld [vmem:[%s28931_s15 + $0x290] sm:$0xf0] }
 0x7d3   : > { %v17036_v28 = vor.u32 %v19839_v34, %v17035_v27  ;;  %12155 = vmatmul.bf16.vlgmr.msrb.gmra.mxu2 %v26265_v2  ;;  %12194 = vmatmul.bf16.vlgmr.msra.gmra.mxu1 %v26589_v44  ;;  %v18044_v27 = vor.u32 %v20091_v29, %v18043_v24  ;;  %v17732_v34 = vor.u32 %v20010_v40, %v17729_v58  ;;  %v17259_v47 = vld [vmem:[%s28931_s15 + $0x240] sm:$0xf]  ;;  %v17623_v24 = vld [vmem:[%s28931_s15 + $0x518] sm:$0xf]  ;;  %v19986_v29 = vld [vmem:[%s28931_s15 + $0x530] sm:$0xf0] }
 0x7d4   : > { %12199 = vmatpush.bf16.msra.mxu2 %v18516_v35  ;;  %12238 = vmatpush.bf16.msrb.mxu1 %v17400_v22  ;;  %v27619_v35 = vpop.f32.mrf.mxu2  ;;  %v20084_v22 = vld [vmem:[%s28931_s15 + $0x840] sm:$0xf0]  ;;  %v17288_v36 = vor.u32 %v19902_v30, %v17287_v33  ;;  %v18295_v40 = vld [vmem:[%s28931_s15 + $0xa58] sm:$0xf]  ;;  %v20154_v58 = vld [vmem:[%s28931_s15 + $0xa70] sm:$0xf0] }
 0x7d6   : > { %12227 = vmatpush.bf16.msrb.mxu3 %v17120_v51  ;;  %v19832_v51 = vld [vmem:[%s28931_s15 + $0x60] sm:$0xf0]  ;;  %12161 = vmatpush.bf16.msrb.mxu0 %v17816_v60  ;;  %v19895_v60 = vld [vmem:[%s28931_s15 + $0x258] sm:$0xf0] }
 0x7d7   : > { %v17008_v53 = vor.u32 %v19832_v51, %v17007_v21  ;;  %v18016_v21 = vor.u32 %v20084_v22, %v18015_v41  ;;  %v17704_v51 = vor.u32 %v20003_v57, %v17701_v45  ;;  %v17260_v55 = vor.u32 %v19895_v60, %v17259_v47  ;;  %v20063_v41 = vld [vmem:[%s28931_s15 + $0x798] sm:$0xf0]  ;;  %v18709_v57 = vld [vmem:[%s28931_s15 + $0xdb4] sm:$0xf0]  ;;  %v17595_v45 = vld [vmem:[%s28931_s15 + $0x4e0] sm:$0xf] }
 0x7d8   : > { %12200 = vmatpush.bf16.msra.mxu2 %v18488_v16  ;;  %12239 = vmatpush.bf16.msrb.mxu1 %v17372_v42  ;;  %v11976_v59 = vpop.f32.mrf.mxu3  ;;  %v20077_v42 = vld [vmem:[%s28931_s15 + $0x808] sm:$0xf0]  ;;  %v20255_v22 = vld [vmem:[%s28931_s15 + $0xd9c] sm:$0xf] }
 0x7d9   : > { %v17988_v56 = vor.u32 %v20077_v42, %v17987_v1  ;;  %v20070_v59 = vld [vmem:[%s28931_s15 + $0x7d0] sm:$0xf0]  ;;  %v20147_v47 = vld [vmem:[%s28931_s15 + $0xa38] sm:$0xf0]  ;;  %v20056_v1 = vld [vmem:[%s28931_s15 + $0x760] sm:$0xf0] }
 0x7da   : > { %12228 = vmatpush.bf16.msrb.mxu3 %v17092_v14  ;;  %v18071_v14 = vld [vmem:[%s28931_s15 + $0x898] sm:$0xf]  ;;  %v27593_v12 = vpop.f32.mrf.mxu1  ;;  %12162 = vmatpush.bf16.msrb.mxu0 %v17788_v20  ;;  %v19888_v20 = vld [vmem:[%s28931_s15 + $0x220] sm:$0xf0] }
 0x7db   : > { %v18072_v39 = vor.u32 %v20098_v3, %v18071_v14  ;;  %v17676_v14 = vor.u32 %v19996_v63, %v17673_v46  ;;  %v17959_v3 = vld [vmem:[%s28931_s15 + $0x7b8] sm:$0xf]  ;;  %v17232_v62 = vor.u32 %v19888_v20, %v17231_v9  ;;  %v20248_v42 = vld [vmem:[%s28931_s15 + $0xd64] sm:$0xf]  ;;  %v17567_v63 = vld [vmem:[%s28931_s15 + $0x4a8] sm:$0xf] }
 0x7dc   : > { %12201 = vmatpush.bf16.msra.mxu2 %v18460_v54  ;;  %12240 = vmatpush.bf16.msrb.mxu1 %v17344_v48  ;;  %v11898_v54 = vpop.f32.mrf.mxu2  ;;  %v19989_v48 = vld [vmem:[%s28931_s15 + $0x54c] sm:$0xf]  ;;  %v19972_v46 = vld [vmem:[%s28931_s15 + $0x4c0] sm:$0xf0] }
 0x7dd   : > { %v20140_v9 = vld [vmem:[%s28931_s15 + $0xa00] sm:$0xf0] }
 0x7de   : > { %12229 = vmatpush.bf16.msrb.mxu3 %v17064_v15  ;;  %v17316_v15 = vor.u32 %v19909_v11, %v17315_v6  ;;  %12163 = vmatpush.bf16.msrb.mxu0 %v17760_v38  ;;  %v18317_v6 = vld [vmem:[%s28931_s15 + $0xaa4] sm:$0xf0]  ;;  %v17203_v11 = vld [vmem:[%s28931_s15 + $0x1d0] sm:$0xf]  ;;  %v27770_v20 = vld [vmem:[%s28932_s16] sm:$0x7f] }
 0x7df   : > { %v18737_v38 = vld [vmem:[%s28931_s15 + $0xdec] sm:$0xf0]  ;;  %v18320_v23 = vor.u32 %v20157_v19, %v18317_v6  ;;  %v9493_v54 = vperm.slane %v27770_v20, 2  ;;  %v20241_v6 = vld [vmem:[%s28931_s15 + $0xd2c] sm:$0xf] }
 0x7e0   : > { %12202 = vmatpush.bf16.msra.mxu2 %v18432_v31  ;;  %12241 = vmatpush.bf16.msrb.mxu1 %v17316_v15  ;;  %v17960_v31 = vor.u32 %v20070_v59, %v17959_v3  ;;  %v17648_v15 = vor.u32 %v19989_v48, %v17645_v18  ;;  %v17568_v59 = vor.u32 %v19972_v46, %v17567_v63  ;;  %v20049_v48 = vld [vmem:[%s28931_s15 + $0x728] sm:$0xf0]  ;;  %v20227_v63 = vld [vmem:[%s28931_s15 + $0xcbc] sm:$0xf]  ;;  %v18597_v46 = vld [vmem:[%s28931_s15 + $0xcd4] sm:$0xf0] }
 0x7e2   : > { %12230 = vmatpush.bf16.msrb.mxu3 %v17036_v28  ;;  %v18373_v28 = vld [vmem:[%s28931_s15 + $0xb14] sm:$0xf0]  ;;  %v11989_v16 = vpop.f32.mrf.mxu1  ;;  %12164 = vmatpush.bf16.msrb.mxu0 %v17732_v34  ;;  %v17931_v34 = vld [vmem:[%s28931_s15 + $0x780] sm:$0xf] }
 0x7e3   : > { %v18376_v49 = vor.u32 %v20171_v37, %v18373_v28  ;;  %v19979_v37 = vld [vmem:[%s28931_s15 + $0x4f8] sm:$0xf0]  ;;  %v18267_v28 = vld [vmem:[%s28931_s15 + $0xa20] sm:$0xf]  ;;  %v17932_v60 = vor.u32 %v20063_v41, %v17931_v34  ;;  %v18712_v16 = vor.u32 %v20255_v22, %v18709_v57  ;;  %v17511_v57 = vld [vmem:[%s28931_s15 + $0x438] sm:$0xf] }
 0x7e4   : > { %12203 = vmatpush.bf16.msra.mxu2 %v18404_v43  ;;  %12242 = vmatpush.bf16.msrb.mxu1 %v17288_v36  ;;  %v18296_v43 = vor.u32 %v20154_v58, %v18295_v40  ;;  %v27721_v36 = vpop.f32.mrf.mxu2  ;;  %v19864_v40 = vld [vmem:[%s28931_s15 + $0x164] sm:$0xf] }
 0x7e6   : > { %12231 = vmatpush.bf16.msrb.mxu3 %v17008_v53  ;;  %v18345_v53 = vld [vmem:[%s28931_s15 + $0xadc] sm:$0xf0]  ;;  %12165 = vmatpush.bf16.msrb.mxu0 %v17704_v51  ;;  %v17903_v51 = vld [vmem:[%s28931_s15 + $0x748] sm:$0xf] }
 0x7e7   : > { %v18348_v10 = vor.u32 %v20164_v25, %v18345_v53  ;;  %v11884_v25 = vadd.f32 %v27371_v5, %v27213_v7  ;;  %v18239_v53 = vld [vmem:[%s28931_s15 + $0x9e8] sm:$0xf]  ;;  %v17904_v7 = vor.u32 %v20056_v1, %v17903_v51  ;;  %v17875_v5 = vld [vmem:[%s28931_s15 + $0x710] sm:$0xf] }
 0x7e8   : > { %12204 = vmatpush.bf16.msra.mxu2 %v18376_v49  ;;  %12243 = vmatpush.bf16.msrb.mxu1 %v17260_v55  ;;  %v18268_v49 = vor.u32 %v20147_v47, %v18267_v28  ;;  %v18681_v55 = vld [vmem:[%s28931_s15 + $0xd7c] sm:$0xf0]  ;;  %v18240_v18 = vor.u32 %v20140_v9, %v18239_v53  ;;  %v18183_v28 = vld [vmem:[%s28931_s15 + $0x978] sm:$0xf]  ;;  %v20126_v47 = vld [vmem:[%s28931_s15 + $0x990] sm:$0xf0] }
 0x7e9   : > { %v18684_v3 = vor.u32 %v20248_v42, %v18681_v55  ;;  %v17121_v51 = vld [vmem:[%s28931_s15 + $0x144] sm:$0xf0]  ;;  %v18184_v42 = vor.u32 %v20126_v47, %v18183_v28  ;;  %v19951_v53 = vld [vmem:[%s28931_s15 + $0x418] sm:$0xf0]  ;;  %v18155_v9 = vld [vmem:[%s28931_s15 + $0x940] sm:$0xf] }
 0x7ea   : > { %12232 = vmatpush.bf16.msrb.mxu3 %v16980_v13  ;;  %v19881_v13 = vld [vmem:[%s28931_s15 + $0x1e8] sm:$0xf0]  ;;  %12166 = vmatpush.bf16.msrb.mxu0 %v17676_v14 }
 0x7eb   : > { %v17204_v50 = vor.u32 %v19881_v13, %v17203_v11  ;;  %v18653_v11 = vld [vmem:[%s28931_s15 + $0xd44] sm:$0xf0]  ;;  %v17539_v13 = vld [vmem:[%s28931_s15 + $0x470] sm:$0xf] }
 0x7ec   : > { %12205 = vmatpush.bf16.msra.mxu2 %v18348_v10  ;;  %12244 = vmatpush.bf16.msrb.mxu1 %v17232_v62  ;;  %v19871_v10 = vld [vmem:[%s28931_s15 + $0x19c] sm:$0xf]  ;;  %v17177_v62 = vld [vmem:[%s28931_s15 + $0x1b4] sm:$0xf0]  ;;  %v11950_v19 = vpop.f32.mrf.mxu2 }
 0x7ed   : > { %12233 = vmatmul.bf16.vlgmr.msrb.gmra.mxu3 %v26162_v32  ;;  %v19944_v19 = vld [vmem:[%s28931_s15 + $0x3e0] sm:$0xf0] }
 0x7ee   : > { %12277 = vmatpush.bf16.msra.mxu3 %v18072_v39  ;;  %v20262_v39 = vld [vmem:[%s28931_s15 + $0xdd4] sm:$0xf]  ;;  %12167 = vmatpush.bf16.msrb.mxu0 %v17648_v15  ;;  %v17876_v15 = vor.u32 %v20049_v48, %v17875_v5 }
 0x7ef   : > { %v18740_v30 = vor.u32 %v20262_v39, %v18737_v38  ;;  %v19965_v38 = vld [vmem:[%s28931_s15 + $0x488] sm:$0xf0] }
 0x7f0   : > { %v12026_v33 = vpop.f32.mrf.mxu3  ;;  %12206 = vmatpush.bf16.msra.mxu2 %v18320_v23  ;;  %12245 = vmatpush.bf16.msrb.mxu1 %v17204_v50  ;;  %v17180_v50 = vor.u32 %v19871_v10, %v17177_v62  ;;  %v17540_v41 = vor.u32 %v19965_v38, %v17539_v13  ;;  %v20220_v10 = vld [vmem:[%s28931_s15 + $0xc84] sm:$0xf]  ;;  %v18569_v62 = vld [vmem:[%s28931_s15 + $0xc9c] sm:$0xf0] }
 0x7f1   : > { %12168 = vmatmul.bf16.vlgmr.msrb.gmra.mxu0 %v26263_v8  ;;  %v12039_v23 = vpop.f32.mrf.mxu1 }
 0x7f2   : > { %12278 = vmatpush.bf16.msra.mxu3 %v18044_v27  ;;  %v17624_v27 = vor.u32 %v19986_v29, %v17623_v24  ;;  %12212 = vmatpush.bf16.msra.mxu0 %v18740_v30  ;;  %v18211_v24 = vld [vmem:[%s28931_s15 + $0x9b0] sm:$0xf]  ;;  %v20133_v29 = vld [vmem:[%s28931_s15 + $0x9c8] sm:$0xf0]  ;;  %v18656_v30 = vor.u32 %v20241_v6, %v18653_v11  ;;  %v18127_v6 = vld [vmem:[%s28931_s15 + $0x908] sm:$0xf] }
 0x7f3   : > { %12207 = vmatmul.bf16.vlgmr.msra.gmra.mxu2 %v26748_v17  ;;  %12246 = vmatmul.bf16.vlgmr.msrb.gmra.mxu1 %v26164_v4  ;;  %v18212_v22 = vor.u32 %v20133_v29, %v18211_v24  ;;  %v20112_v11 = vld [vmem:[%s28931_s15 + $0x920] sm:$0xf0]  ;;  %v18572_v24 = vor.u32 %v20220_v10, %v18569_v62  ;;  %v19843_v29 = vld [vmem:[%s28931_s15 + $0xbc] sm:$0xf]  ;;  %v19829_v10 = vld [vmem:[%s28931_s15 + $0x4c] sm:$0xf] }
 0x7f4   : > { %12251 = vmatpush.bf16.msrb.mxu2 %v17624_v27  ;;  %12290 = vmatpush.bf16.msra.mxu1 %v18296_v43  ;;  %v17149_v27 = vld [vmem:[%s28931_s15 + $0x17c] sm:$0xf0]  ;;  %v18625_v43 = vld [vmem:[%s28931_s15 + $0xd0c] sm:$0xf0]  ;;  %v27836_v55 = vpop.f32.mrf.mxu2  ;;  %v17009_v62 = vld [vmem:[%s28931_s15 + $0x64] sm:$0xf0] }
 0x7f6   : > { %12279 = vmatpush.bf16.msra.mxu3 %v18016_v21  ;;  %v17596_v21 = vor.u32 %v19979_v37, %v17595_v45  ;;  %12213 = vmatpush.bf16.msra.mxu0 %v18712_v16  ;;  %v19958_v45 = vld [vmem:[%s28931_s15 + $0x450] sm:$0xf0] }
 0x7f7   : > { %v17512_v1 = vor.u32 %v19958_v45, %v17511_v57  ;;  %v18519_v57 = vld [vmem:[%s28931_s15 + $0xc18] sm:$0xf]  ;;  %v20210_v45 = vld [vmem:[%s28931_s15 + $0xc30] sm:$0xf0] }
 0x7f8   : > { %12252 = vmatpush.bf16.msrb.mxu2 %v17596_v21  ;;  %v12028_v14 = vpop.f32.mrf.mxu3  ;;  %12291 = vmatpush.bf16.msra.mxu1 %v18268_v49  ;;  %v19857_v21 = vld [vmem:[%s28931_s15 + $0x12c] sm:$0xf] }
 0x7f9   : > { %v17124_v5 = vor.u32 %v19857_v21, %v17121_v51  ;;  %v19850_v14 = vld [vmem:[%s28931_s15 + $0xf4] sm:$0xf] }
 0x7fa   : > { %12280 = vmatpush.bf16.msra.mxu3 %v17988_v56  ;;  %v11897_v56 = vadd.f32 %v27619_v35, %v11884_v25  ;;  %v11909_v35 = vpop.f32.mrf.mxu0  ;;  %12214 = vmatpush.bf16.msra.mxu0 %v18684_v3  ;;  %v17483_v25 = vld [vmem:[%s28931_s15 + $0x400] sm:$0xf]  ;;  %v17093_v3 = vld [vmem:[%s28931_s15 + $0x10c] sm:$0xf0] }
 0x7fb   : > { %v17096_v38 = vor.u32 %v19850_v14, %v17093_v3 }
 0x7fc   : > { %v11910_v39 = vadd.f32 %v11909_v35, %v11897_v56  ;;  %12253 = vmatpush.bf16.msrb.mxu2 %v17568_v59  ;;  %12292 = vmatpush.bf16.msra.mxu1 %v18240_v18  ;;  %v18600_v56 = vor.u32 %v20227_v63, %v18597_v46  ;;  %v17484_v59 = vor.u32 %v19951_v53, %v17483_v25  ;;  %v17455_v18 = vld [vmem:[%s28931_s15 + $0x3c8] sm:$0xf]  ;;  %v17037_v63 = vld [vmem:[%s28931_s15 + $0x9c] sm:$0xf0] }
 0x7fd   : > { %v17819_v46 = vld [vmem:[%s28931_s15 + $0x6a0] sm:$0xf] }
 0x7fe   : > { %12281 = vmatpush.bf16.msra.mxu3 %v17960_v31  ;;  %v12027_v31 = vadd.f32 %v12026_v33, %v9493_v54  ;;  %v12537_v58 = vsub.f32 0.0, %v11910_v39  ;;  %v20234_v33 = vld [vmem:[%s28931_s15 + $0xcf4] sm:$0xf]  ;;  %12215 = vmatpush.bf16.msra.mxu0 %v18656_v30  ;;  %v20119_v54 = vld [vmem:[%s28931_s15 + $0x958] sm:$0xf0]  ;;  %v11949_v39 = vadd.f32 %v27721_v36, %v27484_v0  ;;  %v17456_v0 = vor.u32 %v19944_v19, %v17455_v18 }
 0x7ff   : > { %v18628_v16 = vor.u32 %v20234_v33, %v18625_v43  ;;  %v18156_v48 = vor.u32 %v20119_v54, %v18155_v9  ;;  %v18128_v36 = vor.u32 %v20112_v11, %v18127_v6  ;;  %v19937_v30 = vld [vmem:[%s28931_s15 + $0x3a8] sm:$0xf0]  ;;  %v18099_v33 = vld [vmem:[%s28931_s15 + $0x8d0] sm:$0xf]  ;;  %v20042_v43 = vld [vmem:[%s28931_s15 + $0x6f0] sm:$0xf0] }
 0x800   : > { %v27813_v34 = vadd.f32 %v12039_v23, %v12027_v31  ;;  %v12544_v37 = vmul.f32 1.442695, %v12537_v58  ;;  %12254 = vmatpush.bf16.msrb.mxu2 %v17540_v41  ;;  %12293 = vmatpush.bf16.msra.mxu1 %v18212_v22  ;;  %v17065_v31 = vld [vmem:[%s28931_s15 + $0xd4] sm:$0xf0]  ;;  %v12002_v58 = vpop.f32.mrf.mxu2  ;;  %v18541_v23 = vld [vmem:[%s28931_s15 + $0xc64] sm:$0xf0] }
 0x801   : > { %v20105_v41 = vld [vmem:[%s28931_s15 + $0x8e8] sm:$0xf0]  ;;  %v17847_v22 = vld [vmem:[%s28931_s15 + $0x6d8] sm:$0xf]  ;;  %v17068_v28 = vor.u32 %v19843_v29, %v17065_v31  ;;  %v20035_v9 = vld [vmem:[%s28931_s15 + $0x6b8] sm:$0xf0] }
 0x802   : > { %12282 = vmatpush.bf16.msra.mxu3 %v17932_v60  ;;  %20400 = vpow2.f32 %v12544_v37  ;;  %v17152_v60 = vor.u32 %v19864_v40, %v17149_v27  ;;  %v11911_v49 = vpop.f32.mrf.mxu0  ;;  %12216 = vmatpush.bf16.msra.mxu0 %v18628_v16  ;;  %v17401_v16 = vld [vmem:[%s28931_s15 + $0x374] sm:$0xf0]  ;;  %v18491_v54 = vld [vmem:[%s28931_s15 + $0xbe0] sm:$0xf]  ;;  %v17791_v18 = vld [vmem:[%s28931_s15 + $0x668] sm:$0xf] }
 0x803   : > { %v18520_v49 = vor.u32 %v20210_v45, %v18519_v57  ;;  %v20028_v19 = vld [vmem:[%s28931_s15 + $0x680] sm:$0xf0]  ;;  %v18463_v6 = vld [vmem:[%s28931_s15 + $0xba8] sm:$0xf]  ;;  %v19822_v29 = vld [vmem:[%s28931_s15 + $0x14] sm:$0xf] }
 0x804   : > { %12255 = vmatpush.bf16.msrb.mxu2 %v17512_v1  ;;  %12294 = vmatpush.bf16.msra.mxu1 %v18184_v42  ;;  %v18100_v1 = vor.u32 %v20105_v41, %v18099_v33  ;;  %v17848_v42 = vor.u32 %v20042_v43, %v17847_v22  ;;  %v20196_v11 = vld [vmem:[%s28931_s15 + $0xbc0] sm:$0xf0]  ;;  %v18073_v58 = vld [vmem:[%s28931_s15 + $0x8b4] sm:$0xf0]  ;;  %v19906_v33 = vld [vmem:[%s28931_s15 + $0x2b4] sm:$0xf] }
 0x805   : > { %v17317_v41 = vld [vmem:[%s28931_s15 + $0x2cc] sm:$0xf0] }
 0x806   : > { %12283 = vmatpush.bf16.msra.mxu3 %v17904_v7  ;;  %v12041_v7 = vpop.f32.mrf.mxu1  ;;  %12217 = vmatpush.bf16.msra.mxu0 %v18600_v56  ;;  %v17373_v56 = vld [vmem:[%s28931_s15 + $0x33c] sm:$0xf0] }
 0x807   : > { %v20203_v7 = vld [vmem:[%s28931_s15 + $0xbf8] sm:$0xf0] }
 0x808   : > { %v20401_v35 = vpop.eup %20400  ;;  %12256 = vmatpush.bf16.msrb.mxu2 %v17484_v59  ;;  %12295 = vmatpush.bf16.msra.mxu1 %v18156_v48  ;;  %v17820_v59 = vor.u32 %v20035_v9, %v17819_v46  ;;  %v18492_v48 = vor.u32 %v20203_v7, %v18491_v54  ;;  %v17289_v46 = vld [vmem:[%s28931_s15 + $0x294] sm:$0xf0]  ;;  %v20081_v54 = vld [vmem:[%s28931_s15 + $0x82c] sm:$0xf]  ;;  %v18017_v7 = vld [vmem:[%s28931_s15 + $0x844] sm:$0xf0] }
 0x809   : > { %v12558_v13 = vadd.f32 1.0, %v20401_v35 }
 0x80a   : > { %12284 = vmatpush.bf16.msra.mxu3 %v17876_v15  ;;  %v20213_v15 = vld [vmem:[%s28931_s15 + $0xc4c] sm:$0xf]  ;;  %v11961_v40 = vpop.f32.mrf.mxu0  ;;  %12218 = vmatpush.bf16.msra.mxu0 %v18572_v24 }
 0x80b   : > { %20402 = vrcp.f32 %v12558_v13  ;;  %v11962_v27 = vadd.f32 %v11961_v40, %v11949_v39  ;;  %v18544_v47 = vor.u32 %v20213_v15, %v18541_v23  ;;  %v19913_v13 = vld [vmem:[%s28931_s15 + $0x2ec] sm:$0xf]  ;;  %v17345_v39 = vld [vmem:[%s28931_s15 + $0x304] sm:$0xf0]  ;;  %v17792_v15 = vor.u32 %v20028_v19, %v17791_v18  ;;  %v20095_v40 = vld [vmem:[%s28931_s15 + $0x89c] sm:$0xf] }
 0x80c   : > { %12257 = vmatpush.bf16.msrb.mxu2 %v17456_v0  ;;  %12296 = vmatpush.bf16.msra.mxu1 %v18128_v36  ;;  %v18464_v0 = vor.u32 %v20196_v11, %v18463_v6  ;;  %v16981_v36 = vld [vmem:[%s28931_s15 + $0x2c] sm:$0xf0]  ;;  %v17348_v23 = vor.u32 %v19913_v13, %v17345_v39  ;;  %v18076_v45 = vor.u32 %v20095_v40, %v18073_v58  ;;  %v19892_v18 = vld [vmem:[%s28931_s15 + $0x244] sm:$0xf]  ;;  %v20074_v39 = vld [vmem:[%s28931_s15 + $0x7f4] sm:$0xf] }
 0x80d   : > { %12285 = vmatmul.bf16.vlgmr.msra.gmra.mxu3 %v26410_v52  ;;  %v11975_v37 = vadd.f32 %v27519_v26, %v11962_v27  ;;  %v19836_v26 = vld [vmem:[%s28931_s15 + $0x84] sm:$0xf]  ;;  %v20189_v27 = vld [vmem:[%s28931_s15 + $0xb88] sm:$0xf0]  ;;  %v16984_v22 = vor.u32 %v19822_v29, %v16981_v36  ;;  %v18020_v6 = vor.u32 %v20081_v54, %v18017_v7  ;;  %v17233_v58 = vld [vmem:[%s28931_s15 + $0x224] sm:$0xf0] }
 0x80e   : > { %12329 = vmatpush.bf16.msrb.mxu3 %v17180_v50  ;;  %v17427_v50 = vld [vmem:[%s28931_s15 + $0x390] sm:$0xf]  ;;  %12219 = vmatpush.bf16.msra.mxu0 %v18544_v47  ;;  %v17040_v14 = vor.u32 %v19836_v26, %v17037_v63  ;;  %v20088_v47 = vld [vmem:[%s28931_s15 + $0x864] sm:$0xf]  ;;  %v20182_v26 = vld [vmem:[%s28931_s15 + $0xb50] sm:$0xf0] }
 0x80f   : > { %v17428_v51 = vor.u32 %v19937_v30, %v17427_v50  ;;  %v11988_v31 = vadd.f32 %v27593_v12, %v11975_v37  ;;  %v17763_v12 = vld [vmem:[%s28931_s15 + $0x630] sm:$0xf]  ;;  %v20021_v50 = vld [vmem:[%s28931_s15 + $0x648] sm:$0xf0]  ;;  %v19899_v63 = vld [vmem:[%s28931_s15 + $0x27c] sm:$0xf] }
 0x810   : > { %v27931_v21 = vpop.f32.mrf.mxu3  ;;  %12297 = vmatpush.bf16.msra.mxu1 %v18100_v1  ;;  %v18435_v30 = vld [vmem:[%s28931_s15 + $0xb70] sm:$0xf]  ;;  %v28020_v57 = vpop.f32.mrf.mxu1  ;;  %v17320_v1 = vor.u32 %v19906_v33, %v17317_v41  ;;  %v20168_v36 = vld [vmem:[%s28931_s15 + $0xae0] sm:$0xf0]  ;;  %v19885_v40 = vld [vmem:[%s28931_s15 + $0x20c] sm:$0xf] }
 0x811   : > { %v20403_v25 = vpop.eup %20402  ;;  %12258 = vmatpush.bf16.msrb.mxu2 %v17428_v51  ;;  %12220 = vmatmul.bf16.vlgmr.msra.gmra.mxu0 %v26912_v61  ;;  %v12001_v43 = vadd.f32 %v27836_v55, %v11988_v31  ;;  %v18436_v51 = vor.u32 %v20189_v27, %v18435_v30  ;;  %v17735_v55 = vld [vmem:[%s28931_s15 + $0x5f8] sm:$0xf]  ;;  %v17679_v31 = vld [vmem:[%s28931_s15 + $0x588] sm:$0xf]  ;;  %v17651_v27 = vld [vmem:[%s28931_s15 + $0x550] sm:$0xf] }
 0x812   : > { %12330 = vmatpush.bf16.msrb.mxu3 %v17152_v60  ;;  %v19927_v60 = vld [vmem:[%s28931_s15 + $0x35c] sm:$0xf]  ;;  %12572 = vst [vmem:[%s27952_s23] sm:$0xff] %v20403_v25  ;;  %v11963_v3 = vpop.f32.mrf.mxu0  ;;  %12264 = vmatpush.bf16.msrb.mxu0 %v17848_v42  ;;  %v20014_v42 = vld [vmem:[%s28931_s15 + $0x610] sm:$0xf0]  ;;  %v17961_v30 = vld [vmem:[%s28931_s15 + $0x7d4] sm:$0xf0] }
 0x813   : > { %v17404_v53 = vor.u32 %v19927_v60, %v17401_v16  ;;  %12298 = vmatmul.bf16.vlgmr.msra.gmra.mxu1 %v26589_v44  ;;  %v18045_v60 = vld [vmem:[%s28931_s15 + $0x87c] sm:$0xf0]  ;;  %v17736_v9 = vor.u32 %v20014_v42, %v17735_v55  ;;  %v17292_v3 = vor.u32 %v19899_v63, %v17289_v46  ;;  %v19993_v33 = vld [vmem:[%s28931_s15 + $0x568] sm:$0xf0]  ;;  %v19983_v55 = vld [vmem:[%s28931_s15 + $0x51c] sm:$0xf] }
 0x814   : > { %12259 = vmatmul.bf16.vlgmr.msrb.gmra.mxu2 %v26265_v2  ;;  %v17625_v42 = vld [vmem:[%s28931_s15 + $0x534] sm:$0xf0]  ;;  %v20151_v63 = vld [vmem:[%s28931_s15 + $0xa5c] sm:$0xf] }
 0x815   : > { %12303 = vmatpush.bf16.msra.mxu2 %v18520_v49  ;;  %12342 = vmatpush.bf16.msrb.mxu1 %v17404_v53  ;;  %v18407_v49 = vld [vmem:[%s28931_s15 + $0xb38] sm:$0xf]  ;;  %v18048_v53 = vor.u32 %v20088_v47, %v18045_v60  ;;  %v19878_v47 = vld [vmem:[%s28931_s15 + $0x1d4] sm:$0xf]  ;;  %v17628_v7 = vor.u32 %v19983_v55, %v17625_v42 }
 0x816   : > { %12331 = vmatpush.bf16.msrb.mxu3 %v17124_v5  ;;  %v19920_v5 = vld [vmem:[%s28931_s15 + $0x324] sm:$0xf]  ;;  %12265 = vmatpush.bf16.msrb.mxu0 %v17820_v59  ;;  %v18297_v46 = vld [vmem:[%s28931_s15 + $0xa74] sm:$0xf0] }
 0x817   : > { %v17376_v35 = vor.u32 %v19920_v5, %v17373_v56  ;;  %v17707_v5 = vld [vmem:[%s28931_s15 + $0x5c0] sm:$0xf]  ;;  %v28055_v59 = vpop.f32.mrf.mxu2 }
 0x818   : > { %v12080_v24 = vpop.f32.mrf.mxu3  ;;  %v12093_v19 = vpop.f32.mrf.mxu1 }
 0x819   : > { %12304 = vmatpush.bf16.msra.mxu2 %v18492_v48  ;;  %12343 = vmatpush.bf16.msrb.mxu1 %v17376_v35  ;;  %v20007_v48 = vld [vmem:[%s28931_s15 + $0x5d8] sm:$0xf0]  ;;  %v17261_v35 = vld [vmem:[%s28931_s15 + $0x25c] sm:$0xf0] }
 0x81a   : > { %12332 = vmatpush.bf16.msrb.mxu3 %v17096_v38  ;;  %v17012_v38 = vor.u32 %v19829_v10, %v17009_v62  ;;  %12266 = vmatpush.bf16.msrb.mxu0 %v17792_v15  ;;  %v12013_v37 = vpop.f32.mrf.mxu0  ;;  %v18379_v10 = vld [vmem:[%s28931_s15 + $0xb00] sm:$0xf]  ;;  %v20175_v62 = vld [vmem:[%s28931_s15 + $0xb18] sm:$0xf0]  ;;  %v17708_v13 = vor.u32 %v20007_v48, %v17707_v5  ;;  %v17264_v29 = vor.u32 %v19892_v18, %v17261_v35  ;;  %v20000_v15 = vld [vmem:[%s28931_s15 + $0x5a0] sm:$0xf0] }
 0x81b   : > { %v12014_v16 = vadd.f32 %v12013_v37, %v12001_v43  ;;  %v18380_v24 = vor.u32 %v20175_v62, %v18379_v10  ;;  %v17236_v43 = vor.u32 %v19885_v40, %v17233_v58  ;;  %v18323_v37 = vld [vmem:[%s28931_s15 + $0xa90] sm:$0xf]  ;;  %v20060_v5 = vld [vmem:[%s28931_s15 + $0x784] sm:$0xf]  ;;  %v20259_v48 = vld [vmem:[%s28931_s15 + $0xdb8] sm:$0xf0] }
 0x81c   : > { %v19976_v10 = vld [vmem:[%s28931_s15 + $0x4e4] sm:$0xf]  ;;  %v17597_v62 = vld [vmem:[%s28931_s15 + $0x4fc] sm:$0xf0]  ;;  %v20137_v40 = vld [vmem:[%s28931_s15 + $0x9ec] sm:$0xf] }
 0x81d   : > { %12305 = vmatpush.bf16.msra.mxu2 %v18464_v0  ;;  %12344 = vmatpush.bf16.msrb.mxu1 %v17348_v23  ;;  %v12538_v25 = vsub.f32 0.0, %v12014_v16  ;;  %v18351_v0 = vld [vmem:[%s28931_s15 + $0xac8] sm:$0xf]  ;;  %v20067_v23 = vld [vmem:[%s28931_s15 + $0x7bc] sm:$0xf] }
 0x81e   : > { %12333 = vmatpush.bf16.msrb.mxu3 %v17068_v28  ;;  %v17764_v28 = vor.u32 %v20021_v50, %v17763_v12  ;;  %v17680_v50 = vor.u32 %v20000_v15, %v17679_v31  ;;  %v17205_v16 = vld [vmem:[%s28931_s15 + $0x1ec] sm:$0xf0]  ;;  %v20144_v18 = vld [vmem:[%s28931_s15 + $0xa24] sm:$0xf]  ;;  %v18269_v35 = vld [vmem:[%s28931_s15 + $0xa3c] sm:$0xf0] }
 0x81f   : > { %v12546_v56 = vmul.f32 1.442695, %v12538_v25  ;;  %v18272_v31 = vor.u32 %v20144_v18, %v18269_v35  ;;  %v19969_v15 = vld [vmem:[%s28931_s15 + $0x4ac] sm:$0xf]  ;;  %v18241_v58 = vld [vmem:[%s28931_s15 + $0xa04] sm:$0xf0] }
 0x820   : > { %12267 = vmatpush.bf16.msrb.mxu0 %v17764_v28  ;;  %v20161_v28 = vld [vmem:[%s28931_s15 + $0xaa8] sm:$0xf0] }
 0x821   : > { %12306 = vmatpush.bf16.msra.mxu2 %v18436_v51  ;;  %12345 = vmatpush.bf16.msrb.mxu1 %v17320_v1  ;;  %20404 = vpow2.f32 %v12546_v56  ;;  %v18743_v51 = vld [vmem:[%s28931_s15 + $0xdd8] sm:$0xf]  ;;  %v20266_v1 = vld [vmem:[%s28931_s15 + $0xdf0] sm:$0xf0]  ;;  %v17933_v56 = vld [vmem:[%s28931_s15 + $0x79c] sm:$0xf0] }
 0x822   : > { %12334 = vmatpush.bf16.msrb.mxu3 %v17040_v14  ;;  %v18408_v14 = vor.u32 %v20182_v26, %v18407_v49  ;;  %v12015_v11 = vpop.f32.mrf.mxu0  ;;  %v17964_v49 = vor.u32 %v20067_v23, %v17961_v30  ;;  %v17652_v26 = vor.u32 %v19993_v33, %v17651_v27  ;;  %v18744_v54 = vor.u32 %v20266_v1, %v18743_v51  ;;  %v17877_v27 = vld [vmem:[%s28931_s15 + $0x72c] sm:$0xf0]  ;;  %v17183_v33 = vld [vmem:[%s28931_s15 + $0x1a0] sm:$0xf] }
 0x823   : > { %v17936_v19 = vor.u32 %v20060_v5, %v17933_v56  ;;  %v19955_v5 = vld [vmem:[%s28931_s15 + $0x43c] sm:$0xf]  ;;  %v17513_v56 = vld [vmem:[%s28931_s15 + $0x454] sm:$0xf0] }
 0x824   : > { %12268 = vmatpush.bf16.msrb.mxu0 %v17736_v9  ;;  %v17208_v9 = vor.u32 %v19878_v47, %v17205_v16  ;;  %v18213_v16 = vld [vmem:[%s28931_s15 + $0x9cc] sm:$0xf0]  ;;  %v17516_v18 = vor.u32 %v19955_v5, %v17513_v56 }
 0x825   : > { %12307 = vmatpush.bf16.msra.mxu2 %v18408_v14  ;;  %12346 = vmatpush.bf16.msrb.mxu1 %v17292_v3  ;;  %v18715_v14 = vld [vmem:[%s28931_s15 + $0xda0] sm:$0xf]  ;;  %v18300_v3 = vor.u32 %v20151_v63, %v18297_v46  ;;  %v17155_v63 = vld [vmem:[%s28931_s15 + $0x168] sm:$0xf]  ;;  %v19868_v46 = vld [vmem:[%s28931_s15 + $0x180] sm:$0xf0] }
 0x826   : > { %12335 = vmatpush.bf16.msrb.mxu3 %v17012_v38  ;;  %v17989_v38 = vld [vmem:[%s28931_s15 + $0x80c] sm:$0xf0] }
 0x827   : > { %v17992_v12 = vor.u32 %v20074_v39, %v17989_v38  ;;  %v20405_v41 = vpop.eup %20404  ;;  %v17600_v39 = vor.u32 %v19976_v10, %v17597_v62  ;;  %v17905_v38 = vld [vmem:[%s28931_s15 + $0x764] sm:$0xf0]  ;;  %v17127_v10 = vld [vmem:[%s28931_s15 + $0x130] sm:$0xf]  ;;  %v19861_v62 = vld [vmem:[%s28931_s15 + $0x148] sm:$0xf0] }
 0x828   : > { %12269 = vmatpush.bf16.msrb.mxu0 %v17708_v13  ;;  %v12559_v60 = vadd.f32 1.0, %v20405_v41  ;;  %v18716_v13 = vor.u32 %v20259_v48, %v18715_v14  ;;  %v19875_v41 = vld [vmem:[%s28931_s15 + $0x1b8] sm:$0xf0]  ;;  %v18185_v14 = vld [vmem:[%s28931_s15 + $0x994] sm:$0xf0] }
 0x829   : > { %12308 = vmatpush.bf16.msra.mxu2 %v18380_v24  ;;  %12347 = vmatpush.bf16.msrb.mxu1 %v17264_v29  ;;  %v18687_v24 = vld [vmem:[%s28931_s15 + $0xd68] sm:$0xf]  ;;  %v20252_v29 = vld [vmem:[%s28931_s15 + $0xd80] sm:$0xf0] }
 0x82a   : > { %12336 = vmatpush.bf16.msrb.mxu3 %v16984_v22  ;;  %v18352_v22 = vor.u32 %v20168_v36, %v18351_v0  ;;  %20406 = vrcp.f32 %v12559_v60  ;;  %v17569_v0 = vld [vmem:[%s28931_s15 + $0x4c4] sm:$0xf0]  ;;  %v9494_v36 = vperm.slane %v27770_v20, 3  ;;  %v18688_v20 = vor.u32 %v20252_v29, %v18687_v24  ;;  %v20116_v24 = vld [vmem:[%s28931_s15 + $0x944] sm:$0xf] }
 0x82b   : > { %v17572_v30 = vor.u32 %v19969_v15, %v17569_v0  ;;  %v18157_v29 = vld [vmem:[%s28931_s15 + $0x95c] sm:$0xf0]  ;;  %v17128_v15 = vor.u32 %v19861_v62, %v17127_v10  ;;  %v20032_v10 = vld [vmem:[%s28931_s15 + $0x6a4] sm:$0xf] }
 0x82c   : > { %12270 = vmatpush.bf16.msrb.mxu0 %v17680_v50  ;;  %v20046_v50 = vld [vmem:[%s28931_s15 + $0x714] sm:$0xf] }
 0x82d   : > { %12337 = vmatmul.bf16.vlgmr.msrb.gmra.mxu3 %v26162_v32  ;;  %12309 = vmatpush.bf16.msra.mxu2 %v18352_v22  ;;  %v12053_v22 = vadd.f32 %v28055_v59, %v27813_v34  ;;  %v17541_v34 = vld [vmem:[%s28931_s15 + $0x48c] sm:$0xf0]  ;;  %v20130_v59 = vld [vmem:[%s28931_s15 + $0x9b4] sm:$0xf]  ;;  %v17880_v51 = vor.u32 %v20046_v50, %v17877_v27  ;;  %v20224_v50 = vld [vmem:[%s28931_s15 + $0xca0] sm:$0xf0] }
 0x82e   : > { %12381 = vmatpush.bf16.msra.mxu3 %v18076_v45  ;;  %v12054_v45 = vpop.f32.mrf.mxu2  ;;  %12348 = vmatpush.bf16.msrb.mxu1 %v17236_v43  ;;  %v18244_v43 = vor.u32 %v20137_v40, %v18241_v58  ;;  %v12065_v60 = vpop.f32.mrf.mxu0  ;;  %v19854_v40 = vld [vmem:[%s28931_s15 + $0x110] sm:$0xf0]  ;;  %v20109_v27 = vld [vmem:[%s28931_s15 + $0x90c] sm:$0xf] }
 0x82f   : > { %v18659_v45 = vld [vmem:[%s28931_s15 + $0xd30] sm:$0xf]  ;;  %v12066_v1 = vadd.f32 %v12065_v60, %v12053_v22 }
 0x830   : > { %v12130_v25 = vpop.f32.mrf.mxu3  ;;  %12271 = vmatpush.bf16.msrb.mxu0 %v17652_v26  ;;  %v20407_v11 = vpop.eup %20406 }
 0x831   : > { %12573 = vst [vmem:[%s27952_s23 + $0x8] sm:$0xff] %v20407_v11  ;;  %v12131_v47 = vadd.f32 %v12130_v25, %v9494_v36  ;;  %v12143_v55 = vpop.f32.mrf.mxu1  ;;  %v28233_v25 = vadd.f32 %v27931_v21, %v12066_v1  ;;  %v20123_v21 = vld [vmem:[%s28931_s15 + $0x97c] sm:$0xf]  ;;  %v17099_v36 = vld [vmem:[%s28931_s15 + $0xf8] sm:$0xf] }
 0x832   : > { %12382 = vmatpush.bf16.msra.mxu3 %v18048_v53  ;;  %v18324_v53 = vor.u32 %v20161_v28, %v18323_v37  ;;  %12349 = vmatpush.bf16.msrb.mxu1 %v17208_v9  ;;  %v20245_v37 = vld [vmem:[%s28931_s15 + $0xd48] sm:$0xf0]  ;;  %v19962_v28 = vld [vmem:[%s28931_s15 + $0x474] sm:$0xf]  ;;  %v18216_v9 = vor.u32 %v20130_v59, %v18213_v16  ;;  %v18188_v35 = vor.u32 %v20123_v21, %v18185_v14  ;;  %v20231_v11 = vld [vmem:[%s28931_s15 + $0xcd8] sm:$0xf0] }
 0x833   : > { %12272 = vmatmul.bf16.vlgmr.msrb.gmra.mxu0 %v26263_v8  ;;  %v28224_v42 = vadd.f32 %v12143_v55, %v12131_v47  ;;  %v18660_v26 = vor.u32 %v20245_v37, %v18659_v45  ;;  %v19847_v45 = vld [vmem:[%s28931_s15 + $0xd8] sm:$0xf0]  ;;  %v18547_v37 = vld [vmem:[%s28931_s15 + $0xc50] sm:$0xf]  ;;  %v19934_v59 = vld [vmem:[%s28931_s15 + $0x394] sm:$0xf] }
 0x834   : > { %12310 = vmatpush.bf16.msra.mxu2 %v18324_v53  ;;  %12316 = vmatpush.bf16.msra.mxu0 %v18744_v54  ;;  %v17544_v53 = vor.u32 %v19962_v28, %v17541_v34  ;;  %v18631_v54 = vld [vmem:[%s28931_s15 + $0xcf8] sm:$0xf]  ;;  %v20217_v34 = vld [vmem:[%s28931_s15 + $0xc68] sm:$0xf0]  ;;  %v17429_v16 = vld [vmem:[%s28931_s15 + $0x3ac] sm:$0xf0] }
 0x835   : > { %12350 = vmatmul.bf16.vlgmr.msrb.gmra.mxu1 %v26164_v4  ;;  %v18101_v1 = vld [vmem:[%s28931_s15 + $0x8ec] sm:$0xf0]  ;;  %v20039_v55 = vld [vmem:[%s28931_s15 + $0x6dc] sm:$0xf]  ;;  %v17432_v5 = vor.u32 %v19934_v59, %v17429_v16  ;;  %v19910_v59 = vld [vmem:[%s28931_s15 + $0x2d0] sm:$0xf0] }
 0x836   : > { %12383 = vmatpush.bf16.msra.mxu3 %v18020_v6  ;;  %v20053_v6 = vld [vmem:[%s28931_s15 + $0x74c] sm:$0xf]  ;;  %12394 = vmatpush.bf16.msra.mxu1 %v18300_v3  ;;  %v17156_v3 = vor.u32 %v19868_v46, %v17155_v63  ;;  %v18521_v63 = vld [vmem:[%s28931_s15 + $0xc34] sm:$0xf0] }
 0x837   : > { %12311 = vmatmul.bf16.vlgmr.msra.gmra.mxu2 %v26748_v17  ;;  %v17908_v23 = vor.u32 %v20053_v6, %v17905_v38  ;;  %v18603_v6 = vld [vmem:[%s28931_s15 + $0xcc0] sm:$0xf] }
 0x838   : > { %12355 = vmatpush.bf16.msrb.mxu2 %v17628_v7  ;;  %12317 = vmatpush.bf16.msra.mxu0 %v18716_v13  ;;  %v20238_v7 = vld [vmem:[%s28931_s15 + $0xd10] sm:$0xf0]  ;;  %v19948_v13 = vld [vmem:[%s28931_s15 + $0x404] sm:$0xf]  ;;  %v17485_v38 = vld [vmem:[%s28931_s15 + $0x41c] sm:$0xf0]  ;;  %v18604_v0 = vor.u32 %v20231_v11, %v18603_v6 }
 0x839   : > { %v18632_v48 = vor.u32 %v20238_v7, %v18631_v54  ;;  %v17488_v58 = vor.u32 %v19948_v13, %v17485_v38  ;;  %v19931_v54 = vld [vmem:[%s28931_s15 + $0x378] sm:$0xf0]  ;;  %v18493_v6 = vld [vmem:[%s28931_s15 + $0xbfc] sm:$0xf0]  ;;  %v17379_v11 = vld [vmem:[%s28931_s15 + $0x328] sm:$0xf] }
 0x83a   : > { %12384 = vmatpush.bf16.msra.mxu3 %v17992_v12  ;;  %v12132_v12 = vpop.f32.mrf.mxu3  ;;  %12395 = vmatpush.bf16.msra.mxu1 %v18272_v31  ;;  %v12145_v31 = vpop.f32.mrf.mxu1  ;;  %v19924_v13 = vld [vmem:[%s28931_s15 + $0x340] sm:$0xf0] }
 0x83b   : > { %v18575_v12 = vld [vmem:[%s28931_s15 + $0xc88] sm:$0xf]  ;;  %v19833_v31 = vld [vmem:[%s28931_s15 + $0x68] sm:$0xf0] }
 0x83c   : > { %12356 = vmatpush.bf16.msrb.mxu2 %v17600_v39  ;;  %12318 = vmatpush.bf16.msra.mxu0 %v18688_v20  ;;  %v12067_v39 = vpop.f32.mrf.mxu0  ;;  %v19941_v20 = vld [vmem:[%s28931_s15 + $0x3cc] sm:$0xf]  ;;  %v18576_v22 = vor.u32 %v20224_v50, %v18575_v12 }
 0x83e   : > { %12385 = vmatpush.bf16.msra.mxu3 %v17964_v49  ;;  %v17184_v49 = vor.u32 %v19875_v41, %v17183_v33  ;;  %12396 = vmatpush.bf16.msra.mxu1 %v18244_v43  ;;  %v18129_v33 = vld [vmem:[%s28931_s15 + $0x924] sm:$0xf0]  ;;  %v17100_v41 = vor.u32 %v19854_v40, %v17099_v36  ;;  %v17071_v43 = vld [vmem:[%s28931_s15 + $0xc0] sm:$0xf]  ;;  %v17380_v36 = vor.u32 %v19924_v13, %v17379_v11 }
 0x83f   : > { %v18132_v47 = vor.u32 %v20109_v27, %v18129_v33  ;;  %v17072_v46 = vor.u32 %v19847_v45, %v17071_v43  ;;  %v17793_v40 = vld [vmem:[%s28931_s15 + $0x684] sm:$0xf0]  ;;  %v19826_v33 = vld [vmem:[%s28931_s15 + $0x30] sm:$0xf0] }
 0x840   : > { %12357 = vmatpush.bf16.msrb.mxu2 %v17572_v30  ;;  %12319 = vmatpush.bf16.msra.mxu0 %v18660_v26  ;;  %v17457_v30 = vld [vmem:[%s28931_s15 + $0x3e4] sm:$0xf0]  ;;  %v20207_v26 = vld [vmem:[%s28931_s15 + $0xc1c] sm:$0xf] }
 0x841   : > { %v17460_v28 = vor.u32 %v19941_v20, %v17457_v30  ;;  %v18524_v14 = vor.u32 %v20207_v26, %v18521_v63  ;;  %v16987_v20 = vld [vmem:[%s28931_s15 + $0x18] sm:$0xf]  ;;  %v18051_v26 = vld [vmem:[%s28931_s15 + $0x868] sm:$0xf]  ;;  %v20092_v63 = vld [vmem:[%s28931_s15 + $0x880] sm:$0xf0] }
 0x842   : > { %12386 = vmatpush.bf16.msra.mxu3 %v17936_v19  ;;  %12397 = vmatpush.bf16.msra.mxu1 %v18216_v9  ;;  %v28259_v19 = vpop.f32.mrf.mxu2  ;;  %v17407_v9 = vld [vmem:[%s28931_s15 + $0x360] sm:$0xf]  ;;  %v16988_v16 = vor.u32 %v19826_v33, %v16987_v20  ;;  %v20165_v20 = vld [vmem:[%s28931_s15 + $0xacc] sm:$0xf] }
 0x843   : > { %v17408_v62 = vor.u32 %v19931_v54, %v17407_v9  ;;  %v19889_v33 = vld [vmem:[%s28931_s15 + $0x228] sm:$0xf0] }
 0x844   : > { %12358 = vmatpush.bf16.msrb.mxu2 %v17544_v53  ;;  %12320 = vmatpush.bf16.msra.mxu0 %v18632_v48  ;;  %v18548_v53 = vor.u32 %v20217_v34, %v18547_v37  ;;  %v19840_v48 = vld [vmem:[%s28931_s15 + $0xa0] sm:$0xf0]  ;;  %v20018_v37 = vld [vmem:[%s28931_s15 + $0x634] sm:$0xf]  ;;  %v18437_v34 = vld [vmem:[%s28931_s15 + $0xb8c] sm:$0xf0] }
 0x846   : > { %12387 = vmatpush.bf16.msra.mxu3 %v17908_v23  ;;  %12398 = vmatpush.bf16.msra.mxu1 %v18188_v35  ;;  %v18160_v23 = vor.u32 %v20116_v24, %v18157_v29  ;;  %v20200_v35 = vld [vmem:[%s28931_s15 + $0xbe4] sm:$0xf]  ;;  %v17015_v29 = vld [vmem:[%s28931_s15 + $0x50] sm:$0xf] }
 0x847   : > { %v18496_v24 = vor.u32 %v20200_v35, %v18493_v6  ;;  %v17016_v12 = vor.u32 %v19833_v31, %v17015_v29  ;;  %v20085_v35 = vld [vmem:[%s28931_s15 + $0x848] sm:$0xf0]  ;;  %v18381_v31 = vld [vmem:[%s28931_s15 + $0xb1c] sm:$0xf0] }
 0x848   : > { %12359 = vmatpush.bf16.msrb.mxu2 %v17516_v18  ;;  %12321 = vmatpush.bf16.msra.mxu0 %v18604_v0  ;;  %v17821_v18 = vld [vmem:[%s28931_s15 + $0x6bc] sm:$0xf0]  ;;  %v12092_v0 = vadd.f32 %v28020_v57, %v28233_v25  ;;  %v17351_v57 = vld [vmem:[%s28931_s15 + $0x2f0] sm:$0xf]  ;;  %v19917_v25 = vld [vmem:[%s28931_s15 + $0x308] sm:$0xf0] }
 0x849   : > { %v17824_v38 = vor.u32 %v20032_v10, %v17821_v18  ;;  %v17352_v45 = vor.u32 %v19917_v25, %v17351_v57  ;;  %v18052_v10 = vor.u32 %v20092_v63, %v18051_v26  ;;  %v18023_v18 = vld [vmem:[%s28931_s15 + $0x830] sm:$0xf]  ;;  %v20263_v26 = vld [vmem:[%s28931_s15 + $0xddc] sm:$0xf]  ;;  %v18745_v63 = vld [vmem:[%s28931_s15 + $0xdf4] sm:$0xf0] }
 0x84a   : > { %12388 = vmatpush.bf16.msra.mxu3 %v17880_v51  ;;  %12399 = vmatpush.bf16.msra.mxu1 %v18160_v23  ;;  %v12106_v60 = vpop.f32.mrf.mxu2  ;;  %v20102_v51 = vld [vmem:[%s28931_s15 + $0x8d4] sm:$0xf]  ;;  %v18465_v23 = vld [vmem:[%s28931_s15 + $0xbc4] sm:$0xf0]  ;;  %v12105_v43 = vadd.f32 %v28259_v19, %v12092_v0  ;;  %v17323_v19 = vld [vmem:[%s28931_s15 + $0x2b8] sm:$0xf] }
 0x84b   : > { %v18104_v56 = vor.u32 %v20102_v51, %v18101_v1  ;;  %v17324_v54 = vor.u32 %v19910_v59, %v17323_v19  ;;  %v19896_v0 = vld [vmem:[%s28931_s15 + $0x260] sm:$0xf0]  ;;  %v17653_v59 = vld [vmem:[%s28931_s15 + $0x56c] sm:$0xf0] }
 0x84c   : > { %12360 = vmatpush.bf16.msrb.mxu2 %v17488_v58  ;;  %12322 = vmatpush.bf16.msra.mxu0 %v18576_v22  ;;  %v20193_v58 = vld [vmem:[%s28931_s15 + $0xbac] sm:$0xf]  ;;  %v20099_v22 = vld [vmem:[%s28931_s15 + $0x8b8] sm:$0xf0] }
 0x84d   : > { %12389 = vmatmul.bf16.vlgmr.msra.gmra.mxu3 %v26410_v52  ;;  %v18468_v27 = vor.u32 %v20193_v58, %v18465_v23  ;;  %v20078_v23 = vld [vmem:[%s28931_s15 + $0x810] sm:$0xf0] }
 0x84e   : > { %12433 = vmatpush.bf16.msrb.mxu3 %v17184_v49  ;;  %v17849_v49 = vld [vmem:[%s28931_s15 + $0x6f4] sm:$0xf0]  ;;  %12400 = vmatpush.bf16.msra.mxu1 %v18132_v47  ;;  %v20186_v47 = vld [vmem:[%s28931_s15 + $0xb74] sm:$0xf]  ;;  %v12117_v60 = vpop.f32.mrf.mxu0 }
 0x84f   : > { %v17852_v21 = vor.u32 %v20039_v55, %v17849_v49  ;;  %v12118_v51 = vadd.f32 %v12117_v60, %v12105_v43  ;;  %v18440_v9 = vor.u32 %v20186_v47, %v18437_v34  ;;  %v19990_v47 = vld [vmem:[%s28931_s15 + $0x554] sm:$0xf] }
 0x850   : > { %12361 = vmatpush.bf16.msrb.mxu2 %v17460_v28  ;;  %v28346_v7 = vpop.f32.mrf.mxu3  ;;  %12323 = vmatpush.bf16.msra.mxu0 %v18548_v53  ;;  %v17765_v28 = vld [vmem:[%s28931_s15 + $0x64c] sm:$0xf0]  ;;  %v28432_v1 = vpop.f32.mrf.mxu1 }
 0x851   : > { %v17768_v49 = vor.u32 %v20018_v37, %v17765_v28  ;;  %v12539_v53 = vsub.f32 0.0, %v12118_v51  ;;  %v20071_v28 = vld [vmem:[%s28931_s15 + $0x7d8] sm:$0xf0]  ;;  %v18325_v51 = vld [vmem:[%s28931_s15 + $0xaac] sm:$0xf0] }
 0x852   : > { %12434 = vmatpush.bf16.msrb.mxu3 %v17156_v3  ;;  %v17043_v3 = vld [vmem:[%s28931_s15 + $0x88] sm:$0xf]  ;;  %12401 = vmatpush.bf16.msra.mxu1 %v18104_v56  ;;  %v20179_v56 = vld [vmem:[%s28931_s15 + $0xb3c] sm:$0xf] }
 0x853   : > { %v17044_v39 = vor.u32 %v19840_v48, %v17043_v3  ;;  %12324 = vmatmul.bf16.vlgmr.msra.gmra.mxu0 %v26912_v61  ;;  %v19903_v3 = vld [vmem:[%s28931_s15 + $0x298] sm:$0xf0]  ;;  %v12548_v48 = vmul.f32 1.442695, %v12539_v53 }
 0x854   : > { %12362 = vmatpush.bf16.msrb.mxu2 %v17432_v5  ;;  %12368 = vmatpush.bf16.msrb.mxu0 %v17852_v21  ;;  %v17737_v5 = vld [vmem:[%s28931_s15 + $0x614] sm:$0xf0]  ;;  %v19987_v53 = vld [vmem:[%s28931_s15 + $0x538] sm:$0xf0] }
 0x855   : > { %12402 = vmatmul.bf16.vlgmr.msra.gmra.mxu1 %v26589_v44  ;;  %v18409_v21 = vld [vmem:[%s28931_s15 + $0xb54] sm:$0xf0]  ;;  %20408 = vpow2.f32 %v12548_v48  ;;  %v18748_v48 = vor.u32 %v20263_v26, %v18745_v63 }
 0x856   : > { %12435 = vmatpush.bf16.msrb.mxu3 %v17128_v15  ;;  %v20025_v15 = vld [vmem:[%s28931_s15 + $0x66c] sm:$0xf]  ;;  %12446 = vmatpush.bf16.msrb.mxu1 %v17408_v62  ;;  %v18412_v6 = vor.u32 %v20179_v56, %v18409_v21  ;;  %v28464_v13 = vpop.f32.mrf.mxu2  ;;  %v12119_v29 = vpop.f32.mrf.mxu0  ;;  %v20155_v56 = vld [vmem:[%s28931_s15 + $0xa78] sm:$0xf0] }
 0x857   : > { %12363 = vmatmul.bf16.vlgmr.msrb.gmra.mxu2 %v26265_v2  ;;  %v17796_v30 = vor.u32 %v20025_v15, %v17793_v40  ;;  %v17267_v15 = vld [vmem:[%s28931_s15 + $0x248] sm:$0xf]  ;;  %v18024_v40 = vor.u32 %v20085_v35, %v18023_v18  ;;  %v20064_v18 = vld [vmem:[%s28931_s15 + $0x7a0] sm:$0xf0] }
 0x858   : > { %12407 = vmatpush.bf16.msra.mxu2 %v18524_v14  ;;  %v12184_v50 = vpop.f32.mrf.mxu3  ;;  %12369 = vmatpush.bf16.msrb.mxu0 %v17824_v38  ;;  %v17295_v14 = vld [vmem:[%s28931_s15 + $0x280] sm:$0xf]  ;;  %v17268_v25 = vor.u32 %v19896_v0, %v17267_v15  ;;  %v20256_v35 = vld [vmem:[%s28931_s15 + $0xda4] sm:$0xf]  ;;  %v18275_v29 = vld [vmem:[%s28931_s15 + $0xa28] sm:$0xf] }
 0x859   : > { %v17296_v11 = vor.u32 %v19903_v3, %v17295_v14  ;;  %v17709_v38 = vld [vmem:[%s28931_s15 + $0x5dc] sm:$0xf0]  ;;  %v17681_v50 = vld [vmem:[%s28931_s15 + $0x5a4] sm:$0xf0] }
 0x85a   : > { %12436 = vmatpush.bf16.msrb.mxu3 %v17100_v41  ;;  %v18079_v41 = vld [vmem:[%s28931_s15 + $0x8a0] sm:$0xf]  ;;  %12447 = vmatpush.bf16.msrb.mxu1 %v17380_v36  ;;  %v12197_v36 = vpop.f32.mrf.mxu1 }
 0x85b   : > { %v18080_v55 = vor.u32 %v20099_v22, %v18079_v41  ;;  %v20409_v41 = vpop.eup %20408  ;;  %v17967_v22 = vld [vmem:[%s28931_s15 + $0x7c0] sm:$0xf] }
 0x85c   : > { %12408 = vmatpush.bf16.msra.mxu2 %v18496_v24  ;;  %12370 = vmatpush.bf16.msrb.mxu0 %v17796_v30  ;;  %v20172_v24 = vld [vmem:[%s28931_s15 + $0xb04] sm:$0xf]  ;;  %v18353_v30 = vld [vmem:[%s28931_s15 + $0xae4] sm:$0xf0]  ;;  %v12560_v43 = vadd.f32 1.0, %v20409_v41 }
 0x85d   : > { %v18384_v57 = vor.u32 %v20172_v24, %v18381_v31  ;;  %v18356_v60 = vor.u32 %v20165_v20, %v18353_v30  ;;  %v20148_v31 = vld [vmem:[%s28931_s15 + $0xa40] sm:$0xf0]  ;;  %v18247_v30 = vld [vmem:[%s28931_s15 + $0x9f0] sm:$0xf] }
 0x85e   : > { %12437 = vmatpush.bf16.msrb.mxu3 %v17072_v46  ;;  %v20011_v46 = vld [vmem:[%s28931_s15 + $0x5fc] sm:$0xf]  ;;  %12448 = vmatpush.bf16.msrb.mxu1 %v17352_v45  ;;  %v12158_v19 = vpop.f32.mrf.mxu2  ;;  %20410 = vrcp.f32 %v12560_v43 }
 0x85f   : > { %v17740_v62 = vor.u32 %v20011_v46, %v17737_v5  ;;  %v17631_v46 = vld [vmem:[%s28931_s15 + $0x520] sm:$0xf]  ;;  %v19966_v19 = vld [vmem:[%s28931_s15 + $0x490] sm:$0xf0] }
 0x860   : > { %12409 = vmatpush.bf16.msra.mxu2 %v18468_v27  ;;  %12371 = vmatpush.bf16.msrb.mxu0 %v17768_v49  ;;  %v17239_v27 = vld [vmem:[%s28931_s15 + $0x210] sm:$0xf]  ;;  %v19882_v49 = vld [vmem:[%s28931_s15 + $0x1f0] sm:$0xf0]  ;;  %v18303_v5 = vld [vmem:[%s28931_s15 + $0xa60] sm:$0xf] }
 0x861   : > { %v17240_v34 = vor.u32 %v19889_v33, %v17239_v27  ;;  %v20141_v27 = vld [vmem:[%s28931_s15 + $0xa08] sm:$0xf0] }
 0x862   : > { %12438 = vmatpush.bf16.msrb.mxu3 %v17044_v39  ;;  %12449 = vmatpush.bf16.msrb.mxu1 %v17324_v54  ;;  %v20004_v39 = vld [vmem:[%s28931_s15 + $0x5c4] sm:$0xf]  ;;  %v17656_v54 = vor.u32 %v19990_v47, %v17653_v59  ;;  %v18248_v47 = vor.u32 %v20141_v27, %v18247_v30 }
 0x863   : > { %v17712_v58 = vor.u32 %v20004_v39, %v17709_v38  ;;  %v17603_v39 = vld [vmem:[%s28931_s15 + $0x4e8] sm:$0xf]  ;;  %v19980_v38 = vld [vmem:[%s28931_s15 + $0x500] sm:$0xf0] }
 0x864   : > { %12410 = vmatpush.bf16.msra.mxu2 %v18440_v9  ;;  %12372 = vmatpush.bf16.msrb.mxu0 %v17740_v62  ;;  %v17968_v9 = vor.u32 %v20071_v28, %v17967_v22  ;;  %v17939_v62 = vld [vmem:[%s28931_s15 + $0x788] sm:$0xf]  ;;  %v20411_v24 = vpop.eup %20410  ;;  %v17604_v36 = vor.u32 %v19980_v38, %v17603_v39  ;;  %v12157_v28 = vadd.f32 %v28464_v13, %v28224_v42  ;;  %v18219_v42 = vld [vmem:[%s28931_s15 + $0x9b8] sm:$0xf]  ;;  %v20134_v13 = vld [vmem:[%s28931_s15 + $0x9d0] sm:$0xf0] }
 0x865   : > { %12574 = vst [vmem:[%s27952_s23 + $0x10] sm:$0xff] %v20411_v24  ;;  %v17940_v15 = vor.u32 %v20064_v18, %v17939_v62  ;;  %v18163_v38 = vld [vmem:[%s28931_s15 + $0x948] sm:$0xf]  ;;  %v20120_v24 = vld [vmem:[%s28931_s15 + $0x960] sm:$0xf0] }
 0x866   : > { %12439 = vmatpush.bf16.msrb.mxu3 %v17016_v12  ;;  %12450 = vmatpush.bf16.msrb.mxu1 %v17296_v11  ;;  %v19997_v12 = vld [vmem:[%s28931_s15 + $0x58c] sm:$0xf]  ;;  %v18717_v11 = vld [vmem:[%s28931_s15 + $0xdbc] sm:$0xf0] }
 0x867   : > { %v17684_v37 = vor.u32 %v19997_v12, %v17681_v50  ;;  %v18720_v0 = vor.u32 %v20256_v35, %v18717_v11  ;;  %v19973_v12 = vld [vmem:[%s28931_s15 + $0x4c8] sm:$0xf0]  ;;  %v28598_v50 = vld [vmem:[%s28932_s16] sm:$0x7f] }
 0x868   : > { %12411 = vmatpush.bf16.msra.mxu2 %v18412_v6  ;;  %12373 = vmatpush.bf16.msrb.mxu0 %v17712_v58  ;;  %v18304_v6 = vor.u32 %v20155_v56, %v18303_v5  ;;  %v20057_v58 = vld [vmem:[%s28931_s15 + $0x768] sm:$0xf0]  ;;  %v9495_v20 = vperm.slane %v28598_v50, 4  ;;  %v18633_v5 = vld [vmem:[%s28931_s15 + $0xd14] sm:$0xf0] }
 0x869   : > { %v17519_v56 = vld [vmem:[%s28931_s15 + $0x440] sm:$0xf]  ;;  %v19952_v11 = vld [vmem:[%s28931_s15 + $0x420] sm:$0xf0] }
 0x86a   : > { %12440 = vmatpush.bf16.msrb.mxu3 %v16988_v16  ;;  %12451 = vmatpush.bf16.msrb.mxu1 %v17268_v25  ;;  %v20158_v16 = vld [vmem:[%s28931_s15 + $0xa94] sm:$0xf]  ;;  %v17575_v25 = vld [vmem:[%s28931_s15 + $0x4b0] sm:$0xf]  ;;  %v18605_v35 = vld [vmem:[%s28931_s15 + $0xcdc] sm:$0xf0] }
 0x86b   : > { %v18328_v14 = vor.u32 %v20158_v16, %v18325_v51  ;;  %v17576_v43 = vor.u32 %v19973_v12, %v17575_v25  ;;  %v20214_v12 = vld [vmem:[%s28931_s15 + $0xc54] sm:$0xf] }
 0x86c   : > { %12412 = vmatpush.bf16.msra.mxu2 %v18384_v57  ;;  %12374 = vmatpush.bf16.msrb.mxu0 %v17684_v37  ;;  %v18689_v57 = vld [vmem:[%s28931_s15 + $0xd84] sm:$0xf0]  ;;  %v20242_v37 = vld [vmem:[%s28931_s15 + $0xd34] sm:$0xf] }
 0x86d   : > { %12441 = vmatmul.bf16.vlgmr.msrb.gmra.mxu3 %v26162_v32  ;;  %v17995_v32 = vld [vmem:[%s28931_s15 + $0x7f8] sm:$0xf] }
 0x86e   : > { %12485 = vmatpush.bf16.msra.mxu3 %v18080_v55  ;;  %v17996_v45 = vor.u32 %v20078_v23, %v17995_v32  ;;  %v17211_v55 = vld [vmem:[%s28931_s15 + $0x1d8] sm:$0xf]  ;;  %12452 = vmatpush.bf16.msrb.mxu1 %v17240_v34  ;;  %v20249_v32 = vld [vmem:[%s28931_s15 + $0xd6c] sm:$0xf]  ;;  %v18276_v23 = vor.u32 %v20148_v31, %v18275_v29  ;;  %v12169_v16 = vpop.f32.mrf.mxu0 }
 0x86f   : > { %v17212_v3 = vor.u32 %v19882_v49, %v17211_v55  ;;  %v18692_v22 = vor.u32 %v20249_v32, %v18689_v57  ;;  %v17547_v34 = vld [vmem:[%s28931_s15 + $0x478] sm:$0xf]  ;;  %v12170_v55 = vadd.f32 %v12169_v16, %v12157_v28  ;;  %v18135_v32 = vld [vmem:[%s28931_s15 + $0x910] sm:$0xf]  ;;  %v20211_v28 = vld [vmem:[%s28931_s15 + $0xc38] sm:$0xf0] }
 0x870   : > { %12413 = vmatpush.bf16.msra.mxu2 %v18356_v60  ;;  %v12234_v21 = vpop.f32.mrf.mxu3  ;;  %12375 = vmatpush.bf16.msrb.mxu0 %v17656_v54  ;;  %v18661_v60 = vld [vmem:[%s28931_s15 + $0xd4c] sm:$0xf0]  ;;  %v12247_v49 = vpop.f32.mrf.mxu1  ;;  %v18220_v54 = vor.u32 %v20134_v13, %v18219_v42  ;;  %v17827_v42 = vld [vmem:[%s28931_s15 + $0x6a8] sm:$0xf]  ;;  %v20036_v13 = vld [vmem:[%s28931_s15 + $0x6c0] sm:$0xf0] }
 0x871   : > { %v12235_v59 = vadd.f32 %v12234_v21, %v9495_v20  ;;  %v18664_v63 = vor.u32 %v20242_v37, %v18661_v60  ;;  %v19959_v21 = vld [vmem:[%s28931_s15 + $0x458] sm:$0xf0]  ;;  %v18549_v20 = vld [vmem:[%s28931_s15 + $0xc6c] sm:$0xf0]  ;;  %v18527_v37 = vld [vmem:[%s28931_s15 + $0xc20] sm:$0xf] }
 0x872   : > { %12486 = vmatpush.bf16.msra.mxu3 %v18052_v10  ;;  %v17632_v10 = vor.u32 %v19987_v53, %v17631_v46  ;;  %12453 = vmatpush.bf16.msrb.mxu1 %v17212_v3  ;;  %v17548_v46 = vor.u32 %v19966_v19, %v17547_v34  ;;  %v20235_v53 = vld [vmem:[%s28931_s15 + $0xcfc] sm:$0xf]  ;;  %v18528_v16 = vor.u32 %v20211_v28, %v18527_v37  ;;  %v18331_v37 = vld [vmem:[%s28931_s15 + $0xa98] sm:$0xf] }
 0x873   : > { %12376 = vmatmul.bf16.vlgmr.msrb.gmra.mxu0 %v26263_v8  ;;  %v28635_v26 = vadd.f32 %v12247_v49, %v12235_v59  ;;  %v18636_v3 = vor.u32 %v20235_v53, %v18633_v5  ;;  %v17828_v49 = vor.u32 %v20036_v13, %v17827_v42  ;;  %v20029_v53 = vld [vmem:[%s28931_s15 + $0x688] sm:$0xf0]  ;;  %v18471_v5 = vld [vmem:[%s28931_s15 + $0xbb0] sm:$0xf] }
 0x874   : > { %12414 = vmatpush.bf16.msra.mxu2 %v18328_v14  ;;  %12420 = vmatpush.bf16.msra.mxu0 %v18748_v48  ;;  %v18191_v14 = vld [vmem:[%s28931_s15 + $0x980] sm:$0xf]  ;;  %v17520_v48 = vor.u32 %v19959_v21, %v17519_v56  ;;  %v20197_v56 = vld [vmem:[%s28931_s15 + $0xbc8] sm:$0xf0] }
 0x875   : > { %12454 = vmatmul.bf16.vlgmr.msrb.gmra.mxu1 %v26164_v4  ;;  %v20050_v4 = vld [vmem:[%s28931_s15 + $0x730] sm:$0xf0] }
 0x876   : > { %12487 = vmatpush.bf16.msra.mxu3 %v18024_v40  ;;  %v17911_v40 = vld [vmem:[%s28931_s15 + $0x750] sm:$0xf]  ;;  %12498 = vmatpush.bf16.msra.mxu1 %v18304_v6  ;;  %v28661_v18 = vpop.f32.mrf.mxu2  ;;  %v17491_v6 = vld [vmem:[%s28931_s15 + $0x408] sm:$0xf]  ;;  %v12171_v39 = vpop.f32.mrf.mxu0 }
 0x877   : > { %12415 = vmatmul.bf16.vlgmr.msra.gmra.mxu2 %v26748_v17  ;;  %v17912_v33 = vor.u32 %v20057_v58, %v17911_v40  ;;  %v17463_v40 = vld [vmem:[%s28931_s15 + $0x3d0] sm:$0xf]  ;;  %v19945_v58 = vld [vmem:[%s28931_s15 + $0x3e8] sm:$0xf0] }
 0x878   : > { %12459 = vmatpush.bf16.msrb.mxu2 %v17632_v10  ;;  %v12236_v41 = vpop.f32.mrf.mxu3  ;;  %12421 = vmatpush.bf16.msra.mxu0 %v18720_v0  ;;  %v20228_v10 = vld [vmem:[%s28931_s15 + $0xcc4] sm:$0xf]  ;;  %v12249_v29 = vpop.f32.mrf.mxu1  ;;  %v20221_v0 = vld [vmem:[%s28931_s15 + $0xc8c] sm:$0xf]  ;;  %v17464_v25 = vor.u32 %v19945_v58, %v17463_v40  ;;  %v18387_v40 = vld [vmem:[%s28931_s15 + $0xb08] sm:$0xf] }
 0x879   : > { %v18608_v31 = vor.u32 %v20228_v10, %v18605_v35  ;;  %v19938_v41 = vld [vmem:[%s28931_s15 + $0x3b0] sm:$0xf0]  ;;  %v20176_v58 = vld [vmem:[%s28931_s15 + $0xb20] sm:$0xf0] }
 0x87a   : > { %12488 = vmatpush.bf16.msra.mxu3 %v17996_v45  ;;  %v17883_v45 = vld [vmem:[%s28931_s15 + $0x718] sm:$0xf]  ;;  %12499 = vmatpush.bf16.msra.mxu1 %v18276_v23  ;;  %v20113_v23 = vld [vmem:[%s28931_s15 + $0x928] sm:$0xf0] }
 0x87b   : > { %v17884_v51 = vor.u32 %v20050_v4, %v17883_v45  ;;  %v18136_v30 = vor.u32 %v20113_v23, %v18135_v32  ;;  %v17855_v45 = vld [vmem:[%s28931_s15 + $0x6e0] sm:$0xf]  ;;  %v20043_v4 = vld [vmem:[%s28931_s15 + $0x6f8] sm:$0xf0] }
 0x87c   : > { %12460 = vmatpush.bf16.msrb.mxu2 %v17604_v36  ;;  %12422 = vmatpush.bf16.msra.mxu0 %v18692_v22  ;;  %v18577_v36 = vld [vmem:[%s28931_s15 + $0xca4] sm:$0xf0]  ;;  %v18107_v22 = vld [vmem:[%s28931_s15 + $0x8d8] sm:$0xf]  ;;  %v17856_v59 = vor.u32 %v20043_v4, %v17855_v45  ;;  %v19994_v4 = vld [vmem:[%s28931_s15 + $0x570] sm:$0xf0] }
 0x87d   : > { %v18580_v57 = vor.u32 %v20221_v0, %v18577_v36  ;;  %v17715_v0 = vld [vmem:[%s28931_s15 + $0x5c8] sm:$0xf] }
 0x87e   : > { %12489 = vmatpush.bf16.msra.mxu3 %v17968_v9  ;;  %12500 = vmatpush.bf16.msra.mxu1 %v18248_v47  ;;  %v28641_v9 = vadd.f32 %v28346_v7, %v12170_v55  ;;  %v20127_v7 = vld [vmem:[%s28931_s15 + $0x998] sm:$0xf0]  ;;  %v12210_v27 = vpop.f32.mrf.mxu2  ;;  %v18552_v47 = vor.u32 %v20214_v12, %v18549_v20  ;;  %v20204_v55 = vld [vmem:[%s28931_s15 + $0xc00] sm:$0xf0]  ;;  %v17687_v12 = vld [vmem:[%s28931_s15 + $0x590] sm:$0xf] }
 0x87f   : > { %v18192_v62 = vor.u32 %v20127_v7, %v18191_v14  ;;  %v18472_v7 = vor.u32 %v20197_v56, %v18471_v5  ;;  %v20001_v20 = vld [vmem:[%s28931_s15 + $0x5a8] sm:$0xf0] }
 0x880   : > { %12461 = vmatpush.bf16.msrb.mxu2 %v17576_v43  ;;  %12423 = vmatpush.bf16.msra.mxu0 %v18664_v63  ;;  %v20106_v43 = vld [vmem:[%s28931_s15 + $0x8f0] sm:$0xf0]  ;;  %v20169_v27 = vld [vmem:[%s28931_s15 + $0xae8] sm:$0xf0] }
 0x881   : > { %v18108_v19 = vor.u32 %v20106_v43, %v18107_v22  ;;  %v17659_v22 = vld [vmem:[%s28931_s15 + $0x558] sm:$0xf] }
 0x882   : > { %12490 = vmatpush.bf16.msra.mxu3 %v17940_v15  ;;  %12501 = vmatpush.bf16.msra.mxu1 %v18220_v54  ;;  %v17492_v15 = vor.u32 %v19952_v11, %v17491_v6  ;;  %v12196_v54 = vadd.f32 %v28432_v1, %v28641_v9  ;;  %v17771_v1 = vld [vmem:[%s28931_s15 + $0x638] sm:$0xf]  ;;  %v20015_v11 = vld [vmem:[%s28931_s15 + $0x618] sm:$0xf0] }
 0x884   : > { %12462 = vmatpush.bf16.msrb.mxu2 %v17548_v46  ;;  %12424 = vmatpush.bf16.msra.mxu0 %v18636_v3  ;;  %v17799_v46 = vld [vmem:[%s28931_s15 + $0x670] sm:$0xf]  ;;  %v12209_v9 = vadd.f32 %v28661_v18, %v12196_v54  ;;  %v18443_v3 = vld [vmem:[%s28931_s15 + $0xb78] sm:$0xf]  ;;  %v17743_v18 = vld [vmem:[%s28931_s15 + $0x600] sm:$0xf] }
 0x885   : > { %v17800_v14 = vor.u32 %v20029_v53, %v17799_v46  ;;  %v18695_v46 = vld [vmem:[%s28931_s15 + $0xd70] sm:$0xf]  ;;  %v20253_v53 = vld [vmem:[%s28931_s15 + $0xd88] sm:$0xf0]  ;;  %v9496_v54 = vperm.slane %v28598_v50, 5 }
 0x886   : > { %12491 = vmatpush.bf16.msra.mxu3 %v17912_v33  ;;  %12502 = vmatpush.bf16.msra.mxu1 %v18192_v62  ;;  %v17435_v33 = vld [vmem:[%s28931_s15 + $0x398] sm:$0xf]  ;;  %v18696_v5 = vor.u32 %v20253_v53, %v18695_v46 }
 0x887   : > { %v17436_v60 = vor.u32 %v19938_v41, %v17435_v33  ;;  %v17688_v41 = vor.u32 %v20001_v20, %v17687_v12 }
 0x888   : > { %12463 = vmatpush.bf16.msrb.mxu2 %v17520_v48  ;;  %12425 = vmatpush.bf16.msra.mxu0 %v18608_v31  ;;  %v17744_v31 = vor.u32 %v20015_v11, %v17743_v18 }
 0x88a   : > { %12492 = vmatpush.bf16.msra.mxu3 %v17884_v51  ;;  %v18499_v51 = vld [vmem:[%s28931_s15 + $0xbe8] sm:$0xf] }
 0x88b   : > { %v18500_v63 = vor.u32 %v20204_v55, %v18499_v51  ;;  %v18723_v51 = vld [vmem:[%s28931_s15 + $0xda8] sm:$0xf]  ;;  %v20260_v55 = vld [vmem:[%s28931_s15 + $0xdc0] sm:$0xf0] }
 0x88c   : > { %12464 = vmatpush.bf16.msrb.mxu2 %v17492_v15  ;;  %12426 = vmatpush.bf16.msra.mxu0 %v18580_v57 }
 0x88d   : > { %12493 = vmatmul.bf16.vlgmr.msra.gmra.mxu3 %v26410_v52  ;;  %v18164_v52 = vor.u32 %v20120_v24, %v18163_v38  ;;  %v18415_v38 = vld [vmem:[%s28931_s15 + $0xb40] sm:$0xf]  ;;  %v20183_v24 = vld [vmem:[%s28931_s15 + $0xb58] sm:$0xf0] }
 0x88e   : > { %v12221_v48 = vpop.f32.mrf.mxu0  ;;  %v18416_v15 = vor.u32 %v20183_v24, %v18415_v38  ;;  %v18583_v24 = vld [vmem:[%s28931_s15 + $0xc90] sm:$0xf] }
 0x88f   : > { %12503 = vmatpush.bf16.msra.mxu1 %v18164_v52  ;;  %v12222_v10 = vadd.f32 %v12221_v48, %v12209_v9  ;;  %v20008_v52 = vld [vmem:[%s28931_s15 + $0x5e0] sm:$0xf0] }
 0x890   : > { %12465 = vmatpush.bf16.msrb.mxu2 %v17464_v25  ;;  %v28727_v34 = vpop.f32.mrf.mxu3  ;;  %12427 = vmatpush.bf16.msra.mxu0 %v18552_v47  ;;  %v28771_v62 = vpop.f32.mrf.mxu1  ;;  %v17716_v57 = vor.u32 %v20008_v52, %v17715_v0  ;;  %v18388_v25 = vor.u32 %v20176_v58, %v18387_v40  ;;  %v20162_v47 = vld [vmem:[%s28931_s15 + $0xab0] sm:$0xf0] }
 0x891   : > { %v12540_v39 = vsub.f32 0.0, %v12222_v10 }
 0x893   : > { %12504 = vmatpush.bf16.msra.mxu1 %v18136_v30  ;;  %12428 = vmatmul.bf16.vlgmr.msra.gmra.mxu0 %v26912_v61  ;;  %v12550_v29 = vmul.f32 1.442695, %v12540_v39  ;;  %v18359_v30 = vld [vmem:[%s28931_s15 + $0xad0] sm:$0xf] }
 0x894   : > { %12466 = vmatpush.bf16.msrb.mxu2 %v17436_v60  ;;  %12472 = vmatpush.bf16.msrb.mxu0 %v17856_v59  ;;  %v18360_v45 = vor.u32 %v20169_v27, %v18359_v30  ;;  %v18751_v60 = vld [vmem:[%s28931_s15 + $0xde0] sm:$0xf]  ;;  %v17660_v59 = vor.u32 %v19994_v4, %v17659_v22 }
 0x895   : > { %20412 = vpow2.f32 %v12550_v29 }
 0x896   : > { %v12223_v32 = vpop.f32.mrf.mxu0 }
 0x897   : > { %12505 = vmatpush.bf16.msra.mxu1 %v18108_v19  ;;  %12467 = vmatmul.bf16.vlgmr.msrb.gmra.mxu2 %v26265_v2  ;;  %v20022_v2 = vld [vmem:[%s28931_s15 + $0x650] sm:$0xf0]  ;;  %v12260_v36 = vpop.f32.mrf.mxu2  ;;  %v20267_v19 = vld [vmem:[%s28931_s15 + $0xdf8] sm:$0xf0] }
 0x898   : > { %12511 = vmatpush.bf16.msra.mxu2 %v18528_v16  ;;  %12473 = vmatpush.bf16.msrb.mxu0 %v17828_v49  ;;  %v12288_v21 = vpop.f32.mrf.mxu3  ;;  %v17772_v35 = vor.u32 %v20022_v2, %v17771_v1  ;;  %v12301_v23 = vpop.f32.mrf.mxu1  ;;  %v18332_v16 = vor.u32 %v20162_v47, %v18331_v37  ;;  %v18752_v42 = vor.u32 %v20267_v19, %v18751_v60 }
 0x899   : > { %v18667_v21 = vld [vmem:[%s28931_s15 + $0xd38] sm:$0xf] }
 0x89a   : > { %12506 = vmatmul.bf16.vlgmr.msra.gmra.mxu1 %v26589_v44  ;;  %v20190_v44 = vld [vmem:[%s28931_s15 + $0xb90] sm:$0xf0] }
 0x89b   : > { %v18444_v6 = vor.u32 %v20190_v44, %v18443_v3  ;;  %v20413_v33 = vpop.eup %20412  ;;  %v18639_v3 = vld [vmem:[%s28931_s15 + $0xd00] sm:$0xf]  ;;  %v20239_v44 = vld [vmem:[%s28931_s15 + $0xd18] sm:$0xf0] }
 0x89c   : > { %12512 = vmatpush.bf16.msra.mxu2 %v18500_v63  ;;  %12474 = vmatpush.bf16.msrb.mxu0 %v17800_v14  ;;  %v12561_v43 = vadd.f32 1.0, %v20413_v33  ;;  %v18724_v63 = vor.u32 %v20260_v55, %v18723_v51  ;;  %v20246_v14 = vld [vmem:[%s28931_s15 + $0xd50] sm:$0xf0] }
 0x89d   : > { %v18668_v2 = vor.u32 %v20246_v14, %v18667_v21 }
 0x89e   : > { %20414 = vrcp.f32 %v12561_v43 }
 0x89f   : > { %v12262_v28 = vpop.f32.mrf.mxu2 }
 0x8a0   : > { %12513 = vmatpush.bf16.msra.mxu2 %v18472_v7  ;;  %12475 = vmatpush.bf16.msrb.mxu0 %v17772_v35  ;;  %v12261_v7 = vadd.f32 %v12260_v36, %v28635_v26  ;;  %v18640_v35 = vor.u32 %v20239_v44, %v18639_v3  ;;  %v18611_v26 = vld [vmem:[%s28931_s15 + $0xcc8] sm:$0xf] }
 0x8a4   : > { %12514 = vmatpush.bf16.msra.mxu2 %v18444_v6  ;;  %12476 = vmatpush.bf16.msrb.mxu0 %v17744_v31  ;;  %v20415_v49 = vpop.eup %20414  ;;  %v20232_v6 = vld [vmem:[%s28931_s15 + $0xce0] sm:$0xf0]  ;;  %v18555_v31 = vld [vmem:[%s28931_s15 + $0xc58] sm:$0xf] }
 0x8a5   : > { %12575 = vst [vmem:[%s27952_s23 + $0x18] sm:$0xff] %v20415_v49  ;;  %v18612_v39 = vor.u32 %v20232_v6, %v18611_v26 }
 0x8a8   : > { %12515 = vmatpush.bf16.msra.mxu2 %v18416_v15  ;;  %12477 = vmatpush.bf16.msrb.mxu0 %v17716_v57  ;;  %v20218_v15 = vld [vmem:[%s28931_s15 + $0xc70] sm:$0xf0] }
 0x8a9   : > { %v18556_v52 = vor.u32 %v20218_v15, %v18555_v31 }
 0x8ac   : > { %12516 = vmatpush.bf16.msra.mxu2 %v18388_v25  ;;  %12478 = vmatpush.bf16.msrb.mxu0 %v17688_v41 }
 0x8b0   : > { %12517 = vmatpush.bf16.msra.mxu2 %v18360_v45  ;;  %v12338_v13 = vpop.f32.mrf.mxu3  ;;  %12479 = vmatpush.bf16.msrb.mxu0 %v17660_v59 }
 0x8b1   : > { %v12339_v1 = vadd.f32 %v12338_v13, %v9496_v54 }
 0x8b2   : > { %v12351_v9 = vpop.f32.mrf.mxu1 }
 0x8b3   : > { %12480 = vmatmul.bf16.vlgmr.msrb.gmra.mxu0 %v26263_v8  ;;  %v12273_v8 = vpop.f32.mrf.mxu0  ;;  %v12352_v48 = vadd.f32 %v12351_v9, %v12339_v1 }
 0x8b4   : > { %12518 = vmatpush.bf16.msra.mxu2 %v18332_v16  ;;  %12524 = vmatpush.bf16.msra.mxu0 %v18752_v42 }
 0x8b7   : > { %12519 = vmatmul.bf16.vlgmr.msra.gmra.mxu2 %v26748_v17  ;;  %v12274_v17 = vadd.f32 %v12273_v8, %v12261_v7 }
 0x8b8   : > { %12525 = vmatpush.bf16.msra.mxu0 %v18724_v63  ;;  %v12340_v56 = vpop.f32.mrf.mxu3 }
 0x8b9   : > { %v12287_v10 = vadd.f32 %v28727_v34, %v12274_v17  ;;  %v20225_v34 = vld [vmem:[%s28931_s15 + $0xca8] sm:$0xf0] }
 0x8ba   : > { %v12312_v18 = vpop.f32.mrf.mxu2  ;;  %v12353_v38 = vpop.f32.mrf.mxu1  ;;  %v18584_v29 = vor.u32 %v20225_v34, %v18583_v24 }
 0x8bb   : > { %v12275_v11 = vpop.f32.mrf.mxu0  ;;  %v12300_v40 = vadd.f32 %v28771_v62, %v12287_v10  ;;  %v9497_v62 = vperm.slane %v28598_v50, 6 }
 0x8bc   : > { %12526 = vmatpush.bf16.msra.mxu0 %v18696_v5 }
 0x8bd   : > { %v12313_v32 = vadd.f32 %v12312_v18, %v12300_v40 }
 0x8c0   : > { %12527 = vmatpush.bf16.msra.mxu0 %v18668_v2 }
 0x8c2   : > { %v12314_v0 = vpop.f32.mrf.mxu2 }
 0x8c4   : > { %12528 = vmatpush.bf16.msra.mxu0 %v18640_v35 }
 0x8c8   : > { %12529 = vmatpush.bf16.msra.mxu0 %v18612_v39 }
 0x8cc   : > { %12530 = vmatpush.bf16.msra.mxu0 %v18584_v29 }
 0x8d0   : > { %v12390_v36 = vpop.f32.mrf.mxu3  ;;  %12531 = vmatpush.bf16.msra.mxu0 %v18556_v52  ;;  %v12325_v23 = vpop.f32.mrf.mxu0 }
 0x8d1   : > { %v12326_v57 = vadd.f32 %v12325_v23, %v12313_v32 }
 0x8d2   : > { %v12403_v25 = vpop.f32.mrf.mxu1 }
 0x8d3   : > { %12532 = vmatmul.bf16.vlgmr.msra.gmra.mxu0 %v26912_v61  ;;  %v12541_v12 = vsub.f32 0.0, %v12326_v57 }
 0x8d5   : > { %v12552_v20 = vmul.f32 1.442695, %v12541_v12 }
 0x8d7   : > { %20416 = vpow2.f32 %v12552_v20 }
 0x8d8   : > { %v12392_v58 = vpop.f32.mrf.mxu3  ;;  %v12327_v27 = vpop.f32.mrf.mxu0 }
 0x8da   : > { %v12364_v30 = vpop.f32.mrf.mxu2  ;;  %v12405_v33 = vpop.f32.mrf.mxu1 }
 0x8db   : > { %v12365_v37 = vadd.f32 %v12364_v30, %v12352_v48 }
 0x8dd   : > { %v20417_v41 = vpop.eup %20416 }
 0x8de   : > { %v12562_v22 = vadd.f32 1.0, %v20417_v41 }
 0x8e0   : > { %20418 = vrcp.f32 %v12562_v22 }
 0x8e2   : > { %v12366_v43 = vpop.f32.mrf.mxu2 }
 0x8e6   : > { %v20419_v61 = vpop.eup %20418 }
 0x8e7   : > { %12576 = vst [vmem:[%s27952_s23 + $0x20] sm:$0xff] %v20419_v61 }
 0x8f0   : > { %v12442_v45 = vpop.f32.mrf.mxu3  ;;  %v12377_v47 = vpop.f32.mrf.mxu0 }
 0x8f1   : > { %v12443_v28 = vadd.f32 %v12442_v45, %v9497_v62  ;;  %v12378_v60 = vadd.f32 %v12377_v47, %v12365_v37 }
 0x8f2   : > { %v12455_v19 = vpop.f32.mrf.mxu1 }
 0x8f3   : > { %v12456_v59 = vadd.f32 %v12455_v19, %v12443_v28  ;;  %v12391_v16 = vadd.f32 %v12390_v36, %v12378_v60 }
 0x8f5   : > { %v12404_v63 = vadd.f32 %v12403_v25, %v12391_v16 }
 0x8f8   : > { %v12444_v4 = vpop.f32.mrf.mxu3  ;;  %v12379_v13 = vpop.f32.mrf.mxu0 }
 0x8fa   : > { %v12416_v42 = vpop.f32.mrf.mxu2  ;;  %v12457_v51 = vpop.f32.mrf.mxu1 }
 0x8fb   : > { %v12417_v53 = vadd.f32 %v12416_v42, %v12404_v63 }
 0x902   : > { %v12418_v55 = vpop.f32.mrf.mxu2 }
 0x910   : > { %v12494_v49 = vpop.f32.mrf.mxu3  ;;  %v12429_v54 = vpop.f32.mrf.mxu0 }
 0x911   : > { %v12430_v5 = vadd.f32 %v12429_v54, %v12417_v53 }
 0x913   : > { %v12542_v56 = vsub.f32 0.0, %v12430_v5 }
 0x915   : > { %v12554_v21 = vmul.f32 1.442695, %v12542_v56 }
 0x917   : > { %v12507_v50 = vpop.f32.mrf.mxu1  ;;  %20420 = vpow2.f32 %v12554_v21 }
 0x918   : > { %v12496_v46 = vpop.f32.mrf.mxu3  ;;  %v12431_v7 = vpop.f32.mrf.mxu0 }
 0x91a   : > { %v12468_v14 = vpop.f32.mrf.mxu2 }
 0x91b   : > { %v12469_v10 = vadd.f32 %v12468_v14, %v12456_v59 }
 0x91d   : > { %v20421_v8 = vpop.eup %20420 }
 0x91e   : > { %v12563_v2 = vadd.f32 1.0, %v20421_v8 }
 0x91f   : > { %v12509_v1 = vpop.f32.mrf.mxu1 }
 0x920   : > { %20422 = vrcp.f32 %v12563_v2 }
 0x922   : > { %v12470_v17 = vpop.f32.mrf.mxu2 }
 0x926   : > { %v20423_v9 = vpop.eup %20422 }
 0x927   : > { %12577 = vst [vmem:[%s27952_s23 + $0x28] sm:$0xff] %v20423_v9 }
 0x930   : > { %v12481_v3 = vpop.f32.mrf.mxu0 }
 0x931   : > { %v12482_v26 = vadd.f32 %v12481_v3, %v12469_v10 }
 0x933   : > { %v12495_v6 = vadd.f32 %v12494_v49, %v12482_v26 }
 0x935   : > { %v12508_v18 = vadd.f32 %v12507_v50, %v12495_v6 }
 0x938   : > { %v12483_v48 = vpop.f32.mrf.mxu0 }
 0x93a   : > { %v12520_v44 = vpop.f32.mrf.mxu2 }
 0x93b   : > { %v12521_v11 = vadd.f32 %v12520_v44, %v12508_v18 }
 0x942   : > { %v12522_v35 = vpop.f32.mrf.mxu2 }
 0x950   : > { %v12533_v39 = vpop.f32.mrf.mxu0 }
 0x951   : > { %v12534_v38 = vadd.f32 %v12533_v39, %v12521_v11 }
 0x953   : > { %v12543_v24 = vsub.f32 0.0, %v12534_v38 }
 0x955   : > { %v12556_v34 = vmul.f32 1.442695, %v12543_v24 }
 0x957   : > { %20424 = vpow2.f32 %v12556_v34 }
 0x958   : > { %v12535_v29 = vpop.f32.mrf.mxu0 }
 0x95d   : > { %v20425_v31 = vpop.eup %20424 }
 0x95e   : > { %v12564_v15 = vadd.f32 1.0, %v20425_v31 }
 0x960   : > { %20426 = vrcp.f32 %v12564_v15 }
 0x966   : > { %v20427_v0 = vpop.eup %20426 }
 0x967   : > { %12578 = vst.msk [vmem:[%s27952_s23 + $0x30] sm:$0xff] %vm2978_vm0, %v20427_v0 }
 0x968   : > { %20551 = shalt.err (!%p20548_p8)
}
 0x969   : > { %20283 = dma.vmem_to_hbm [thread:$0]  (%p20729_p5), %s12594_s19, 896, %s12596_s0, %s12580_s10  }
 0x96a PF: > { %s28961_s23 = sld [smem:[#allocation14_spill]] }
 0x96b   : > { %s28962_s24 = sld [smem:[#allocation12_spill]] }
 0x970   : > { %p20305_p9 = scmp.ge.s32.totalorder %s28961_s23, 2 }
 0x971   : > { %s12607_s6 = sand.u32 1, %s28962_s24  }
 0x972   : > { %p20296_p10 = pnand %p20305_p9, %p20733_p6  ;;  %s12608_s20 = scalar_lea.sflag [#allocation4], %s12607_s6 }
 0x974   : > { %p20297_p11 = pneg %p20296_p10 }
 0x976   : > { %20577 = dma.done.wait (%p20297_p11), %s12608_s20, 896  }
 0x977   : > { %20579 = vsyncadd (%p20297_p11), %s12608_s20, 4294966400  ;;  %s28964_s27 = sld [smem:[#allocation15_spill]]  ;;  %s28967_s24 = smov %s20586_s25 }
 0x978   : > { %s28965_s28 = sld [smem:[#allocation13_spill]] }
 0x979   : > { %s28966_s26 = sld [smem:[#allocation16_spill]] }
 0x97d   : > { %p29_p12 = scmp.ge.s32.totalorder %s28964_s27, 6  }
 0x97e   : > { %s28968_s25 = smov %s28965_s28 }
 0x97f   :  { %31 = sbr.rel (!%p29_p12) target bundleno = 10 (0xa), region = 136 }
 0x984   :  { %12614 = vsyncpa [#allocation3], 1 }
 0x985   :  { %12616 = vsyncpa [#allocation3 + $0x1], 1 }
 0x986   :  { %12617 = vsyncpa [#allocation6], 1 }
 0x987   :  { %12618 = vsyncpa [#allocation4], 1 }
 0x988   :  { %12620 = vsyncpa [#allocation4 + $0x1], 1 }

</bundles_post_ra>
